<compile_context>
chip_gen: v7x
topology: tpu7x:2x2x1
jax: 0.10.0
libtpu: 0.0.40
codegen_flags: <defaults>
</compile_context>

<pallas_src>
import jax
import jax.numpy as jnp
import numpy as np
from jax.experimental import pallas as pl
from jax.experimental.pallas import tpu as pltpu

HIDDEN = 8
NUM_LAYERS = 2


def _vpu_matvec(w_b, h_b):
    """(4H, B) <- sum_j w[:, j] * h[j, :].

    w_b, h_b: (H, 4H, B).  Leading-axis reduce == plain vector adds across
    vreg groups (pure VPU), keeping the MXU round-trip latency off the
    per-timestep dependent chain.
    """
    return jnp.sum(w_b * h_b, axis=0)


def lstm_kernel(x_ref, wih0_ref, b0_ref, whh0_ref,
                wih1_ref, whh1_ref, b1_ref,
                wlin_ref, blin_ref,
                y_ref, h_out_ref, c_out_ref):
    """2-layer LSTM over the full sequence + final linear head.

    Layout (everything fits in VMEM, single gridless invocation):
      x     : (T, B)    time-major, batch on lanes
      wih0  : (4H, 1)   layer-0 input weight column, gate order (i, f, o, g)
      b0    : (4H, 1)   fused b_ih_l0 + b_hh_l0
      whh0  : (H, 4H)   row j = column j of W_hh_l0   (same for wih1/whh1)
      b1    : (4H, 1)   fused b_ih_l1 + b_hh_l1
      wlin  : (H, 1), blin: (1, 1)
    State h/c is carried as (H, B) — hidden on sublanes, batch on lanes.
    """
    x = x_ref[...]
    wih0 = wih0_ref[...]
    b0 = b0_ref[...]
    whh0 = whh0_ref[...]
    wih1 = wih1_ref[...]
    whh1 = whh1_ref[...]
    b1 = b1_ref[...]
    wlin = wlin_ref[...]
    blin = blin_ref[...]

    T, B = x.shape
    H = whh0.shape[0]
    G = 4 * H
    f32 = jnp.float32

    # ---- hoisted out of the recurrence ---------------------------------
    # Layer-0 input projection + bias for ALL timesteps (input_size == 1 ->
    # outer product).  Leading-T layout: xw0[t] is a free tile select.
    xw0 = x[:, None, :] * wih0[None, :, :] + b0[None, :, :]          # (T, 4H, B)

    # Weight columns pre-broadcast across the lane (batch) axis ONCE.
    # (JAX does not CSE broadcast_in_dim — never leave these inside the loop.)
    whh0_b = jnp.broadcast_to(whh0[:, :, None], (H, G, B))
    wih1_b = jnp.broadcast_to(wih1[:, :, None], (H, G, B))
    whh1_b = jnp.broadcast_to(whh1[:, :, None], (H, G, B))
    b1_b = jnp.broadcast_to(b1, (G, B))

    def gate_update(gates, c):
        # Gate blocks on sublanes in order (i, f, o, g); H == 8 keeps every
        # slice vreg-aligned.  sigmoid over the first 3H, tanh over the last
        # H only: no wasted EUP work.
        sig = jax.nn.sigmoid(gates[0:3 * H, :])                      # (3H, B)
        g = jnp.tanh(gates[3 * H:4 * H, :])                          # (H, B)
        i = sig[0:H, :]
        f = sig[H:2 * H, :]
        o = sig[2 * H:3 * H, :]
        c_new = f * c + i * g
        h_new = o * jnp.tanh(c_new)
        return h_new, c_new

    # ---- recurrence: both layers advance together (wavefront) ----------
    # Layer-1 cell t only needs the fresh h0_t, so the dependent chain is
    # ~T+1 cells; with the full static unroll (T is small/compile-time) the
    # scheduler sees that layer-0 cell t+1 and layer-1 cell t are independent.
    zeros_hb = jnp.zeros((H, B), f32)
    h0, c0, h1, c1 = zeros_hb, zeros_hb, zeros_hb, zeros_hb
    h0_b = jnp.zeros((H, G, B), f32)   # h rows pre-broadcast across sublanes
    h1_b = jnp.zeros((H, G, B), f32)

    # TODO(synk): for production-sized T/B, switch to lax.fori_loop(unroll=4..8)
    # carrying (h0,c0,h1,c1), add a real grid (time tiled "arbitrary", batch
    # tiled "parallel" — also shards across v7x's 2 TensorCores), and budget
    # the hoisted xw0 against v7x's 64 MiB VMEM / v5e's 16 MiB scoped default
    # via pltpu.CompilerParams(vmem_limit_bytes=...).  The stride-0
    # sublane-broadcast-load variant of the h broadcast (h kept in a VMEM
    # scratch) would move the per-step broadcasts onto the load slots.
    for t in range(T):
        # layer 0, cell t  — VPU outer-product recurrence
        g0 = xw0[t] + _vpu_matvec(whh0_b, h0_b)
        h0, c0 = gate_update(g0, c0)
        h0_b = jnp.broadcast_to(h0[:, None, :], (H, G, B))
        # layer 1, cell t  — input projection of fresh h0 + recurrence
        g1 = b1_b + _vpu_matvec(wih1_b, h0_b) + _vpu_matvec(whh1_b, h1_b)
        h1, c1 = gate_update(g1, c1)
        h1_b = jnp.broadcast_to(h1[:, None, :], (H, G, B))

    # ---- linear head on the last top-layer output ------------------------
    # VPU mul + one sublane reduction (epilogue only) — no padded MXU call.
    y_ref[...] = jnp.sum(h1 * wlin, axis=0, keepdims=True) + blin    # (1, B)
    h_out_ref[0] = h0
    h_out_ref[1] = h1
    c_out_ref[0] = c0
    c_out_ref[1] = c1


def _gate_perm(hidden):
    """Row permutation taking PyTorch gate order (i, f, g, o) -> (i, f, o, g)."""
    h = hidden
    return np.concatenate([np.arange(0, h), np.arange(h, 2 * h),
                           np.arange(3 * h, 4 * h), np.arange(2 * h, 3 * h)])


def init_params(key, hidden=HIDDEN):
    """Deterministic init matching nn.LSTM / nn.Linear parameter shapes."""
    k = 1.0 / np.sqrt(hidden)
    keys = jax.random.split(key, 10)
    u = lambda kk, shape: jax.random.uniform(kk, shape, jnp.float32, -k, k)
    params = {
        "w_ih_l0": u(keys[0], (4 * hidden, 1)),
        "w_hh_l0": u(keys[1], (4 * hidden, hidden)),
        "b_ih_l0": u(keys[2], (4 * hidden,)),
        "b_hh_l0": u(keys[3], (4 * hidden,)),
        "w_ih_l1": u(keys[4], (4 * hidden, hidden)),
        "w_hh_l1": u(keys[5], (4 * hidden, hidden)),
        "b_ih_l1": u(keys[6], (4 * hidden,)),
        "b_hh_l1": u(keys[7], (4 * hidden,)),
        "w_lin": u(keys[8], (1, hidden)),
        "b_lin": u(keys[9], (1,)),
    }
    return params


def lstm_stock_price_model(x, params):
    """Equivalent of LSTMStockPriceModel.forward(x, state=None)."""
    B, T, in_feat = x.shape
    assert in_feat == 1
    H = HIDDEN
    perm = _gate_perm(H)

    # Wrapper-side layout plumbing (cheap XLA ops, outside the kernel):
    #   batch -> lanes, gates -> sublanes, gate blocks reordered to (i,f,o,g),
    #   biases fused, recurrent weights stored column-major as (H, 4H).
    x_tb = x[..., 0].T.astype(jnp.float32)                                    # (T, B)
    wih0 = params["w_ih_l0"][perm].astype(jnp.float32)                        # (4H, 1)
    b0 = (params["b_ih_l0"] + params["b_hh_l0"])[perm].reshape(4 * H, 1).astype(jnp.float32)
    whh0 = params["w_hh_l0"][perm].T.astype(jnp.float32)                      # (H, 4H)
    wih1 = params["w_ih_l1"][perm].T.astype(jnp.float32)                      # (H, 4H)
    whh1 = params["w_hh_l1"][perm].T.astype(jnp.float32)                      # (H, 4H)
    b1 = (params["b_ih_l1"] + params["b_hh_l1"])[perm].reshape(4 * H, 1).astype(jnp.float32)
    wlin = params["w_lin"].T.astype(jnp.float32)                              # (H, 1)
    blin = params["b_lin"].reshape(1, 1).astype(jnp.float32)

    vmem = pl.BlockSpec(memory_space=pltpu.MemorySpace.VMEM)
    y_k, h_k, c_k = pl.pallas_call(
        lstm_kernel,
        out_shape=(
            jax.ShapeDtypeStruct((1, B), jnp.float32),                # linear(y[:, -1, :]).T
            jax.ShapeDtypeStruct((NUM_LAYERS, H, B), jnp.float32),    # h (H, B per layer)
            jax.ShapeDtypeStruct((NUM_LAYERS, H, B), jnp.float32),    # c
        ),
        in_specs=[vmem] * 9,
        out_specs=(vmem, vmem, vmem),
    )(x_tb, wih0, b0, whh0, wih1, whh1, b1, wlin, blin)

    # Back to the PyTorch layouts: y (B, 1), h/c (num_layers, B, H).
    y = y_k.T
    h = jnp.swapaxes(h_k, 1, 2)
    c = jnp.swapaxes(c_k, 1, 2)
    return y, (h, c)


def reference_forward(x, params):
    """Pure-JAX reference mirroring torch.nn.LSTM semantics (gate order i,f,g,o)."""
    B, T, _ = x.shape
    H = HIDDEN

    def cell(x_in, h, c, w_ih, w_hh, b_ih, b_hh):
        gates = x_in @ w_ih.T + h @ w_hh.T + b_ih + b_hh
        i = jax.nn.sigmoid(gates[:, 0:H])
        f = jax.nn.sigmoid(gates[:, H:2 * H])
        g = jnp.tanh(gates[:, 2 * H:3 * H])
        o = jax.nn.sigmoid(gates[:, 3 * H:4 * H])
        c = f * c + i * g
        h = o * jnp.tanh(c)
        return h, c

    h0 = c0 = h1 = c1 = jnp.zeros((B, H), jnp.float32)
    for t in range(T):
        x_t = x[:, t, :]
        h0, c0 = cell(x_t, h0, c0, params["w_ih_l0"], params["w_hh_l0"],
                      params["b_ih_l0"], params["b_hh_l0"])
        h1, c1 = cell(h0, h1, c1, params["w_ih_l1"], params["w_hh_l1"],
                      params["b_ih_l1"], params["b_hh_l1"])
    y = h1 @ params["w_lin"].T + params["b_lin"]
    h = jnp.stack([h0, h1], axis=0)
    c = jnp.stack([c0, c1], axis=0)
    return y, (h, c)


if __name__ == "__main__":
    key = jax.random.PRNGKey(0)
    k_param, k_x = jax.random.split(key)

    B, T = 2, 8
    params = init_params(k_param)
    x = jax.random.normal(k_x, (B, T, 1), dtype=jnp.float32)

    y, (h, c) = lstm_stock_price_model(x, params)
    jax.block_until_ready((y, h, c))

    y_ref, (h_ref, c_ref) = reference_forward(x, params)
    np.testing.assert_allclose(np.asarray(y), np.asarray(y_ref), rtol=1e-5, atol=1e-5)
    np.testing.assert_allclose(np.asarray(h), np.asarray(h_ref), rtol=1e-5, atol=1e-5)
    np.testing.assert_allclose(np.asarray(c), np.asarray(c_ref), rtol=1e-5, atol=1e-5)

    print("KERNEL_OK")
</pallas_src>

<mosaic_0001>
module attributes {stable_mosaic.version = 11 : i64} {
  func.func @lstm_kernel(%arg0: memref<8x2xf32, #tpu.memory_space<vmem>>, %arg1: memref<32x1xf32, #tpu.memory_space<vmem>>, %arg2: memref<32x1xf32, #tpu.memory_space<vmem>>, %arg3: memref<8x32xf32, #tpu.memory_space<vmem>>, %arg4: memref<8x32xf32, #tpu.memory_space<vmem>>, %arg5: memref<8x32xf32, #tpu.memory_space<vmem>>, %arg6: memref<32x1xf32, #tpu.memory_space<vmem>>, %arg7: memref<8x1xf32, #tpu.memory_space<vmem>>, %arg8: memref<1x1xf32, #tpu.memory_space<vmem>>, %arg9: memref<1x2xf32, #tpu.memory_space<vmem>>, %arg10: memref<2x8x2xf32, #tpu.memory_space<vmem>>, %arg11: memref<2x8x2xf32, #tpu.memory_space<vmem>>) attributes {dimension_semantics = [], scalar_prefetch = 0 : i64, scratch_operands = 0 : i64, tpu.core_type = #tpu.core_type<tc>} {
    %c0 = arith.constant 0 : index
    %c0_0 = arith.constant 0 : index
    %0 = vector.load %arg0[%c0, %c0_0] : memref<8x2xf32, #tpu.memory_space<vmem>>, vector<8x2xf32>
    %c0_1 = arith.constant 0 : index
    %c0_2 = arith.constant 0 : index
    %1 = vector.load %arg1[%c0_1, %c0_2] : memref<32x1xf32, #tpu.memory_space<vmem>>, vector<32x1xf32>
    %c0_3 = arith.constant 0 : index
    %c0_4 = arith.constant 0 : index
    %2 = vector.load %arg2[%c0_3, %c0_4] : memref<32x1xf32, #tpu.memory_space<vmem>>, vector<32x1xf32>
    %c0_5 = arith.constant 0 : index
    %c0_6 = arith.constant 0 : index
    %3 = vector.load %arg3[%c0_5, %c0_6] : memref<8x32xf32, #tpu.memory_space<vmem>>, vector<8x32xf32>
    %c0_7 = arith.constant 0 : index
    %c0_8 = arith.constant 0 : index
    %4 = vector.load %arg4[%c0_7, %c0_8] : memref<8x32xf32, #tpu.memory_space<vmem>>, vector<8x32xf32>
    %c0_9 = arith.constant 0 : index
    %c0_10 = arith.constant 0 : index
    %5 = vector.load %arg5[%c0_9, %c0_10] : memref<8x32xf32, #tpu.memory_space<vmem>>, vector<8x32xf32>
    %c0_11 = arith.constant 0 : index
    %c0_12 = arith.constant 0 : index
    %6 = vector.load %arg6[%c0_11, %c0_12] : memref<32x1xf32, #tpu.memory_space<vmem>>, vector<32x1xf32>
    %c0_13 = arith.constant 0 : index
    %c0_14 = arith.constant 0 : index
    %7 = vector.load %arg7[%c0_13, %c0_14] : memref<8x1xf32, #tpu.memory_space<vmem>>, vector<8x1xf32>
    %c0_15 = arith.constant 0 : index
    %c0_16 = arith.constant 0 : index
    %8 = vector.load %arg8[%c0_15, %c0_16] : memref<1x1xf32, #tpu.memory_space<vmem>>, vector<1x1xf32>
    %9 = vector.shape_cast %0 : vector<8x2xf32> to vector<8x1x2xf32>
    %10 = vector.shape_cast %1 : vector<32x1xf32> to vector<1x32x1xf32>
    %11 = vector.broadcast %9 : vector<8x1x2xf32> to vector<8x32x2xf32>
    %12 = vector.broadcast %10 : vector<1x32x1xf32> to vector<8x32x2xf32>
    %13 = arith.mulf %11, %12 : vector<8x32x2xf32>
    %14 = vector.shape_cast %2 : vector<32x1xf32> to vector<1x32x1xf32>
    %15 = vector.broadcast %14 : vector<1x32x1xf32> to vector<8x32x2xf32>
    %16 = arith.addf %13, %15 : vector<8x32x2xf32>
    %17 = vector.shape_cast %3 : vector<8x32xf32> to vector<8x32x1xf32>
    %18 = vector.shape_cast %17 : vector<8x32x1xf32> to vector<8x32x1xf32>
    %19 = vector.broadcast %18 : vector<8x32x1xf32> to vector<8x32x2xf32>
    %20 = vector.shape_cast %4 : vector<8x32xf32> to vector<8x32x1xf32>
    %21 = vector.shape_cast %20 : vector<8x32x1xf32> to vector<8x32x1xf32>
    %22 = vector.broadcast %21 : vector<8x32x1xf32> to vector<8x32x2xf32>
    %23 = vector.shape_cast %5 : vector<8x32xf32> to vector<8x32x1xf32>
    %24 = vector.shape_cast %23 : vector<8x32x1xf32> to vector<8x32x1xf32>
    %25 = vector.broadcast %24 : vector<8x32x1xf32> to vector<8x32x2xf32>
    %26 = vector.shape_cast %6 : vector<32x1xf32> to vector<32x1xf32>
    %27 = vector.broadcast %26 : vector<32x1xf32> to vector<32x2xf32>
    %cst = arith.constant 0.000000e+00 : f32
    %28 = vector.broadcast %cst : f32 to vector<8x2xf32>
    %cst_17 = arith.constant 0.000000e+00 : f32
    %29 = vector.broadcast %cst_17 : f32 to vector<8x32x2xf32>
    %cst_18 = arith.constant 0.000000e+00 : f32
    %30 = vector.broadcast %cst_18 : f32 to vector<8x32x2xf32>
    %31 = vector.extract_strided_slice %16 {offsets = [0, 0, 0], sizes = [1, 32, 2], strides = [1, 1, 1]} : vector<8x32x2xf32> to vector<1x32x2xf32>
    %32 = vector.shape_cast %31 : vector<1x32x2xf32> to vector<32x2xf32>
    %33 = arith.mulf %19, %29 : vector<8x32x2xf32>
    %cst_19 = arith.constant dense<0.000000e+00> : vector<32x2xf32>
    %34 = vector.multi_reduction <add>, %33, %cst_19 [0] : vector<8x32x2xf32> to vector<32x2xf32>
    %35 = arith.addf %32, %34 : vector<32x2xf32>
    %36 = vector.extract_strided_slice %35 {offsets = [0, 0], sizes = [24, 2], strides = [1, 1]} : vector<32x2xf32> to vector<24x2xf32>
    %37 = arith.negf %36 : vector<24x2xf32>
    %38 = math.exp %37 : vector<24x2xf32>
    %cst_20 = arith.constant 1.000000e+00 : f32
    %39 = vector.broadcast %cst_20 : f32 to vector<24x2xf32>
    %40 = arith.addf %39, %38 : vector<24x2xf32>
    %41 = arith.divf %39, %40 : vector<24x2xf32>
    %42 = vector.extract_strided_slice %35 {offsets = [24, 0], sizes = [8, 2], strides = [1, 1]} : vector<32x2xf32> to vector<8x2xf32>
    %43 = math.tanh %42 : vector<8x2xf32>
    %44 = vector.extract_strided_slice %41 {offsets = [0, 0], sizes = [8, 2], strides = [1, 1]} : vector<24x2xf32> to vector<8x2xf32>
    %45 = vector.extract_strided_slice %41 {offsets = [8, 0], sizes = [8, 2], strides = [1, 1]} : vector<24x2xf32> to vector<8x2xf32>
    %46 = vector.extract_strided_slice %41 {offsets = [16, 0], sizes = [8, 2], strides = [1, 1]} : vector<24x2xf32> to vector<8x2xf32>
    %47 = arith.mulf %45, %28 : vector<8x2xf32>
    %48 = arith.mulf %44, %43 : vector<8x2xf32>
    %49 = arith.addf %47, %48 : vector<8x2xf32>
    %50 = math.tanh %49 : vector<8x2xf32>
    %51 = arith.mulf %46, %50 : vector<8x2xf32>
    %52 = vector.shape_cast %51 : vector<8x2xf32> to vector<8x1x2xf32>
    %53 = vector.shape_cast %52 : vector<8x1x2xf32> to vector<8x1x2xf32>
    %54 = vector.broadcast %53 : vector<8x1x2xf32> to vector<8x32x2xf32>
    %55 = arith.mulf %22, %54 : vector<8x32x2xf32>
    %cst_21 = arith.constant dense<0.000000e+00> : vector<32x2xf32>
    %56 = vector.multi_reduction <add>, %55, %cst_21 [0] : vector<8x32x2xf32> to vector<32x2xf32>
    %57 = arith.addf %27, %56 : vector<32x2xf32>
    %58 = arith.mulf %25, %30 : vector<8x32x2xf32>
    %cst_22 = arith.constant dense<0.000000e+00> : vector<32x2xf32>
    %59 = vector.multi_reduction <add>, %58, %cst_22 [0] : vector<8x32x2xf32> to vector<32x2xf32>
    %60 = arith.addf %57, %59 : vector<32x2xf32>
    %61 = vector.extract_strided_slice %60 {offsets = [0, 0], sizes = [24, 2], strides = [1, 1]} : vector<32x2xf32> to vector<24x2xf32>
    %62 = arith.negf %61 : vector<24x2xf32>
    %63 = math.exp %62 : vector<24x2xf32>
    %cst_23 = arith.constant 1.000000e+00 : f32
    %64 = vector.broadcast %cst_23 : f32 to vector<24x2xf32>
    %65 = arith.addf %64, %63 : vector<24x2xf32>
    %66 = arith.divf %64, %65 : vector<24x2xf32>
    %67 = vector.extract_strided_slice %60 {offsets = [24, 0], sizes = [8, 2], strides = [1, 1]} : vector<32x2xf32> to vector<8x2xf32>
    %68 = math.tanh %67 : vector<8x2xf32>
    %69 = vector.extract_strided_slice %66 {offsets = [0, 0], sizes = [8, 2], strides = [1, 1]} : vector<24x2xf32> to vector<8x2xf32>
    %70 = vector.extract_strided_slice %66 {offsets = [8, 0], sizes = [8, 2], strides = [1, 1]} : vector<24x2xf32> to vector<8x2xf32>
    %71 = vector.extract_strided_slice %66 {offsets = [16, 0], sizes = [8, 2], strides = [1, 1]} : vector<24x2xf32> to vector<8x2xf32>
    %72 = arith.mulf %70, %28 : vector<8x2xf32>
    %73 = arith.mulf %69, %68 : vector<8x2xf32>
    %74 = arith.addf %72, %73 : vector<8x2xf32>
    %75 = math.tanh %74 : vector<8x2xf32>
    %76 = arith.mulf %71, %75 : vector<8x2xf32>
    %77 = vector.shape_cast %76 : vector<8x2xf32> to vector<8x1x2xf32>
    %78 = vector.shape_cast %77 : vector<8x1x2xf32> to vector<8x1x2xf32>
    %79 = vector.broadcast %78 : vector<8x1x2xf32> to vector<8x32x2xf32>
    %80 = vector.extract_strided_slice %16 {offsets = [1, 0, 0], sizes = [1, 32, 2], strides = [1, 1, 1]} : vector<8x32x2xf32> to vector<1x32x2xf32>
    %81 = vector.shape_cast %80 : vector<1x32x2xf32> to vector<32x2xf32>
    %82 = arith.mulf %19, %54 : vector<8x32x2xf32>
    %cst_24 = arith.constant dense<0.000000e+00> : vector<32x2xf32>
    %83 = vector.multi_reduction <add>, %82, %cst_24 [0] : vector<8x32x2xf32> to vector<32x2xf32>
    %84 = arith.addf %81, %83 : vector<32x2xf32>
    %85 = vector.extract_strided_slice %84 {offsets = [0, 0], sizes = [24, 2], strides = [1, 1]} : vector<32x2xf32> to vector<24x2xf32>
    %86 = arith.negf %85 : vector<24x2xf32>
    %87 = math.exp %86 : vector<24x2xf32>
    %cst_25 = arith.constant 1.000000e+00 : f32
    %88 = vector.broadcast %cst_25 : f32 to vector<24x2xf32>
    %89 = arith.addf %88, %87 : vector<24x2xf32>
    %90 = arith.divf %88, %89 : vector<24x2xf32>
    %91 = vector.extract_strided_slice %84 {offsets = [24, 0], sizes = [8, 2], strides = [1, 1]} : vector<32x2xf32> to vector<8x2xf32>
    %92 = math.tanh %91 : vector<8x2xf32>
    %93 = vector.extract_strided_slice %90 {offsets = [0, 0], sizes = [8, 2], strides = [1, 1]} : vector<24x2xf32> to vector<8x2xf32>
    %94 = vector.extract_strided_slice %90 {offsets = [8, 0], sizes = [8, 2], strides = [1, 1]} : vector<24x2xf32> to vector<8x2xf32>
    %95 = vector.extract_strided_slice %90 {offsets = [16, 0], sizes = [8, 2], strides = [1, 1]} : vector<24x2xf32> to vector<8x2xf32>
    %96 = arith.mulf %94, %49 : vector<8x2xf32>
    %97 = arith.mulf %93, %92 : vector<8x2xf32>
    %98 = arith.addf %96, %97 : vector<8x2xf32>
    %99 = math.tanh %98 : vector<8x2xf32>
    %100 = arith.mulf %95, %99 : vector<8x2xf32>
    %101 = vector.shape_cast %100 : vector<8x2xf32> to vector<8x1x2xf32>
    %102 = vector.shape_cast %101 : vector<8x1x2xf32> to vector<8x1x2xf32>
    %103 = vector.broadcast %102 : vector<8x1x2xf32> to vector<8x32x2xf32>
    %104 = arith.mulf %22, %103 : vector<8x32x2xf32>
    %cst_26 = arith.constant dense<0.000000e+00> : vector<32x2xf32>
    %105 = vector.multi_reduction <add>, %104, %cst_26 [0] : vector<8x32x2xf32> to vector<32x2xf32>
    %106 = arith.addf %27, %105 : vector<32x2xf32>
    %107 = arith.mulf %25, %79 : vector<8x32x2xf32>
    %cst_27 = arith.constant dense<0.000000e+00> : vector<32x2xf32>
    %108 = vector.multi_reduction <add>, %107, %cst_27 [0] : vector<8x32x2xf32> to vector<32x2xf32>
    %109 = arith.addf %106, %108 : vector<32x2xf32>
    %110 = vector.extract_strided_slice %109 {offsets = [0, 0], sizes = [24, 2], strides = [1, 1]} : vector<32x2xf32> to vector<24x2xf32>
    %111 = arith.negf %110 : vector<24x2xf32>
    %112 = math.exp %111 : vector<24x2xf32>
    %cst_28 = arith.constant 1.000000e+00 : f32
    %113 = vector.broadcast %cst_28 : f32 to vector<24x2xf32>
    %114 = arith.addf %113, %112 : vector<24x2xf32>
    %115 = arith.divf %113, %114 : vector<24x2xf32>
    %116 = vector.extract_strided_slice %109 {offsets = [24, 0], sizes = [8, 2], strides = [1, 1]} : vector<32x2xf32> to vector<8x2xf32>
    %117 = math.tanh %116 : vector<8x2xf32>
    %118 = vector.extract_strided_slice %115 {offsets = [0, 0], sizes = [8, 2], strides = [1, 1]} : vector<24x2xf32> to vector<8x2xf32>
    %119 = vector.extract_strided_slice %115 {offsets = [8, 0], sizes = [8, 2], strides = [1, 1]} : vector<24x2xf32> to vector<8x2xf32>
    %120 = vector.extract_strided_slice %115 {offsets = [16, 0], sizes = [8, 2], strides = [1, 1]} : vector<24x2xf32> to vector<8x2xf32>
    %121 = arith.mulf %119, %74 : vector<8x2xf32>
    %122 = arith.mulf %118, %117 : vector<8x2xf32>
    %123 = arith.addf %121, %122 : vector<8x2xf32>
    %124 = math.tanh %123 : vector<8x2xf32>
    %125 = arith.mulf %120, %124 : vector<8x2xf32>
    %126 = vector.shape_cast %125 : vector<8x2xf32> to vector<8x1x2xf32>
    %127 = vector.shape_cast %126 : vector<8x1x2xf32> to vector<8x1x2xf32>
    %128 = vector.broadcast %127 : vector<8x1x2xf32> to vector<8x32x2xf32>
    %129 = vector.extract_strided_slice %16 {offsets = [2, 0, 0], sizes = [1, 32, 2], strides = [1, 1, 1]} : vector<8x32x2xf32> to vector<1x32x2xf32>
    %130 = vector.shape_cast %129 : vector<1x32x2xf32> to vector<32x2xf32>
    %131 = arith.mulf %19, %103 : vector<8x32x2xf32>
    %cst_29 = arith.constant dense<0.000000e+00> : vector<32x2xf32>
    %132 = vector.multi_reduction <add>, %131, %cst_29 [0] : vector<8x32x2xf32> to vector<32x2xf32>
    %133 = arith.addf %130, %132 : vector<32x2xf32>
    %134 = vector.extract_strided_slice %133 {offsets = [0, 0], sizes = [24, 2], strides = [1, 1]} : vector<32x2xf32> to vector<24x2xf32>
    %135 = arith.negf %134 : vector<24x2xf32>
    %136 = math.exp %135 : vector<24x2xf32>
    %cst_30 = arith.constant 1.000000e+00 : f32
    %137 = vector.broadcast %cst_30 : f32 to vector<24x2xf32>
    %138 = arith.addf %137, %136 : vector<24x2xf32>
    %139 = arith.divf %137, %138 : vector<24x2xf32>
    %140 = vector.extract_strided_slice %133 {offsets = [24, 0], sizes = [8, 2], strides = [1, 1]} : vector<32x2xf32> to vector<8x2xf32>
    %141 = math.tanh %140 : vector<8x2xf32>
    %142 = vector.extract_strided_slice %139 {offsets = [0, 0], sizes = [8, 2], strides = [1, 1]} : vector<24x2xf32> to vector<8x2xf32>
    %143 = vector.extract_strided_slice %139 {offsets = [8, 0], sizes = [8, 2], strides = [1, 1]} : vector<24x2xf32> to vector<8x2xf32>
    %144 = vector.extract_strided_slice %139 {offsets = [16, 0], sizes = [8, 2], strides = [1, 1]} : vector<24x2xf32> to vector<8x2xf32>
    %145 = arith.mulf %143, %98 : vector<8x2xf32>
    %146 = arith.mulf %142, %141 : vector<8x2xf32>
    %147 = arith.addf %145, %146 : vector<8x2xf32>
    %148 = math.tanh %147 : vector<8x2xf32>
    %149 = arith.mulf %144, %148 : vector<8x2xf32>
    %150 = vector.shape_cast %149 : vector<8x2xf32> to vector<8x1x2xf32>
    %151 = vector.shape_cast %150 : vector<8x1x2xf32> to vector<8x1x2xf32>
    %152 = vector.broadcast %151 : vector<8x1x2xf32> to vector<8x32x2xf32>
    %153 = arith.mulf %22, %152 : vector<8x32x2xf32>
    %cst_31 = arith.constant dense<0.000000e+00> : vector<32x2xf32>
    %154 = vector.multi_reduction <add>, %153, %cst_31 [0] : vector<8x32x2xf32> to vector<32x2xf32>
    %155 = arith.addf %27, %154 : vector<32x2xf32>
    %156 = arith.mulf %25, %128 : vector<8x32x2xf32>
    %cst_32 = arith.constant dense<0.000000e+00> : vector<32x2xf32>
    %157 = vector.multi_reduction <add>, %156, %cst_32 [0] : vector<8x32x2xf32> to vector<32x2xf32>
    %158 = arith.addf %155, %157 : vector<32x2xf32>
    %159 = vector.extract_strided_slice %158 {offsets = [0, 0], sizes = [24, 2], strides = [1, 1]} : vector<32x2xf32> to vector<24x2xf32>
    %160 = arith.negf %159 : vector<24x2xf32>
    %161 = math.exp %160 : vector<24x2xf32>
    %cst_33 = arith.constant 1.000000e+00 : f32
    %162 = vector.broadcast %cst_33 : f32 to vector<24x2xf32>
    %163 = arith.addf %162, %161 : vector<24x2xf32>
    %164 = arith.divf %162, %163 : vector<24x2xf32>
    %165 = vector.extract_strided_slice %158 {offsets = [24, 0], sizes = [8, 2], strides = [1, 1]} : vector<32x2xf32> to vector<8x2xf32>
    %166 = math.tanh %165 : vector<8x2xf32>
    %167 = vector.extract_strided_slice %164 {offsets = [0, 0], sizes = [8, 2], strides = [1, 1]} : vector<24x2xf32> to vector<8x2xf32>
    %168 = vector.extract_strided_slice %164 {offsets = [8, 0], sizes = [8, 2], strides = [1, 1]} : vector<24x2xf32> to vector<8x2xf32>
    %169 = vector.extract_strided_slice %164 {offsets = [16, 0], sizes = [8, 2], strides = [1, 1]} : vector<24x2xf32> to vector<8x2xf32>
    %170 = arith.mulf %168, %123 : vector<8x2xf32>
    %171 = arith.mulf %167, %166 : vector<8x2xf32>
    %172 = arith.addf %170, %171 : vector<8x2xf32>
    %173 = math.tanh %172 : vector<8x2xf32>
    %174 = arith.mulf %169, %173 : vector<8x2xf32>
    %175 = vector.shape_cast %174 : vector<8x2xf32> to vector<8x1x2xf32>
    %176 = vector.shape_cast %175 : vector<8x1x2xf32> to vector<8x1x2xf32>
    %177 = vector.broadcast %176 : vector<8x1x2xf32> to vector<8x32x2xf32>
    %178 = vector.extract_strided_slice %16 {offsets = [3, 0, 0], sizes = [1, 32, 2], strides = [1, 1, 1]} : vector<8x32x2xf32> to vector<1x32x2xf32>
    %179 = vector.shape_cast %178 : vector<1x32x2xf32> to vector<32x2xf32>
    %180 = arith.mulf %19, %152 : vector<8x32x2xf32>
    %cst_34 = arith.constant dense<0.000000e+00> : vector<32x2xf32>
    %181 = vector.multi_reduction <add>, %180, %cst_34 [0] : vector<8x32x2xf32> to vector<32x2xf32>
    %182 = arith.addf %179, %181 : vector<32x2xf32>
    %183 = vector.extract_strided_slice %182 {offsets = [0, 0], sizes = [24, 2], strides = [1, 1]} : vector<32x2xf32> to vector<24x2xf32>
    %184 = arith.negf %183 : vector<24x2xf32>
    %185 = math.exp %184 : vector<24x2xf32>
    %cst_35 = arith.constant 1.000000e+00 : f32
    %186 = vector.broadcast %cst_35 : f32 to vector<24x2xf32>
    %187 = arith.addf %186, %185 : vector<24x2xf32>
    %188 = arith.divf %186, %187 : vector<24x2xf32>
    %189 = vector.extract_strided_slice %182 {offsets = [24, 0], sizes = [8, 2], strides = [1, 1]} : vector<32x2xf32> to vector<8x2xf32>
    %190 = math.tanh %189 : vector<8x2xf32>
    %191 = vector.extract_strided_slice %188 {offsets = [0, 0], sizes = [8, 2], strides = [1, 1]} : vector<24x2xf32> to vector<8x2xf32>
    %192 = vector.extract_strided_slice %188 {offsets = [8, 0], sizes = [8, 2], strides = [1, 1]} : vector<24x2xf32> to vector<8x2xf32>
    %193 = vector.extract_strided_slice %188 {offsets = [16, 0], sizes = [8, 2], strides = [1, 1]} : vector<24x2xf32> to vector<8x2xf32>
    %194 = arith.mulf %192, %147 : vector<8x2xf32>
    %195 = arith.mulf %191, %190 : vector<8x2xf32>
    %196 = arith.addf %194, %195 : vector<8x2xf32>
    %197 = math.tanh %196 : vector<8x2xf32>
    %198 = arith.mulf %193, %197 : vector<8x2xf32>
    %199 = vector.shape_cast %198 : vector<8x2xf32> to vector<8x1x2xf32>
    %200 = vector.shape_cast %199 : vector<8x1x2xf32> to vector<8x1x2xf32>
    %201 = vector.broadcast %200 : vector<8x1x2xf32> to vector<8x32x2xf32>
    %202 = arith.mulf %22, %201 : vector<8x32x2xf32>
    %cst_36 = arith.constant dense<0.000000e+00> : vector<32x2xf32>
    %203 = vector.multi_reduction <add>, %202, %cst_36 [0] : vector<8x32x2xf32> to vector<32x2xf32>
    %204 = arith.addf %27, %203 : vector<32x2xf32>
    %205 = arith.mulf %25, %177 : vector<8x32x2xf32>
    %cst_37 = arith.constant dense<0.000000e+00> : vector<32x2xf32>
    %206 = vector.multi_reduction <add>, %205, %cst_37 [0] : vector<8x32x2xf32> to vector<32x2xf32>
    %207 = arith.addf %204, %206 : vector<32x2xf32>
    %208 = vector.extract_strided_slice %207 {offsets = [0, 0], sizes = [24, 2], strides = [1, 1]} : vector<32x2xf32> to vector<24x2xf32>
    %209 = arith.negf %208 : vector<24x2xf32>
    %210 = math.exp %209 : vector<24x2xf32>
    %cst_38 = arith.constant 1.000000e+00 : f32
    %211 = vector.broadcast %cst_38 : f32 to vector<24x2xf32>
    %212 = arith.addf %211, %210 : vector<24x2xf32>
    %213 = arith.divf %211, %212 : vector<24x2xf32>
    %214 = vector.extract_strided_slice %207 {offsets = [24, 0], sizes = [8, 2], strides = [1, 1]} : vector<32x2xf32> to vector<8x2xf32>
    %215 = math.tanh %214 : vector<8x2xf32>
    %216 = vector.extract_strided_slice %213 {offsets = [0, 0], sizes = [8, 2], strides = [1, 1]} : vector<24x2xf32> to vector<8x2xf32>
    %217 = vector.extract_strided_slice %213 {offsets = [8, 0], sizes = [8, 2], strides = [1, 1]} : vector<24x2xf32> to vector<8x2xf32>
    %218 = vector.extract_strided_slice %213 {offsets = [16, 0], sizes = [8, 2], strides = [1, 1]} : vector<24x2xf32> to vector<8x2xf32>
    %219 = arith.mulf %217, %172 : vector<8x2xf32>
    %220 = arith.mulf %216, %215 : vector<8x2xf32>
    %221 = arith.addf %219, %220 : vector<8x2xf32>
    %222 = math.tanh %221 : vector<8x2xf32>
    %223 = arith.mulf %218, %222 : vector<8x2xf32>
    %224 = vector.shape_cast %223 : vector<8x2xf32> to vector<8x1x2xf32>
    %225 = vector.shape_cast %224 : vector<8x1x2xf32> to vector<8x1x2xf32>
    %226 = vector.broadcast %225 : vector<8x1x2xf32> to vector<8x32x2xf32>
    %227 = vector.extract_strided_slice %16 {offsets = [4, 0, 0], sizes = [1, 32, 2], strides = [1, 1, 1]} : vector<8x32x2xf32> to vector<1x32x2xf32>
    %228 = vector.shape_cast %227 : vector<1x32x2xf32> to vector<32x2xf32>
    %229 = arith.mulf %19, %201 : vector<8x32x2xf32>
    %cst_39 = arith.constant dense<0.000000e+00> : vector<32x2xf32>
    %230 = vector.multi_reduction <add>, %229, %cst_39 [0] : vector<8x32x2xf32> to vector<32x2xf32>
    %231 = arith.addf %228, %230 : vector<32x2xf32>
    %232 = vector.extract_strided_slice %231 {offsets = [0, 0], sizes = [24, 2], strides = [1, 1]} : vector<32x2xf32> to vector<24x2xf32>
    %233 = arith.negf %232 : vector<24x2xf32>
    %234 = math.exp %233 : vector<24x2xf32>
    %cst_40 = arith.constant 1.000000e+00 : f32
    %235 = vector.broadcast %cst_40 : f32 to vector<24x2xf32>
    %236 = arith.addf %235, %234 : vector<24x2xf32>
    %237 = arith.divf %235, %236 : vector<24x2xf32>
    %238 = vector.extract_strided_slice %231 {offsets = [24, 0], sizes = [8, 2], strides = [1, 1]} : vector<32x2xf32> to vector<8x2xf32>
    %239 = math.tanh %238 : vector<8x2xf32>
    %240 = vector.extract_strided_slice %237 {offsets = [0, 0], sizes = [8, 2], strides = [1, 1]} : vector<24x2xf32> to vector<8x2xf32>
    %241 = vector.extract_strided_slice %237 {offsets = [8, 0], sizes = [8, 2], strides = [1, 1]} : vector<24x2xf32> to vector<8x2xf32>
    %242 = vector.extract_strided_slice %237 {offsets = [16, 0], sizes = [8, 2], strides = [1, 1]} : vector<24x2xf32> to vector<8x2xf32>
    %243 = arith.mulf %241, %196 : vector<8x2xf32>
    %244 = arith.mulf %240, %239 : vector<8x2xf32>
    %245 = arith.addf %243, %244 : vector<8x2xf32>
    %246 = math.tanh %245 : vector<8x2xf32>
    %247 = arith.mulf %242, %246 : vector<8x2xf32>
    %248 = vector.shape_cast %247 : vector<8x2xf32> to vector<8x1x2xf32>
    %249 = vector.shape_cast %248 : vector<8x1x2xf32> to vector<8x1x2xf32>
    %250 = vector.broadcast %249 : vector<8x1x2xf32> to vector<8x32x2xf32>
    %251 = arith.mulf %22, %250 : vector<8x32x2xf32>
    %cst_41 = arith.constant dense<0.000000e+00> : vector<32x2xf32>
    %252 = vector.multi_reduction <add>, %251, %cst_41 [0] : vector<8x32x2xf32> to vector<32x2xf32>
    %253 = arith.addf %27, %252 : vector<32x2xf32>
    %254 = arith.mulf %25, %226 : vector<8x32x2xf32>
    %cst_42 = arith.constant dense<0.000000e+00> : vector<32x2xf32>
    %255 = vector.multi_reduction <add>, %254, %cst_42 [0] : vector<8x32x2xf32> to vector<32x2xf32>
    %256 = arith.addf %253, %255 : vector<32x2xf32>
    %257 = vector.extract_strided_slice %256 {offsets = [0, 0], sizes = [24, 2], strides = [1, 1]} : vector<32x2xf32> to vector<24x2xf32>
    %258 = arith.negf %257 : vector<24x2xf32>
    %259 = math.exp %258 : vector<24x2xf32>
    %cst_43 = arith.constant 1.000000e+00 : f32
    %260 = vector.broadcast %cst_43 : f32 to vector<24x2xf32>
    %261 = arith.addf %260, %259 : vector<24x2xf32>
    %262 = arith.divf %260, %261 : vector<24x2xf32>
    %263 = vector.extract_strided_slice %256 {offsets = [24, 0], sizes = [8, 2], strides = [1, 1]} : vector<32x2xf32> to vector<8x2xf32>
    %264 = math.tanh %263 : vector<8x2xf32>
    %265 = vector.extract_strided_slice %262 {offsets = [0, 0], sizes = [8, 2], strides = [1, 1]} : vector<24x2xf32> to vector<8x2xf32>
    %266 = vector.extract_strided_slice %262 {offsets = [8, 0], sizes = [8, 2], strides = [1, 1]} : vector<24x2xf32> to vector<8x2xf32>
    %267 = vector.extract_strided_slice %262 {offsets = [16, 0], sizes = [8, 2], strides = [1, 1]} : vector<24x2xf32> to vector<8x2xf32>
    %268 = arith.mulf %266, %221 : vector<8x2xf32>
    %269 = arith.mulf %265, %264 : vector<8x2xf32>
    %270 = arith.addf %268, %269 : vector<8x2xf32>
    %271 = math.tanh %270 : vector<8x2xf32>
    %272 = arith.mulf %267, %271 : vector<8x2xf32>
    %273 = vector.shape_cast %272 : vector<8x2xf32> to vector<8x1x2xf32>
    %274 = vector.shape_cast %273 : vector<8x1x2xf32> to vector<8x1x2xf32>
    %275 = vector.broadcast %274 : vector<8x1x2xf32> to vector<8x32x2xf32>
    %276 = vector.extract_strided_slice %16 {offsets = [5, 0, 0], sizes = [1, 32, 2], strides = [1, 1, 1]} : vector<8x32x2xf32> to vector<1x32x2xf32>
    %277 = vector.shape_cast %276 : vector<1x32x2xf32> to vector<32x2xf32>
    %278 = arith.mulf %19, %250 : vector<8x32x2xf32>
    %cst_44 = arith.constant dense<0.000000e+00> : vector<32x2xf32>
    %279 = vector.multi_reduction <add>, %278, %cst_44 [0] : vector<8x32x2xf32> to vector<32x2xf32>
    %280 = arith.addf %277, %279 : vector<32x2xf32>
    %281 = vector.extract_strided_slice %280 {offsets = [0, 0], sizes = [24, 2], strides = [1, 1]} : vector<32x2xf32> to vector<24x2xf32>
    %282 = arith.negf %281 : vector<24x2xf32>
    %283 = math.exp %282 : vector<24x2xf32>
    %cst_45 = arith.constant 1.000000e+00 : f32
    %284 = vector.broadcast %cst_45 : f32 to vector<24x2xf32>
    %285 = arith.addf %284, %283 : vector<24x2xf32>
    %286 = arith.divf %284, %285 : vector<24x2xf32>
    %287 = vector.extract_strided_slice %280 {offsets = [24, 0], sizes = [8, 2], strides = [1, 1]} : vector<32x2xf32> to vector<8x2xf32>
    %288 = math.tanh %287 : vector<8x2xf32>
    %289 = vector.extract_strided_slice %286 {offsets = [0, 0], sizes = [8, 2], strides = [1, 1]} : vector<24x2xf32> to vector<8x2xf32>
    %290 = vector.extract_strided_slice %286 {offsets = [8, 0], sizes = [8, 2], strides = [1, 1]} : vector<24x2xf32> to vector<8x2xf32>
    %291 = vector.extract_strided_slice %286 {offsets = [16, 0], sizes = [8, 2], strides = [1, 1]} : vector<24x2xf32> to vector<8x2xf32>
    %292 = arith.mulf %290, %245 : vector<8x2xf32>
    %293 = arith.mulf %289, %288 : vector<8x2xf32>
    %294 = arith.addf %292, %293 : vector<8x2xf32>
    %295 = math.tanh %294 : vector<8x2xf32>
    %296 = arith.mulf %291, %295 : vector<8x2xf32>
    %297 = vector.shape_cast %296 : vector<8x2xf32> to vector<8x1x2xf32>
    %298 = vector.shape_cast %297 : vector<8x1x2xf32> to vector<8x1x2xf32>
    %299 = vector.broadcast %298 : vector<8x1x2xf32> to vector<8x32x2xf32>
    %300 = arith.mulf %22, %299 : vector<8x32x2xf32>
    %cst_46 = arith.constant dense<0.000000e+00> : vector<32x2xf32>
    %301 = vector.multi_reduction <add>, %300, %cst_46 [0] : vector<8x32x2xf32> to vector<32x2xf32>
    %302 = arith.addf %27, %301 : vector<32x2xf32>
    %303 = arith.mulf %25, %275 : vector<8x32x2xf32>
    %cst_47 = arith.constant dense<0.000000e+00> : vector<32x2xf32>
    %304 = vector.multi_reduction <add>, %303, %cst_47 [0] : vector<8x32x2xf32> to vector<32x2xf32>
    %305 = arith.addf %302, %304 : vector<32x2xf32>
    %306 = vector.extract_strided_slice %305 {offsets = [0, 0], sizes = [24, 2], strides = [1, 1]} : vector<32x2xf32> to vector<24x2xf32>
    %307 = arith.negf %306 : vector<24x2xf32>
    %308 = math.exp %307 : vector<24x2xf32>
    %cst_48 = arith.constant 1.000000e+00 : f32
    %309 = vector.broadcast %cst_48 : f32 to vector<24x2xf32>
    %310 = arith.addf %309, %308 : vector<24x2xf32>
    %311 = arith.divf %309, %310 : vector<24x2xf32>
    %312 = vector.extract_strided_slice %305 {offsets = [24, 0], sizes = [8, 2], strides = [1, 1]} : vector<32x2xf32> to vector<8x2xf32>
    %313 = math.tanh %312 : vector<8x2xf32>
    %314 = vector.extract_strided_slice %311 {offsets = [0, 0], sizes = [8, 2], strides = [1, 1]} : vector<24x2xf32> to vector<8x2xf32>
    %315 = vector.extract_strided_slice %311 {offsets = [8, 0], sizes = [8, 2], strides = [1, 1]} : vector<24x2xf32> to vector<8x2xf32>
    %316 = vector.extract_strided_slice %311 {offsets = [16, 0], sizes = [8, 2], strides = [1, 1]} : vector<24x2xf32> to vector<8x2xf32>
    %317 = arith.mulf %315, %270 : vector<8x2xf32>
    %318 = arith.mulf %314, %313 : vector<8x2xf32>
    %319 = arith.addf %317, %318 : vector<8x2xf32>
    %320 = math.tanh %319 : vector<8x2xf32>
    %321 = arith.mulf %316, %320 : vector<8x2xf32>
    %322 = vector.shape_cast %321 : vector<8x2xf32> to vector<8x1x2xf32>
    %323 = vector.shape_cast %322 : vector<8x1x2xf32> to vector<8x1x2xf32>
    %324 = vector.broadcast %323 : vector<8x1x2xf32> to vector<8x32x2xf32>
    %325 = vector.extract_strided_slice %16 {offsets = [6, 0, 0], sizes = [1, 32, 2], strides = [1, 1, 1]} : vector<8x32x2xf32> to vector<1x32x2xf32>
    %326 = vector.shape_cast %325 : vector<1x32x2xf32> to vector<32x2xf32>
    %327 = arith.mulf %19, %299 : vector<8x32x2xf32>
    %cst_49 = arith.constant dense<0.000000e+00> : vector<32x2xf32>
    %328 = vector.multi_reduction <add>, %327, %cst_49 [0] : vector<8x32x2xf32> to vector<32x2xf32>
    %329 = arith.addf %326, %328 : vector<32x2xf32>
    %330 = vector.extract_strided_slice %329 {offsets = [0, 0], sizes = [24, 2], strides = [1, 1]} : vector<32x2xf32> to vector<24x2xf32>
    %331 = arith.negf %330 : vector<24x2xf32>
    %332 = math.exp %331 : vector<24x2xf32>
    %cst_50 = arith.constant 1.000000e+00 : f32
    %333 = vector.broadcast %cst_50 : f32 to vector<24x2xf32>
    %334 = arith.addf %333, %332 : vector<24x2xf32>
    %335 = arith.divf %333, %334 : vector<24x2xf32>
    %336 = vector.extract_strided_slice %329 {offsets = [24, 0], sizes = [8, 2], strides = [1, 1]} : vector<32x2xf32> to vector<8x2xf32>
    %337 = math.tanh %336 : vector<8x2xf32>
    %338 = vector.extract_strided_slice %335 {offsets = [0, 0], sizes = [8, 2], strides = [1, 1]} : vector<24x2xf32> to vector<8x2xf32>
    %339 = vector.extract_strided_slice %335 {offsets = [8, 0], sizes = [8, 2], strides = [1, 1]} : vector<24x2xf32> to vector<8x2xf32>
    %340 = vector.extract_strided_slice %335 {offsets = [16, 0], sizes = [8, 2], strides = [1, 1]} : vector<24x2xf32> to vector<8x2xf32>
    %341 = arith.mulf %339, %294 : vector<8x2xf32>
    %342 = arith.mulf %338, %337 : vector<8x2xf32>
    %343 = arith.addf %341, %342 : vector<8x2xf32>
    %344 = math.tanh %343 : vector<8x2xf32>
    %345 = arith.mulf %340, %344 : vector<8x2xf32>
    %346 = vector.shape_cast %345 : vector<8x2xf32> to vector<8x1x2xf32>
    %347 = vector.shape_cast %346 : vector<8x1x2xf32> to vector<8x1x2xf32>
    %348 = vector.broadcast %347 : vector<8x1x2xf32> to vector<8x32x2xf32>
    %349 = arith.mulf %22, %348 : vector<8x32x2xf32>
    %cst_51 = arith.constant dense<0.000000e+00> : vector<32x2xf32>
    %350 = vector.multi_reduction <add>, %349, %cst_51 [0] : vector<8x32x2xf32> to vector<32x2xf32>
    %351 = arith.addf %27, %350 : vector<32x2xf32>
    %352 = arith.mulf %25, %324 : vector<8x32x2xf32>
    %cst_52 = arith.constant dense<0.000000e+00> : vector<32x2xf32>
    %353 = vector.multi_reduction <add>, %352, %cst_52 [0] : vector<8x32x2xf32> to vector<32x2xf32>
    %354 = arith.addf %351, %353 : vector<32x2xf32>
    %355 = vector.extract_strided_slice %354 {offsets = [0, 0], sizes = [24, 2], strides = [1, 1]} : vector<32x2xf32> to vector<24x2xf32>
    %356 = arith.negf %355 : vector<24x2xf32>
    %357 = math.exp %356 : vector<24x2xf32>
    %cst_53 = arith.constant 1.000000e+00 : f32
    %358 = vector.broadcast %cst_53 : f32 to vector<24x2xf32>
    %359 = arith.addf %358, %357 : vector<24x2xf32>
    %360 = arith.divf %358, %359 : vector<24x2xf32>
    %361 = vector.extract_strided_slice %354 {offsets = [24, 0], sizes = [8, 2], strides = [1, 1]} : vector<32x2xf32> to vector<8x2xf32>
    %362 = math.tanh %361 : vector<8x2xf32>
    %363 = vector.extract_strided_slice %360 {offsets = [0, 0], sizes = [8, 2], strides = [1, 1]} : vector<24x2xf32> to vector<8x2xf32>
    %364 = vector.extract_strided_slice %360 {offsets = [8, 0], sizes = [8, 2], strides = [1, 1]} : vector<24x2xf32> to vector<8x2xf32>
    %365 = vector.extract_strided_slice %360 {offsets = [16, 0], sizes = [8, 2], strides = [1, 1]} : vector<24x2xf32> to vector<8x2xf32>
    %366 = arith.mulf %364, %319 : vector<8x2xf32>
    %367 = arith.mulf %363, %362 : vector<8x2xf32>
    %368 = arith.addf %366, %367 : vector<8x2xf32>
    %369 = math.tanh %368 : vector<8x2xf32>
    %370 = arith.mulf %365, %369 : vector<8x2xf32>
    %371 = vector.shape_cast %370 : vector<8x2xf32> to vector<8x1x2xf32>
    %372 = vector.shape_cast %371 : vector<8x1x2xf32> to vector<8x1x2xf32>
    %373 = vector.broadcast %372 : vector<8x1x2xf32> to vector<8x32x2xf32>
    %374 = vector.extract_strided_slice %16 {offsets = [7, 0, 0], sizes = [1, 32, 2], strides = [1, 1, 1]} : vector<8x32x2xf32> to vector<1x32x2xf32>
    %375 = vector.shape_cast %374 : vector<1x32x2xf32> to vector<32x2xf32>
    %376 = arith.mulf %19, %348 : vector<8x32x2xf32>
    %cst_54 = arith.constant dense<0.000000e+00> : vector<32x2xf32>
    %377 = vector.multi_reduction <add>, %376, %cst_54 [0] : vector<8x32x2xf32> to vector<32x2xf32>
    %378 = arith.addf %375, %377 : vector<32x2xf32>
    %379 = vector.extract_strided_slice %378 {offsets = [0, 0], sizes = [24, 2], strides = [1, 1]} : vector<32x2xf32> to vector<24x2xf32>
    %380 = arith.negf %379 : vector<24x2xf32>
    %381 = math.exp %380 : vector<24x2xf32>
    %cst_55 = arith.constant 1.000000e+00 : f32
    %382 = vector.broadcast %cst_55 : f32 to vector<24x2xf32>
    %383 = arith.addf %382, %381 : vector<24x2xf32>
    %384 = arith.divf %382, %383 : vector<24x2xf32>
    %385 = vector.extract_strided_slice %378 {offsets = [24, 0], sizes = [8, 2], strides = [1, 1]} : vector<32x2xf32> to vector<8x2xf32>
    %386 = math.tanh %385 : vector<8x2xf32>
    %387 = vector.extract_strided_slice %384 {offsets = [0, 0], sizes = [8, 2], strides = [1, 1]} : vector<24x2xf32> to vector<8x2xf32>
    %388 = vector.extract_strided_slice %384 {offsets = [8, 0], sizes = [8, 2], strides = [1, 1]} : vector<24x2xf32> to vector<8x2xf32>
    %389 = vector.extract_strided_slice %384 {offsets = [16, 0], sizes = [8, 2], strides = [1, 1]} : vector<24x2xf32> to vector<8x2xf32>
    %390 = arith.mulf %388, %343 : vector<8x2xf32>
    %391 = arith.mulf %387, %386 : vector<8x2xf32>
    %392 = arith.addf %390, %391 : vector<8x2xf32>
    %393 = math.tanh %392 : vector<8x2xf32>
    %394 = arith.mulf %389, %393 : vector<8x2xf32>
    %395 = vector.shape_cast %394 : vector<8x2xf32> to vector<8x1x2xf32>
    %396 = vector.shape_cast %395 : vector<8x1x2xf32> to vector<8x1x2xf32>
    %397 = vector.broadcast %396 : vector<8x1x2xf32> to vector<8x32x2xf32>
    %398 = arith.mulf %22, %397 : vector<8x32x2xf32>
    %cst_56 = arith.constant dense<0.000000e+00> : vector<32x2xf32>
    %399 = vector.multi_reduction <add>, %398, %cst_56 [0] : vector<8x32x2xf32> to vector<32x2xf32>
    %400 = arith.addf %27, %399 : vector<32x2xf32>
    %401 = arith.mulf %25, %373 : vector<8x32x2xf32>
    %cst_57 = arith.constant dense<0.000000e+00> : vector<32x2xf32>
    %402 = vector.multi_reduction <add>, %401, %cst_57 [0] : vector<8x32x2xf32> to vector<32x2xf32>
    %403 = arith.addf %400, %402 : vector<32x2xf32>
    %404 = vector.extract_strided_slice %403 {offsets = [0, 0], sizes = [24, 2], strides = [1, 1]} : vector<32x2xf32> to vector<24x2xf32>
    %405 = arith.negf %404 : vector<24x2xf32>
    %406 = math.exp %405 : vector<24x2xf32>
    %cst_58 = arith.constant 1.000000e+00 : f32
    %407 = vector.broadcast %cst_58 : f32 to vector<24x2xf32>
    %408 = arith.addf %407, %406 : vector<24x2xf32>
    %409 = arith.divf %407, %408 : vector<24x2xf32>
    %410 = vector.extract_strided_slice %403 {offsets = [24, 0], sizes = [8, 2], strides = [1, 1]} : vector<32x2xf32> to vector<8x2xf32>
    %411 = math.tanh %410 : vector<8x2xf32>
    %412 = vector.extract_strided_slice %409 {offsets = [0, 0], sizes = [8, 2], strides = [1, 1]} : vector<24x2xf32> to vector<8x2xf32>
    %413 = vector.extract_strided_slice %409 {offsets = [8, 0], sizes = [8, 2], strides = [1, 1]} : vector<24x2xf32> to vector<8x2xf32>
    %414 = vector.extract_strided_slice %409 {offsets = [16, 0], sizes = [8, 2], strides = [1, 1]} : vector<24x2xf32> to vector<8x2xf32>
    %415 = arith.mulf %413, %368 : vector<8x2xf32>
    %416 = arith.mulf %412, %411 : vector<8x2xf32>
    %417 = arith.addf %415, %416 : vector<8x2xf32>
    %418 = math.tanh %417 : vector<8x2xf32>
    %419 = arith.mulf %414, %418 : vector<8x2xf32>
    %420 = vector.broadcast %7 : vector<8x1xf32> to vector<8x2xf32>
    %421 = arith.mulf %419, %420 : vector<8x2xf32>
    %cst_59 = arith.constant dense<0.000000e+00> : vector<2xf32>
    %422 = vector.multi_reduction <add>, %421, %cst_59 [0] : vector<8x2xf32> to vector<2xf32>
    %423 = vector.shape_cast %422 : vector<2xf32> to vector<1x2xf32>
    %424 = vector.broadcast %8 : vector<1x1xf32> to vector<1x2xf32>
    %425 = arith.addf %423, %424 : vector<1x2xf32>
    %c0_60 = arith.constant 0 : index
    %c0_61 = arith.constant 0 : index
    %426 = vector.load %arg9[%c0_60, %c0_61] : memref<1x2xf32, #tpu.memory_space<vmem>>, vector<1x2xf32>
    tpu.vector_store %arg9[%c0_60, %c0_61], %425 {strides = array<i32>} : memref<1x2xf32, #tpu.memory_space<vmem>>, vector<1x2xf32>,
    %c0_62 = arith.constant 0 : index
    %c0_63 = arith.constant 0 : index
    %c0_64 = arith.constant 0 : index
    %427 = vector.load %arg10[%c0_62, %c0_63, %c0_64] : memref<2x8x2xf32, #tpu.memory_space<vmem>>, vector<1x8x2xf32>
    %428 = vector.shape_cast %427 : vector<1x8x2xf32> to vector<8x2xf32>
    %429 = vector.shape_cast %394 : vector<8x2xf32> to vector<1x8x2xf32>
    tpu.vector_store %arg10[%c0_62, %c0_63, %c0_64], %429 {strides = array<i32>} : memref<2x8x2xf32, #tpu.memory_space<vmem>>, vector<1x8x2xf32>,
    %c1 = arith.constant 1 : index
    %c0_65 = arith.constant 0 : index
    %c0_66 = arith.constant 0 : index
    %430 = vector.load %arg10[%c1, %c0_65, %c0_66] : memref<2x8x2xf32, #tpu.memory_space<vmem>>, vector<1x8x2xf32>
    %431 = vector.shape_cast %430 : vector<1x8x2xf32> to vector<8x2xf32>
    %432 = vector.shape_cast %419 : vector<8x2xf32> to vector<1x8x2xf32>
    tpu.vector_store %arg10[%c1, %c0_65, %c0_66], %432 {strides = array<i32>} : memref<2x8x2xf32, #tpu.memory_space<vmem>>, vector<1x8x2xf32>,
    %c0_67 = arith.constant 0 : index
    %c0_68 = arith.constant 0 : index
    %c0_69 = arith.constant 0 : index
    %433 = vector.load %arg11[%c0_67, %c0_68, %c0_69] : memref<2x8x2xf32, #tpu.memory_space<vmem>>, vector<1x8x2xf32>
    %434 = vector.shape_cast %433 : vector<1x8x2xf32> to vector<8x2xf32>
    %435 = vector.shape_cast %392 : vector<8x2xf32> to vector<1x8x2xf32>
    tpu.vector_store %arg11[%c0_67, %c0_68, %c0_69], %435 {strides = array<i32>} : memref<2x8x2xf32, #tpu.memory_space<vmem>>, vector<1x8x2xf32>,
    %c1_70 = arith.constant 1 : index
    %c0_71 = arith.constant 0 : index
    %c0_72 = arith.constant 0 : index
    %436 = vector.load %arg11[%c1_70, %c0_71, %c0_72] : memref<2x8x2xf32, #tpu.memory_space<vmem>>, vector<1x8x2xf32>
    %437 = vector.shape_cast %436 : vector<1x8x2xf32> to vector<8x2xf32>
    %438 = vector.shape_cast %417 : vector<8x2xf32> to vector<1x8x2xf32>
    tpu.vector_store %arg11[%c1_70, %c0_71, %c0_72], %438 {strides = array<i32>} : memref<2x8x2xf32, #tpu.memory_space<vmem>>, vector<1x8x2xf32>,
    return
  }
}

</mosaic_0001>

<bundles_post_ra>
// kernel: tpu_custom_call.1
= control target key start
LH: loop header
LB: loop body
LE: loop exit
PB: predicated region body
PF: predicated region fallthrough
CT: control target
= control target key end

     0   :  { %s8548_s0 = inlined_call_operand.vmem [shape: f32[8,2], index: 0, kind: input, shape index: {}]   ;;  %s8549_s1 = inlined_call_operand.vmem [shape: f32[32,1], index: 1, kind: input, shape index: {}]   ;;  %s8550_s2 = inlined_call_operand.vmem [shape: f32[32,1], index: 2, kind: input, shape index: {}]   ;;  %s8551_s3 = inlined_call_operand.vmem [shape: f32[8,32], index: 3, kind: input, shape index: {}]   ;;  %s8552_s4 = inlined_call_operand.vmem [shape: f32[8,32], index: 4, kind: input, shape index: {}]   ;;  %s8553_s5 = inlined_call_operand.vmem [shape: f32[8,32], index: 5, kind: input, shape index: {}]   ;;  %s8554_s6 = inlined_call_operand.vmem [shape: f32[32,1], index: 6, kind: input, shape index: {}]   ;;  %s8555_s7 = inlined_call_operand.vmem [shape: f32[8,1], index: 7, kind: input, shape index: {}]   ;;  %s8556_s8 = inlined_call_operand.<no memory space> [shape: f32[1,1], index: 8, kind: input, shape index: {}]   ;;  %s8557_s9 = inlined_call_operand.hbm [shape: f32[1,2], index: 9, kind: output, shape index: {0}]   ;;  %s8558_s10 = inlined_call_operand.vmem [shape: f32[2,8,2], index: 10, kind: output, shape index: {1}]   ;;  %s8559_s11 = inlined_call_operand.vmem [shape: f32[2,8,2], index: 11, kind: output, shape index: {2}]  }
   0x1   :  { %v17_v0 = vstv %s8556_s8 }
   0x2   :  { %18 = vst [vmem:[#allocation2] sm:$0x1] %v17_v0 }
   0x3   :  { %v61_v1 = vlaneseq  ;;  %v5090_v2 = vmov 0   ;;  %v47_v4 = vld [vmem:[%s8551_s3] sm:$0xff] }
   0x4   :  { %4808 = vset.pattern.permute.xlu1 %v5090_v2  ;;  %4807 = vset.pattern.permute.xlu0 %v5090_v2 }
   0x5   :  { %v5156_v3 = vshrl.u32 %v61_v1, 7 }
   0x6   :  { %19 = vsyncpa [#allocation4], 0  ;;  %v40_v14 = vld [vmem:[%s8549_s1 + $0x8] sm:$0xff]  ;;  %v39_v15 = vld [vmem:[%s8549_s1] sm:$0xff]  ;;  %v5091_v42 = vmov 1966171168  }
   0x7   :  { %v5162_v5 = vsub.s32 0, %v5156_v3  ;;  %v5165_v6 = vsub.s32 1, %v5156_v3  ;;  %v5170_v9 = vsub.s32 2, %v5156_v3  ;;  %v5174_v11 = vsub.s32 3, %v5156_v3  ;;  %v43_v18 = vld [vmem:[%s8550_s2] sm:$0xff]  ;;  %v44_v19 = vld [vmem:[%s8550_s2 + $0x8] sm:$0xff] }
   0x8   :  { %v5178_v13 = vsub.s32 4, %v5156_v3  ;;  %v5188_v17 = vsub.s32 5, %v5156_v3  ;;  %v5198_v21 = vsub.s32 6, %v5156_v3  ;;  %v5202_v23 = vsub.s32 7, %v5156_v3  ;;  %v41_v25 = vld [vmem:[%s8549_s1 + $0x10] sm:$0xff]  ;;  %v42_v26 = vld [vmem:[%s8549_s1 + $0x18] sm:$0xff] }
   0x9   :  { %8828 = vst [vmem:[#allocation6_spill] sm:$0xff] %v5162_v5  ;;  %v272_v7 = vrot.slane %v47_v4, %v5165_v6  ;;  %v253_v8 = vrot.slane %v47_v4, %v5162_v5  ;;  %v291_v10 = vrot.slane %v47_v4, %v5170_v9  ;;  %v310_v12 = vrot.slane %v47_v4, %v5174_v11  ;;  %v45_v27 = vld [vmem:[%s8550_s2 + $0x10] sm:$0xff]  ;;  %v46_v28 = vld [vmem:[%s8550_s2 + $0x18] sm:$0xff]  ;;  %v48_v29 = vld [vmem:[%s8552_s4] sm:$0xff]  ;;  %s5092_s12 = smov [#allocation3]  }
   0xa   :  { %v329_v16 = vrot.slane %v47_v4, %v5178_v13  ;;  %v348_v20 = vrot.slane %v47_v4, %v5188_v17  ;;  %v367_v22 = vrot.slane %v47_v4, %v5198_v21  ;;  %v386_v24 = vrot.slane %v47_v4, %v5202_v23  ;;  %v5236_v33 = vld [vmem:[%s8553_s5] sm:$0xff]  ;;  %v51_v51 = vld [vmem:[%s8554_s6 + $0x8] sm:$0xff] }
   0xb   :  { %274 = vbcast.lane.b32.xlu1 %v272_v7, 256  ;;  %255 = vbcast.lane.b32.xlu0 %v253_v8, 256  ;;  %v5221_v30 = vrot.slane %v48_v29, %v5162_v5  ;;  %v5226_v31 = vrot.slane %v48_v29, %v5165_v6  ;;  %v5231_v32 = vrot.slane %v48_v29, %v5170_v9  ;;  %v59_v43 = vunpack.c.l.s4 %v5091_v42  ;;  %v38_v48 = vld [vmem:[%s8548_s0] sm:$0xff] }
   0xc   :  { %v5242_v34 = vrot.slane %v5236_v33, %v5162_v5  ;;  %v5248_v35 = vrot.slane %v5236_v33, %v5165_v6  ;;  %v5253_v36 = vrot.slane %v48_v29, %v5174_v11  ;;  %v5259_v37 = vrot.slane %v5236_v33, %v5170_v9  ;;  %v50_v50 = vld [vmem:[%s8554_s6] sm:$0xff] }
   0xd   :  { %v5264_v38 = vrot.slane %v48_v29, %v5178_v13  ;;  %v5270_v39 = vrot.slane %v5236_v33, %v5174_v11  ;;  %v5275_v40 = vrot.slane %v48_v29, %v5188_v17  ;;  %v5281_v41 = vrot.slane %v5236_v33, %v5178_v13 }
   0xe   :  { %v5286_v44 = vrot.slane %v48_v29, %v5198_v21  ;;  %v60_v45 = vunpack.c.0.s8 %v59_v43  ;;  %v57_v52 = vcombine.high %v38_v48, %v38_v48  ;;  %v5312_v55 = vrot.slane %v5236_v33, %v5188_v17 }
   0xf   :  { %278 = vbcast.lane.b32.xlu1 %v272_v7, 264  ;;  %259 = vbcast.lane.b32.xlu0 %v253_v8, 264  ;;  %v5319_v58 = vrot.slane %v48_v29, %v5202_v23  ;;  %v5329_v63 = vrot.slane %v5236_v33, %v5198_v21  ;;  %vm936_vm0 = vcmask 15360   ;;  %vm4724_vm1 = vcmask 8192  }
  0x10   :  { %v5298_v49 = vsub.s32 %v60_v45, %v5156_v3 }
  0x12   :  { %8831 = vst [vmem:[#allocation9_spill] sm:$0xff] %v5298_v49  ;;  %v64_v56 = vrot.slane %v38_v48, %v5298_v49  ;;  %v71_v57 = vrot.slane %v57_v52, %v5298_v49 }
  0x13   :  { %297 = vbcast.lane.b32.xlu1 %v291_v10, 264  ;;  %293 = vbcast.lane.b32.xlu0 %v291_v10, 256 }
  0x14   :  { %v72_v61 = vcombine.high %v64_v56, %v64_v56  ;;  %v73_v62 = vcombine.high %v71_v57, %v71_v57  ;;  %v5332_v0 = vrot.slane %v64_v56, %v5298_v49  ;;  %v87_v2 = vrot.slane %v71_v57, %v5298_v49 }
  0x16   :  { %v94_v1 = vrot.slane %v72_v61, %v5298_v49  ;;  %v101_v3 = vrot.slane %v73_v62, %v5298_v49  ;;  %v103_v9 = vcombine.high %v87_v2, %v87_v2 }
  0x17   :  { %316 = vbcast.lane.b32.xlu1 %v310_v12, 264  ;;  %312 = vbcast.lane.b32.xlu0 %v310_v12, 256 }
  0x18   :  { %v5352_v13 = vrot.slane %v94_v1, %v5162_v5  ;;  %v5364_v17 = vrot.slane %v101_v3, %v5162_v5 }
  0x1b   :  { %153 = vperm.xlu1 %4808, %v40_v14   ;;  %148 = vperm.xlu0 %4807, %v39_v15  }
  0x1f   :  { %331 = vbcast.lane.b32.xlu1 %v329_v16, 256  ;;  %335 = vbcast.lane.b32.xlu0 %v329_v16, 264 }
  0x23   :  { %200 = vperm.xlu1 %4808, %v43_v18   ;;  %205 = vperm.xlu0 %4807, %v44_v19   ;;  %v5367_v18 = vrot.slane %v103_v9, %v5162_v5 }
  0x27   :  { %350 = vbcast.lane.b32.xlu1 %v348_v20, 256  ;;  %354 = vbcast.lane.b32.xlu0 %v348_v20, 264 }
  0x2b   :  { %369 = vbcast.lane.b32.xlu1 %v367_v22, 256  ;;  %373 = vbcast.lane.b32.xlu0 %v367_v22, 264 }
  0x2f   :  { %388 = vbcast.lane.b32.xlu1 %v386_v24, 256  ;;  %392 = vbcast.lane.b32.xlu0 %v386_v24, 264 }
  0x33   :  { %263 = vbcast.lane.b32.xlu1 %v253_v8, 272  ;;  %267 = vbcast.lane.b32.xlu0 %v253_v8, 280  ;;  %v104_v8 = vcombine.high %v94_v1, %v94_v1 }
  0x35   :  { %v5358_v15 = vrot.slane %v104_v8, %v5162_v5 }
  0x37   :  { %282 = vbcast.lane.b32.xlu1 %v272_v7, 272  ;;  %286 = vbcast.lane.b32.xlu0 %v272_v7, 280  ;;  %v102_v7 = vcombine.high %v5332_v0, %v5332_v0 }
  0x39   :  { %v5355_v14 = vrot.slane %v102_v7, %v5162_v5 }
  0x3b   :  { %301 = vbcast.lane.b32.xlu1 %v291_v10, 272  ;;  %305 = vbcast.lane.b32.xlu0 %v291_v10, 280  ;;  %v105_v10 = vcombine.high %v101_v3, %v101_v3 }
  0x3d   :  { %v5370_v19 = vrot.slane %v105_v10, %v5162_v5 }
  0x3f   :  { %320 = vbcast.lane.b32.xlu1 %v310_v12, 272  ;;  %324 = vbcast.lane.b32.xlu0 %v310_v12, 280 }
  0x43   :  { %158 = vperm.xlu1 %4808, %v41_v25   ;;  %163 = vperm.xlu0 %4807, %v42_v26  }
  0x47   :  { %339 = vbcast.lane.b32.xlu1 %v329_v16, 272  ;;  %343 = vbcast.lane.b32.xlu0 %v329_v16, 280  ;;  %v5361_v16 = vrot.slane %v87_v2, %v5162_v5 }
  0x4b   :  { %210 = vperm.xlu1 %4808, %v45_v27   ;;  %215 = vperm.xlu0 %4807, %v46_v28  }
  0x4f   :  { %358 = vbcast.lane.b32.xlu1 %v348_v20, 272  ;;  %362 = vbcast.lane.b32.xlu0 %v348_v20, 280 }
  0x53   :  { %377 = vbcast.lane.b32.xlu1 %v367_v22, 272  ;;  %381 = vbcast.lane.b32.xlu0 %v367_v22, 280 }
  0x57   :  { %396 = vbcast.lane.b32.xlu1 %v386_v24, 272  ;;  %400 = vbcast.lane.b32.xlu0 %v386_v24, 280  ;;  %v5382_v24 = vrot.slane %v5236_v33, %v5202_v23 }
  0x5b   :  { %407 = vbcast.lane.b32.xlu1 %v5221_v30, 256  ;;  %411 = vbcast.lane.b32.xlu0 %v5221_v30, 264 }
  0x5f   :  { %426 = vbcast.lane.b32.xlu1 %v5226_v31, 256  ;;  %430 = vbcast.lane.b32.xlu0 %v5226_v31, 264 }
  0x63   :  { %445 = vbcast.lane.b32.xlu1 %v5231_v32, 256  ;;  %449 = vbcast.lane.b32.xlu0 %v5231_v32, 264 }
  0x67   :  { %559 = vbcast.lane.b32.xlu1 %v5242_v34, 256  ;;  %563 = vbcast.lane.b32.xlu0 %v5242_v34, 264 }
  0x6b   :  { %578 = vbcast.lane.b32.xlu1 %v5248_v35, 256  ;;  %582 = vbcast.lane.b32.xlu0 %v5248_v35, 264 }
  0x6f   :  { %464 = vbcast.lane.b32.xlu1 %v5253_v36, 256  ;;  %468 = vbcast.lane.b32.xlu0 %v5253_v36, 264 }
  0x73   :  { %597 = vbcast.lane.b32.xlu1 %v5259_v37, 256  ;;  %601 = vbcast.lane.b32.xlu0 %v5259_v37, 264 }
  0x77   :  { %483 = vbcast.lane.b32.xlu1 %v5264_v38, 256  ;;  %487 = vbcast.lane.b32.xlu0 %v5264_v38, 264 }
  0x7b   :  { %616 = vbcast.lane.b32.xlu1 %v5270_v39, 256  ;;  %620 = vbcast.lane.b32.xlu0 %v5270_v39, 264 }
  0x7d   :  { %v5288_v46 = vpop.permute.xlu1 %274  ;;  %v5290_v47 = vpop.permute.xlu0 %255 }
  0x7e   :  { %8829 = vst [vmem:[#allocation7_spill] sm:$0xff] %v5288_v46  ;;  %8830 = vst [vmem:[#allocation8_spill] sm:$0xff] %v5290_v47 }
  0x7f   :  { %502 = vbcast.lane.b32.xlu1 %v5275_v40, 256  ;;  %506 = vbcast.lane.b32.xlu0 %v5275_v40, 264 }
  0x81   :  { %v5306_v53 = vpop.permute.xlu1 %278  ;;  %v5308_v54 = vpop.permute.xlu0 %259 }
  0x82   :  { %8832 = vst [vmem:[#allocation10_spill] sm:$0xff] %v5306_v53  ;;  %8833 = vst [vmem:[#allocation11_spill] sm:$0xff] %v5308_v54 }
  0x83   :  { %635 = vbcast.lane.b32.xlu1 %v5281_v41, 256  ;;  %639 = vbcast.lane.b32.xlu0 %v5281_v41, 264 }
  0x85   :  { %v5321_v59 = vpop.permute.xlu1 %297  ;;  %v5323_v60 = vpop.permute.xlu0 %293 }
  0x86   :  { %8834 = vst [vmem:[#allocation12_spill] sm:$0xff] %v5321_v59  ;;  %8835 = vst [vmem:[#allocation13_spill] sm:$0xff] %v5323_v60 }
  0x87   :  { %521 = vbcast.lane.b32.xlu1 %v5286_v44, 256  ;;  %525 = vbcast.lane.b32.xlu0 %v5286_v44, 264 }
  0x89   :  { %v5337_v4 = vpop.permute.xlu1 %316  ;;  %v5339_v6 = vpop.permute.xlu0 %312 }
  0x8a   :  { %8836 = vst [vmem:[#allocation14_spill] sm:$0xff] %v5337_v4  ;;  %8837 = vst [vmem:[#allocation15_spill] sm:$0xff] %v5339_v6 }
  0x8b   :  { %708 = vperm.xlu1 %4808, %v50_v50   ;;  %713 = vperm.xlu0 %4807, %v51_v51  }
  0x8f   :  { %654 = vbcast.lane.b32.xlu1 %v5312_v55, 256  ;;  %658 = vbcast.lane.b32.xlu0 %v5312_v55, 264 }
  0x93   :  { %540 = vbcast.lane.b32.xlu1 %v5319_v58, 256  ;;  %544 = vbcast.lane.b32.xlu0 %v5319_v58, 264 }
  0x97   :  { %673 = vbcast.lane.b32.xlu1 %v5329_v63, 256  ;;  %677 = vbcast.lane.b32.xlu0 %v5329_v63, 264 }
  0x9a   :  { %v5345_v11 = vpop.permute.xlu1 %153  ;;  %v5347_v12 = vpop.permute.xlu0 %148 }
  0x9b   :  { %415 = vbcast.lane.b32.xlu1 %v5221_v30, 272  ;;  %419 = vbcast.lane.b32.xlu0 %v5221_v30, 280  ;;  %v170_v22 = vmul.f32 %v5347_v12, %v5352_v13  ;;  %v174_v25 = vmul.f32 %v5347_v12, %v5355_v14  ;;  %v178_v26 = vmul.f32 %v5347_v12, %v5358_v15 }
  0x9c   :  { %v182_v27 = vmul.f32 %v5347_v12, %v5361_v16  ;;  %v186_v28 = vmul.f32 %v5347_v12, %v5364_v17  ;;  %v190_v29 = vmul.f32 %v5347_v12, %v5367_v18  ;;  %v194_v30 = vmul.f32 %v5347_v12, %v5370_v19 }
  0x9d   :  { %v171_v23 = vmul.f32 %v5345_v11, %v5352_v13  ;;  %v179_v43 = vmul.f32 %v5345_v11, %v5358_v15  ;;  %v183_v45 = vmul.f32 %v5345_v11, %v5361_v16  ;;  %v187_v48 = vmul.f32 %v5345_v11, %v5364_v17 }
  0x9e   :  { %v5372_v20 = vpop.permute.xlu1 %331  ;;  %v5374_v21 = vpop.permute.xlu0 %335  ;;  %v191_v50 = vmul.f32 %v5345_v11, %v5367_v18  ;;  %v195_v57 = vmul.f32 %v5345_v11, %v5370_v19 }
  0x9f   :  { %8838 = vst [vmem:[#allocation16_spill] sm:$0xff] %v5372_v20  ;;  %8839 = vst [vmem:[#allocation17_spill] sm:$0xff] %v5374_v21  ;;  %434 = vbcast.lane.b32.xlu1 %v5226_v31, 272  ;;  %438 = vbcast.lane.b32.xlu0 %v5226_v31, 280  ;;  %v175_v31 = vmul.f32 %v5345_v11, %v5355_v14 }
  0xa2   :  { %v5400_v33 = vpop.permute.xlu1 %200  ;;  %v5402_v42 = vpop.permute.xlu0 %205 }
  0xa3   :  { %v5413_v51 = vadd.f32 %v5400_v33, %v170_v22  ;;  %v5416_v52 = vadd.f32 %v5400_v33, %v174_v25  ;;  %v5419_v56 = vadd.f32 %v5400_v33, %v178_v26  ;;  %692 = vbcast.lane.b32.xlu1 %v5382_v24, 256  ;;  %v5425_v61 = vadd.f32 %v5400_v33, %v182_v27 }
  0xa4   :  { %v5428_v62 = vadd.f32 %v5400_v33, %v186_v28  ;;  %v5431_v1 = vadd.f32 %v5400_v33, %v190_v29  ;;  %v5434_v2 = vadd.f32 %v5400_v33, %v194_v30  ;;  %696 = vbcast.lane.b32.xlu0 %v5382_v24, 264  ;;  %v5438_v3 = vadd.f32 %v5402_v42, %v171_v23 }
  0xa5   :  { %8840 = vst [vmem:[#allocation18_spill] sm:$0xff] %v5413_v51  ;;  %8841 = vst [vmem:[#allocation19_spill] sm:$0xff] %v5416_v52  ;;  %v5441_v7 = vadd.f32 %v5402_v42, %v175_v31  ;;  %v5444_v8 = vadd.f32 %v5402_v42, %v179_v43  ;;  %v5447_v9 = vadd.f32 %v5402_v42, %v183_v45  ;;  %v730_v30 = vmul.f32 0.0, %v5288_v46 }
  0xa6   :  { %8842 = vst [vmem:[#allocation20_spill] sm:$0xff] %v5419_v56  ;;  %8843 = vst [vmem:[#allocation21_spill] sm:$0xff] %v5425_v61  ;;  %v5450_v10 = vadd.f32 %v5402_v42, %v187_v48  ;;  %v5453_v22 = vadd.f32 %v5402_v42, %v191_v50  ;;  %v5456_v25 = vadd.f32 %v5402_v42, %v195_v57  ;;  %v5458_v26 = vpop.permute.xlu1 %350  ;;  %v5460_v27 = vpop.permute.xlu0 %354  ;;  %v726_v23 = vmul.f32 0.0, %v5290_v47 }
  0xa7   :  { %8844 = vst [vmem:[#allocation22_spill] sm:$0xff] %v5428_v62  ;;  %8845 = vst [vmem:[#allocation23_spill] sm:$0xff] %v5431_v1  ;;  %453 = vbcast.lane.b32.xlu1 %v5231_v32, 272  ;;  %v731_v31 = vmul.f32 0.0, %v5306_v53  ;;  %v727_v43 = vmul.f32 0.0, %v5308_v54  ;;  %v734_v45 = vmul.f32 0.0, %v5323_v60 }
  0xa8   :  { %8846 = vst [vmem:[#allocation24_spill] sm:$0xff] %v5434_v2  ;;  %8847 = vst [vmem:[#allocation25_spill] sm:$0xff] %v5438_v3  ;;  %457 = vbcast.lane.b32.xlu0 %v5231_v32, 280  ;;  %v735_v32 = vmul.f32 0.0, %v5321_v59  ;;  %v758_v57 = vadd.f32 %v730_v30, %v726_v23  ;;  %v743_v62 = vmul.f32 0.0, %v5374_v21  ;;  %v746_v23 = vmul.f32 0.0, %v5458_v26 }
  0xa9   :  { %8848 = vst [vmem:[#allocation26_spill] sm:$0xff] %v5441_v7  ;;  %8849 = vst [vmem:[#allocation27_spill] sm:$0xff] %v5444_v8  ;;  %v765_v2 = vadd.f32 %v731_v31, %v727_v43  ;;  %v747_v43 = vmul.f32 0.0, %v5460_v27 }
  0xaa   :  { %8850 = vst [vmem:[#allocation28_spill] sm:$0xff] %v5447_v9  ;;  %8851 = vst [vmem:[#allocation29_spill] sm:$0xff] %v5450_v10  ;;  %v5464_v28 = vpop.permute.xlu1 %369  ;;  %v5466_v29 = vpop.permute.xlu0 %373  ;;  %v759_v1 = vadd.f32 %v758_v57, %v734_v45 }
  0xab   :  { %8852 = vst [vmem:[#allocation30_spill] sm:$0xff] %v5453_v22  ;;  %8853 = vst [vmem:[#allocation31_spill] sm:$0xff] %v5456_v25  ;;  %567 = vbcast.lane.b32.xlu1 %v5242_v34, 272  ;;  %v738_v25 = vmul.f32 0.0, %v5339_v6  ;;  %v739_v22 = vmul.f32 0.0, %v5337_v4  ;;  %v766_v10 = vadd.f32 %v765_v2, %v735_v32  ;;  %v750_v45 = vmul.f32 0.0, %v5464_v28 }
  0xac   :  { %8854 = vst [vmem:[#allocation32_spill] sm:$0xff] %v5458_v26  ;;  %8855 = vst [vmem:[#allocation33_spill] sm:$0xff] %v5460_v27  ;;  %571 = vbcast.lane.b32.xlu0 %v5242_v34, 280  ;;  %v742_v34 = vmul.f32 0.0, %v5372_v20  ;;  %v751_v32 = vmul.f32 0.0, %v5466_v29 }
  0xad   :  { %8856 = vst [vmem:[#allocation34_spill] sm:$0xff] %v5464_v28  ;;  %8857 = vst [vmem:[#allocation35_spill] sm:$0xff] %v5466_v29  ;;  %v760_v30 = vadd.f32 %v759_v1, %v738_v25  ;;  %v767_v31 = vadd.f32 %v766_v10, %v739_v22  ;;  %v5502_v1 = vrot.slane %v5332_v0, %v5162_v5 }
  0xae   :  { %v5476_v48 = vpop.permute.xlu1 %388  ;;  %v5478_v50 = vpop.permute.xlu0 %392 }
  0xaf   :  { %8858 = vst [vmem:[#allocation36_spill] sm:$0xff] %v5476_v48  ;;  %8859 = vst [vmem:[#allocation37_spill] sm:$0xff] %v5478_v50  ;;  %586 = vbcast.lane.b32.xlu1 %v5248_v35, 272  ;;  %v768_v2 = vadd.f32 %v767_v31, %v743_v62  ;;  %v754_v10 = vmul.f32 0.0, %v5476_v48  ;;  %v755_v22 = vmul.f32 0.0, %v5478_v50  ;;  %v166_v0 = vmul.f32 %v5347_v12, %v5502_v1 }
  0xb0   :  { %590 = vbcast.lane.b32.xlu0 %v5248_v35, 280  ;;  %v761_v35 = vadd.f32 %v760_v30, %v742_v34 }
  0xb2   :  { %v5486_v9 = vpop.permute.xlu1 %263  ;;  %v5488_v61 = vpop.permute.xlu0 %267  ;;  %v762_v25 = vadd.f32 %v761_v35, %v746_v23  ;;  %v167_v23 = vmul.f32 %v5345_v11, %v5502_v1 }
  0xb3   :  { %8860 = vst [vmem:[#allocation38_spill] sm:$0xff] %v5486_v9  ;;  %8861 = vst [vmem:[#allocation39_spill] sm:$0xff] %v5488_v61  ;;  %472 = vbcast.lane.b32.xlu1 %v5253_v36, 272 }
  0xb4   :  { %476 = vbcast.lane.b32.xlu0 %v5253_v36, 280  ;;  %v769_v36 = vadd.f32 %v768_v2, %v747_v43  ;;  %v763_v62 = vadd.f32 %v762_v25, %v750_v45  ;;  %v219_v35 = vadd.f32 %v5402_v42, %v167_v23 }
  0xb6   :  { %v5496_v57 = vpop.permute.xlu1 %282  ;;  %v5498_v8 = vpop.permute.xlu0 %286  ;;  %v770_v34 = vadd.f32 %v769_v36, %v751_v32  ;;  %v764_v56 = vadd.f32 %v763_v62, %v754_v10 }
  0xb7   :  { %8862 = vst [vmem:[#allocation40_spill] sm:$0xff] %v5496_v57  ;;  %8863 = vst [vmem:[#allocation41_spill] sm:$0xff] %v5498_v8  ;;  %605 = vbcast.lane.b32.xlu1 %v5259_v37, 272  ;;  %v733_v62 = vmul.f32 0.0, %v5498_v8 }
  0xb8   :  { %609 = vbcast.lane.b32.xlu0 %v5259_v37, 280  ;;  %v771_v43 = vadd.f32 %v770_v34, %v755_v22  ;;  %v218_v37 = vadd.f32 %v5400_v33, %v166_v0  ;;  %v732_v22 = vmul.f32 0.0, %v5496_v57 }
  0xba   :  { %v5508_v30 = vpop.permute.xlu1 %301  ;;  %v5510_v31 = vpop.permute.xlu0 %305  ;;  %v786_v32 = vadd.f32 %v764_v56, %v218_v37  ;;  %v787_v12 = vadd.f32 %v771_v43, %v219_v35 }
  0xbb   :  { %8864 = vst [vmem:[#allocation42_spill] sm:$0xff] %v5508_v30  ;;  %8865 = vst [vmem:[#allocation43_spill] sm:$0xff] %v5510_v31  ;;  %491 = vbcast.lane.b32.xlu1 %v5264_v38, 272  ;;  %v737_v3 = vmul.f32 0.0, %v5510_v31 }
  0xbc   :  { %495 = vbcast.lane.b32.xlu0 %v5264_v38, 280  ;;  %v4754_v10 = vmul.f32 -1.442695, %v786_v32  ;;  %v4755_v42 = vmul.f32 -1.442695, %v787_v12 }
  0xbe   :  { %v5520_v45 = vpop.permute.xlu1 %320  ;;  %v5522_v2 = vpop.permute.xlu0 %324  ;;  %4810 = vpow2.f32 %v4754_v10 }
  0xbf   :  { %8866 = vst [vmem:[#allocation44_spill] sm:$0xff] %v5520_v45  ;;  %8867 = vst [vmem:[#allocation45_spill] sm:$0xff] %v5522_v2  ;;  %624 = vbcast.lane.b32.xlu1 %v5270_v39, 272  ;;  %4812 = vpow2.f32 %v4755_v42 }
  0xc0   :  { %628 = vbcast.lane.b32.xlu0 %v5270_v39, 280 }
  0xc2   :  { %v5526_v25 = vpop.permute.xlu1 %158  ;;  %v5528_v11 = vpop.permute.xlu0 %163 }
  0xc3   :  { %v172_v38 = vmul.f32 %v5526_v25, %v5352_v13  ;;  %v176_v33 = vmul.f32 %v5526_v25, %v5355_v14  ;;  %510 = vbcast.lane.b32.xlu1 %v5275_v40, 272  ;;  %v180_v56 = vmul.f32 %v5526_v25, %v5358_v15  ;;  %v184_v39 = vmul.f32 %v5526_v25, %v5361_v16 }
  0xc4   :  { %v188_v36 = vmul.f32 %v5526_v25, %v5364_v17  ;;  %514 = vbcast.lane.b32.xlu0 %v5275_v40, 280  ;;  %v192_v34 = vmul.f32 %v5526_v25, %v5367_v18  ;;  %v196_v0 = vmul.f32 %v5526_v25, %v5370_v19  ;;  %v173_v23 = vmul.f32 %v5528_v11, %v5352_v13 }
  0xc5   :  { %v177_v43 = vmul.f32 %v5528_v11, %v5355_v14  ;;  %v181_v37 = vmul.f32 %v5528_v11, %v5358_v15  ;;  %v185_v40 = vmul.f32 %v5528_v11, %v5361_v16  ;;  %v189_v12 = vmul.f32 %v5528_v11, %v5364_v17 }
  0xc6   :  { %v5556_v35 = vpop.permute.xlu1 %339  ;;  %v5558_v32 = vpop.permute.xlu0 %343  ;;  %v193_v7 = vmul.f32 %v5528_v11, %v5367_v18  ;;  %v197_v13 = vmul.f32 %v5528_v11, %v5370_v19  ;;  %v728_v14 = vmul.f32 0.0, %v5486_v9  ;;  %v729_v15 = vmul.f32 0.0, %v5488_v61 }
  0xc7   :  { %8868 = vst [vmem:[#allocation46_spill] sm:$0xff] %v5556_v35  ;;  %8869 = vst [vmem:[#allocation47_spill] sm:$0xff] %v5558_v32  ;;  %643 = vbcast.lane.b32.xlu1 %v5281_v41, 272  ;;  %v736_v17 = vmul.f32 0.0, %v5508_v30  ;;  %v740_v19 = vmul.f32 0.0, %v5520_v45 }
  0xc8   :  { %647 = vbcast.lane.b32.xlu0 %v5281_v41, 280  ;;  %v772_v16 = vadd.f32 %v732_v22, %v728_v14  ;;  %v779_v52 = vadd.f32 %v733_v62, %v729_v15 }
  0xca   :  { %v211_v18 = vpop.permute.xlu1 %210  ;;  %v216_v51 = vpop.permute.xlu0 %215 }
  0xcb   :  { %v5573_v50 = vadd.f32 %v211_v18, %v172_v38  ;;  %v5575_v10 = vadd.f32 %v211_v18, %v176_v33  ;;  %v5577_v48 = vadd.f32 %v211_v18, %v180_v56  ;;  %529 = vbcast.lane.b32.xlu1 %v5286_v44, 272  ;;  %v5580_v41 = vadd.f32 %v211_v18, %v184_v39  ;;  %v52_v38 = vld [vmem:[%s8554_s6 + $0x10] sm:$0xff] }
  0xcc   :  { %v5582_v42 = vadd.f32 %v211_v18, %v188_v36  ;;  %v5584_v22 = vadd.f32 %v211_v18, %v192_v34  ;;  %v5586_v62 = vadd.f32 %v211_v18, %v196_v0  ;;  %533 = vbcast.lane.b32.xlu0 %v5286_v44, 280  ;;  %v741_v33 = vmul.f32 0.0, %v5522_v2  ;;  %v53_v36 = vld [vmem:[%s8554_s6 + $0x18] sm:$0xff] }
  0xcd   :  { %8870 = vst [vmem:[#allocation48_spill] sm:$0xff] %v5575_v10  ;;  %8871 = vst [vmem:[#allocation49_spill] sm:$0xff] %v5577_v48  ;;  %v5593_v56 = vadd.f32 %v216_v51, %v173_v23  ;;  %v5595_v14 = vadd.f32 %v216_v51, %v177_v43  ;;  %v5597_v39 = vadd.f32 %v216_v51, %v181_v37  ;;  %v744_v37 = vmul.f32 0.0, %v5556_v35 }
  0xce   :  { %8872 = vst [vmem:[#allocation50_spill] sm:$0xff] %v5580_v41  ;;  %8873 = vst [vmem:[#allocation51_spill] sm:$0xff] %v5582_v42  ;;  %v5602_v34 = vadd.f32 %v216_v51, %v185_v40  ;;  %v5604_v0 = vadd.f32 %v216_v51, %v189_v12  ;;  %v5606_v44 = vadd.f32 %v216_v51, %v193_v7  ;;  %v5612_v23 = vpop.permute.xlu0 %362  ;;  %v745_v42 = vmul.f32 0.0, %v5558_v32 }
  0xcf   :  { %8874 = vst [vmem:[#allocation52_spill] sm:$0xff] %v5584_v22  ;;  %8875 = vst [vmem:[#allocation53_spill] sm:$0xff] %v5586_v62  ;;  %v5608_v15 = vadd.f32 %v216_v51, %v197_v13  ;;  %v5610_v62 = vpop.permute.xlu1 %358  ;;  %v773_v43 = vadd.f32 %v772_v16, %v736_v17  ;;  %v780_v22 = vadd.f32 %v779_v52, %v737_v3  ;;  %718 = vperm.xlu1 %4808, %v52_v38   ;;  %v4811_v13 = vpop.eup %4810 }
  0xd0   :  { %8876 = vst [vmem:[#allocation54_spill] sm:$0xff] %v5595_v14  ;;  %8877 = vst [vmem:[#allocation55_spill] sm:$0xff] %v5597_v39  ;;  %723 = vperm.xlu0 %4807, %v53_v36   ;;  %v748_v12 = vmul.f32 0.0, %v5610_v62  ;;  %v749_v7 = vmul.f32 0.0, %v5612_v23  ;;  %v169_v36 = vmul.f32 %v5528_v11, %v5502_v1 }
  0xd1   :  { %8878 = vst [vmem:[#allocation56_spill] sm:$0xff] %v5602_v34  ;;  %8879 = vst [vmem:[#allocation57_spill] sm:$0xff] %v5604_v0  ;;  %v774_v40 = vadd.f32 %v773_v43, %v740_v19  ;;  %v781_v34 = vadd.f32 %v780_v22, %v741_v33  ;;  %v4813_v0 = vpop.eup %4812  ;;  %v168_v33 = vmul.f32 %v5526_v25, %v5502_v1 }
  0xd2   :  { %8880 = vst [vmem:[#allocation58_spill] sm:$0xff] %v5606_v44  ;;  %8881 = vst [vmem:[#allocation59_spill] sm:$0xff] %v5608_v15  ;;  %v5620_v44 = vpop.permute.xlu0 %381  ;;  %v800_v38 = vadd.f32 1.0, %v4813_v0  ;;  %v221_v25 = vadd.f32 %v216_v51, %v169_v36  ;;  %v54_v51 = vld [vmem:[%s8555_s7] sm:$0xff] }
  0xd3   :  { %8882 = vst [vmem:[#allocation60_spill] sm:$0xff] %v5610_v62  ;;  %8883 = vst [vmem:[#allocation61_spill] sm:$0xff] %v5612_v23  ;;  %v5618_v15 = vpop.permute.xlu1 %377  ;;  %v775_v16 = vadd.f32 %v774_v40, %v744_v37  ;;  %v782_v52 = vadd.f32 %v781_v34, %v745_v42  ;;  %v753_v17 = vmul.f32 0.0, %v5620_v44  ;;  %662 = vbcast.lane.b32.xlu1 %v5312_v55, 272 }
  0xd4   :  { %8884 = vst [vmem:[#allocation62_spill] sm:$0xff] %v5618_v15  ;;  %8885 = vst [vmem:[#allocation63_spill] sm:$0xff] %v5620_v44  ;;  %v752_v3 = vmul.f32 0.0, %v5618_v15  ;;  %666 = vbcast.lane.b32.xlu0 %v5312_v55, 280  ;;  %v799_v55 = vadd.f32 1.0, %v4811_v13  ;;  %v220_v0 = vadd.f32 %v211_v18, %v168_v33  ;;  %4814 = vrcp.f32 %v800_v38 }
  0xd5   :  { %v776_v19 = vadd.f32 %v775_v16, %v748_v12  ;;  %v783_v22 = vadd.f32 %v782_v52, %v749_v7  ;;  %v55_v18 = vld [vmem:[#allocation2] sm:$0x1] }
  0xd6   :  { %v5632_v42 = vpop.permute.xlu0 %400  ;;  %4816 = vrcp.f32 %v799_v55 }
  0xd7   :  { %v5630_v43 = vpop.permute.xlu1 %396  ;;  %8887 = vst [vmem:[#allocation65_spill] sm:$0xff] %v5632_v42  ;;  %v777_v34 = vadd.f32 %v776_v19, %v752_v3  ;;  %v784_v37 = vadd.f32 %v783_v22, %v753_v17  ;;  %v757_v41 = vmul.f32 0.0, %v5632_v42  ;;  %548 = vbcast.lane.b32.xlu1 %v5319_v58, 272 }
  0xd8   :  { %8886 = vst [vmem:[#allocation64_spill] sm:$0xff] %v5630_v43  ;;  %v756_v40 = vmul.f32 0.0, %v5630_v43  ;;  %552 = vbcast.lane.b32.xlu0 %v5319_v58, 280 }
  0xd9   :  { %v785_v7 = vadd.f32 %v784_v37, %v757_v41 }
  0xda   :  { %v778_v12 = vadd.f32 %v777_v34, %v756_v40  ;;  %v5640_v11 = vpop.permute.xlu0 %411 }
  0xdb   :  { %v5638_v1 = vpop.permute.xlu1 %407  ;;  %8889 = vst [vmem:[#allocation67_spill] sm:$0xff] %v5640_v11  ;;  %v789_v52 = vadd.f32 %v785_v7, %v221_v25  ;;  %681 = vbcast.lane.b32.xlu1 %v5329_v63, 272 }
  0xdc   :  { %8888 = vst [vmem:[#allocation66_spill] sm:$0xff] %v5638_v1  ;;  %v788_v16 = vadd.f32 %v778_v12, %v220_v0  ;;  %685 = vbcast.lane.b32.xlu0 %v5329_v63, 280 }
  0xdd   :  { %4818 = vtanh.f32 %v789_v52 }
  0xde   :  { %v4756_v3 = vmul.f32 -1.442695, %v788_v16  ;;  %v5646_v58 = vpop.permute.xlu0 %430  ;;  %v4815_v63 = vpop.eup %4814 }
  0xdf   :  { %v5644_v13 = vpop.permute.xlu1 %426  ;;  %8891 = vst [vmem:[#allocation69_spill] sm:$0xff] %v5646_v58  ;;  %700 = vbcast.lane.b32.xlu1 %v5382_v24, 272  ;;  %v809_v36 = vmul.f32 0.0, %v4815_v63 }
  0xe0   :  { %8890 = vst [vmem:[#allocation68_spill] sm:$0xff] %v5644_v13  ;;  %4820 = vpow2.f32 %v4756_v3  ;;  %704 = vbcast.lane.b32.xlu0 %v5382_v24, 280  ;;  %v4817_v19 = vpop.eup %4816 }
  0xe2   :  { %v5655_v17 = vpop.permute.xlu0 %449 }
  0xe3   :  { %v5653_v41 = vpop.permute.xlu1 %445  ;;  %8893 = vst [vmem:[#allocation71_spill] sm:$0xff] %v5655_v17  ;;  %4703 = vperm.xlu1 %4808, %v54_v51  }
  0xe4   :  { %8892 = vst [vmem:[#allocation70_spill] sm:$0xff] %v5653_v41  ;;  %4716 = vperm.xlu0 %4807, %v55_v18  }
  0xe6   :  { %v5659_v38 = vpop.permute.xlu0 %563 }
  0xe7   :  { %v5657_v22 = vpop.permute.xlu1 %559  ;;  %8895 = vst [vmem:[#allocation73_spill] sm:$0xff] %v5659_v38  ;;  %v4819_v33 = vpop.eup %4818 }
  0xe8   :  { %8894 = vst [vmem:[#allocation72_spill] sm:$0xff] %v5657_v22  ;;  %v810_v24 = vmul.f32 %v4819_v33, %v4817_v19 }
  0xea   :  { %v4821_v34 = vpop.eup %4820  ;;  %v5661_v40 = vadd.f32 %v810_v24, %v809_v36  ;;  %v5665_v0 = vpop.permute.xlu0 %582 }
  0xeb   :  { %v801_v37 = vadd.f32 1.0, %v4821_v34  ;;  %v5663_v55 = vpop.permute.xlu1 %578  ;;  %8898 = vst [vmem:[#allocation76_spill] sm:$0xff] %v5665_v0 }
  0xec   :  { %8896 = vst [vmem:[#allocation74_spill] sm:$0xff] %v5661_v40  ;;  %8897 = vst [vmem:[#allocation75_spill] sm:$0xff] %v5663_v55 }
  0xed   :  { %4822 = vrcp.f32 %v801_v37 }
  0xee   :  { %4824 = vtanh.f32 %v5661_v40  ;;  %v5670_v12 = vpop.permute.xlu0 %468 }
  0xef   :  { %v5668_v25 = vpop.permute.xlu1 %464  ;;  %8900 = vst [vmem:[#allocation78_spill] sm:$0xff] %v5670_v12 }
  0xf0   :  { %8899 = vst [vmem:[#allocation77_spill] sm:$0xff] %v5668_v25 }
  0xf2   :  { %v5674_v16 = vpop.permute.xlu0 %601 }
  0xf3   :  { %v5672_v7 = vpop.permute.xlu1 %597  ;;  %8902 = vst [vmem:[#allocation80_spill] sm:$0xff] %v5674_v16 }
  0xf4   :  { %8901 = vst [vmem:[#allocation79_spill] sm:$0xff] %v5672_v7 }
  0xf6   :  { %v5678_v51 = vpop.permute.xlu0 %487 }
  0xf7   :  { %v4823_v52 = vpop.eup %4822  ;;  %v5676_v3 = vpop.permute.xlu1 %483  ;;  %8904 = vst [vmem:[#allocation82_spill] sm:$0xff] %v5678_v51 }
  0xf8   :  { %8903 = vst [vmem:[#allocation81_spill] sm:$0xff] %v5676_v3  ;;  %v4825_v18 = vpop.eup %4824 }
  0xf9   :  { %v813_v63 = vmul.f32 %v4825_v18, %v4823_v52 }
  0xfa   :  { %v5683_v24 = vpop.permute.xlu0 %620 }
  0xfb   :  { %v815_v19 = vcombine.high %v813_v63, %v813_v63  ;;  %v822_v33 = vrot.slane %v813_v63, %v5298_v49  ;;  %v5681_v36 = vpop.permute.xlu1 %616  ;;  %8906 = vst [vmem:[#allocation84_spill] sm:$0xff] %v5683_v24 }
  0xfc   :  { %8905 = vst [vmem:[#allocation83_spill] sm:$0xff] %v5681_v36 }
  0xfd   :  { %v829_v34 = vrot.slane %v815_v19, %v5298_v49  ;;  %v830_v37 = vcombine.high %v822_v33, %v822_v33  ;;  %v838_v39 = vrot.slane %v822_v33, %v5298_v49 }
  0xfe   :  { %v5691_v52 = vpop.permute.xlu0 %506 }
  0xff   :  { %v831_v48 = vcombine.high %v829_v34, %v829_v34  ;;  %v845_v14 = vrot.slane %v829_v34, %v5298_v49  ;;  %v852_v10 = vrot.slane %v830_v37, %v5298_v49  ;;  %v860_v40 = vcombine.high %v838_v39, %v838_v39  ;;  %v5689_v16 = vpop.permute.xlu1 %502  ;;  %8908 = vst [vmem:[#allocation86_spill] sm:$0xff] %v5691_v52 }
 0x100   :  { %8907 = vst [vmem:[#allocation85_spill] sm:$0xff] %v5689_v16  ;;  %v5694_v18 = vrot.slane %v838_v39, %v5162_v5 }
 0x101   :  { %v859_v63 = vrot.slane %v831_v48, %v5298_v49  ;;  %v861_v24 = vcombine.high %v845_v14, %v845_v14  ;;  %v862_v19 = vcombine.high %v852_v10, %v852_v10  ;;  %v5698_v36 = vrot.slane %v852_v10, %v5162_v5 }
 0x102   :  { %v5701_v33 = vrot.slane %v860_v40, %v5162_v5  ;;  %v5704_v34 = vrot.slane %v845_v14, %v5162_v5  ;;  %v1179_v39 = vmul.f32 %v5694_v18, %v5290_v47  ;;  %v1180_v48 = vmul.f32 %v5694_v18, %v5308_v54  ;;  %v5715_v10 = vpop.permute.xlu0 %639 }
 0x103   :  { %v863_v37 = vcombine.high %v859_v63, %v859_v63  ;;  %v5707_v7 = vrot.slane %v862_v19, %v5162_v5  ;;  %v5713_v49 = vpop.permute.xlu1 %635  ;;  %8910 = vst [vmem:[#allocation88_spill] sm:$0xff] %v5715_v10  ;;  %v5718_v40 = vrot.slane %v859_v63, %v5162_v5  ;;  %v5721_v14 = vrot.slane %v861_v24, %v5162_v5 }
 0x104   :  { %8909 = vst [vmem:[#allocation87_spill] sm:$0xff] %v5713_v49  ;;  %v1181_v19 = vmul.f32 %v5694_v18, %v5486_v9  ;;  %v5727_v0 = vmul.f32 %v5694_v18, %v5488_v61  ;;  %v1183_v54 = vmul.f32 %v5698_v36, %v5288_v46  ;;  %v1184_v63 = vmul.f32 %v5698_v36, %v5306_v53 }
 0x105   :  { %8911 = vst [vmem:[#allocation89_spill] sm:$0xff] %v5721_v14  ;;  %v5730_v47 = vrot.slane %v863_v37, %v5162_v5  ;;  %v1185_v24 = vmul.f32 %v5698_v36, %v5496_v57  ;;  %v5740_v10 = vmul.f32 %v5698_v36, %v5498_v8  ;;  %v1187_v61 = vmul.f32 %v5701_v33, %v5323_v60 }
 0x106   :  { %v1188_v37 = vmul.f32 %v5701_v33, %v5321_v59  ;;  %v1189_v9 = vmul.f32 %v5701_v33, %v5508_v30  ;;  %v5750_v46 = vmul.f32 %v5701_v33, %v5510_v31  ;;  %v1191_v57 = vmul.f32 %v5707_v7, %v5339_v6  ;;  %v5760_v5 = vpop.permute.xlu0 %525 }
 0x107   :  { %8912 = vst [vmem:[#allocation90_spill] sm:$0xff] %v5730_v47  ;;  %v1192_v8 = vmul.f32 %v5707_v7, %v5337_v4  ;;  %v1193_v53 = vmul.f32 %v5707_v7, %v5520_v45  ;;  %v5758_v60 = vpop.permute.xlu1 %521  ;;  %8914 = vst [vmem:[#allocation92_spill] sm:$0xff] %v5760_v5  ;;  %v5764_v30 = vmul.f32 %v5707_v7, %v5522_v2 }
 0x108   :  { %8913 = vst [vmem:[#allocation91_spill] sm:$0xff] %v5758_v60  ;;  %v1195_v31 = vmul.f32 %v5704_v34, %v5372_v20  ;;  %v1196_v6 = vmul.f32 %v5704_v34, %v5374_v21  ;;  %v1197_v4 = vmul.f32 %v5704_v34, %v5556_v35  ;;  %v1198_v45 = vmul.f32 %v5704_v34, %v5558_v32  ;;  %v8915_v60 = vld [vmem:[#allocation36_spill] sm:$0xff] }
 0x109   :  { %v1199_v59 = vmul.f32 %v5718_v40, %v5458_v26  ;;  %v1200_v5 = vmul.f32 %v5718_v40, %v5460_v27  ;;  %v1201_v2 = vmul.f32 %v5718_v40, %v5610_v62  ;;  %v1202_v20 = vmul.f32 %v5718_v40, %v5612_v23  ;;  %v8916_v62 = vld [vmem:[#allocation37_spill] sm:$0xff] }
 0x10a   :  { %v1203_v21 = vmul.f32 %v5721_v14, %v5464_v28  ;;  %v1204_v35 = vmul.f32 %v5721_v14, %v5466_v29  ;;  %v1207_v32 = vmul.f32 %v5730_v47, %v8915_v60  ;;  %v1205_v26 = vmul.f32 %v5721_v14, %v5618_v15  ;;  %v5800_v38 = vpop.permute.xlu0 %713 }
 0x10b   :  { %v5792_v27 = vmul.f32 %v5721_v14, %v5620_v44  ;;  %v1208_v49 = vmul.f32 %v5730_v47, %v8916_v62  ;;  %v1209_v23 = vmul.f32 %v5730_v47, %v5630_v43  ;;  %v5798_v28 = vpop.permute.xlu1 %708  ;;  %8918 = vst [vmem:[#allocation94_spill] sm:$0xff] %v5800_v38  ;;  %v5804_v60 = vmul.f32 %v5730_v47, %v5632_v42 }
 0x10c   :  { %8917 = vst [vmem:[#allocation93_spill] sm:$0xff] %v5798_v28  ;;  %v1211_v15 = vsel %vm936_vm0, %v1179_v39, 0.0  ;;  %v1212_v29 = vsel %vm936_vm0, %v1183_v54, 0.0  ;;  %v1214_v44 = vsel %vm936_vm0, %v1187_v61, 0.0  ;;  %v1216_v62 = vsel %vm936_vm0, %v1191_v57, 0.0 }
 0x10d   :  { %v1213_v14 = vadd.f32 %v1212_v29, %v1211_v15  ;;  %v1218_v22 = vsel %vm936_vm0, %v1195_v31, 0.0  ;;  %v1220_v43 = vsel %vm936_vm0, %v1199_v59, 0.0  ;;  %v1222_v28 = vsel %vm936_vm0, %v1203_v21, 0.0 }
 0x10e   :  { %v1224_v38 = vsel %vm936_vm0, %v1207_v32, 0.0  ;;  %v1226_v42 = vsel %vm936_vm0, %v1180_v48, 0.0  ;;  %v1227_v47 = vsel %vm936_vm0, %v1184_v63, 0.0  ;;  %v1229_v54 = vsel %vm936_vm0, %v1188_v37, 0.0  ;;  %v5820_v57 = vpop.permute.xlu0 %658 }
 0x10f   :  { %v1215_v39 = vadd.f32 %v1214_v44, %v1213_v14  ;;  %v1228_v55 = vadd.f32 %v1227_v47, %v1226_v42  ;;  %v1231_v61 = vsel %vm936_vm0, %v1192_v8, 0.0  ;;  %v5818_v29 = vpop.permute.xlu1 %654  ;;  %8920 = vst [vmem:[#allocation96_spill] sm:$0xff] %v5820_v57  ;;  %v1233_v59 = vsel %vm936_vm0, %v1196_v6, 0.0 }
 0x110   :  { %8919 = vst [vmem:[#allocation95_spill] sm:$0xff] %v5818_v29  ;;  %v1235_v21 = vsel %vm936_vm0, %v1200_v5, 0.0  ;;  %v1241_v31 = vsel %vm936_vm0, %v1181_v19, 0.0  ;;  %v1242_v32 = vsel %vm936_vm0, %v1185_v24, 0.0  ;;  %v1237_v47 = vsel %vm936_vm0, %v1204_v35, 0.0 }
 0x111   :  { %v1217_v15 = vadd.f32 %v1216_v62, %v1215_v39  ;;  %v1230_v48 = vadd.f32 %v1229_v54, %v1228_v55  ;;  %v1243_v44 = vadd.f32 %v1242_v32, %v1241_v31  ;;  %v1239_v42 = vsel %vm936_vm0, %v1208_v49, 0.0 }
 0x112   :  { %v1244_v8 = vsel %vm936_vm0, %v1189_v9, 0.0  ;;  %v1246_v14 = vsel %vm936_vm0, %v1193_v53, 0.0  ;;  %v1248_v63 = vsel %vm936_vm0, %v1197_v4, 0.0  ;;  %v1250_v19 = vsel %vm936_vm0, %v1201_v2, 0.0  ;;  %v5834_v62 = vpop.permute.xlu0 %544 }
 0x113   :  { %v1219_v6 = vadd.f32 %v1218_v22, %v1217_v15  ;;  %v1232_v37 = vadd.f32 %v1231_v61, %v1230_v48  ;;  %v1245_v5 = vadd.f32 %v1244_v8, %v1243_v44  ;;  %v5832_v57 = vpop.permute.xlu1 %540  ;;  %8922 = vst [vmem:[#allocation98_spill] sm:$0xff] %v5834_v62  ;;  %v1252_v35 = vsel %vm936_vm0, %v1205_v26, 0.0 }
 0x114   :  { %8921 = vst [vmem:[#allocation97_spill] sm:$0xff] %v5832_v57  ;;  %v1254_v55 = vsel %vm936_vm0, %v1209_v23, 0.0  ;;  %v1256_v49 = vsel %vm936_vm0, %v5727_v0, 0.0  ;;  %v1257_v53 = vsel %vm936_vm0, %v5740_v10, 0.0  ;;  %v1259_v2 = vsel %vm936_vm0, %v5750_v46, 0.0 }
 0x115   :  { %v1221_v4 = vadd.f32 %v1220_v43, %v1219_v6  ;;  %v1234_v9 = vadd.f32 %v1233_v59, %v1232_v37  ;;  %v1247_v22 = vadd.f32 %v1246_v14, %v1245_v5  ;;  %v1258_v24 = vadd.f32 %v1257_v53, %v1256_v49  ;;  %v8925_v37 = vld [vmem:[#allocation18_spill] sm:$0xff] }
 0x116   :  { %v1261_v39 = vsel %vm936_vm0, %v5764_v30, 0.0  ;;  %v1263_v26 = vsel %vm936_vm0, %v1198_v45, 0.0  ;;  %v1265_v23 = vsel %vm936_vm0, %v1202_v20, 0.0  ;;  %v5850_v43 = vpop.permute.xlu0 %677  ;;  %v904_v10 = vmul.f32 %v5694_v18, %v5638_v1 }
 0x117   :  { %v1223_v54 = vadd.f32 %v1222_v28, %v1221_v4  ;;  %v1236_v61 = vadd.f32 %v1235_v21, %v1234_v9  ;;  %v1249_v0 = vadd.f32 %v1248_v63, %v1247_v22  ;;  %v1260_v31 = vadd.f32 %v1259_v2, %v1258_v24  ;;  %v5848_v32 = vpop.permute.xlu1 %673  ;;  %8924 = vst [vmem:[#allocation100_spill] sm:$0xff] %v5850_v43  ;;  %v8928_v24 = vld [vmem:[#allocation25_spill] sm:$0xff] }
 0x118   :  { %8923 = vst [vmem:[#allocation99_spill] sm:$0xff] %v5848_v32  ;;  %v905_v46 = vmul.f32 %v5694_v18, %v5640_v11  ;;  %v908_v30 = vmul.f32 %v5698_v36, %v5644_v13  ;;  %v909_v20 = vmul.f32 %v5698_v36, %v5646_v58  ;;  %v937_v15 = vsel %vm936_vm0, %v904_v10, 0.0 }
 0x119   :  { %v1225_v28 = vadd.f32 %v1224_v38, %v1223_v54  ;;  %v1238_v45 = vadd.f32 %v1237_v47, %v1236_v61  ;;  %v1251_v59 = vadd.f32 %v1250_v19, %v1249_v0  ;;  %v1262_v21 = vadd.f32 %v1261_v39, %v1260_v31 }
 0x11a   :  { %v952_v48 = vsel %vm936_vm0, %v905_v46, 0.0  ;;  %v938_v44 = vsel %vm936_vm0, %v908_v30, 0.0  ;;  %v953_v8 = vsel %vm936_vm0, %v909_v20, 0.0  ;;  %v5867_v53 = vpop.permute.xlu0 %419  ;;  %v912_v19 = vmul.f32 %v5701_v33, %v5653_v41 }
 0x11b   :  { %v1240_v14 = vadd.f32 %v1239_v42, %v1238_v45  ;;  %v1253_v63 = vadd.f32 %v1252_v35, %v1251_v59  ;;  %v1264_v6 = vadd.f32 %v1263_v26, %v1262_v21  ;;  %v1271_v5 = vadd.f32 %v1225_v28, %v8925_v37  ;;  %v5865_v49 = vpop.permute.xlu1 %415  ;;  %8927 = vst [vmem:[#allocation101_spill] sm:$0xff] %v5867_v53 }
 0x11c   :  { %8926 = vst [vmem:[#allocation18_spill] sm:$0xff] %v5865_v49  ;;  %v939_v38 = vadd.f32 %v938_v44, %v937_v15  ;;  %v954_v47 = vadd.f32 %v953_v8, %v952_v48  ;;  %v913_v4 = vmul.f32 %v5701_v33, %v5655_v17  ;;  %v1267_v2 = vsel %vm936_vm0, %v5792_v27, 0.0 }
 0x11d   :  { %v1255_v9 = vadd.f32 %v1254_v55, %v1253_v63  ;;  %v1266_v22 = vadd.f32 %v1265_v23, %v1264_v6  ;;  %v1272_v42 = vadd.f32 %v1240_v14, %v8928_v24  ;;  %v4760_v35 = vmul.f32 -1.442695, %v1271_v5 }
 0x11e   :  { %v940_v39 = vsel %vm936_vm0, %v912_v19, 0.0  ;;  %v916_v26 = vmul.f32 %v5707_v7, %v5668_v25  ;;  %v917_v54 = vmul.f32 %v5707_v7, %v5670_v12  ;;  %v955_v55 = vsel %vm936_vm0, %v913_v4, 0.0  ;;  %v5884_v31 = vpop.permute.xlu0 %438 }
 0x11f   :  { %v1268_v61 = vadd.f32 %v1267_v2, %v1266_v22  ;;  %4826 = vpow2.f32 %v4760_v35  ;;  %v4761_v0 = vmul.f32 -1.442695, %v1272_v42  ;;  %v5882_v23 = vpop.permute.xlu1 %434  ;;  %8930 = vst [vmem:[#allocation102_spill] sm:$0xff] %v5884_v31  ;;  %v1269_v27 = vsel %vm936_vm0, %v5804_v60, 0.0 }
 0x120   :  { %8929 = vst [vmem:[#allocation25_spill] sm:$0xff] %v5882_v23  ;;  %v1273_v10 = vadd.f32 %v1255_v9, %v5573_v50  ;;  %v941_v46 = vadd.f32 %v940_v39, %v939_v38  ;;  %v956_v30 = vadd.f32 %v955_v55, %v954_v47  ;;  %v942_v20 = vsel %vm936_vm0, %v916_v26, 0.0  ;;  %v8935_v39 = vld [vmem:[#allocation75_spill] sm:$0xff]  ;;  %v8938_v55 = vld [vmem:[#allocation72_spill] sm:$0xff] }
 0x121   :  { %4828 = vpow2.f32 %v4761_v0  ;;  %v957_v28 = vsel %vm936_vm0, %v917_v54, 0.0  ;;  %v920_v45 = vmul.f32 %v5704_v34, %v5676_v3  ;;  %v921_v15 = vmul.f32 %v5704_v34, %v5678_v51 }
 0x122   :  { %v943_v59 = vadd.f32 %v942_v20, %v941_v46  ;;  %v958_v21 = vadd.f32 %v957_v28, %v956_v30  ;;  %v924_v60 = vmul.f32 %v5718_v40, %v5689_v16  ;;  %v1270_v48 = vadd.f32 %v1269_v27, %v1268_v61  ;;  %v5902_v14 = vpop.permute.xlu0 %696  ;;  %v8939_v46 = vld [vmem:[#allocation73_spill] sm:$0xff]  ;;  %v8940_v20 = vld [vmem:[#allocation76_spill] sm:$0xff] }
 0x123   :  { %v944_v50 = vsel %vm936_vm0, %v920_v45, 0.0  ;;  %v925_v44 = vmul.f32 %v5718_v40, %v5691_v52  ;;  %v5900_v8 = vpop.permute.xlu1 %692  ;;  %8932 = vst [vmem:[#allocation104_spill] sm:$0xff] %v5902_v14  ;;  %v959_v6 = vsel %vm936_vm0, %v921_v15, 0.0  ;;  %v4762_v38 = vmul.f32 -1.442695, %v1273_v10 }
 0x124   :  { %8931 = vst [vmem:[#allocation103_spill] sm:$0xff] %v5900_v8  ;;  %v945_v63 = vadd.f32 %v944_v50, %v943_v59  ;;  %v960_v37 = vadd.f32 %v959_v6, %v958_v21  ;;  %v946_v5 = vsel %vm936_vm0, %v924_v60, 0.0  ;;  %v1274_v4 = vadd.f32 %v1270_v48, %v5593_v56  ;;  %v8941_v21 = vld [vmem:[#allocation79_spill] sm:$0xff] }
 0x125   :  { %v961_v19 = vsel %vm936_vm0, %v925_v44, 0.0  ;;  %4830 = vpow2.f32 %v4762_v38  ;;  %v1005_v26 = vmul.f32 0.0, %v8935_v39  ;;  %v906_v56 = vmul.f32 %v5694_v18, %v5865_v49  ;;  %v8944_v44 = vld [vmem:[#allocation80_spill] sm:$0xff]  ;;  %v8945_v38 = vld [vmem:[#allocation83_spill] sm:$0xff] }
 0x126   :  { %v5906_v47 = vadd.f32 %v946_v5, %v945_v63  ;;  %v5910_v9 = vadd.f32 %v961_v19, %v960_v37  ;;  %v5914_v24 = vpop.permute.xlu0 %457  ;;  %4832 = vtanh.f32 %v1274_v4  ;;  %v1001_v27 = vmul.f32 0.0, %v8938_v55  ;;  %v9008_v49 = vld [vmem:[#allocation64_spill] sm:$0xff] }
 0x127   :  { %v5912_v22 = vpop.permute.xlu1 %453  ;;  %8934 = vst [vmem:[#allocation106_spill] sm:$0xff] %v5914_v24  ;;  %v907_v10 = vmul.f32 %v5694_v18, %v5867_v53  ;;  %v1002_v30 = vmul.f32 0.0, %v8939_v46  ;;  %v1006_v28 = vmul.f32 0.0, %v8940_v20  ;;  %v910_v45 = vmul.f32 %v5698_v36, %v5882_v23  ;;  %v9006_v23 = vld [vmem:[#allocation36_spill] sm:$0xff]  ;;  %v9007_v53 = vld [vmem:[#allocation37_spill] sm:$0xff] }
 0x128   :  { %8933 = vst [vmem:[#allocation105_spill] sm:$0xff] %v5912_v22  ;;  %v1033_v59 = vadd.f32 %v1005_v26, %v1001_v27  ;;  %v1009_v15 = vmul.f32 0.0, %v8941_v21  ;;  %v911_v60 = vmul.f32 %v5698_v36, %v5884_v31  ;;  %v914_v48 = vmul.f32 %v5701_v33, %v5912_v22  ;;  %v8948_v21 = vld [vmem:[#allocation84_spill] sm:$0xff]  ;;  %v9004_v22 = vld [vmem:[#allocation62_spill] sm:$0xff]  ;;  %v9005_v31 = vld [vmem:[#allocation63_spill] sm:$0xff] }
 0x129   :  { %v4827_v42 = vpop.eup %4826  ;;  %v1010_v63 = vmul.f32 0.0, %v8944_v44  ;;  %v967_v6 = vsel %vm936_vm0, %v906_v56, 0.0  ;;  %v968_v37 = vsel %vm936_vm0, %v910_v45, 0.0  ;;  %v915_v5 = vmul.f32 %v5701_v33, %v5914_v24 }
 0x12a   :  { %v1284_v35 = vadd.f32 1.0, %v4827_v42  ;;  %v5919_v61 = vpop.permute.xlu0 %571  ;;  %v1013_v19 = vmul.f32 0.0, %v8945_v38  ;;  %v982_v36 = vsel %vm936_vm0, %v907_v10, 0.0  ;;  %v969_v4 = vadd.f32 %v968_v37, %v967_v6 }
 0x12b   :  { %v4829_v2 = vpop.eup %4828  ;;  %v5917_v54 = vpop.permute.xlu1 %567  ;;  %8937 = vst [vmem:[#allocation108_spill] sm:$0xff] %v5919_v61  ;;  %v983_v42 = vsel %vm936_vm0, %v911_v60, 0.0  ;;  %v985_v26 = vsel %vm936_vm0, %v915_v5, 0.0  ;;  %v1034_v27 = vadd.f32 %v1033_v59, %v1009_v15  ;;  %v1014_v38 = vmul.f32 0.0, %v8948_v21  ;;  %v8950_v59 = vld [vmem:[#allocation91_spill] sm:$0xff]  ;;  %v8951_v15 = vld [vmem:[#allocation89_spill] sm:$0xff] }
 0x12c   :  { %8936 = vst [vmem:[#allocation107_spill] sm:$0xff] %v5917_v54  ;;  %v1285_v0 = vadd.f32 1.0, %v4829_v2  ;;  %4834 = vrcp.f32 %v1284_v35  ;;  %v984_v35 = vadd.f32 %v983_v42, %v982_v36  ;;  %v970_v2 = vsel %vm936_vm0, %v914_v48, 0.0 }
 0x12d   :  { %v971_v56 = vadd.f32 %v970_v2, %v969_v4  ;;  %v1035_v37 = vadd.f32 %v1034_v27, %v1013_v19  ;;  %v928_v5 = vmul.f32 %v8951_v15, %v8950_v59  ;;  %v8952_v4 = vld [vmem:[#allocation88_spill] sm:$0xff] }
 0x12e   :  { %4836 = vrcp.f32 %v1285_v0  ;;  %v5937_v18 = vpop.permute.xlu0 %590  ;;  %v1040_v0 = vadd.f32 %v1006_v28, %v1002_v30  ;;  %v986_v20 = vadd.f32 %v985_v26, %v984_v35  ;;  %v8949_v30 = vld [vmem:[#allocation87_spill] sm:$0xff]  ;;  %v1018_v42 = vmul.f32 0.0, %v8952_v4  ;;  %v8953_v2 = vld [vmem:[#allocation92_spill] sm:$0xff] }
 0x12f   :  { %v5935_v50 = vpop.permute.xlu1 %586  ;;  %8943 = vst [vmem:[#allocation110_spill] sm:$0xff] %v5937_v18  ;;  %v4831_v33 = vpop.eup %4830  ;;  %v1017_v28 = vmul.f32 0.0, %v8949_v30  ;;  %v929_v35 = vmul.f32 %v8951_v15, %v8953_v2  ;;  %v8957_v15 = vld [vmem:[#allocation74_spill] sm:$0xff] }
 0x130   :  { %8942 = vst [vmem:[#allocation109_spill] sm:$0xff] %v5935_v50  ;;  %v4833_v48 = vpop.eup %4832  ;;  %v1041_v6 = vadd.f32 %v1040_v0, %v1010_v63  ;;  %v1286_v55 = vadd.f32 1.0, %v4831_v33 }
 0x132   :  { %v5951_v45 = vpop.permute.xlu0 %476  ;;  %v1042_v4 = vadd.f32 %v1041_v6, %v1014_v38  ;;  %4838 = vrcp.f32 %v1286_v55 }
 0x133   :  { %v5949_v44 = vpop.permute.xlu1 %472  ;;  %8947 = vst [vmem:[#allocation112_spill] sm:$0xff] %v5951_v45  ;;  %v919_v60 = vmul.f32 %v5707_v7, %v5951_v45  ;;  %v1021_v45 = vmul.f32 0.0, %v5818_v29 }
 0x134   :  { %8946 = vst [vmem:[#allocation111_spill] sm:$0xff] %v5949_v44  ;;  %v918_v10 = vmul.f32 %v5707_v7, %v5949_v44  ;;  %v8954_v7 = vld [vmem:[#allocation90_spill] sm:$0xff]  ;;  %v1043_v24 = vadd.f32 %v1042_v4, %v1018_v42 }
 0x135   :  { %v987_v21 = vsel %vm936_vm0, %v919_v60, 0.0  ;;  %v932_v63 = vmul.f32 %v8954_v7, %v5832_v57  ;;  %v948_v60 = vsel %vm936_vm0, %v928_v5, 0.0 }
 0x136   :  { %v4835_v36 = vpop.eup %4834  ;;  %v972_v26 = vsel %vm936_vm0, %v918_v10, 0.0  ;;  %v988_v0 = vadd.f32 %v987_v21, %v986_v20  ;;  %v5970_v30 = vpop.permute.xlu0 %609  ;;  %v1036_v10 = vadd.f32 %v1035_v37, %v1017_v28  ;;  %v963_v20 = vsel %vm936_vm0, %v929_v35, 0.0 }
 0x137   :  { %v1295_v39 = vmul.f32 %v4835_v36, %v4833_v48  ;;  %v973_v19 = vadd.f32 %v972_v26, %v971_v56  ;;  %v5968_v27 = vpop.permute.xlu1 %605  ;;  %8956 = vst [vmem:[#allocation114_spill] sm:$0xff] %v5970_v30  ;;  %v8958_v48 = vld [vmem:[#allocation96_spill] sm:$0xff]  ;;  %v949_v56 = vadd.f32 %v948_v60, %v5906_v47  ;;  %v933_v21 = vmul.f32 %v8954_v7, %v5834_v62  ;;  %v9009_v62 = vld [vmem:[#allocation65_spill] sm:$0xff] }
 0x138   :  { %8955 = vst [vmem:[#allocation113_spill] sm:$0xff] %v5968_v27  ;;  %v4837_v46 = vpop.eup %4836  ;;  %v1022_v36 = vmul.f32 0.0, %v8958_v48  ;;  %v964_v38 = vadd.f32 %v963_v20, %v5910_v9  ;;  %v950_v33 = vsel %vm936_vm0, %v932_v63, 0.0  ;;  %v1037_v28 = vadd.f32 %v1036_v10, %v1021_v45  ;;  %v8978_v48 = vld [vmem:[#allocation39_spill] sm:$0xff] }
 0x139   :  { %v1294_v44 = vmul.f32 %v4837_v46, %v8957_v15  ;;  %v1025_v46 = vmul.f32 0.0, %v5848_v32  ;;  %v1026_v9 = vmul.f32 0.0, %v5850_v43  ;;  %v951_v5 = vadd.f32 %v950_v33, %v949_v56 }
 0x13a   :  { %v5987_v37 = vpop.permute.xlu0 %495  ;;  %v965_v4 = vsel %vm936_vm0, %v933_v21, 0.0  ;;  %v1030_v35 = vmul.f32 0.0, %v5902_v14 }
 0x13b   :  { %v5980_v26 = vadd.f32 %v1295_v39, %v1294_v44  ;;  %v5985_v6 = vpop.permute.xlu1 %491  ;;  %8961 = vst [vmem:[#allocation116_spill] sm:$0xff] %v5987_v37  ;;  %v923_v15 = vmul.f32 %v5704_v34, %v5987_v37  ;;  %v1044_v39 = vadd.f32 %v1043_v24, %v1022_v36  ;;  %v1029_v44 = vmul.f32 0.0, %v5900_v8  ;;  %v8964_v8 = vld [vmem:[#allocation93_spill] sm:$0xff]  ;;  %v8997_v37 = vld [vmem:[#allocation32_spill] sm:$0xff] }
 0x13c   :  { %8960 = vst [vmem:[#allocation115_spill] sm:$0xff] %v5985_v6  ;;  %v922_v47 = vmul.f32 %v5704_v34, %v5985_v6  ;;  %v1038_v45 = vadd.f32 %v1037_v28, %v1025_v46  ;;  %v966_v24 = vadd.f32 %v965_v4, %v964_v38  ;;  %v997_v56 = vadd.f32 %v951_v5, %v8964_v8  ;;  %v8998_v6 = vld [vmem:[#allocation33_spill] sm:$0xff] }
 0x13d   :  { %8959 = vst [vmem:[#allocation74_spill] sm:$0xff] %v5980_v26  ;;  %4840 = vtanh.f32 %v5980_v26  ;;  %v989_v55 = vsel %vm936_vm0, %v923_v15, 0.0  ;;  %v1045_v36 = vadd.f32 %v1044_v39, %v1026_v9  ;;  %v8991_v26 = vld [vmem:[#allocation45_spill] sm:$0xff] }
 0x13e   :  { %v974_v42 = vsel %vm936_vm0, %v922_v47, 0.0  ;;  %v990_v10 = vadd.f32 %v989_v55, %v988_v0  ;;  %v6002_v60 = vpop.permute.xlu0 %628  ;;  %v1039_v20 = vadd.f32 %v1038_v45, %v1029_v44  ;;  %v8967_v0 = vld [vmem:[#allocation94_spill] sm:$0xff] }
 0x13f   :  { %v975_v63 = vadd.f32 %v974_v42, %v973_v19  ;;  %v6000_v34 = vpop.permute.xlu1 %624  ;;  %8963 = vst [vmem:[#allocation118_spill] sm:$0xff] %v6002_v60  ;;  %v1046_v33 = vadd.f32 %v1045_v36, %v1030_v35  ;;  %v998_v28 = vadd.f32 %v966_v24, %v8967_v0  ;;  %v4839_v42 = vpop.eup %4838  ;;  %v1007_v35 = vmul.f32 0.0, %v5935_v50  ;;  %v8970_v24 = vld [vmem:[#allocation9_spill] sm:$0xff]  ;;  %v8999_v60 = vld [vmem:[#allocation60_spill] sm:$0xff] }
 0x140   :  { %8962 = vst [vmem:[#allocation117_spill] sm:$0xff] %v6000_v34  ;;  %v1061_v15 = vadd.f32 %v1039_v20, %v997_v56  ;;  %v8984_v0 = vld [vmem:[#allocation13_spill] sm:$0xff] }
 0x141   :  { %v1062_v44 = vadd.f32 %v1046_v33, %v998_v28  ;;  %v9000_v34 = vld [vmem:[#allocation61_spill] sm:$0xff] }
 0x142   :  { %v6007_v47 = vpop.permute.xlu0 %514  ;;  %v4757_v45 = vmul.f32 -1.442695, %v1061_v15 }
 0x143   :  { %v6005_v21 = vpop.permute.xlu1 %510  ;;  %8966 = vst [vmem:[#allocation120_spill] sm:$0xff] %v6007_v47  ;;  %v927_v19 = vmul.f32 %v5718_v40, %v6007_v47  ;;  %v4758_v56 = vmul.f32 -1.442695, %v1062_v44  ;;  %v8972_v44 = vld [vmem:[#allocation6_spill] sm:$0xff] }
 0x144   :  { %8965 = vst [vmem:[#allocation119_spill] sm:$0xff] %v6005_v21  ;;  %v926_v46 = vmul.f32 %v5718_v40, %v6005_v21  ;;  %v1008_v40 = vmul.f32 0.0, %v5937_v18  ;;  %4842 = vpow2.f32 %v4757_v45  ;;  %v8980_v18 = vld [vmem:[#allocation10_spill] sm:$0xff]  ;;  %v8996_v21 = vld [vmem:[#allocation47_spill] sm:$0xff] }
 0x145   :  { %v991_v39 = vsel %vm936_vm0, %v927_v19, 0.0  ;;  %v1004_v19 = vmul.f32 0.0, %v5919_v61  ;;  %4844 = vpow2.f32 %v4758_v56  ;;  %v8974_v56 = vld [vmem:[#allocation8_spill] sm:$0xff]  ;;  %v8983_v61 = vld [vmem:[#allocation41_spill] sm:$0xff]  ;;  %v8995_v47 = vld [vmem:[#allocation46_spill] sm:$0xff] }
 0x146   :  { %v976_v38 = vsel %vm936_vm0, %v926_v46, 0.0  ;;  %v6018_v4 = vadd.f32 %v991_v39, %v990_v10  ;;  %v1003_v46 = vmul.f32 0.0, %v5917_v54 }
 0x147   :  { %v4841_v9 = vpop.eup %4840  ;;  %v6016_v5 = vadd.f32 %v976_v38, %v975_v63  ;;  %v6029_v15 = vadd.f32 %v1008_v40, %v1004_v19 }
 0x148   :  { %8969 = vst [vmem:[#allocation122_spill] sm:$0xff] %v6018_v4  ;;  %v1298_v55 = vmul.f32 %v4841_v9, %v4839_v42  ;;  %v6027_v28 = vadd.f32 %v1007_v35, %v1003_v46  ;;  %v8992_v4 = vld [vmem:[#allocation16_spill] sm:$0xff] }
 0x149   :  { %8968 = vst [vmem:[#allocation121_spill] sm:$0xff] %v6016_v5  ;;  %8971 = vst [vmem:[#allocation123_spill] sm:$0xff] %v6029_v15  ;;  %v8990_v5 = vld [vmem:[#allocation44_spill] sm:$0xff]  ;;  %v9001_v15 = vld [vmem:[#allocation34_spill] sm:$0xff] }
 0x14a   :  { %v1300_v36 = vcombine.high %v1298_v55, %v1298_v55  ;;  %v1307_v20 = vrot.slane %v1298_v55, %v8970_v24 }
 0x14c   :  { %v1314_v33 = vrot.slane %v1300_v36, %v8970_v24  ;;  %v1315_v63 = vcombine.high %v1307_v20, %v1307_v20  ;;  %v1323_v10 = vrot.slane %v1307_v20, %v8970_v24  ;;  %v6037_v36 = vmul.f32 0.0, %v5968_v27 }
 0x14d   :  { %v6040_v20 = vmul.f32 0.0, %v5970_v30  ;;  %v8979_v30 = vld [vmem:[#allocation7_spill] sm:$0xff] }
 0x14e   :  { %v1316_v42 = vcombine.high %v1314_v33, %v1314_v33  ;;  %v1330_v38 = vrot.slane %v1314_v33, %v8970_v24  ;;  %v1337_v39 = vrot.slane %v1315_v63, %v8970_v24  ;;  %v1345_v9 = vcombine.high %v1323_v10, %v1323_v10  ;;  %v6100_v7 = vpop.eup %4842 }
 0x14f   :  { %v6034_v55 = vrot.slane %v1323_v10, %v8972_v44  ;;  %8973 = vst [vmem:[#allocation124_spill] sm:$0xff] %v6040_v20  ;;  %v8975_v10 = vld [vmem:[#allocation11_spill] sm:$0xff]  ;;  %8993 = vst [vmem:[#allocation127_spill] sm:$0xff] %v6100_v7  ;;  %v6118_v20 = vpop.eup %4844 }
 0x150   :  { %v1344_v45 = vrot.slane %v1316_v42, %v8970_v24  ;;  %v1346_v35 = vcombine.high %v1330_v38, %v1330_v38  ;;  %v1347_v40 = vcombine.high %v1337_v39, %v1337_v39  ;;  %v6044_v46 = vrot.slane %v1337_v39, %v8972_v44  ;;  %v8989_v24 = vld [vmem:[#allocation14_spill] sm:$0xff]  ;;  %9002 = vst [vmem:[#allocation128_spill] sm:$0xff] %v6118_v20 }
 0x151   :  { %v6047_v19 = vrot.slane %v1345_v9, %v8972_v44  ;;  %v6050_v33 = vrot.slane %v1330_v38, %v8972_v44  ;;  %v1695_v63 = vmul.f32 %v6034_v55, %v8974_v56  ;;  %v1696_v14 = vmul.f32 %v6034_v55, %v8975_v10  ;;  %v8977_v9 = vld [vmem:[#allocation38_spill] sm:$0xff]  ;;  %v8987_v56 = vld [vmem:[#allocation43_spill] sm:$0xff] }
 0x152   :  { %v1348_v43 = vcombine.high %v1344_v45, %v1344_v45  ;;  %v6057_v42 = vrot.slane %v1347_v40, %v8972_v44  ;;  %v6060_v32 = vrot.slane %v1344_v45, %v8972_v44  ;;  %v6063_v39 = vrot.slane %v1346_v35, %v8972_v44  ;;  %v8982_v45 = vld [vmem:[#allocation40_spill] sm:$0xff]  ;;  %v8986_v10 = vld [vmem:[#allocation42_spill] sm:$0xff] }
 0x153   :  { %v1697_v38 = vmul.f32 %v6034_v55, %v8977_v9  ;;  %v6069_v29 = vmul.f32 %v6034_v55, %v8978_v48  ;;  %v1699_v27 = vmul.f32 %v6044_v46, %v8979_v30  ;;  %v1700_v40 = vmul.f32 %v6044_v46, %v8980_v18  ;;  %v8985_v48 = vld [vmem:[#allocation12_spill] sm:$0xff] }
 0x154   :  { %8976 = vst [vmem:[#allocation125_spill] sm:$0xff] %v6063_v39  ;;  %v6076_v50 = vrot.slane %v1348_v43, %v8972_v44  ;;  %v1701_v35 = vmul.f32 %v6044_v46, %v8982_v45  ;;  %v1702_v54 = vmul.f32 %v6044_v46, %v8983_v61  ;;  %v1703_v8 = vmul.f32 %v6047_v19, %v8984_v0  ;;  %v8988_v43 = vld [vmem:[#allocation15_spill] sm:$0xff] }
 0x155   :  { %v1704_v9 = vmul.f32 %v6047_v19, %v8985_v48  ;;  %v1705_v30 = vmul.f32 %v6047_v19, %v8986_v10  ;;  %v1706_v18 = vmul.f32 %v6047_v19, %v8987_v56  ;;  %v1707_v44 = vmul.f32 %v6057_v42, %v8988_v43  ;;  %v8994_v10 = vld [vmem:[#allocation17_spill] sm:$0xff] }
 0x156   :  { %8981 = vst [vmem:[#allocation126_spill] sm:$0xff] %v6076_v50  ;;  %v1708_v45 = vmul.f32 %v6057_v42, %v8989_v24  ;;  %v1709_v61 = vmul.f32 %v6057_v42, %v8990_v5  ;;  %v1710_v0 = vmul.f32 %v6057_v42, %v8991_v26  ;;  %v1711_v48 = vmul.f32 %v6050_v33, %v8992_v4 }
 0x157   :  { %v1712_v56 = vmul.f32 %v6050_v33, %v8994_v10  ;;  %v1713_v43 = vmul.f32 %v6050_v33, %v8995_v47  ;;  %v1714_v24 = vmul.f32 %v6050_v33, %v8996_v21  ;;  %v1715_v5 = vmul.f32 %v6060_v32, %v8997_v37  ;;  %v9003_v47 = vld [vmem:[#allocation35_spill] sm:$0xff] }
 0x158   :  { %v1716_v26 = vmul.f32 %v6060_v32, %v8998_v6  ;;  %v1717_v4 = vmul.f32 %v6060_v32, %v8999_v60  ;;  %v1718_v7 = vmul.f32 %v6060_v32, %v9000_v34  ;;  %v1719_v10 = vmul.f32 %v6063_v39, %v9001_v15 }
 0x159   :  { %v1720_v21 = vmul.f32 %v6063_v39, %v9003_v47  ;;  %v1721_v37 = vmul.f32 %v6063_v39, %v9004_v22  ;;  %v1722_v6 = vmul.f32 %v6063_v39, %v9005_v31  ;;  %v1723_v60 = vmul.f32 %v6076_v50, %v9006_v23 }
 0x15a   :  { %v1724_v34 = vmul.f32 %v6076_v50, %v9007_v53  ;;  %v1725_v15 = vmul.f32 %v6076_v50, %v9008_v49  ;;  %v1726_v20 = vmul.f32 %v6076_v50, %v9009_v62  ;;  %v1727_v47 = vsel %vm936_vm0, %v1695_v63, 0.0 }
 0x15b   :  { %v1728_v57 = vsel %vm936_vm0, %v1699_v27, 0.0  ;;  %v1730_v22 = vsel %vm936_vm0, %v1703_v8, 0.0  ;;  %v1732_v31 = vsel %vm936_vm0, %v1707_v44, 0.0  ;;  %v1734_v2 = vsel %vm936_vm0, %v1711_v48, 0.0 }
 0x15c   :  { %v1729_v23 = vadd.f32 %v1728_v57, %v1727_v47  ;;  %v1736_v39 = vsel %vm936_vm0, %v1715_v5, 0.0  ;;  %v1738_v53 = vsel %vm936_vm0, %v1719_v10, 0.0  ;;  %v1740_v49 = vsel %vm936_vm0, %v1723_v60, 0.0 }
 0x15d   :  { %v1742_v59 = vsel %vm936_vm0, %v1696_v14, 0.0  ;;  %v1743_v62 = vsel %vm936_vm0, %v1700_v40, 0.0  ;;  %v1745_v63 = vsel %vm936_vm0, %v1704_v9, 0.0  ;;  %v1747_v27 = vsel %vm936_vm0, %v1708_v45, 0.0 }
 0x15e   :  { %v1731_v8 = vadd.f32 %v1730_v22, %v1729_v23  ;;  %v1744_v50 = vadd.f32 %v1743_v62, %v1742_v59  ;;  %v1749_v44 = vsel %vm936_vm0, %v1712_v56, 0.0  ;;  %v1751_v57 = vsel %vm936_vm0, %v1716_v26, 0.0 }
 0x15f   :  { %v1753_v48 = vsel %vm936_vm0, %v1720_v21, 0.0  ;;  %v1755_v47 = vsel %vm936_vm0, %v1724_v34, 0.0  ;;  %v1757_v60 = vsel %vm936_vm0, %v1697_v38, 0.0  ;;  %v1758_v14 = vsel %vm936_vm0, %v1701_v35, 0.0 }
 0x160   :  { %v1733_v5 = vadd.f32 %v1732_v31, %v1731_v8  ;;  %v1746_v10 = vadd.f32 %v1745_v63, %v1744_v50  ;;  %v1759_v40 = vadd.f32 %v1758_v14, %v1757_v60  ;;  %v1760_v9 = vsel %vm936_vm0, %v1705_v30, 0.0 }
 0x161   :  { %v1762_v23 = vsel %vm936_vm0, %v1709_v61, 0.0  ;;  %v1764_v62 = vsel %vm936_vm0, %v1713_v43, 0.0  ;;  %v1766_v22 = vsel %vm936_vm0, %v1717_v4, 0.0  ;;  %v1768_v59 = vsel %vm936_vm0, %v1721_v37, 0.0  ;;  %v6163_v43 = vpop.permute.xlu0 %647 }
 0x162   :  { %v1735_v26 = vadd.f32 %v1734_v2, %v1733_v5  ;;  %v1748_v21 = vadd.f32 %v1747_v27, %v1746_v10  ;;  %v1761_v34 = vadd.f32 %v1760_v9, %v1759_v40  ;;  %v1770_v56 = vsel %vm936_vm0, %v1725_v15, 0.0  ;;  %9010 = vst [vmem:[#allocation129_spill] sm:$0xff] %v6163_v43 }
 0x163   :  { %v1772_v31 = vsel %vm936_vm0, %v6069_v29, 0.0  ;;  %v1773_v50 = vsel %vm936_vm0, %v1702_v54, 0.0  ;;  %v1775_v30 = vsel %vm936_vm0, %v1706_v18, 0.0  ;;  %v1777_v61 = vsel %vm936_vm0, %v1710_v0, 0.0 }
 0x164   :  { %v1737_v38 = vadd.f32 %v1736_v39, %v1735_v26  ;;  %v1750_v45 = vadd.f32 %v1749_v44, %v1748_v21  ;;  %v1763_v35 = vadd.f32 %v1762_v23, %v1761_v34  ;;  %v1774_v4 = vadd.f32 %v1773_v50, %v1772_v31  ;;  %v9012_v23 = vld [vmem:[#allocation19_spill] sm:$0xff]  ;;  %v9014_v50 = vld [vmem:[#allocation26_spill] sm:$0xff] }
 0x165   :  { %v1779_v2 = vsel %vm936_vm0, %v1714_v24, 0.0  ;;  %v1781_v37 = vsel %vm936_vm0, %v1718_v7, 0.0  ;;  %v1783_v15 = vsel %vm936_vm0, %v1722_v6, 0.0  ;;  %v1785_v29 = vsel %vm936_vm0, %v1726_v20, 0.0  ;;  %v6177_v24 = vpop.permute.xlu1 %643  ;;  %v6184_v26 = vpop.permute.xlu0 %533 }
 0x166   :  { %v1739_v63 = vadd.f32 %v1738_v53, %v1737_v38  ;;  %v1752_v54 = vadd.f32 %v1751_v57, %v1750_v45  ;;  %v1765_v27 = vadd.f32 %v1764_v62, %v1763_v35  ;;  %v1776_v18 = vadd.f32 %v1775_v30, %v1774_v4  ;;  %9011 = vst [vmem:[#allocation130_spill] sm:$0xff] %v6177_v24 }
 0x167   :  { %v1389_v0 = vmul.f32 %v6034_v55, %v5638_v1  ;;  %v1390_v39 = vmul.f32 %v6034_v55, %v5640_v11  ;;  %v1393_v8 = vmul.f32 %v6044_v46, %v5644_v13  ;;  %v1394_v7 = vmul.f32 %v6044_v46, %v5646_v58  ;;  %9013 = vst [vmem:[#allocation19_spill] sm:$0xff] %v6184_v26 }
 0x168   :  { %v1741_v6 = vadd.f32 %v1740_v49, %v1739_v63  ;;  %v1754_v20 = vadd.f32 %v1753_v48, %v1752_v54  ;;  %v1767_v53 = vadd.f32 %v1766_v22, %v1765_v27  ;;  %v1778_v44 = vadd.f32 %v1777_v61, %v1776_v18 }
 0x169   :  { %v1421_v57 = vsel %vm936_vm0, %v1389_v0, 0.0  ;;  %v1436_v60 = vsel %vm936_vm0, %v1390_v39, 0.0  ;;  %v1422_v14 = vsel %vm936_vm0, %v1393_v8, 0.0  ;;  %v1437_v5 = vsel %vm936_vm0, %v1394_v7, 0.0  ;;  %v6197_v35 = vpop.permute.xlu1 %529  ;;  %v6204_v7 = vpop.permute.xlu0 %723 }
 0x16a   :  { %v1756_v10 = vadd.f32 %v1755_v47, %v1754_v20  ;;  %v1769_v40 = vadd.f32 %v1768_v59, %v1767_v53  ;;  %v1780_v9 = vadd.f32 %v1779_v2, %v1778_v44  ;;  %v1787_v62 = vadd.f32 %v1741_v6, %v9012_v23  ;;  %9015 = vst [vmem:[#allocation26_spill] sm:$0xff] %v6197_v35  ;;  %v9016_v2 = vld [vmem:[#allocation48_spill] sm:$0xff]  ;;  %v9018_v44 = vld [vmem:[#allocation54_spill] sm:$0xff] }
 0x16b   :  { %v1423_v21 = vadd.f32 %v1422_v14, %v1421_v57  ;;  %v1438_v49 = vadd.f32 %v1437_v5, %v1436_v60  ;;  %v1397_v48 = vmul.f32 %v6047_v19, %v5653_v41  ;;  %v1398_v22 = vmul.f32 %v6047_v19, %v5655_v17  ;;  %9017 = vst [vmem:[#allocation48_spill] sm:$0xff] %v6204_v7 }
 0x16c   :  { %v1771_v34 = vadd.f32 %v1770_v56, %v1769_v40  ;;  %v1782_v31 = vadd.f32 %v1781_v37, %v1780_v9  ;;  %v1788_v30 = vadd.f32 %v1756_v10, %v9014_v50  ;;  %v4766_v61 = vmul.f32 -1.442695, %v1787_v62  ;;  %v9019_v40 = vld [vmem:[#allocation91_spill] sm:$0xff]  ;;  %v9020_v9 = vld [vmem:[#allocation125_spill] sm:$0xff] }
 0x16d   :  { %v1424_v47 = vsel %vm936_vm0, %v1397_v48, 0.0  ;;  %v1439_v59 = vsel %vm936_vm0, %v1398_v22, 0.0  ;;  %v1401_v38 = vmul.f32 %v6057_v42, %v5668_v25  ;;  %v1402_v45 = vmul.f32 %v6057_v42, %v5670_v12  ;;  %v6221_v62 = vpop.permute.xlu1 %718  ;;  %v9022_v48 = vld [vmem:[#allocation92_spill] sm:$0xff] }
 0x16e   :  { %v1784_v4 = vadd.f32 %v1783_v15, %v1782_v31  ;;  %v1789_v63 = vadd.f32 %v1771_v34, %v9016_v2  ;;  %4846 = vpow2.f32 %v4766_v61  ;;  %v4767_v56 = vmul.f32 -1.442695, %v1788_v30  ;;  %9021 = vst [vmem:[#allocation54_spill] sm:$0xff] %v6221_v62  ;;  %v9024_v31 = vld [vmem:[#allocation126_spill] sm:$0xff] }
 0x16f   :  { %v1425_v37 = vadd.f32 %v1424_v47, %v1423_v21  ;;  %v1440_v54 = vadd.f32 %v1439_v59, %v1438_v49  ;;  %v1426_v27 = vsel %vm936_vm0, %v1401_v38, 0.0  ;;  %v1441_v18 = vsel %vm936_vm0, %v1402_v45, 0.0  ;;  %v9025_v30 = vld [vmem:[#allocation98_spill] sm:$0xff] }
 0x170   :  { %v1786_v0 = vadd.f32 %v1785_v29, %v1784_v4  ;;  %4848 = vpow2.f32 %v4767_v56  ;;  %v4768_v39 = vmul.f32 -1.442695, %v1789_v63  ;;  %v1405_v8 = vmul.f32 %v6050_v33, %v5676_v3  ;;  %v9026_v38 = vld [vmem:[#allocation18_spill] sm:$0xff]  ;;  %v9027_v4 = vld [vmem:[#allocation101_spill] sm:$0xff]  ;;  %v6236_v63 = vpop.permute.xlu0 %666 }
 0x171   :  { %v1427_v6 = vadd.f32 %v1426_v27, %v1425_v37  ;;  %v1442_v15 = vadd.f32 %v1441_v18, %v1440_v54  ;;  %v1406_v20 = vmul.f32 %v6050_v33, %v5678_v51  ;;  %v1409_v53 = vmul.f32 %v6060_v32, %v5689_v16  ;;  %9028 = vst [vmem:[#allocation125_spill] sm:$0xff] %v6236_v63  ;;  %v9029_v27 = vld [vmem:[#allocation25_spill] sm:$0xff] }
 0x172   :  { %v1790_v57 = vadd.f32 %v1786_v0, %v9018_v44  ;;  %v1428_v60 = vsel %vm936_vm0, %v1405_v8, 0.0  ;;  %v1410_v29 = vmul.f32 %v6060_v32, %v5691_v52  ;;  %v6216_v14 = vadd.f32 %v6027_v28, %v6037_v36  ;;  %v9023_v36 = vld [vmem:[#allocation97_spill] sm:$0xff] }
 0x173   :  { %4850 = vpow2.f32 %v4768_v39  ;;  %v1429_v5 = vadd.f32 %v1428_v60, %v1427_v6  ;;  %v1443_v10 = vsel %vm936_vm0, %v1406_v20, 0.0  ;;  %v1413_v23 = vmul.f32 %v9020_v9, %v9019_v40  ;;  %v6250_v60 = vpop.permute.xlu1 %662 }
 0x174   :  { %4852 = vtanh.f32 %v1790_v57  ;;  %v1444_v21 = vadd.f32 %v1443_v10, %v1442_v15  ;;  %v1430_v49 = vsel %vm936_vm0, %v1409_v53, 0.0  ;;  %v1414_v22 = vmul.f32 %v9020_v9, %v9022_v48  ;;  %v9030_v15 = vld [vmem:[#allocation102_spill] sm:$0xff]  ;;  %9032 = vst [vmem:[#allocation131_spill] sm:$0xff] %v6250_v60 }
 0x175   :  { %v1431_v34 = vadd.f32 %v1430_v49, %v1429_v5  ;;  %v1445_v28 = vsel %vm936_vm0, %v1410_v29, 0.0  ;;  %v1417_v50 = vmul.f32 %v9024_v31, %v9023_v36  ;;  %v1418_v61 = vmul.f32 %v9024_v31, %v9025_v30 }
 0x176   :  { %v1446_v47 = vadd.f32 %v1445_v28, %v1444_v21  ;;  %v1432_v59 = vsel %vm936_vm0, %v1413_v23, 0.0  ;;  %v1391_v45 = vmul.f32 %v6034_v55, %v9026_v38  ;;  %v1392_v2 = vmul.f32 %v6034_v55, %v9027_v4  ;;  %v9034_v21 = vld [vmem:[#allocation105_spill] sm:$0xff]  ;;  %v9036_v28 = vld [vmem:[#allocation123_spill] sm:$0xff] }
 0x177   :  { %v1433_v56 = vadd.f32 %v1432_v59, %v1431_v34  ;;  %v1447_v37 = vsel %vm936_vm0, %v1414_v22, 0.0  ;;  %v1434_v54 = vsel %vm936_vm0, %v1417_v50, 0.0  ;;  %v1395_v18 = vmul.f32 %v6044_v46, %v9029_v27  ;;  %v9035_v34 = vld [vmem:[#allocation124_spill] sm:$0xff]  ;;  %v9098_v4 = vld [vmem:[#allocation65_spill] sm:$0xff] }
 0x178   :  { %v4847_v0 = vpop.eup %4846  ;;  %v1448_v39 = vadd.f32 %v1447_v37, %v1446_v47  ;;  %v1449_v8 = vsel %vm936_vm0, %v1418_v61, 0.0  ;;  %v1451_v6 = vsel %vm936_vm0, %v1391_v45, 0.0  ;;  %v1396_v20 = vmul.f32 %v6044_v46, %v9030_v15  ;;  %v9037_v47 = vld [vmem:[#allocation106_spill] sm:$0xff]  ;;  %v9038_v45 = vld [vmem:[#allocation111_spill] sm:$0xff]  ;;  %v9096_v15 = vld [vmem:[#allocation37_spill] sm:$0xff] }
 0x179   :  { %v1800_v55 = vadd.f32 1.0, %v4847_v0  ;;  %v6246_v53 = vadd.f32 %v1434_v54, %v1433_v56  ;;  %v1466_v44 = vsel %vm936_vm0, %v1392_v2, 0.0  ;;  %v1452_v57 = vsel %vm936_vm0, %v1395_v18, 0.0  ;;  %v9039_v56 = vld [vmem:[#allocation117_spill] sm:$0xff]  ;;  %v6265_v54 = vpop.permute.xlu0 %552  ;;  %v9097_v27 = vld [vmem:[#allocation64_spill] sm:$0xff] }
 0x17a   :  { %v4849_v29 = vpop.eup %4848  ;;  %v6252_v5 = vadd.f32 %v1449_v8, %v1448_v39  ;;  %v1453_v10 = vadd.f32 %v1452_v57, %v1451_v6  ;;  %v1467_v23 = vsel %vm936_vm0, %v1396_v20, 0.0  ;;  %v1399_v49 = vmul.f32 %v6047_v19, %v9034_v21  ;;  %9040 = vst [vmem:[#allocation124_spill] sm:$0xff] %v6265_v54  ;;  %v9041_v39 = vld [vmem:[#allocation112_spill] sm:$0xff]  ;;  %v9042_v6 = vld [vmem:[#allocation118_spill] sm:$0xff]  ;;  %v9043_v57 = vld [vmem:[#allocation115_spill] sm:$0xff] }
 0x17b   :  { %9031 = vst [vmem:[#allocation126_spill] sm:$0xff] %v6246_v53  ;;  %v1801_v22 = vadd.f32 1.0, %v4849_v29  ;;  %4854 = vrcp.f32 %v1800_v55  ;;  %v1468_v46 = vadd.f32 %v1467_v23, %v1466_v44  ;;  %v1055_v50 = vadd.f32 %v9036_v28, %v9035_v34  ;;  %v9044_v23 = vld [vmem:[#allocation116_spill] sm:$0xff] }
 0x17c   :  { %9033 = vst [vmem:[#allocation132_spill] sm:$0xff] %v6252_v5  ;;  %v1454_v61 = vsel %vm936_vm0, %v1399_v49, 0.0  ;;  %v1400_v59 = vmul.f32 %v6047_v19, %v9037_v47  ;;  %v1403_v2 = vmul.f32 %v6057_v42, %v9038_v45  ;;  %v1015_v37 = vmul.f32 0.0, %v9039_v56  ;;  %v9048_v5 = vld [vmem:[#allocation120_spill] sm:$0xff]  ;;  %v9093_v45 = vld [vmem:[#allocation62_spill] sm:$0xff]  ;;  %v9094_v47 = vld [vmem:[#allocation63_spill] sm:$0xff] }
 0x17d   :  { %v4851_v18 = vpop.eup %4850  ;;  %4856 = vrcp.f32 %v1801_v22  ;;  %v1455_v0 = vadd.f32 %v1454_v61, %v1453_v10  ;;  %v1404_v8 = vmul.f32 %v6057_v42, %v9041_v39  ;;  %v1016_v20 = vmul.f32 0.0, %v9042_v6  ;;  %v9045_v22 = vld [vmem:[#allocation89_spill] sm:$0xff]  ;;  %v6279_v61 = vpop.permute.xlu1 %548  ;;  %v9095_v21 = vld [vmem:[#allocation36_spill] sm:$0xff] }
 0x17e   :  { %v4853_v55 = vpop.eup %4852  ;;  %v1469_v44 = vsel %vm936_vm0, %v1400_v59, 0.0  ;;  %v1456_v19 = vsel %vm936_vm0, %v1403_v2, 0.0  ;;  %v1407_v29 = vmul.f32 %v6050_v33, %v9043_v57  ;;  %v1408_v49 = vmul.f32 %v6050_v33, %v9044_v23  ;;  %9046 = vst [vmem:[#allocation123_spill] sm:$0xff] %v6279_v61  ;;  %v9047_v2 = vld [vmem:[#allocation119_spill] sm:$0xff]  ;;  %v6294_v23 = vpop.permute.xlu0 %685 }
 0x17f   :  { %v1470_v34 = vadd.f32 %v1469_v44, %v1468_v46  ;;  %v1457_v28 = vadd.f32 %v1456_v19, %v1455_v0  ;;  %v1020_v10 = vmul.f32 0.0, %v6163_v43  ;;  %v931_v42 = vmul.f32 %v9045_v22, %v6184_v26  ;;  %9049 = vst [vmem:[#allocation89_spill] sm:$0xff] %v6294_v23 }
 0x180   :  { %v1471_v6 = vsel %vm936_vm0, %v1404_v8, 0.0  ;;  %v1458_v59 = vsel %vm936_vm0, %v1407_v29, 0.0  ;;  %v1411_v56 = vmul.f32 %v6060_v32, %v9047_v2  ;;  %v1412_v53 = vmul.f32 %v6060_v32, %v9048_v5  ;;  %v9090_v5 = vld [vmem:[#allocation34_spill] sm:$0xff] }
 0x181   :  { %v1472_v33 = vadd.f32 %v1471_v6, %v1470_v34  ;;  %v1459_v46 = vadd.f32 %v1458_v59, %v1457_v28  ;;  %v1056_v0 = vadd.f32 %v1055_v50, %v1016_v20  ;;  %v1415_v44 = vmul.f32 %v9020_v9, %v6197_v35  ;;  %v9050_v28 = vld [vmem:[#allocation90_spill] sm:$0xff]  ;;  %v6306_v59 = vpop.permute.xlu1 %681 }
 0x182   :  { %v1473_v19 = vsel %vm936_vm0, %v1408_v49, 0.0  ;;  %v1049_v43 = vadd.f32 %v6216_v14, %v1015_v37  ;;  %v1460_v8 = vsel %vm936_vm0, %v1411_v56, 0.0  ;;  %v1416_v29 = vmul.f32 %v9020_v9, %v6184_v26  ;;  %9051 = vst [vmem:[#allocation90_spill] sm:$0xff] %v6306_v59 }
 0x183   :  { %v1474_v2 = vadd.f32 %v1473_v19, %v1472_v33  ;;  %v1461_v57 = vadd.f32 %v1460_v8, %v1459_v46  ;;  %v1057_v32 = vadd.f32 %v1056_v0, %v1020_v10  ;;  %v930_v50 = vmul.f32 %v9045_v22, %v6197_v35  ;;  %v9052_v0 = vld [vmem:[#allocation122_spill] sm:$0xff]  ;;  %v9089_v35 = vld [vmem:[#allocation61_spill] sm:$0xff] }
 0x184   :  { %v1475_v6 = vsel %vm936_vm0, %v1412_v53, 0.0  ;;  %v1462_v20 = vsel %vm936_vm0, %v1415_v44, 0.0  ;;  %v993_v49 = vsel %vm936_vm0, %v931_v42, 0.0  ;;  %v1419_v14 = vmul.f32 %v9024_v31, %v6279_v61 }
 0x185   :  { %v4855_v56 = vpop.eup %4854  ;;  %v1476_v37 = vadd.f32 %v1475_v6, %v1474_v2  ;;  %v1463_v9 = vadd.f32 %v1462_v20, %v1461_v57  ;;  %v1024_v34 = vmul.f32 0.0, %v6236_v63  ;;  %v935_v10 = vmul.f32 %v9050_v28, %v6265_v54  ;;  %v9054_v2 = vld [vmem:[#allocation74_spill] sm:$0xff]  ;;  %v9055_v20 = vld [vmem:[#allocation128_spill] sm:$0xff] }
 0x186   :  { %v1802_v22 = vadd.f32 1.0, %v4851_v18  ;;  %v1811_v33 = vmul.f32 %v4855_v56, %v4853_v55  ;;  %v1477_v53 = vsel %vm936_vm0, %v1416_v29, 0.0  ;;  %v1464_v46 = vsel %vm936_vm0, %v1419_v14, 0.0  ;;  %v6319_v55 = vpop.permute.xlu0 %704 }
 0x187   :  { %v4857_v42 = vpop.eup %4856  ;;  %v994_v44 = vadd.f32 %v993_v49, %v9052_v0  ;;  %v1478_v19 = vadd.f32 %v1477_v53, %v1476_v37  ;;  %v6311_v8 = vadd.f32 %v1464_v46, %v1463_v9  ;;  %v995_v57 = vsel %vm936_vm0, %v935_v10, 0.0  ;;  %9056 = vst [vmem:[#allocation74_spill] sm:$0xff] %v6319_v55 }
 0x188   :  { %v1810_v6 = vmul.f32 %v4857_v42, %v9054_v2  ;;  %v1075_v63 = vadd.f32 1.0, %v9055_v20  ;;  %v1019_v26 = vmul.f32 0.0, %v6177_v24  ;;  %v1420_v18 = vmul.f32 %v9024_v31, %v6265_v54  ;;  %v6331_v42 = vpop.permute.xlu1 %700  ;;  %v9076_v24 = vld [vmem:[#allocation42_spill] sm:$0xff]  ;;  %v9087_v54 = vld [vmem:[#allocation33_spill] sm:$0xff] }
 0x189   :  { %9053 = vst [vmem:[#allocation122_spill] sm:$0xff] %v6311_v8  ;;  %v1058_v29 = vadd.f32 %v1057_v32, %v1024_v34  ;;  %v934_v49 = vmul.f32 %v9050_v28, %v6279_v61  ;;  %v996_v14 = vadd.f32 %v995_v57, %v994_v44  ;;  %v1028_v56 = vmul.f32 0.0, %v6294_v23  ;;  %9059 = vst [vmem:[#allocation134_spill] sm:$0xff] %v6331_v42  ;;  %v9060_v34 = vld [vmem:[#allocation127_spill] sm:$0xff]  ;;  %v9081_v8 = vld [vmem:[#allocation45_spill] sm:$0xff] }
 0x18a   :  { %v6324_v37 = vadd.f32 %v1811_v33, %v1810_v6  ;;  %v978_v9 = vsel %vm936_vm0, %v930_v50, 0.0  ;;  %v1023_v10 = vmul.f32 0.0, %v6250_v60  ;;  %v1479_v53 = vsel %vm936_vm0, %v1420_v18, 0.0  ;;  %v9088_v61 = vld [vmem:[#allocation60_spill] sm:$0xff] }
 0x18b   :  { %4858 = vrcp.f32 %v1802_v22  ;;  %v6329_v46 = vadd.f32 %v1479_v53, %v1478_v19  ;;  %v1059_v31 = vadd.f32 %v1058_v29, %v1028_v56  ;;  %v1032_v32 = vmul.f32 0.0, %v6319_v55  ;;  %v9061_v22 = vld [vmem:[#allocation121_spill] sm:$0xff] }
 0x18c   :  { %9057 = vst [vmem:[#allocation128_spill] sm:$0xff] %v6324_v37  ;;  %4860 = vtanh.f32 %v6324_v37  ;;  %v1074_v28 = vadd.f32 1.0, %v9060_v34  ;;  %v1050_v33 = vadd.f32 %v1049_v43, %v1019_v26  ;;  %v1027_v0 = vmul.f32 0.0, %v6306_v59  ;;  %v9075_v59 = vld [vmem:[#allocation12_spill] sm:$0xff]  ;;  %v9085_v37 = vld [vmem:[#allocation47_spill] sm:$0xff] }
 0x18d   :  { %9058 = vst [vmem:[#allocation133_spill] sm:$0xff] %v6329_v46  ;;  %v980_v50 = vsel %vm936_vm0, %v934_v49, 0.0  ;;  %v1000_v44 = vadd.f32 %v996_v14, %v6204_v7  ;;  %v1060_v57 = vadd.f32 %v1059_v31, %v1032_v32  ;;  %v979_v19 = vadd.f32 %v978_v9, %v9061_v22  ;;  %v9062_v32 = vld [vmem:[#allocation9_spill] sm:$0xff] }
 0x18e   :  { %v1051_v2 = vadd.f32 %v1050_v33, %v1023_v10  ;;  %v1031_v6 = vmul.f32 0.0, %v6331_v42  ;;  %4862 = vrcp.f32 %v1075_v63  ;;  %v9073_v7 = vld [vmem:[#allocation41_spill] sm:$0xff] }
 0x18f   :  { %v1064_v20 = vadd.f32 %v1060_v57, %v1000_v44  ;;  %4864 = vrcp.f32 %v1074_v28  ;;  %v981_v18 = vadd.f32 %v980_v50, %v979_v19  ;;  %v9074_v42 = vld [vmem:[#allocation13_spill] sm:$0xff] }
 0x190   :  { %v1052_v29 = vadd.f32 %v1051_v2, %v1027_v0 }
 0x191   :  { %4866 = vtanh.f32 %v1064_v20  ;;  %v999_v43 = vadd.f32 %v981_v18, %v6221_v62  ;;  %v9063_v20 = vld [vmem:[#allocation6_spill] sm:$0xff]  ;;  %v9082_v62 = vld [vmem:[#allocation16_spill] sm:$0xff] }
 0x192   :  { %v1053_v56 = vadd.f32 %v1052_v29, %v1031_v6 }
 0x194   :  { %v1063_v49 = vadd.f32 %v1053_v56, %v999_v43 }
 0x195   :  { %v4859_v26 = vpop.eup %4858 }
 0x196   :  { %v4861_v53 = vpop.eup %4860  ;;  %v4759_v33 = vmul.f32 -1.442695, %v1063_v49 }
 0x197   :  { %v1814_v34 = vmul.f32 %v4861_v53, %v4859_v26 }
 0x198   :  { %v4863_v14 = vpop.eup %4862  ;;  %4868 = vpow2.f32 %v4759_v33 }
 0x199   :  { %v1816_v31 = vcombine.high %v1814_v34, %v1814_v34  ;;  %v1823_v9 = vrot.slane %v1814_v34, %v9062_v32  ;;  %v4865_v10 = vpop.eup %4864  ;;  %v1084_v50 = vmul.f32 0.0, %v4863_v14  ;;  %v9065_v14 = vld [vmem:[#allocation8_spill] sm:$0xff] }
 0x19b   :  { %v4867_v22 = vpop.eup %4866  ;;  %v1830_v63 = vrot.slane %v1816_v31, %v9062_v32  ;;  %v1831_v28 = vcombine.high %v1823_v9, %v1823_v9  ;;  %v1839_v0 = vrot.slane %v1823_v9, %v9062_v32  ;;  %v9066_v9 = vld [vmem:[#allocation11_spill] sm:$0xff] }
 0x19c   :  { %v1085_v44 = vmul.f32 %v4867_v22, %v4865_v10 }
 0x19d   :  { %v1832_v57 = vcombine.high %v1830_v63, %v1830_v63  ;;  %v1846_v19 = vrot.slane %v1830_v63, %v9062_v32  ;;  %v1853_v2 = vrot.slane %v1831_v28, %v9062_v32  ;;  %v1861_v6 = vcombine.high %v1839_v0, %v1839_v0 }
 0x19e   :  { %v6348_v18 = vrot.slane %v1839_v0, %v9063_v20  ;;  %v6350_v29 = vadd.f32 %v1085_v44, %v1084_v50  ;;  %v9067_v0 = vld [vmem:[#allocation38_spill] sm:$0xff]  ;;  %v9068_v44 = vld [vmem:[#allocation39_spill] sm:$0xff] }
 0x19f   :  { %v1860_v56 = vrot.slane %v1832_v57, %v9062_v32  ;;  %v1862_v43 = vcombine.high %v1846_v19, %v1846_v19  ;;  %v1863_v26 = vcombine.high %v1853_v2, %v1853_v2  ;;  %v6354_v53 = vrot.slane %v1853_v2, %v9063_v20  ;;  %v9084_v32 = vld [vmem:[#allocation46_spill] sm:$0xff] }
 0x1a0   :  { %9064 = vst [vmem:[#allocation127_spill] sm:$0xff] %v6350_v29  ;;  %v6357_v49 = vrot.slane %v1861_v6, %v9063_v20  ;;  %v6360_v34 = vrot.slane %v1846_v19, %v9063_v20  ;;  %v2211_v31 = vmul.f32 %v6348_v18, %v9065_v14  ;;  %v2212_v10 = vmul.f32 %v6348_v18, %v9066_v9  ;;  %v9069_v19 = vld [vmem:[#allocation7_spill] sm:$0xff]  ;;  %v9070_v6 = vld [vmem:[#allocation10_spill] sm:$0xff]  ;;  %v9080_v14 = vld [vmem:[#allocation44_spill] sm:$0xff] }
 0x1a1   :  { %v1864_v33 = vcombine.high %v1860_v56, %v1860_v56  ;;  %v6367_v22 = vrot.slane %v1863_v26, %v9063_v20  ;;  %v6370_v63 = vrot.slane %v1860_v56, %v9063_v20  ;;  %v6373_v28 = vrot.slane %v1862_v43, %v9063_v20  ;;  %v9072_v56 = vld [vmem:[#allocation40_spill] sm:$0xff]  ;;  %v9079_v9 = vld [vmem:[#allocation14_spill] sm:$0xff] }
 0x1a2   :  { %v2213_v50 = vmul.f32 %v6348_v18, %v9067_v0  ;;  %v6379_v57 = vmul.f32 %v6348_v18, %v9068_v44  ;;  %v2215_v2 = vmul.f32 %v6354_v53, %v9069_v19  ;;  %v2216_v26 = vmul.f32 %v6354_v53, %v9070_v6  ;;  %v9077_v44 = vld [vmem:[#allocation43_spill] sm:$0xff]  ;;  %v9086_v29 = vld [vmem:[#allocation32_spill] sm:$0xff]  ;;  %v6426_v39 = vpop.eup %4868 }
 0x1a3   :  { %v6386_v46 = vrot.slane %v1864_v33, %v9063_v20  ;;  %v2217_v43 = vmul.f32 %v6354_v53, %v9072_v56  ;;  %v2218_v55 = vmul.f32 %v6354_v53, %v9073_v7  ;;  %v2219_v23 = vmul.f32 %v6357_v49, %v9074_v42  ;;  %v9078_v33 = vld [vmem:[#allocation15_spill] sm:$0xff]  ;;  %v9083_v20 = vld [vmem:[#allocation17_spill] sm:$0xff]  ;;  %9091 = vst [vmem:[#allocation135_spill] sm:$0xff] %v6426_v39 }
 0x1a4   :  { %v2220_v60 = vmul.f32 %v6357_v49, %v9075_v59  ;;  %v2221_v19 = vmul.f32 %v6357_v49, %v9076_v24  ;;  %v2222_v6 = vmul.f32 %v6357_v49, %v9077_v44  ;;  %v2223_v0 = vmul.f32 %v6367_v22, %v9078_v33 }
 0x1a5   :  { %9071 = vst [vmem:[#allocation121_spill] sm:$0xff] %v6386_v46  ;;  %v2224_v56 = vmul.f32 %v6367_v22, %v9079_v9  ;;  %v2225_v7 = vmul.f32 %v6367_v22, %v9080_v14  ;;  %v2226_v42 = vmul.f32 %v6367_v22, %v9081_v8  ;;  %v2227_v59 = vmul.f32 %v6360_v34, %v9082_v62 }
 0x1a6   :  { %v2228_v24 = vmul.f32 %v6360_v34, %v9083_v20  ;;  %v2229_v44 = vmul.f32 %v6360_v34, %v9084_v32  ;;  %v2230_v33 = vmul.f32 %v6360_v34, %v9085_v37  ;;  %v2231_v9 = vmul.f32 %v6370_v63, %v9086_v29  ;;  %v9092_v32 = vld [vmem:[#allocation35_spill] sm:$0xff] }
 0x1a7   :  { %v2232_v14 = vmul.f32 %v6370_v63, %v9087_v54  ;;  %v2233_v8 = vmul.f32 %v6370_v63, %v9088_v61  ;;  %v2234_v62 = vmul.f32 %v6370_v63, %v9089_v35  ;;  %v2235_v20 = vmul.f32 %v6373_v28, %v9090_v5 }
 0x1a8   :  { %v2236_v37 = vmul.f32 %v6373_v28, %v9092_v32  ;;  %v2237_v29 = vmul.f32 %v6373_v28, %v9093_v45  ;;  %v2238_v54 = vmul.f32 %v6373_v28, %v9094_v47  ;;  %v2239_v61 = vmul.f32 %v6386_v46, %v9095_v21 }
 0x1a9   :  { %v2240_v35 = vmul.f32 %v6386_v46, %v9096_v15  ;;  %v2241_v5 = vmul.f32 %v6386_v46, %v9097_v27  ;;  %v2242_v39 = vmul.f32 %v6386_v46, %v9098_v4  ;;  %v2243_v32 = vsel %vm936_vm0, %v2211_v31, 0.0 }
 0x1aa   :  { %v2244_v38 = vsel %vm936_vm0, %v2215_v2, 0.0  ;;  %v2246_v45 = vsel %vm936_vm0, %v2219_v23, 0.0  ;;  %v2248_v47 = vsel %vm936_vm0, %v2223_v0, 0.0  ;;  %v2250_v30 = vsel %vm936_vm0, %v2227_v59, 0.0 }
 0x1ab   :  { %v2245_v21 = vadd.f32 %v2244_v38, %v2243_v32  ;;  %v2252_v36 = vsel %vm936_vm0, %v2231_v9, 0.0  ;;  %v2254_v15 = vsel %vm936_vm0, %v2235_v20, 0.0  ;;  %v2256_v27 = vsel %vm936_vm0, %v2239_v61, 0.0 }
 0x1ac   :  { %v2258_v48 = vsel %vm936_vm0, %v2212_v10, 0.0  ;;  %v2259_v4 = vsel %vm936_vm0, %v2216_v26, 0.0  ;;  %v2261_v31 = vsel %vm936_vm0, %v2220_v60, 0.0  ;;  %v2263_v2 = vsel %vm936_vm0, %v2224_v56, 0.0 }
 0x1ad   :  { %v2247_v23 = vadd.f32 %v2246_v45, %v2245_v21  ;;  %v2260_v46 = vadd.f32 %v2259_v4, %v2258_v48  ;;  %v2265_v0 = vsel %vm936_vm0, %v2228_v24, 0.0  ;;  %v2267_v38 = vsel %vm936_vm0, %v2232_v14, 0.0 }
 0x1ae   :  { %v2269_v59 = vsel %vm936_vm0, %v2236_v37, 0.0  ;;  %v2271_v32 = vsel %vm936_vm0, %v2240_v35, 0.0  ;;  %v2273_v61 = vsel %vm936_vm0, %v2213_v50, 0.0  ;;  %v2274_v20 = vsel %vm936_vm0, %v2217_v43, 0.0 }
 0x1af   :  { %v2249_v9 = vadd.f32 %v2248_v47, %v2247_v23  ;;  %v2262_v10 = vadd.f32 %v2261_v31, %v2260_v46  ;;  %v2275_v26 = vadd.f32 %v2274_v20, %v2273_v61  ;;  %v2276_v60 = vsel %vm936_vm0, %v2221_v19, 0.0 }
 0x1b0   :  { %v2278_v21 = vsel %vm936_vm0, %v2225_v7, 0.0  ;;  %v2280_v48 = vsel %vm936_vm0, %v2229_v44, 0.0  ;;  %v2282_v24 = vsel %vm936_vm0, %v2233_v8, 0.0  ;;  %v2284_v4 = vsel %vm936_vm0, %v2237_v29, 0.0 }
 0x1b1   :  { %v2251_v45 = vadd.f32 %v2250_v30, %v2249_v9  ;;  %v2264_v37 = vadd.f32 %v2263_v2, %v2262_v10  ;;  %v2277_v35 = vadd.f32 %v2276_v60, %v2275_v26  ;;  %v2286_v14 = vsel %vm936_vm0, %v2241_v5, 0.0  ;;  %v9099_v26 = vld [vmem:[#allocation20_spill] sm:$0xff] }
 0x1b2   :  { %v2288_v47 = vsel %vm936_vm0, %v6379_v57, 0.0  ;;  %v2289_v46 = vsel %vm936_vm0, %v2218_v55, 0.0  ;;  %v2291_v50 = vsel %vm936_vm0, %v2222_v6, 0.0  ;;  %v2293_v7 = vsel %vm936_vm0, %v2226_v42, 0.0 }
 0x1b3   :  { %v2253_v19 = vadd.f32 %v2252_v36, %v2251_v45  ;;  %v2266_v44 = vadd.f32 %v2265_v0, %v2264_v37  ;;  %v2279_v56 = vadd.f32 %v2278_v21, %v2277_v35  ;;  %v2290_v8 = vadd.f32 %v2289_v46, %v2288_v47  ;;  %v9100_v37 = vld [vmem:[#allocation27_spill] sm:$0xff] }
 0x1b4   :  { %v2295_v29 = vsel %vm936_vm0, %v2230_v33, 0.0  ;;  %v2297_v30 = vsel %vm936_vm0, %v2234_v62, 0.0  ;;  %v2299_v43 = vsel %vm936_vm0, %v2238_v54, 0.0  ;;  %v2301_v5 = vsel %vm936_vm0, %v2242_v39, 0.0 }
 0x1b5   :  { %v2255_v31 = vadd.f32 %v2254_v15, %v2253_v19  ;;  %v2268_v57 = vadd.f32 %v2267_v38, %v2266_v44  ;;  %v2281_v2 = vadd.f32 %v2280_v48, %v2279_v56  ;;  %v2292_v55 = vadd.f32 %v2291_v50, %v2290_v8  ;;  %v9101_v19 = vld [vmem:[#allocation49_spill] sm:$0xff] }
 0x1b6   :  { %v1905_v6 = vmul.f32 %v6348_v18, %v5638_v1  ;;  %v1906_v36 = vmul.f32 %v6348_v18, %v5640_v11  ;;  %v1909_v42 = vmul.f32 %v6354_v53, %v5644_v13  ;;  %v1910_v62 = vmul.f32 %v6354_v53, %v5646_v58 }
 0x1b7   :  { %v2257_v33 = vadd.f32 %v2256_v27, %v2255_v31  ;;  %v2270_v54 = vadd.f32 %v2269_v59, %v2268_v57  ;;  %v2283_v23 = vadd.f32 %v2282_v24, %v2281_v2  ;;  %v2294_v39 = vadd.f32 %v2293_v7, %v2292_v55 }
 0x1b8   :  { %v1937_v15 = vsel %vm936_vm0, %v1905_v6, 0.0  ;;  %v1952_v0 = vsel %vm936_vm0, %v1906_v36, 0.0  ;;  %v1938_v38 = vsel %vm936_vm0, %v1909_v42, 0.0  ;;  %v1953_v61 = vsel %vm936_vm0, %v1910_v62, 0.0  ;;  %v9102_v42 = vld [vmem:[#allocation55_spill] sm:$0xff] }
 0x1b9   :  { %v2272_v20 = vadd.f32 %v2271_v32, %v2270_v54  ;;  %v2285_v9 = vadd.f32 %v2284_v4, %v2283_v23  ;;  %v2296_v10 = vadd.f32 %v2295_v29, %v2294_v39  ;;  %v2303_v60 = vadd.f32 %v2257_v33, %v9099_v26  ;;  %v9104_v26 = vld [vmem:[#allocation97_spill] sm:$0xff] }
 0x1ba   :  { %v1939_v21 = vadd.f32 %v1938_v38, %v1937_v15  ;;  %v1954_v48 = vadd.f32 %v1953_v61, %v1952_v0  ;;  %v1913_v27 = vmul.f32 %v6357_v49, %v5653_v41  ;;  %v1914_v59 = vmul.f32 %v6357_v49, %v5655_v17  ;;  %v9103_v61 = vld [vmem:[#allocation92_spill] sm:$0xff] }
 0x1bb   :  { %v2287_v24 = vadd.f32 %v2286_v14, %v2285_v9  ;;  %v2298_v45 = vadd.f32 %v2297_v30, %v2296_v10  ;;  %v2304_v35 = vadd.f32 %v2272_v20, %v9100_v37  ;;  %v4772_v47 = vmul.f32 -1.442695, %v2303_v60  ;;  %v9105_v60 = vld [vmem:[#allocation121_spill] sm:$0xff] }
 0x1bc   :  { %v1940_v46 = vsel %vm936_vm0, %v1913_v27, 0.0  ;;  %v1955_v32 = vsel %vm936_vm0, %v1914_v59, 0.0  ;;  %v1917_v4 = vmul.f32 %v6367_v22, %v5668_v25  ;;  %v1918_v50 = vmul.f32 %v6367_v22, %v5670_v12 }
 0x1bd   :  { %v2300_v7 = vadd.f32 %v2299_v43, %v2298_v45  ;;  %v2305_v44 = vadd.f32 %v2287_v24, %v9101_v19  ;;  %4870 = vpow2.f32 %v4772_v47  ;;  %v4773_v56 = vmul.f32 -1.442695, %v2304_v35  ;;  %v9107_v45 = vld [vmem:[#allocation18_spill] sm:$0xff]  ;;  %v9108_v35 = vld [vmem:[#allocation101_spill] sm:$0xff] }
 0x1be   :  { %v1941_v14 = vadd.f32 %v1940_v46, %v1939_v21  ;;  %v1956_v8 = vadd.f32 %v1955_v32, %v1954_v48  ;;  %v1942_v29 = vsel %vm936_vm0, %v1917_v4, 0.0  ;;  %v1957_v30 = vsel %vm936_vm0, %v1918_v50, 0.0  ;;  %v9106_v48 = vld [vmem:[#allocation98_spill] sm:$0xff]  ;;  %v9109_v50 = vld [vmem:[#allocation25_spill] sm:$0xff] }
 0x1bf   :  { %v2302_v31 = vadd.f32 %v2301_v5, %v2300_v7  ;;  %4872 = vpow2.f32 %v4773_v56  ;;  %v4774_v57 = vmul.f32 -1.442695, %v2305_v44  ;;  %v1921_v2 = vmul.f32 %v6360_v34, %v5676_v3 }
 0x1c0   :  { %v1943_v55 = vadd.f32 %v1942_v29, %v1941_v14  ;;  %v1958_v6 = vadd.f32 %v1957_v30, %v1956_v8  ;;  %v1922_v43 = vmul.f32 %v6360_v34, %v5678_v51  ;;  %v1925_v36 = vmul.f32 %v6370_v63, %v5689_v16  ;;  %v9110_v8 = vld [vmem:[#allocation102_spill] sm:$0xff] }
 0x1c1   :  { %v2306_v62 = vadd.f32 %v2302_v31, %v9102_v42  ;;  %4874 = vpow2.f32 %v4774_v57  ;;  %v1944_v33 = vsel %vm936_vm0, %v1921_v2, 0.0  ;;  %v1926_v5 = vmul.f32 %v6370_v63, %v5691_v52  ;;  %v9112_v57 = vld [vmem:[#allocation105_spill] sm:$0xff]  ;;  %v9114_v42 = vld [vmem:[#allocation106_spill] sm:$0xff] }
 0x1c2   :  { %v1945_v54 = vadd.f32 %v1944_v33, %v1943_v55  ;;  %v1959_v23 = vsel %vm936_vm0, %v1922_v43, 0.0  ;;  %v1946_v39 = vsel %vm936_vm0, %v1925_v36, 0.0  ;;  %v1929_v15 = vmul.f32 %v6373_v28, %v9019_v40 }
 0x1c3   :  { %4876 = vtanh.f32 %v2306_v62  ;;  %v1960_v0 = vadd.f32 %v1959_v23, %v1958_v6  ;;  %v1961_v38 = vsel %vm936_vm0, %v1926_v5, 0.0  ;;  %v1930_v20 = vmul.f32 %v6373_v28, %v9103_v61 }
 0x1c4   :  { %v1947_v9 = vadd.f32 %v1946_v39, %v1945_v54  ;;  %v1948_v10 = vsel %vm936_vm0, %v1929_v15, 0.0  ;;  %v1933_v21 = vmul.f32 %v9105_v60, %v9104_v26  ;;  %v1934_v27 = vmul.f32 %v9105_v60, %v9106_v48  ;;  %v9115_v39 = vld [vmem:[#allocation111_spill] sm:$0xff] }
 0x1c5   :  { %v1962_v59 = vadd.f32 %v1961_v38, %v1960_v0  ;;  %v1963_v24 = vsel %vm936_vm0, %v1930_v20, 0.0  ;;  %v1907_v37 = vmul.f32 %v6348_v18, %v9107_v45  ;;  %v1908_v47 = vmul.f32 %v6348_v18, %v9108_v35  ;;  %v9183_v35 = vld [vmem:[#allocation65_spill] sm:$0xff] }
 0x1c6   :  { %v1949_v46 = vadd.f32 %v1948_v10, %v1947_v9  ;;  %v1950_v32 = vsel %vm936_vm0, %v1933_v21, 0.0  ;;  %v1965_v4 = vsel %vm936_vm0, %v1934_v27, 0.0  ;;  %v1911_v7 = vmul.f32 %v6354_v53, %v9109_v50  ;;  %v9116_v10 = vld [vmem:[#allocation112_spill] sm:$0xff]  ;;  %v9117_v21 = vld [vmem:[#allocation115_spill] sm:$0xff] }
 0x1c7   :  { %v4871_v19 = vpop.eup %4870  ;;  %v1964_v44 = vadd.f32 %v1963_v24, %v1962_v59  ;;  %v1967_v56 = vsel %vm936_vm0, %v1907_v37, 0.0  ;;  %v1982_v14 = vsel %vm936_vm0, %v1908_v47, 0.0  ;;  %v1912_v29 = vmul.f32 %v6354_v53, %v9110_v8  ;;  %v9118_v59 = vld [vmem:[#allocation116_spill] sm:$0xff]  ;;  %v9119_v47 = vld [vmem:[#allocation119_spill] sm:$0xff]  ;;  %v9181_v8 = vld [vmem:[#allocation37_spill] sm:$0xff] }
 0x1c8   :  { %v2316_v30 = vadd.f32 1.0, %v4871_v19  ;;  %v6537_v31 = vadd.f32 %v1950_v32, %v1949_v46  ;;  %v1968_v18 = vsel %vm936_vm0, %v1911_v7, 0.0  ;;  %v1915_v2 = vmul.f32 %v6357_v49, %v9112_v57  ;;  %v9120_v32 = vld [vmem:[#allocation135_spill] sm:$0xff]  ;;  %v9180_v57 = vld [vmem:[#allocation36_spill] sm:$0xff] }
 0x1c9   :  { %v4873_v55 = vpop.eup %4872  ;;  %v6542_v6 = vadd.f32 %v1965_v4, %v1964_v44  ;;  %v1969_v43 = vadd.f32 %v1968_v18, %v1967_v56  ;;  %v1983_v36 = vsel %vm936_vm0, %v1912_v29, 0.0  ;;  %v1916_v62 = vmul.f32 %v6357_v49, %v9114_v42  ;;  %v9121_v44 = vld [vmem:[#allocation120_spill] sm:$0xff]  ;;  %v9179_v42 = vld [vmem:[#allocation63_spill] sm:$0xff] }
 0x1ca   :  { %9111 = vst [vmem:[#allocation20_spill] sm:$0xff] %v6537_v31  ;;  %v2317_v33 = vadd.f32 1.0, %v4873_v55  ;;  %4878 = vrcp.f32 %v2316_v30  ;;  %v1984_v53 = vadd.f32 %v1983_v36, %v1982_v14  ;;  %v1970_v54 = vsel %vm936_vm0, %v1915_v2, 0.0  ;;  %v9123_v2 = vld [vmem:[#allocation19_spill] sm:$0xff]  ;;  %v9182_v50 = vld [vmem:[#allocation64_spill] sm:$0xff] }
 0x1cb   :  { %9113 = vst [vmem:[#allocation27_spill] sm:$0xff] %v6542_v6  ;;  %v4875_v5 = vpop.eup %4874  ;;  %v1985_v23 = vsel %vm936_vm0, %v1916_v62, 0.0  ;;  %v1919_v15 = vmul.f32 %v6367_v22, %v9115_v39  ;;  %v1971_v0 = vadd.f32 %v1970_v54, %v1969_v43  ;;  %v1920_v49 = vmul.f32 %v6367_v22, %v9116_v10  ;;  %v9122_v22 = vld [vmem:[#allocation26_spill] sm:$0xff]  ;;  %v9124_v43 = vld [vmem:[#allocation123_spill] sm:$0xff]  ;;  %v9125_v54 = vld [vmem:[#allocation124_spill] sm:$0xff] }
 0x1cc   :  { %4880 = vrcp.f32 %v2317_v33  ;;  %v1986_v38 = vadd.f32 %v1985_v23, %v1984_v53  ;;  %v1923_v27 = vmul.f32 %v6360_v34, %v9117_v21  ;;  %v1924_v24 = vmul.f32 %v6360_v34, %v9118_v59  ;;  %v9172_v59 = vld [vmem:[#allocation32_spill] sm:$0xff]  ;;  %v9173_v21 = vld [vmem:[#allocation33_spill] sm:$0xff]  ;;  %v9177_v39 = vld [vmem:[#allocation35_spill] sm:$0xff] }
 0x1cd   :  { %v4877_v20 = vpop.eup %4876  ;;  %v1972_v9 = vsel %vm936_vm0, %v1919_v15, 0.0  ;;  %v1927_v46 = vmul.f32 %v6370_v63, %v9119_v47  ;;  %v1076_v4 = vadd.f32 1.0, %v9120_v32  ;;  %v1987_v7 = vsel %vm936_vm0, %v1920_v49, 0.0  ;;  %v9126_v15 = vld [vmem:[#allocation127_spill] sm:$0xff]  ;;  %v9174_v10 = vld [vmem:[#allocation60_spill] sm:$0xff] }
 0x1ce   :  { %v1973_v37 = vadd.f32 %v1972_v9, %v1971_v0  ;;  %v1974_v19 = vsel %vm936_vm0, %v1923_v27, 0.0  ;;  %v1928_v56 = vmul.f32 %v6370_v63, %v9121_v44  ;;  %v1931_v14 = vmul.f32 %v6373_v28, %v9122_v22  ;;  %v9167_v22 = vld [vmem:[#allocation45_spill] sm:$0xff]  ;;  %v9168_v44 = vld [vmem:[#allocation16_spill] sm:$0xff]  ;;  %v9171_v47 = vld [vmem:[#allocation47_spill] sm:$0xff] }
 0x1cf   :  { %v1988_v29 = vadd.f32 %v1987_v7, %v1986_v38  ;;  %v1989_v34 = vsel %vm936_vm0, %v1924_v24, 0.0  ;;  %v1976_v18 = vsel %vm936_vm0, %v1927_v46, 0.0  ;;  %v1932_v55 = vmul.f32 %v6373_v28, %v9123_v2  ;;  %v9166_v2 = vld [vmem:[#allocation44_spill] sm:$0xff] }
 0x1d0   :  { %v1975_v30 = vadd.f32 %v1974_v19, %v1973_v37  ;;  %v1935_v36 = vmul.f32 %v9105_v60, %v9124_v43  ;;  %4882 = vrcp.f32 %v1076_v4  ;;  %v1991_v63 = vsel %vm936_vm0, %v1928_v56, 0.0  ;;  %v9128_v4 = vld [vmem:[#allocation128_spill] sm:$0xff]  ;;  %v9165_v43 = vld [vmem:[#allocation14_spill] sm:$0xff] }
 0x1d1   :  { %v1990_v62 = vadd.f32 %v1989_v34, %v1988_v29  ;;  %v1978_v53 = vsel %vm936_vm0, %v1931_v14, 0.0  ;;  %v1936_v23 = vmul.f32 %v9105_v60, %v9125_v54  ;;  %4884 = vtanh.f32 %v9126_v15  ;;  %v9131_v34 = vld [vmem:[#allocation9_spill] sm:$0xff]  ;;  %v9154_v15 = vld [vmem:[#allocation39_spill] sm:$0xff] }
 0x1d2   :  { %v1977_v33 = vadd.f32 %v1976_v18, %v1975_v30  ;;  %v1993_v28 = vsel %vm936_vm0, %v1932_v55, 0.0  ;;  %v1980_v27 = vsel %vm936_vm0, %v1935_v36, 0.0  ;;  %v2318_v37 = vadd.f32 1.0, %v4875_v5  ;;  %v9163_v54 = vld [vmem:[#allocation43_spill] sm:$0xff] }
 0x1d3   :  { %v1992_v38 = vadd.f32 %v1991_v63, %v1990_v62  ;;  %v1995_v19 = vsel %vm936_vm0, %v1936_v23, 0.0 }
 0x1d4   :  { %v4879_v0 = vpop.eup %4878  ;;  %v1979_v9 = vadd.f32 %v1978_v53, %v1977_v33  ;;  %4886 = vrcp.f32 %v2318_v37  ;;  %v9138_v37 = vld [vmem:[#allocation132_spill] sm:$0xff] }
 0x1d5   :  { %v2327_v49 = vmul.f32 %v4879_v0, %v4877_v20  ;;  %v1994_v46 = vadd.f32 %v1993_v28, %v1992_v38  ;;  %v9135_v28 = vld [vmem:[#allocation126_spill] sm:$0xff] }
 0x1d6   :  { %v4881_v24 = vpop.eup %4880  ;;  %v6580_v32 = vadd.f32 %v1980_v27, %v1979_v9 }
 0x1d7   :  { %v2326_v7 = vmul.f32 %v4881_v24, %v9128_v4  ;;  %v6584_v60 = vadd.f32 %v1995_v19, %v1994_v46  ;;  %v9137_v24 = vld [vmem:[#allocation94_spill] sm:$0xff] }
 0x1d8   :  { %9127 = vst [vmem:[#allocation49_spill] sm:$0xff] %v6580_v32  ;;  %v6605_v46 = vadd.f32 %v9138_v37, %v9137_v24  ;;  %v9152_v24 = vld [vmem:[#allocation11_spill] sm:$0xff] }
 0x1d9   :  { %9129 = vst [vmem:[#allocation55_spill] sm:$0xff] %v6584_v60  ;;  %v6586_v56 = vadd.f32 %v2327_v49, %v2326_v7  ;;  %v9134_v49 = vld [vmem:[#allocation93_spill] sm:$0xff]  ;;  %v9140_v7 = vld [vmem:[#allocation6_spill] sm:$0xff] }
 0x1da   :  { %v4883_v20 = vpop.eup %4882  ;;  %v6601_v27 = vadd.f32 %v9135_v28, %v9134_v49  ;;  %9139 = vst [vmem:[#allocation132_spill] sm:$0xff] %v6605_v46  ;;  %v9156_v46 = vld [vmem:[#allocation10_spill] sm:$0xff] }
 0x1db   :  { %9130 = vst [vmem:[#allocation121_spill] sm:$0xff] %v6586_v56  ;;  %4888 = vtanh.f32 %v6586_v56  ;;  %v4885_v14 = vpop.eup %4884 }
 0x1dc   :  { %v1088_v29 = vmul.f32 %v4885_v14, %v4883_v20  ;;  %9136 = vst [vmem:[#allocation126_spill] sm:$0xff] %v6601_v27 }
 0x1de   :  { %v1090_v30 = vcombine.high %v1088_v29, %v1088_v29  ;;  %v1097_v5 = vrot.slane %v1088_v29, %v9131_v34  ;;  %v4887_v36 = vpop.eup %4886 }
 0x1e0   :  { %v1104_v18 = vrot.slane %v1090_v30, %v9131_v34  ;;  %v1105_v55 = vcombine.high %v1097_v5, %v1097_v5  ;;  %v1113_v33 = vrot.slane %v1097_v5, %v9131_v34  ;;  %v9142_v30 = vld [vmem:[#allocation54_spill] sm:$0xff] }
 0x1e1   :  { %v9143_v5 = vld [vmem:[#allocation122_spill] sm:$0xff] }
 0x1e2   :  { %v1106_v53 = vcombine.high %v1104_v18, %v1104_v18  ;;  %v6593_v23 = vrot.slane %v1104_v18, %v9131_v34  ;;  %v6596_v0 = vrot.slane %v1105_v55, %v9131_v34  ;;  %v1135_v4 = vcombine.high %v1113_v33, %v1113_v33 }
 0x1e3   :  { %v6608_v19 = vrot.slane %v1113_v33, %v9140_v7  ;;  %v6614_v18 = vadd.f32 %v9143_v5, %v9142_v30  ;;  %v9151_v30 = vld [vmem:[#allocation8_spill] sm:$0xff] }
 0x1e4   :  { %9132 = vst [vmem:[#allocation135_spill] sm:$0xff] %v6593_v23  ;;  %9133 = vst [vmem:[#allocation128_spill] sm:$0xff] %v6596_v0  ;;  %v6617_v55 = vrot.slane %v1106_v53, %v9131_v34  ;;  %v6625_v33 = vrot.slane %v6596_v0, %v9140_v7  ;;  %v6633_v53 = vrot.slane %v1135_v4, %v9140_v7  ;;  %v9175_v0 = vld [vmem:[#allocation61_spill] sm:$0xff] }
 0x1e5   :  { %v4889_v62 = vpop.eup %4888  ;;  %9141 = vst [vmem:[#allocation136_spill] sm:$0xff] %v6608_v19  ;;  %9144 = vst [vmem:[#allocation122_spill] sm:$0xff] %v6614_v18  ;;  %v6637_v5 = vrot.slane %v6593_v23, %v9140_v7  ;;  %v9170_v23 = vld [vmem:[#allocation46_spill] sm:$0xff] }
 0x1e6   :  { %v2330_v63 = vmul.f32 %v4889_v62, %v4887_v36  ;;  %9145 = vst [vmem:[#allocation137_spill] sm:$0xff] %v6617_v55  ;;  %9146 = vst [vmem:[#allocation138_spill] sm:$0xff] %v6625_v33  ;;  %v9149_v36 = vld [vmem:[#allocation72_spill] sm:$0xff]  ;;  %v9178_v55 = vld [vmem:[#allocation62_spill] sm:$0xff] }
 0x1e7   :  { %9147 = vst [vmem:[#allocation139_spill] sm:$0xff] %v6633_v53  ;;  %9148 = vst [vmem:[#allocation140_spill] sm:$0xff] %v6637_v5  ;;  %v6641_v62 = vmul.f32 %v6608_v19, %v9149_v36  ;;  %v9162_v53 = vld [vmem:[#allocation42_spill] sm:$0xff]  ;;  %v9169_v19 = vld [vmem:[#allocation17_spill] sm:$0xff] }
 0x1e8   :  { %v2332_v38 = vcombine.high %v2330_v63, %v2330_v63  ;;  %v2339_v9 = vrot.slane %v2330_v63, %v9131_v34 }
 0x1e9   :  { %9150 = vst [vmem:[#allocation141_spill] sm:$0xff] %v6641_v62 }
 0x1ea   :  { %v2346_v20 = vrot.slane %v2332_v38, %v9131_v34  ;;  %v2347_v14 = vcombine.high %v2339_v9, %v2339_v9  ;;  %v2355_v29 = vrot.slane %v2339_v9, %v9131_v34 }
 0x1ec   :  { %v2348_v63 = vcombine.high %v2346_v20, %v2346_v20  ;;  %v2362_v38 = vrot.slane %v2346_v20, %v9131_v34  ;;  %v2369_v9 = vrot.slane %v2347_v14, %v9131_v34  ;;  %v2377_v28 = vcombine.high %v2355_v29, %v2355_v29 }
 0x1ed   :  { %v6630_v37 = vrot.slane %v2355_v29, %v9140_v7 }
 0x1ee   :  { %v2376_v60 = vrot.slane %v2348_v63, %v9131_v34  ;;  %v2378_v20 = vcombine.high %v2362_v38, %v2362_v38  ;;  %v2379_v32 = vcombine.high %v2369_v9, %v2369_v9  ;;  %v6645_v14 = vrot.slane %v2369_v9, %v9140_v7  ;;  %v9159_v34 = vld [vmem:[#allocation41_spill] sm:$0xff] }
 0x1ef   :  { %v6648_v29 = vrot.slane %v2377_v28, %v9140_v7  ;;  %v6651_v4 = vrot.slane %v2362_v38, %v9140_v7  ;;  %v2727_v6 = vmul.f32 %v6630_v37, %v9151_v30  ;;  %v2728_v31 = vmul.f32 %v6630_v37, %v9152_v24  ;;  %v9153_v28 = vld [vmem:[#allocation38_spill] sm:$0xff]  ;;  %v9155_v30 = vld [vmem:[#allocation7_spill] sm:$0xff] }
 0x1f0   :  { %v2380_v49 = vcombine.high %v2376_v60, %v2376_v60  ;;  %v6658_v63 = vrot.slane %v2379_v32, %v9140_v7  ;;  %v6661_v36 = vrot.slane %v2376_v60, %v9140_v7  ;;  %v6664_v9 = vrot.slane %v2378_v20, %v9140_v7  ;;  %v9158_v60 = vld [vmem:[#allocation40_spill] sm:$0xff] }
 0x1f1   :  { %v2729_v38 = vmul.f32 %v6630_v37, %v9153_v28  ;;  %v6670_v18 = vmul.f32 %v6630_v37, %v9154_v15  ;;  %v2731_v24 = vmul.f32 %v6645_v14, %v9155_v30  ;;  %v2732_v32 = vmul.f32 %v6645_v14, %v9156_v46  ;;  %v9160_v28 = vld [vmem:[#allocation13_spill] sm:$0xff]  ;;  %v9161_v15 = vld [vmem:[#allocation12_spill] sm:$0xff] }
 0x1f2   :  { %v6677_v27 = vrot.slane %v2380_v49, %v9140_v7  ;;  %v2733_v20 = vmul.f32 %v6645_v14, %v9158_v60  ;;  %v2734_v62 = vmul.f32 %v6645_v14, %v9159_v34  ;;  %v2735_v5 = vmul.f32 %v6648_v29, %v9160_v28  ;;  %v9164_v49 = vld [vmem:[#allocation15_spill] sm:$0xff]  ;;  %v9176_v7 = vld [vmem:[#allocation34_spill] sm:$0xff] }
 0x1f3   :  { %v2736_v56 = vmul.f32 %v6648_v29, %v9161_v15  ;;  %v2737_v30 = vmul.f32 %v6648_v29, %v9162_v53  ;;  %v2738_v46 = vmul.f32 %v6648_v29, %v9163_v54  ;;  %v2739_v33 = vmul.f32 %v6658_v63, %v9164_v49 }
 0x1f4   :  { %9157 = vst [vmem:[#allocation142_spill] sm:$0xff] %v6677_v27  ;;  %v2740_v60 = vmul.f32 %v6658_v63, %v9165_v43  ;;  %v2741_v34 = vmul.f32 %v6658_v63, %v9166_v2  ;;  %v2742_v28 = vmul.f32 %v6658_v63, %v9167_v22  ;;  %v2743_v15 = vmul.f32 %v6651_v4, %v9168_v44 }
 0x1f5   :  { %v2744_v53 = vmul.f32 %v6651_v4, %v9169_v19  ;;  %v2745_v54 = vmul.f32 %v6651_v4, %v9170_v23  ;;  %v2746_v49 = vmul.f32 %v6651_v4, %v9171_v47  ;;  %v2747_v43 = vmul.f32 %v6661_v36, %v9172_v59 }
 0x1f6   :  { %v2748_v2 = vmul.f32 %v6661_v36, %v9173_v21  ;;  %v2749_v22 = vmul.f32 %v6661_v36, %v9174_v10  ;;  %v2750_v44 = vmul.f32 %v6661_v36, %v9175_v0  ;;  %v2751_v19 = vmul.f32 %v6664_v9, %v9176_v7 }
 0x1f7   :  { %v2752_v23 = vmul.f32 %v6664_v9, %v9177_v39  ;;  %v2753_v47 = vmul.f32 %v6664_v9, %v9178_v55  ;;  %v2754_v59 = vmul.f32 %v6664_v9, %v9179_v42  ;;  %v2755_v21 = vmul.f32 %v6677_v27, %v9180_v57 }
 0x1f8   :  { %v2756_v10 = vmul.f32 %v6677_v27, %v9181_v8  ;;  %v2757_v0 = vmul.f32 %v6677_v27, %v9182_v50  ;;  %v2758_v7 = vmul.f32 %v6677_v27, %v9183_v35  ;;  %v2759_v39 = vsel %vm936_vm0, %v2727_v6, 0.0 }
 0x1f9   :  { %v2760_v45 = vsel %vm936_vm0, %v2731_v24, 0.0  ;;  %v2762_v55 = vsel %vm936_vm0, %v2735_v5, 0.0  ;;  %v2764_v42 = vsel %vm936_vm0, %v2739_v33, 0.0  ;;  %v2766_v48 = vsel %vm936_vm0, %v2743_v15, 0.0 }
 0x1fa   :  { %v2761_v57 = vadd.f32 %v2760_v45, %v2759_v39  ;;  %v2768_v26 = vsel %vm936_vm0, %v2747_v43, 0.0  ;;  %v2770_v8 = vsel %vm936_vm0, %v2751_v19, 0.0  ;;  %v2772_v50 = vsel %vm936_vm0, %v2755_v21, 0.0 }
 0x1fb   :  { %v2774_v61 = vsel %vm936_vm0, %v2728_v31, 0.0  ;;  %v2775_v35 = vsel %vm936_vm0, %v2732_v32, 0.0  ;;  %v2777_v6 = vsel %vm936_vm0, %v2736_v56, 0.0  ;;  %v2779_v24 = vsel %vm936_vm0, %v2740_v60, 0.0 }
 0x1fc   :  { %v2763_v5 = vadd.f32 %v2762_v55, %v2761_v57  ;;  %v2776_v27 = vadd.f32 %v2775_v35, %v2774_v61  ;;  %v2781_v33 = vsel %vm936_vm0, %v2744_v53, 0.0  ;;  %v2783_v45 = vsel %vm936_vm0, %v2748_v2, 0.0 }
 0x1fd   :  { %v2785_v39 = vsel %vm936_vm0, %v2752_v23, 0.0  ;;  %v2787_v43 = vsel %vm936_vm0, %v2756_v10, 0.0  ;;  %v2789_v21 = vsel %vm936_vm0, %v2729_v38, 0.0  ;;  %v2790_v31 = vsel %vm936_vm0, %v2733_v20, 0.0 }
 0x1fe   :  { %v2765_v15 = vadd.f32 %v2764_v42, %v2763_v5  ;;  %v2778_v19 = vadd.f32 %v2777_v6, %v2776_v27  ;;  %v2791_v32 = vadd.f32 %v2790_v31, %v2789_v21  ;;  %v2792_v56 = vsel %vm936_vm0, %v2737_v30, 0.0 }
 0x1ff   :  { %v2794_v57 = vsel %vm936_vm0, %v2741_v34, 0.0  ;;  %v2796_v61 = vsel %vm936_vm0, %v2745_v54, 0.0  ;;  %v2798_v35 = vsel %vm936_vm0, %v2749_v22, 0.0  ;;  %v2800_v2 = vsel %vm936_vm0, %v2753_v47, 0.0 }
 0x200   :  { %v2767_v23 = vadd.f32 %v2766_v48, %v2765_v15  ;;  %v2780_v55 = vadd.f32 %v2779_v24, %v2778_v19  ;;  %v2793_v10 = vadd.f32 %v2792_v56, %v2791_v32  ;;  %v2802_v53 = vsel %vm936_vm0, %v2757_v0, 0.0  ;;  %v9184_v32 = vld [vmem:[#allocation21_spill] sm:$0xff] }
 0x201   :  { %v2804_v42 = vsel %vm936_vm0, %v6670_v18, 0.0  ;;  %v2805_v27 = vsel %vm936_vm0, %v2734_v62, 0.0  ;;  %v2807_v30 = vsel %vm936_vm0, %v2738_v46, 0.0  ;;  %v2809_v34 = vsel %vm936_vm0, %v2742_v28, 0.0 }
 0x202   :  { %v2769_v38 = vadd.f32 %v2768_v26, %v2767_v23  ;;  %v2782_v54 = vadd.f32 %v2781_v33, %v2780_v55  ;;  %v2795_v60 = vadd.f32 %v2794_v57, %v2793_v10  ;;  %v2806_v22 = vadd.f32 %v2805_v27, %v2804_v42  ;;  %v9185_v55 = vld [vmem:[#allocation28_spill] sm:$0xff] }
 0x203   :  { %v2811_v47 = vsel %vm936_vm0, %v2746_v49, 0.0  ;;  %v2813_v48 = vsel %vm936_vm0, %v2750_v44, 0.0  ;;  %v2815_v20 = vsel %vm936_vm0, %v2754_v59, 0.0  ;;  %v2817_v0 = vsel %vm936_vm0, %v2758_v7, 0.0 }
 0x204   :  { %v2771_v6 = vadd.f32 %v2770_v8, %v2769_v38  ;;  %v2784_v18 = vadd.f32 %v2783_v45, %v2782_v54  ;;  %v2797_v24 = vadd.f32 %v2796_v61, %v2795_v60  ;;  %v2808_v62 = vadd.f32 %v2807_v30, %v2806_v22  ;;  %v9186_v38 = vld [vmem:[#allocation50_spill] sm:$0xff] }
 0x205   :  { %v2421_v46 = vmul.f32 %v6630_v37, %v5638_v1  ;;  %v2422_v26 = vmul.f32 %v6630_v37, %v5640_v11  ;;  %v2425_v28 = vmul.f32 %v6645_v14, %v5644_v13  ;;  %v2426_v44 = vmul.f32 %v6645_v14, %v5646_v58 }
 0x206   :  { %v2773_v49 = vadd.f32 %v2772_v50, %v2771_v6  ;;  %v2786_v59 = vadd.f32 %v2785_v39, %v2784_v18  ;;  %v2799_v5 = vadd.f32 %v2798_v35, %v2797_v24  ;;  %v2810_v7 = vadd.f32 %v2809_v34, %v2808_v62 }
 0x207   :  { %v2453_v8 = vsel %vm936_vm0, %v2421_v46, 0.0  ;;  %v2468_v33 = vsel %vm936_vm0, %v2422_v26, 0.0  ;;  %v2454_v45 = vsel %vm936_vm0, %v2425_v28, 0.0  ;;  %v2469_v21 = vsel %vm936_vm0, %v2426_v44, 0.0  ;;  %v9187_v28 = vld [vmem:[#allocation56_spill] sm:$0xff] }
 0x208   :  { %v2788_v31 = vadd.f32 %v2787_v43, %v2786_v59  ;;  %v2801_v15 = vadd.f32 %v2800_v2, %v2799_v5  ;;  %v2812_v19 = vadd.f32 %v2811_v47, %v2810_v7  ;;  %v2819_v56 = vadd.f32 %v2773_v49, %v9184_v32  ;;  %v9189_v32 = vld [vmem:[#allocation97_spill] sm:$0xff] }
 0x209   :  { %v2455_v57 = vadd.f32 %v2454_v45, %v2453_v8  ;;  %v2470_v61 = vadd.f32 %v2469_v21, %v2468_v33  ;;  %v2429_v50 = vmul.f32 %v6648_v29, %v5653_v41  ;;  %v2430_v39 = vmul.f32 %v6648_v29, %v5655_v17  ;;  %v9188_v21 = vld [vmem:[#allocation92_spill] sm:$0xff] }
 0x20a   :  { %v2803_v35 = vadd.f32 %v2802_v53, %v2801_v15  ;;  %v2814_v23 = vadd.f32 %v2813_v48, %v2812_v19  ;;  %v2820_v10 = vadd.f32 %v2788_v31, %v9185_v55  ;;  %v4778_v42 = vmul.f32 -1.442695, %v2819_v56  ;;  %v9190_v56 = vld [vmem:[#allocation142_spill] sm:$0xff] }
 0x20b   :  { %v2456_v27 = vsel %vm936_vm0, %v2429_v50, 0.0  ;;  %v2471_v43 = vsel %vm936_vm0, %v2430_v39, 0.0  ;;  %v2433_v2 = vmul.f32 %v6658_v63, %v5668_v25  ;;  %v2434_v30 = vmul.f32 %v6658_v63, %v5670_v12 }
 0x20c   :  { %v2816_v34 = vadd.f32 %v2815_v20, %v2814_v23  ;;  %v2821_v54 = vadd.f32 %v2803_v35, %v9186_v38  ;;  %4890 = vpow2.f32 %v4778_v42  ;;  %v4779_v60 = vmul.f32 -1.442695, %v2820_v10  ;;  %v9192_v23 = vld [vmem:[#allocation18_spill] sm:$0xff]  ;;  %v9193_v10 = vld [vmem:[#allocation101_spill] sm:$0xff] }
 0x20d   :  { %v2457_v53 = vadd.f32 %v2456_v27, %v2455_v57  ;;  %v2472_v22 = vadd.f32 %v2471_v43, %v2470_v61  ;;  %v2458_v47 = vsel %vm936_vm0, %v2433_v2, 0.0  ;;  %v2473_v48 = vsel %vm936_vm0, %v2434_v30, 0.0  ;;  %v9191_v61 = vld [vmem:[#allocation98_spill] sm:$0xff]  ;;  %v9194_v30 = vld [vmem:[#allocation25_spill] sm:$0xff] }
 0x20e   :  { %v2818_v6 = vadd.f32 %v2817_v0, %v2816_v34  ;;  %4892 = vpow2.f32 %v4779_v60  ;;  %v4780_v18 = vmul.f32 -1.442695, %v2821_v54  ;;  %v2437_v24 = vmul.f32 %v6651_v4, %v5676_v3 }
 0x20f   :  { %v2459_v62 = vadd.f32 %v2458_v47, %v2457_v53  ;;  %v2474_v46 = vadd.f32 %v2473_v48, %v2472_v22  ;;  %v2438_v20 = vmul.f32 %v6651_v4, %v5678_v51  ;;  %v2441_v26 = vmul.f32 %v6661_v36, %v5689_v16  ;;  %v9195_v22 = vld [vmem:[#allocation102_spill] sm:$0xff] }
 0x210   :  { %v2822_v44 = vadd.f32 %v2818_v6, %v9187_v28  ;;  %4894 = vpow2.f32 %v4780_v18  ;;  %v2460_v49 = vsel %vm936_vm0, %v2437_v24, 0.0  ;;  %v2442_v0 = vmul.f32 %v6661_v36, %v5691_v52  ;;  %v9197_v18 = vld [vmem:[#allocation105_spill] sm:$0xff]  ;;  %v9199_v28 = vld [vmem:[#allocation106_spill] sm:$0xff] }
 0x211   :  { %v2461_v59 = vadd.f32 %v2460_v49, %v2459_v62  ;;  %v2475_v5 = vsel %vm936_vm0, %v2438_v20, 0.0  ;;  %v2462_v7 = vsel %vm936_vm0, %v2441_v26, 0.0  ;;  %v2445_v8 = vmul.f32 %v6664_v9, %v9019_v40 }
 0x212   :  { %4896 = vtanh.f32 %v2822_v44  ;;  %v2476_v33 = vadd.f32 %v2475_v5, %v2474_v46  ;;  %v2477_v45 = vsel %vm936_vm0, %v2442_v0, 0.0  ;;  %v2446_v31 = vmul.f32 %v6664_v9, %v9188_v21  ;;  %v9200_v0 = vld [vmem:[#allocation137_spill] sm:$0xff] }
 0x213   :  { %v2463_v15 = vadd.f32 %v2462_v7, %v2461_v59  ;;  %v2464_v19 = vsel %vm936_vm0, %v2445_v8, 0.0  ;;  %v2449_v57 = vmul.f32 %v9190_v56, %v9189_v32  ;;  %v2450_v50 = vmul.f32 %v9190_v56, %v9191_v61 }
 0x214   :  { %v2478_v39 = vadd.f32 %v2477_v45, %v2476_v33  ;;  %v2479_v35 = vsel %vm936_vm0, %v2446_v31, 0.0  ;;  %v2423_v55 = vmul.f32 %v6630_v37, %v9192_v23  ;;  %v2424_v42 = vmul.f32 %v6630_v37, %v9193_v10  ;;  %v9201_v33 = vld [vmem:[#allocation111_spill] sm:$0xff]  ;;  %v9202_v31 = vld [vmem:[#allocation6_spill] sm:$0xff]  ;;  %v9300_v10 = vld [vmem:[#allocation65_spill] sm:$0xff] }
 0x215   :  { %v2465_v27 = vadd.f32 %v2464_v19, %v2463_v15  ;;  %v2466_v43 = vsel %vm936_vm0, %v2449_v57, 0.0  ;;  %v2481_v2 = vsel %vm936_vm0, %v2450_v50, 0.0  ;;  %v2427_v34 = vmul.f32 %v6645_v14, %v9194_v30  ;;  %v9203_v15 = vld [vmem:[#allocation128_spill] sm:$0xff] }
 0x216   :  { %v4891_v38 = vpop.eup %4890  ;;  %v2480_v54 = vadd.f32 %v2479_v35, %v2478_v39  ;;  %v2483_v60 = vsel %vm936_vm0, %v2423_v55, 0.0  ;;  %v2498_v53 = vsel %vm936_vm0, %v2424_v42, 0.0  ;;  %v2428_v47 = vmul.f32 %v6645_v14, %v9195_v22  ;;  %v9205_v42 = vld [vmem:[#allocation112_spill] sm:$0xff]  ;;  %v9298_v22 = vld [vmem:[#allocation37_spill] sm:$0xff] }
 0x217   :  { %v2832_v48 = vadd.f32 1.0, %v4891_v38  ;;  %v6826_v6 = vadd.f32 %v2466_v43, %v2465_v27  ;;  %v2484_v37 = vsel %vm936_vm0, %v2427_v34, 0.0  ;;  %v2431_v24 = vmul.f32 %v6648_v29, %v9197_v18  ;;  %v9206_v43 = vld [vmem:[#allocation115_spill] sm:$0xff]  ;;  %v9207_v34 = vld [vmem:[#allocation116_spill] sm:$0xff] }
 0x218   :  { %v4893_v62 = vpop.eup %4892  ;;  %v6831_v46 = vadd.f32 %v2481_v2, %v2480_v54  ;;  %v2485_v20 = vadd.f32 %v2484_v37, %v2483_v60  ;;  %v2499_v26 = vsel %vm936_vm0, %v2428_v47, 0.0  ;;  %v2432_v44 = vmul.f32 %v6648_v29, %v9199_v28  ;;  %v9208_v60 = vld [vmem:[#allocation119_spill] sm:$0xff]  ;;  %v9297_v18 = vld [vmem:[#allocation36_spill] sm:$0xff] }
 0x219   :  { %9196 = vst [vmem:[#allocation21_spill] sm:$0xff] %v6826_v6  ;;  %v2833_v49 = vadd.f32 1.0, %v4893_v62  ;;  %4898 = vrcp.f32 %v2832_v48  ;;  %v2500_v14 = vadd.f32 %v2499_v26, %v2498_v53  ;;  %v1138_v59 = vcombine.high %v9200_v0, %v9200_v0  ;;  %v9209_v47 = vld [vmem:[#allocation135_spill] sm:$0xff]  ;;  %v9212_v62 = vld [vmem:[#allocation136_spill] sm:$0xff] }
 0x21a   :  { %9198 = vst [vmem:[#allocation28_spill] sm:$0xff] %v6831_v46  ;;  %v4895_v5 = vpop.eup %4894  ;;  %v2486_v7 = vsel %vm936_vm0, %v2431_v24, 0.0  ;;  %v2501_v8 = vsel %vm936_vm0, %v2432_v44, 0.0  ;;  %v2435_v45 = vmul.f32 %v6658_v63, %v9201_v33  ;;  %v9204_v19 = vcombine.high %v9203_v15, %v9203_v15  ;;  %v9211_v24 = vld [vmem:[#allocation73_spill] sm:$0xff]  ;;  %v9213_v44 = vld [vmem:[#allocation120_spill] sm:$0xff]  ;;  %v9296_v28 = vld [vmem:[#allocation63_spill] sm:$0xff] }
 0x21b   :  { %4900 = vrcp.f32 %v2833_v49  ;;  %v2487_v29 = vadd.f32 %v2486_v7, %v2485_v20  ;;  %v2502_v50 = vadd.f32 %v2501_v8, %v2500_v14  ;;  %v6848_v39 = vrot.slane %v9200_v0, %v9202_v31  ;;  %v9214_v49 = vld [vmem:[#allocation26_spill] sm:$0xff]  ;;  %v9221_v6 = vld [vmem:[#allocation124_spill] sm:$0xff] }
 0x21c   :  { %v1154_v57 = vrot.slane %v9204_v19, %v9202_v31  ;;  %v4897_v35 = vpop.eup %4896  ;;  %v2488_v55 = vsel %vm936_vm0, %v2435_v45, 0.0  ;;  %v2436_v27 = vmul.f32 %v6658_v63, %v9205_v42  ;;  %v2439_v2 = vmul.f32 %v6651_v4, %v9206_v43  ;;  %v9215_v45 = vld [vmem:[#allocation107_spill] sm:$0xff]  ;;  %v9299_v30 = vld [vmem:[#allocation64_spill] sm:$0xff] }
 0x21d   :  { %v2440_v38 = vmul.f32 %v6651_v4, %v9207_v34  ;;  %v2489_v54 = vadd.f32 %v2488_v55, %v2487_v29  ;;  %v2443_v53 = vmul.f32 %v6661_v36, %v9208_v60  ;;  %v9210_v48 = vcombine.high %v9209_v47, %v9209_v47  ;;  %v9216_v55 = vld [vmem:[#allocation19_spill] sm:$0xff]  ;;  %v9250_v60 = vld [vmem:[#allocation100_spill] sm:$0xff]  ;;  %v9251_v34 = vld [vmem:[#allocation90_spill] sm:$0xff] }
 0x21e   :  { %v6865_v20 = vmul.f32 %v9212_v62, %v9211_v24  ;;  %v2503_v63 = vsel %vm936_vm0, %v2436_v27, 0.0  ;;  %v2490_v26 = vsel %vm936_vm0, %v2439_v2, 0.0  ;;  %v2444_v4 = vmul.f32 %v6661_v36, %v9213_v44  ;;  %v9217_v36 = vld [vmem:[#allocation123_spill] sm:$0xff] }
 0x21f   :  { %v1166_v37 = vrot.slane %v9210_v48, %v9202_v31  ;;  %v2447_v14 = vmul.f32 %v6664_v9, %v9214_v49  ;;  %v2504_v0 = vadd.f32 %v2503_v63, %v2502_v50  ;;  %v2491_v7 = vadd.f32 %v2490_v26, %v2489_v54  ;;  %v9218_v54 = vld [vmem:[#allocation108_spill] sm:$0xff]  ;;  %v9219_v48 = vld [vmem:[#allocation75_spill] sm:$0xff]  ;;  %v9220_v63 = vld [vmem:[#allocation138_spill] sm:$0xff] }
 0x220   :  { %v6874_v8 = vrot.slane %v1138_v59, %v9202_v31  ;;  %v6878_v15 = vmul.f32 %v9212_v62, %v9215_v45  ;;  %v2505_v19 = vsel %vm936_vm0, %v2440_v38, 0.0  ;;  %v2492_v29 = vsel %vm936_vm0, %v2443_v53, 0.0  ;;  %v9247_v49 = vld [vmem:[#allocation125_spill] sm:$0xff] }
 0x221   :  { %v2448_v27 = vmul.f32 %v6664_v9, %v9216_v55  ;;  %v2451_v2 = vmul.f32 %v9190_v56, %v9217_v36  ;;  %v2506_v47 = vadd.f32 %v2505_v19, %v2504_v0  ;;  %v2493_v50 = vadd.f32 %v2492_v29, %v2491_v7  ;;  %v9222_v0 = vld [vmem:[#allocation76_spill] sm:$0xff]  ;;  %v9223_v19 = vld [vmem:[#allocation109_spill] sm:$0xff] }
 0x222   :  { %v6888_v59 = vmul.f32 %v9212_v62, %v9218_v54  ;;  %v1489_v26 = vmul.f32 %v9220_v63, %v9219_v48  ;;  %v2834_v46 = vadd.f32 1.0, %v4895_v5  ;;  %v2507_v38 = vsel %vm936_vm0, %v2444_v4, 0.0  ;;  %v9224_v4 = vld [vmem:[#allocation110_spill] sm:$0xff] }
 0x223   :  { %v2494_v53 = vsel %vm936_vm0, %v2447_v14, 0.0  ;;  %v2452_v9 = vmul.f32 %v9190_v56, %v9221_v6  ;;  %v4899_v45 = vpop.eup %4898  ;;  %v2508_v24 = vadd.f32 %v2507_v38, %v2506_v47  ;;  %v1490_v7 = vmul.f32 %v9220_v63, %v9222_v0  ;;  %v9226_v47 = vld [vmem:[#allocation79_spill] sm:$0xff] }
 0x224   :  { %v2495_v36 = vadd.f32 %v2494_v53, %v2493_v50  ;;  %v1491_v62 = vmul.f32 %v9220_v63, %v9223_v19  ;;  %v2843_v29 = vmul.f32 %v4899_v45, %v4897_v35  ;;  %v2509_v54 = vsel %vm936_vm0, %v2448_v27, 0.0  ;;  %v9227_v50 = vld [vmem:[#allocation139_spill] sm:$0xff]  ;;  %v9228_v53 = vld [vmem:[#allocation80_spill] sm:$0xff]  ;;  %v9229_v19 = vld [vmem:[#allocation121_spill] sm:$0xff] }
 0x225   :  { %v2496_v5 = vsel %vm936_vm0, %v2451_v2, 0.0  ;;  %v1492_v14 = vmul.f32 %v9220_v63, %v9224_v4  ;;  %v4901_v48 = vpop.eup %4900  ;;  %v2510_v55 = vadd.f32 %v2509_v54, %v2508_v24  ;;  %v1493_v38 = vmul.f32 %v9227_v50, %v9226_v47  ;;  %v9230_v27 = vld [vmem:[#allocation113_spill] sm:$0xff]  ;;  %v9232_v63 = vld [vmem:[#allocation114_spill] sm:$0xff]  ;;  %v9239_v47 = vld [vmem:[#allocation140_spill] sm:$0xff] }
 0x226   :  { %v6904_v56 = vadd.f32 %v2496_v5, %v2495_v36  ;;  %v1494_v0 = vmul.f32 %v9227_v50, %v9228_v53  ;;  %4902 = vrcp.f32 %v2834_v46  ;;  %v2842_v35 = vmul.f32 %v4901_v48, %v9229_v19  ;;  %v9233_v36 = vld [vmem:[#allocation83_spill] sm:$0xff]  ;;  %v9234_v5 = vld [vmem:[#allocation84_spill] sm:$0xff]  ;;  %v9236_v46 = vld [vmem:[#allocation117_spill] sm:$0xff] }
 0x227   :  { %v2511_v45 = vsel %vm936_vm0, %v2452_v9, 0.0  ;;  %v1495_v2 = vmul.f32 %v9227_v50, %v9230_v27  ;;  %v6918_v24 = vmul.f32 %v9227_v50, %v9232_v63  ;;  %v1497_v54 = vmul.f32 %v1154_v57, %v9233_v36  ;;  %v9237_v48 = vld [vmem:[#allocation118_spill] sm:$0xff]  ;;  %v9238_v9 = vld [vmem:[#allocation87_spill] sm:$0xff]  ;;  %v9242_v63 = vld [vmem:[#allocation129_spill] sm:$0xff] }
 0x228   :  { %9225 = vst [vmem:[#allocation50_spill] sm:$0xff] %v6904_v56  ;;  %v6914_v6 = vadd.f32 %v2511_v45, %v2510_v55  ;;  %v1498_v56 = vmul.f32 %v1154_v57, %v9234_v5  ;;  %v6922_v4 = vadd.f32 %v2843_v29, %v2842_v35  ;;  %v1499_v53 = vmul.f32 %v1154_v57, %v9236_v46  ;;  %v9240_v55 = vld [vmem:[#allocation88_spill] sm:$0xff]  ;;  %v9243_v29 = vld [vmem:[#allocation95_spill] sm:$0xff]  ;;  %v9245_v46 = vld [vmem:[#allocation141_spill] sm:$0xff] }
 0x229   :  { %v6926_v19 = vmul.f32 %v1154_v57, %v9237_v48  ;;  %v1501_v27 = vmul.f32 %v9239_v47, %v9238_v9  ;;  %v1502_v45 = vmul.f32 %v9239_v47, %v9240_v55  ;;  %v6936_v36 = vmul.f32 %v9239_v47, %v9242_v63  ;;  %v9244_v57 = vld [vmem:[#allocation96_spill] sm:$0xff]  ;;  %v9246_v5 = vld [vmem:[#allocation131_spill] sm:$0xff] }
 0x22a   :  { %9231 = vst [vmem:[#allocation56_spill] sm:$0xff] %v6914_v6  ;;  %9235 = vst [vmem:[#allocation142_spill] sm:$0xff] %v6922_v4  ;;  %v9241_v6 = vld [vmem:[#allocation130_spill] sm:$0xff]  ;;  %v1505_v35 = vmul.f32 %v6848_v39, %v9243_v29  ;;  %4904 = vtanh.f32 %v6922_v4  ;;  %v1506_v48 = vmul.f32 %v6848_v39, %v9244_v57  ;;  %v1517_v9 = vsel %vm936_vm0, %v9245_v46, 0.0  ;;  %v9249_v63 = vld [vmem:[#allocation99_spill] sm:$0xff] }
 0x22b   :  { %v1503_v50 = vmul.f32 %v9239_v47, %v9241_v6  ;;  %v1518_v55 = vsel %vm936_vm0, %v1489_v26, 0.0  ;;  %v1507_v6 = vmul.f32 %v6848_v39, %v9246_v5  ;;  %v6950_v47 = vmul.f32 %v6848_v39, %v9247_v49  ;;  %v9252_v57 = vld [vmem:[#allocation89_spill] sm:$0xff]  ;;  %v9254_v26 = vld [vmem:[#allocation103_spill] sm:$0xff] }
 0x22c   :  { %v1509_v44 = vmul.f32 %v1166_v37, %v9249_v63  ;;  %v1519_v29 = vadd.f32 %v1518_v55, %v1517_v9  ;;  %v1510_v4 = vmul.f32 %v1166_v37, %v9250_v60  ;;  %v1511_v43 = vmul.f32 %v1166_v37, %v9251_v34  ;;  %v9255_v63 = vld [vmem:[#allocation104_spill] sm:$0xff]  ;;  %v9256_v55 = vld [vmem:[#allocation134_spill] sm:$0xff] }
 0x22d   :  { %9248 = vst [vmem:[#allocation137_spill] sm:$0xff] %v6950_v47  ;;  %v6956_v42 = vmul.f32 %v1166_v37, %v9252_v57  ;;  %v1520_v46 = vsel %vm936_vm0, %v1493_v38, 0.0  ;;  %v1513_v33 = vmul.f32 %v6874_v8, %v9254_v26  ;;  %v1532_v39 = vsel %vm936_vm0, %v6865_v20, 0.0 }
 0x22e   :  { %v1521_v5 = vadd.f32 %v1520_v46, %v1519_v29  ;;  %v1533_v49 = vsel %vm936_vm0, %v1490_v7, 0.0  ;;  %v1514_v9 = vmul.f32 %v6874_v8, %v9255_v63  ;;  %v6968_v34 = vmul.f32 %v6874_v8, %v9256_v55  ;;  %v9258_v7 = vld [vmem:[#allocation74_spill] sm:$0xff] }
 0x22f   :  { %9253 = vst [vmem:[#allocation128_spill] sm:$0xff] %v6956_v42  ;;  %v1522_v37 = vsel %vm936_vm0, %v1497_v54, 0.0  ;;  %v1534_v57 = vadd.f32 %v1533_v49, %v1532_v39  ;;  %v1535_v60 = vsel %vm936_vm0, %v1494_v0, 0.0  ;;  %v1547_v29 = vsel %vm936_vm0, %v6878_v15, 0.0 }
 0x230   :  { %9257 = vst [vmem:[#allocation135_spill] sm:$0xff] %v6968_v34  ;;  %v1523_v38 = vadd.f32 %v1522_v37, %v1521_v5  ;;  %v1548_v20 = vsel %vm936_vm0, %v1491_v62, 0.0  ;;  %v4903_v46 = vpop.eup %4902  ;;  %v6977_v26 = vmul.f32 %v6874_v8, %v9258_v7  ;;  %v1524_v63 = vsel %vm936_vm0, %v1501_v27, 0.0  ;;  %v9293_v34 = vld [vmem:[#allocation34_spill] sm:$0xff] }
 0x231   :  { %v1536_v55 = vadd.f32 %v1535_v60, %v1534_v57  ;;  %v1549_v42 = vadd.f32 %v1548_v20, %v1547_v29  ;;  %v1526_v49 = vsel %vm936_vm0, %v1505_v35, 0.0  ;;  %v1537_v54 = vsel %vm936_vm0, %v1498_v56, 0.0 }
 0x232   :  { %9259 = vst [vmem:[#allocation136_spill] sm:$0xff] %v6977_v26  ;;  %v1525_v47 = vadd.f32 %v1524_v63, %v1523_v38  ;;  %v1550_v0 = vsel %vm936_vm0, %v1495_v2, 0.0  ;;  %v1528_v15 = vsel %vm936_vm0, %v1509_v44, 0.0  ;;  %v1539_v62 = vsel %vm936_vm0, %v1502_v45, 0.0  ;;  %v9291_v26 = vld [vmem:[#allocation60_spill] sm:$0xff] }
 0x233   :  { %v1538_v5 = vadd.f32 %v1537_v54, %v1536_v55  ;;  %v1551_v39 = vadd.f32 %v1550_v0, %v1549_v42  ;;  %v1552_v8 = vsel %vm936_vm0, %v1499_v53, 0.0  ;;  %v1562_v60 = vsel %vm936_vm0, %v6888_v59, 0.0 }
 0x234   :  { %v1527_v37 = vadd.f32 %v1526_v49, %v1525_v47  ;;  %v1563_v27 = vsel %vm936_vm0, %v1492_v14, 0.0  ;;  %v4905_v63 = vpop.eup %4904  ;;  %v1530_v35 = vsel %vm936_vm0, %v1513_v33, 0.0  ;;  %v1541_v55 = vsel %vm936_vm0, %v1506_v48, 0.0  ;;  %v9260_v14 = vld [vmem:[#allocation9_spill] sm:$0xff] }
 0x235   :  { %v1540_v56 = vadd.f32 %v1539_v62, %v1538_v5  ;;  %v1553_v57 = vadd.f32 %v1552_v8, %v1551_v39  ;;  %v1564_v2 = vadd.f32 %v1563_v27, %v1562_v60  ;;  %v2846_v38 = vmul.f32 %v4905_v63, %v4903_v46  ;;  %v9261_v5 = vld [vmem:[#allocation126_spill] sm:$0xff] }
 0x236   :  { %v1529_v44 = vadd.f32 %v1528_v15, %v1527_v37  ;;  %v1554_v42 = vsel %vm936_vm0, %v1503_v50, 0.0  ;;  %v1543_v53 = vsel %vm936_vm0, %v1510_v4, 0.0  ;;  %v1556_v59 = vsel %vm936_vm0, %v1507_v6, 0.0 }
 0x237   :  { %v1542_v45 = vadd.f32 %v1541_v55, %v1540_v56  ;;  %v1555_v47 = vadd.f32 %v1554_v42, %v1553_v57  ;;  %v2848_v29 = vcombine.high %v2846_v38, %v2846_v38  ;;  %v2855_v20 = vrot.slane %v2846_v38, %v9260_v14  ;;  %v9268_v42 = vld [vmem:[#allocation8_spill] sm:$0xff] }
 0x238   :  { %v1531_v49 = vadd.f32 %v1530_v35, %v1529_v44  ;;  %v1565_v33 = vsel %vm936_vm0, %v6918_v24, 0.0  ;;  %v1545_v46 = vsel %vm936_vm0, %v1514_v9, 0.0  ;;  %v1558_v39 = vsel %vm936_vm0, %v1511_v43, 0.0  ;;  %v9266_v43 = vld [vmem:[#allocation132_spill] sm:$0xff] }
 0x239   :  { %v1544_v54 = vadd.f32 %v1543_v53, %v1542_v45  ;;  %v1557_v0 = vadd.f32 %v1556_v59, %v1555_v47  ;;  %v1566_v48 = vadd.f32 %v1565_v33, %v1564_v2  ;;  %v2862_v50 = vrot.slane %v2848_v29, %v9260_v14  ;;  %v9269_v53 = vld [vmem:[#allocation11_spill] sm:$0xff]  ;;  %v9270_v33 = vld [vmem:[#allocation38_spill] sm:$0xff] }
 0x23a   :  { %v2863_v15 = vcombine.high %v2855_v20, %v2855_v20  ;;  %v2871_v4 = vrot.slane %v2855_v20, %v9260_v14  ;;  %v7001_v62 = vadd.f32 %v1531_v49, %v9261_v5  ;;  %v1567_v37 = vsel %vm936_vm0, %v6926_v19, 0.0 }
 0x23b   :  { %v1546_v6 = vadd.f32 %v1545_v46, %v1544_v54  ;;  %v7008_v24 = vsel %vm936_vm0, %v6936_v36, 0.0  ;;  %v2864_v9 = vcombine.high %v2862_v50, %v2862_v50  ;;  %v2878_v8 = vrot.slane %v2862_v50, %v9260_v14  ;;  %v9271_v46 = vld [vmem:[#allocation39_spill] sm:$0xff] }
 0x23c   :  { %9262 = vst [vmem:[#allocation138_spill] sm:$0xff] %v7001_v62  ;;  %9263 = vst [vmem:[#allocation139_spill] sm:$0xff] %v7008_v24  ;;  %v2885_v60 = vrot.slane %v2863_v15, %v9260_v14  ;;  %v2893_v27 = vcombine.high %v2871_v4, %v2871_v4  ;;  %v7013_v63 = vrot.slane %v2871_v4, %v9202_v31  ;;  %v9273_v15 = vld [vmem:[#allocation10_spill] sm:$0xff]  ;;  %v9290_v62 = vld [vmem:[#allocation33_spill] sm:$0xff] }
 0x23d   :  { %v7015_v35 = vadd.f32 %v1558_v39, %v1557_v0  ;;  %v7017_v56 = vadd.f32 %v1567_v37, %v1566_v48  ;;  %v7020_v57 = vadd.f32 %v1546_v6, %v9266_v43  ;;  %v2892_v19 = vrot.slane %v2864_v9, %v9260_v14  ;;  %v9272_v48 = vld [vmem:[#allocation7_spill] sm:$0xff]  ;;  %v9275_v6 = vld [vmem:[#allocation40_spill] sm:$0xff]  ;;  %v9276_v37 = vld [vmem:[#allocation41_spill] sm:$0xff] }
 0x23e   :  { %v2894_v36 = vcombine.high %v2878_v8, %v2878_v8  ;;  %v2895_v2 = vcombine.high %v2885_v60, %v2885_v60  ;;  %v7024_v38 = vrot.slane %v2885_v60, %v9202_v31  ;;  %v7027_v44 = vrot.slane %v2893_v27, %v9202_v31  ;;  %v9278_v27 = vld [vmem:[#allocation12_spill] sm:$0xff]  ;;  %v9288_v14 = vld [vmem:[#allocation47_spill] sm:$0xff] }
 0x23f   :  { %9264 = vst [vmem:[#allocation121_spill] sm:$0xff] %v7015_v35  ;;  %9265 = vst [vmem:[#allocation140_spill] sm:$0xff] %v7017_v56  ;;  %v7030_v55 = vrot.slane %v2878_v8, %v9202_v31  ;;  %v3243_v45 = vmul.f32 %v7013_v63, %v9268_v42  ;;  %v3244_v47 = vmul.f32 %v7013_v63, %v9269_v53  ;;  %v9277_v8 = vld [vmem:[#allocation13_spill] sm:$0xff]  ;;  %v9285_v53 = vld [vmem:[#allocation16_spill] sm:$0xff] }
 0x240   :  { %9267 = vst [vmem:[#allocation141_spill] sm:$0xff] %v7020_v57  ;;  %v2896_v59 = vcombine.high %v2892_v19, %v2892_v19  ;;  %v7037_v29 = vrot.slane %v2895_v2, %v9202_v31  ;;  %v7040_v20 = vrot.slane %v2892_v19, %v9202_v31  ;;  %v7043_v49 = vrot.slane %v2894_v36, %v9202_v31  ;;  %v9279_v19 = vld [vmem:[#allocation42_spill] sm:$0xff]  ;;  %v9280_v2 = vld [vmem:[#allocation43_spill] sm:$0xff]  ;;  %v9286_v42 = vld [vmem:[#allocation17_spill] sm:$0xff] }
 0x241   :  { %v3245_v54 = vmul.f32 %v7013_v63, %v9270_v33  ;;  %v7049_v0 = vmul.f32 %v7013_v63, %v9271_v46  ;;  %v3247_v50 = vmul.f32 %v7024_v38, %v9272_v48  ;;  %v3248_v4 = vmul.f32 %v7024_v38, %v9273_v15  ;;  %v9282_v48 = vld [vmem:[#allocation14_spill] sm:$0xff]  ;;  %v9283_v46 = vld [vmem:[#allocation44_spill] sm:$0xff]  ;;  %v9284_v33 = vld [vmem:[#allocation45_spill] sm:$0xff] }
 0x242   :  { %v7056_v5 = vrot.slane %v2896_v59, %v9202_v31  ;;  %v3249_v39 = vmul.f32 %v7024_v38, %v9275_v6  ;;  %v3250_v9 = vmul.f32 %v7024_v38, %v9276_v37  ;;  %v3251_v60 = vmul.f32 %v7027_v44, %v9277_v8  ;;  %v9281_v59 = vld [vmem:[#allocation15_spill] sm:$0xff]  ;;  %v9287_v31 = vld [vmem:[#allocation46_spill] sm:$0xff]  ;;  %v9289_v57 = vld [vmem:[#allocation32_spill] sm:$0xff] }
 0x243   :  { %v3252_v43 = vmul.f32 %v7027_v44, %v9278_v27  ;;  %v3253_v36 = vmul.f32 %v7027_v44, %v9279_v19  ;;  %v3254_v7 = vmul.f32 %v7027_v44, %v9280_v2  ;;  %v3255_v15 = vmul.f32 %v7037_v29, %v9281_v59  ;;  %v9292_v35 = vld [vmem:[#allocation61_spill] sm:$0xff]  ;;  %v9294_v24 = vld [vmem:[#allocation35_spill] sm:$0xff]  ;;  %v9295_v56 = vld [vmem:[#allocation62_spill] sm:$0xff] }
 0x244   :  { %9274 = vst [vmem:[#allocation126_spill] sm:$0xff] %v7056_v5  ;;  %v3256_v6 = vmul.f32 %v7037_v29, %v9282_v48  ;;  %v3257_v37 = vmul.f32 %v7037_v29, %v9283_v46  ;;  %v3258_v8 = vmul.f32 %v7037_v29, %v9284_v33  ;;  %v3259_v27 = vmul.f32 %v7030_v55, %v9285_v53 }
 0x245   :  { %v3260_v19 = vmul.f32 %v7030_v55, %v9286_v42  ;;  %v3261_v2 = vmul.f32 %v7030_v55, %v9287_v31  ;;  %v3262_v59 = vmul.f32 %v7030_v55, %v9288_v14  ;;  %v3263_v48 = vmul.f32 %v7040_v20, %v9289_v57 }
 0x246   :  { %v3264_v46 = vmul.f32 %v7040_v20, %v9290_v62  ;;  %v3265_v33 = vmul.f32 %v7040_v20, %v9291_v26  ;;  %v3266_v53 = vmul.f32 %v7040_v20, %v9292_v35  ;;  %v3267_v42 = vmul.f32 %v7043_v49, %v9293_v34 }
 0x247   :  { %v3268_v31 = vmul.f32 %v7043_v49, %v9294_v24  ;;  %v3269_v14 = vmul.f32 %v7043_v49, %v9295_v56  ;;  %v3270_v57 = vmul.f32 %v7043_v49, %v9296_v28  ;;  %v3271_v62 = vmul.f32 %v7056_v5, %v9297_v18 }
 0x248   :  { %v3272_v26 = vmul.f32 %v7056_v5, %v9298_v22  ;;  %v3273_v35 = vmul.f32 %v7056_v5, %v9299_v30  ;;  %v3274_v34 = vmul.f32 %v7056_v5, %v9300_v10  ;;  %v3275_v24 = vsel %vm936_vm0, %v3243_v45, 0.0 }
 0x249   :  { %v3276_v23 = vsel %vm936_vm0, %v3247_v50, 0.0  ;;  %v3278_v56 = vsel %vm936_vm0, %v3251_v60, 0.0  ;;  %v3280_v28 = vsel %vm936_vm0, %v3255_v15, 0.0  ;;  %v3282_v61 = vsel %vm936_vm0, %v3259_v27, 0.0 }
 0x24a   :  { %v3277_v18 = vadd.f32 %v3276_v23, %v3275_v24  ;;  %v3284_v32 = vsel %vm936_vm0, %v3263_v48, 0.0  ;;  %v3286_v22 = vsel %vm936_vm0, %v3267_v42, 0.0  ;;  %v3288_v30 = vsel %vm936_vm0, %v3271_v62, 0.0 }
 0x24b   :  { %v3290_v21 = vsel %vm936_vm0, %v3244_v47, 0.0  ;;  %v3291_v10 = vsel %vm936_vm0, %v3248_v4, 0.0  ;;  %v3293_v45 = vsel %vm936_vm0, %v3252_v43, 0.0  ;;  %v3295_v50 = vsel %vm936_vm0, %v3256_v6, 0.0 }
 0x24c   :  { %v3279_v60 = vadd.f32 %v3278_v56, %v3277_v18  ;;  %v3292_v5 = vadd.f32 %v3291_v10, %v3290_v21  ;;  %v3297_v15 = vsel %vm936_vm0, %v3260_v19, 0.0  ;;  %v3299_v23 = vsel %vm936_vm0, %v3264_v46, 0.0 }
 0x24d   :  { %v3301_v24 = vsel %vm936_vm0, %v3268_v31, 0.0  ;;  %v3303_v42 = vsel %vm936_vm0, %v3272_v26, 0.0  ;;  %v3305_v62 = vsel %vm936_vm0, %v3245_v54, 0.0  ;;  %v3306_v47 = vsel %vm936_vm0, %v3249_v39, 0.0 }
 0x24e   :  { %v3281_v48 = vadd.f32 %v3280_v28, %v3279_v60  ;;  %v3294_v4 = vadd.f32 %v3293_v45, %v3292_v5  ;;  %v3307_v27 = vadd.f32 %v3306_v47, %v3305_v62  ;;  %v3308_v43 = vsel %vm936_vm0, %v3253_v36, 0.0 }
 0x24f   :  { %v3310_v18 = vsel %vm936_vm0, %v3257_v37, 0.0  ;;  %v3312_v21 = vsel %vm936_vm0, %v3261_v2, 0.0  ;;  %v3314_v10 = vsel %vm936_vm0, %v3265_v33, 0.0  ;;  %v3316_v56 = vsel %vm936_vm0, %v3269_v14, 0.0 }
 0x250   :  { %v3283_v31 = vadd.f32 %v3282_v61, %v3281_v48  ;;  %v3296_v46 = vadd.f32 %v3295_v50, %v3294_v4  ;;  %v3309_v26 = vadd.f32 %v3308_v43, %v3307_v27  ;;  %v3318_v54 = vsel %vm936_vm0, %v3273_v35, 0.0  ;;  %v9301_v27 = vld [vmem:[#allocation22_spill] sm:$0xff] }
 0x251   :  { %v3320_v28 = vsel %vm936_vm0, %v7049_v0, 0.0  ;;  %v3321_v5 = vsel %vm936_vm0, %v3250_v9, 0.0  ;;  %v3323_v6 = vsel %vm936_vm0, %v3254_v7, 0.0  ;;  %v3325_v39 = vsel %vm936_vm0, %v3258_v8, 0.0 }
 0x252   :  { %v3285_v37 = vadd.f32 %v3284_v32, %v3283_v31  ;;  %v3298_v19 = vadd.f32 %v3297_v15, %v3296_v46  ;;  %v3311_v36 = vadd.f32 %v3310_v18, %v3309_v26  ;;  %v3322_v33 = vadd.f32 %v3321_v5, %v3320_v28  ;;  %v9302_v46 = vld [vmem:[#allocation29_spill] sm:$0xff] }
 0x253   :  { %v3327_v14 = vsel %vm936_vm0, %v3262_v59, 0.0  ;;  %v3329_v61 = vsel %vm936_vm0, %v3266_v53, 0.0  ;;  %v3331_v2 = vsel %vm936_vm0, %v3270_v57, 0.0  ;;  %v3333_v35 = vsel %vm936_vm0, %v3274_v34, 0.0 }
 0x254   :  { %v3287_v45 = vadd.f32 %v3286_v22, %v3285_v37  ;;  %v3300_v0 = vadd.f32 %v3299_v23, %v3298_v19  ;;  %v3313_v50 = vadd.f32 %v3312_v21, %v3311_v36  ;;  %v3324_v9 = vadd.f32 %v3323_v6, %v3322_v33  ;;  %v9303_v37 = vld [vmem:[#allocation51_spill] sm:$0xff] }
 0x255   :  { %v2937_v7 = vmul.f32 %v7013_v63, %v5638_v1  ;;  %v2938_v32 = vmul.f32 %v7013_v63, %v5640_v11  ;;  %v2941_v8 = vmul.f32 %v7024_v38, %v5644_v13  ;;  %v2942_v53 = vmul.f32 %v7024_v38, %v5646_v58 }
 0x256   :  { %v3289_v59 = vadd.f32 %v3288_v30, %v3287_v45  ;;  %v3302_v57 = vadd.f32 %v3301_v24, %v3300_v0  ;;  %v3315_v60 = vadd.f32 %v3314_v10, %v3313_v50  ;;  %v3326_v34 = vadd.f32 %v3325_v39, %v3324_v9 }
 0x257   :  { %v2969_v22 = vsel %vm936_vm0, %v2937_v7, 0.0  ;;  %v2984_v15 = vsel %vm936_vm0, %v2938_v32, 0.0  ;;  %v2970_v23 = vsel %vm936_vm0, %v2941_v8, 0.0  ;;  %v2985_v62 = vsel %vm936_vm0, %v2942_v53, 0.0  ;;  %v9304_v8 = vld [vmem:[#allocation57_spill] sm:$0xff] }
 0x258   :  { %v3304_v47 = vadd.f32 %v3303_v42, %v3302_v57  ;;  %v3317_v48 = vadd.f32 %v3316_v56, %v3315_v60  ;;  %v3328_v4 = vadd.f32 %v3327_v14, %v3326_v34  ;;  %v3335_v43 = vadd.f32 %v3289_v59, %v9301_v27  ;;  %v9306_v27 = vld [vmem:[#allocation97_spill] sm:$0xff] }
 0x259   :  { %v2971_v18 = vadd.f32 %v2970_v23, %v2969_v22  ;;  %v2986_v21 = vadd.f32 %v2985_v62, %v2984_v15  ;;  %v2945_v30 = vmul.f32 %v7027_v44, %v5653_v41  ;;  %v2946_v24 = vmul.f32 %v7027_v44, %v5655_v17  ;;  %v9305_v62 = vld [vmem:[#allocation92_spill] sm:$0xff] }
 0x25a   :  { %v3319_v10 = vadd.f32 %v3318_v54, %v3317_v48  ;;  %v3330_v31 = vadd.f32 %v3329_v61, %v3328_v4  ;;  %v3336_v26 = vadd.f32 %v3304_v47, %v9302_v46  ;;  %v4784_v28 = vmul.f32 -1.442695, %v3335_v43  ;;  %v9307_v43 = vld [vmem:[#allocation126_spill] sm:$0xff] }
 0x25b   :  { %v2972_v5 = vsel %vm936_vm0, %v2945_v30, 0.0  ;;  %v2987_v42 = vsel %vm936_vm0, %v2946_v24, 0.0  ;;  %v2949_v56 = vmul.f32 %v7037_v29, %v5668_v25  ;;  %v2950_v6 = vmul.f32 %v7037_v29, %v5670_v12 }
 0x25c   :  { %v3332_v39 = vadd.f32 %v3331_v2, %v3330_v31  ;;  %v3337_v19 = vadd.f32 %v3319_v10, %v9303_v37  ;;  %4906 = vpow2.f32 %v4784_v28  ;;  %v4785_v36 = vmul.f32 -1.442695, %v3336_v26  ;;  %v9309_v31 = vld [vmem:[#allocation18_spill] sm:$0xff]  ;;  %v9310_v26 = vld [vmem:[#allocation101_spill] sm:$0xff] }
 0x25d   :  { %v2973_v54 = vadd.f32 %v2972_v5, %v2971_v18  ;;  %v2988_v33 = vadd.f32 %v2987_v42, %v2986_v21  ;;  %v2974_v14 = vsel %vm936_vm0, %v2949_v56, 0.0  ;;  %v2989_v61 = vsel %vm936_vm0, %v2950_v6, 0.0  ;;  %v9308_v21 = vld [vmem:[#allocation98_spill] sm:$0xff]  ;;  %v9311_v6 = vld [vmem:[#allocation25_spill] sm:$0xff] }
 0x25e   :  { %v3334_v45 = vadd.f32 %v3333_v35, %v3332_v39  ;;  %4908 = vpow2.f32 %v4785_v36  ;;  %v4786_v0 = vmul.f32 -1.442695, %v3337_v19  ;;  %v2953_v50 = vmul.f32 %v7030_v55, %v5676_v3 }
 0x25f   :  { %v2975_v9 = vadd.f32 %v2974_v14, %v2973_v54  ;;  %v2990_v7 = vadd.f32 %v2989_v61, %v2988_v33  ;;  %v2954_v2 = vmul.f32 %v7030_v55, %v5678_v51  ;;  %v2957_v32 = vmul.f32 %v7040_v20, %v5689_v16  ;;  %v9312_v33 = vld [vmem:[#allocation102_spill] sm:$0xff] }
 0x260   :  { %v3338_v53 = vadd.f32 %v3334_v45, %v9304_v8  ;;  %4910 = vpow2.f32 %v4786_v0  ;;  %v2976_v59 = vsel %vm936_vm0, %v2953_v50, 0.0  ;;  %v2958_v35 = vmul.f32 %v7040_v20, %v5691_v52  ;;  %v9314_v0 = vld [vmem:[#allocation105_spill] sm:$0xff]  ;;  %v9316_v8 = vld [vmem:[#allocation106_spill] sm:$0xff] }
 0x261   :  { %v2977_v57 = vadd.f32 %v2976_v59, %v2975_v9  ;;  %v2991_v60 = vsel %vm936_vm0, %v2954_v2, 0.0  ;;  %v2978_v34 = vsel %vm936_vm0, %v2957_v32, 0.0  ;;  %v2961_v22 = vmul.f32 %v7043_v49, %v9019_v40 }
 0x262   :  { %4912 = vtanh.f32 %v3338_v53  ;;  %v2992_v15 = vadd.f32 %v2991_v60, %v2990_v7  ;;  %v2993_v23 = vsel %vm936_vm0, %v2958_v35, 0.0  ;;  %v2962_v47 = vmul.f32 %v7043_v49, %v9305_v62  ;;  %v9317_v35 = vld [vmem:[#allocation140_spill] sm:$0xff] }
 0x263   :  { %v2979_v48 = vadd.f32 %v2978_v34, %v2977_v57  ;;  %v2980_v4 = vsel %vm936_vm0, %v2961_v22, 0.0  ;;  %v2965_v18 = vmul.f32 %v9307_v43, %v9306_v27  ;;  %v2966_v30 = vmul.f32 %v9307_v43, %v9308_v21  ;;  %v9318_v57 = vld [vmem:[#allocation139_spill] sm:$0xff] }
 0x264   :  { %v2994_v24 = vadd.f32 %v2993_v23, %v2992_v15  ;;  %v2995_v10 = vsel %vm936_vm0, %v2962_v47, 0.0  ;;  %v2939_v46 = vmul.f32 %v7013_v63, %v9309_v31  ;;  %v2940_v28 = vmul.f32 %v7013_v63, %v9310_v26  ;;  %v9319_v23 = vld [vmem:[#allocation111_spill] sm:$0xff]  ;;  %v9380_v26 = vld [vmem:[#allocation65_spill] sm:$0xff] }
 0x265   :  { %v2981_v5 = vadd.f32 %v2980_v4, %v2979_v48  ;;  %v2982_v42 = vsel %vm936_vm0, %v2965_v18, 0.0  ;;  %v2997_v56 = vsel %vm936_vm0, %v2966_v30, 0.0  ;;  %v2943_v39 = vmul.f32 %v7024_v38, %v9311_v6  ;;  %v9320_v48 = vld [vmem:[#allocation135_spill] sm:$0xff]  ;;  %v9321_v30 = vld [vmem:[#allocation137_spill] sm:$0xff]  ;;  %v9379_v6 = vld [vmem:[#allocation64_spill] sm:$0xff] }
 0x266   :  { %v4907_v37 = vpop.eup %4906  ;;  %v2996_v19 = vadd.f32 %v2995_v10, %v2994_v24  ;;  %v2999_v36 = vsel %vm936_vm0, %v2939_v46, 0.0  ;;  %v3014_v54 = vsel %vm936_vm0, %v2940_v28, 0.0  ;;  %v2944_v14 = vmul.f32 %v7024_v38, %v9312_v33  ;;  %v9322_v28 = vld [vmem:[#allocation112_spill] sm:$0xff]  ;;  %v9378_v33 = vld [vmem:[#allocation37_spill] sm:$0xff] }
 0x267   :  { %v3348_v61 = vadd.f32 1.0, %v4907_v37  ;;  %v7205_v45 = vadd.f32 %v2982_v42, %v2981_v5  ;;  %v3000_v63 = vsel %vm936_vm0, %v2943_v39, 0.0  ;;  %v2947_v50 = vmul.f32 %v7027_v44, %v9314_v0  ;;  %v9323_v42 = vld [vmem:[#allocation115_spill] sm:$0xff]  ;;  %v9324_v39 = vld [vmem:[#allocation116_spill] sm:$0xff] }
 0x268   :  { %v4909_v9 = vpop.eup %4908  ;;  %v7210_v7 = vadd.f32 %v2997_v56, %v2996_v19  ;;  %v3001_v2 = vadd.f32 %v3000_v63, %v2999_v36  ;;  %v3015_v32 = vsel %vm936_vm0, %v2944_v14, 0.0  ;;  %v2948_v53 = vmul.f32 %v7027_v44, %v9316_v8  ;;  %v9325_v36 = vld [vmem:[#allocation119_spill] sm:$0xff]  ;;  %v9326_v14 = vld [vmem:[#allocation121_spill] sm:$0xff]  ;;  %v9377_v0 = vld [vmem:[#allocation36_spill] sm:$0xff] }
 0x269   :  { %9313 = vst [vmem:[#allocation132_spill] sm:$0xff] %v7205_v45  ;;  %v3349_v59 = vadd.f32 1.0, %v4909_v9  ;;  %4914 = vrcp.f32 %v3348_v61  ;;  %v3016_v38 = vadd.f32 %v3015_v32, %v3014_v54  ;;  %v1570_v60 = vadd.f32 %v9318_v57, %v9317_v35  ;;  %v9328_v32 = vld [vmem:[#allocation26_spill] sm:$0xff]  ;;  %v9330_v57 = vld [vmem:[#allocation136_spill] sm:$0xff]  ;;  %v9356_v45 = vld [vmem:[#allocation13_spill] sm:$0xff] }
 0x26a   :  { %9315 = vst [vmem:[#allocation22_spill] sm:$0xff] %v7210_v7  ;;  %v4911_v34 = vpop.eup %4910  ;;  %v3002_v22 = vsel %vm936_vm0, %v2947_v50, 0.0  ;;  %v3017_v15 = vsel %vm936_vm0, %v2948_v53, 0.0  ;;  %v2951_v47 = vmul.f32 %v7037_v29, %v9319_v23  ;;  %v1560_v4 = vsel %vm936_vm0, %v9320_v48, 0.0  ;;  %v9375_v23 = vld [vmem:[#allocation62_spill] sm:$0xff]  ;;  %v9376_v8 = vld [vmem:[#allocation63_spill] sm:$0xff] }
 0x26b   :  { %4916 = vrcp.f32 %v3349_v59  ;;  %v3003_v18 = vadd.f32 %v3002_v22, %v3001_v2  ;;  %v3018_v44 = vadd.f32 %v3017_v15, %v3016_v38  ;;  %v1571_v24 = vsel %vm936_vm0, %v9321_v30, 0.0  ;;  %v9327_v2 = vld [vmem:[#allocation120_spill] sm:$0xff] }
 0x26c   :  { %v4913_v10 = vpop.eup %4912  ;;  %v3004_v46 = vsel %vm936_vm0, %v2951_v47, 0.0  ;;  %v2952_v5 = vmul.f32 %v7037_v29, %v9322_v28  ;;  %v2955_v56 = vmul.f32 %v7030_v55, %v9323_v42  ;;  %v2956_v37 = vmul.f32 %v7030_v55, %v9324_v39  ;;  %v9329_v55 = vld [vmem:[#allocation128_spill] sm:$0xff]  ;;  %v9331_v47 = vld [vmem:[#allocation19_spill] sm:$0xff]  ;;  %v9371_v39 = vld [vmem:[#allocation61_spill] sm:$0xff] }
 0x26d   :  { %v3005_v19 = vadd.f32 %v3004_v46, %v3003_v18  ;;  %v2959_v54 = vmul.f32 %v7040_v20, %v9325_v36  ;;  %v1561_v61 = vadd.f32 %v1560_v4, %v9326_v14  ;;  %v1572_v63 = vadd.f32 %v1571_v24, %v1570_v60  ;;  %v9332_v4 = vld [vmem:[#allocation123_spill] sm:$0xff]  ;;  %v9333_v24 = vld [vmem:[#allocation122_spill] sm:$0xff]  ;;  %v9370_v36 = vld [vmem:[#allocation60_spill] sm:$0xff] }
 0x26e   :  { %v3019_v50 = vsel %vm936_vm0, %v2952_v5, 0.0  ;;  %v3006_v9 = vsel %vm936_vm0, %v2955_v56, 0.0  ;;  %v2960_v29 = vmul.f32 %v7040_v20, %v9327_v2  ;;  %v2963_v53 = vmul.f32 %v7043_v49, %v9328_v32  ;;  %v9368_v32 = vld [vmem:[#allocation32_spill] sm:$0xff]  ;;  %v9369_v2 = vld [vmem:[#allocation33_spill] sm:$0xff]  ;;  %v9372_v42 = vld [vmem:[#allocation34_spill] sm:$0xff] }
 0x26f   :  { %v3020_v59 = vadd.f32 %v3019_v50, %v3018_v44  ;;  %v3007_v38 = vadd.f32 %v3006_v9, %v3005_v19  ;;  %v1573_v35 = vsel %vm936_vm0, %v9329_v55, 0.0  ;;  %v1575_v22 = vsel %vm936_vm0, %v9330_v57, 0.0  ;;  %v9335_v19 = vld [vmem:[#allocation124_spill] sm:$0xff]  ;;  %v9338_v57 = vld [vmem:[#allocation133_spill] sm:$0xff] }
 0x270   :  { %v3021_v60 = vsel %vm936_vm0, %v2956_v37, 0.0  ;;  %v3008_v15 = vsel %vm936_vm0, %v2959_v54, 0.0  ;;  %v2964_v48 = vmul.f32 %v7043_v49, %v9331_v47  ;;  %v2967_v20 = vmul.f32 %v9307_v43, %v9332_v4  ;;  %v9336_v54 = vld [vmem:[#allocation138_spill] sm:$0xff]  ;;  %v9337_v55 = vld [vmem:[#allocation48_spill] sm:$0xff]  ;;  %v9367_v47 = vld [vmem:[#allocation47_spill] sm:$0xff] }
 0x271   :  { %v3022_v18 = vadd.f32 %v3021_v60, %v3020_v59  ;;  %v3009_v30 = vadd.f32 %v3008_v15, %v3007_v38  ;;  %v1574_v44 = vadd.f32 %v1573_v35, %v1572_v63  ;;  %v7252_v46 = vadd.f32 %v1561_v61, %v9333_v24  ;;  %v9340_v24 = vld [vmem:[#allocation142_spill] sm:$0xff] }
 0x272   :  { %v3023_v5 = vsel %vm936_vm0, %v2960_v29, 0.0  ;;  %v3010_v56 = vsel %vm936_vm0, %v2963_v53, 0.0  ;;  %v2968_v37 = vmul.f32 %v9307_v43, %v9335_v19  ;;  %v4763_v14 = vmul.f32 -1.442695, %v9336_v54  ;;  %v9365_v19 = vld [vmem:[#allocation17_spill] sm:$0xff]  ;;  %v9366_v4 = vld [vmem:[#allocation46_spill] sm:$0xff] }
 0x273   :  { %9334 = vst [vmem:[#allocation29_spill] sm:$0xff] %v7252_v46  ;;  %v4915_v50 = vpop.eup %4914  ;;  %v3024_v49 = vadd.f32 %v3023_v5, %v3022_v18  ;;  %v3011_v9 = vadd.f32 %v3010_v56, %v3009_v30  ;;  %v1484_v59 = vadd.f32 %v9338_v57, %v9337_v55  ;;  %v1576_v38 = vadd.f32 %v1575_v22, %v1574_v44  ;;  %v9342_v5 = vld [vmem:[#allocation141_spill] sm:$0xff]  ;;  %v9362_v46 = vld [vmem:[#allocation44_spill] sm:$0xff] }
 0x274   :  { %v3359_v63 = vmul.f32 %v4915_v50, %v4913_v10  ;;  %v3025_v61 = vsel %vm936_vm0, %v2964_v48, 0.0  ;;  %v3012_v35 = vsel %vm936_vm0, %v2967_v20, 0.0  ;;  %4918 = vpow2.f32 %v4763_v14 }
 0x275   :  { %v4917_v29 = vpop.eup %4916  ;;  %v3350_v53 = vadd.f32 1.0, %v4911_v34  ;;  %v3026_v60 = vadd.f32 %v3025_v61, %v3024_v49  ;;  %v7263_v15 = vadd.f32 %v3012_v35, %v3011_v9  ;;  %v1580_v43 = vadd.f32 %v1576_v38, %v1484_v59 }
 0x276   :  { %v3358_v54 = vmul.f32 %v4917_v29, %v9340_v24  ;;  %v3027_v18 = vsel %vm936_vm0, %v2968_v37, 0.0  ;;  %v4764_v22 = vmul.f32 -1.442695, %v9342_v5  ;;  %v9344_v37 = vld [vmem:[#allocation9_spill] sm:$0xff] }
 0x277   :  { %9339 = vst [vmem:[#allocation51_spill] sm:$0xff] %v7263_v15  ;;  %v7267_v30 = vadd.f32 %v3027_v18, %v3026_v60  ;;  %4920 = vrcp.f32 %v3350_v53  ;;  %v9355_v15 = vld [vmem:[#allocation41_spill] sm:$0xff] }
 0x278   :  { %v7270_v10 = vadd.f32 %v3359_v63, %v3358_v54 }
 0x279   :  { %9341 = vst [vmem:[#allocation57_spill] sm:$0xff] %v7267_v30 }
 0x27a   :  { %9343 = vst [vmem:[#allocation126_spill] sm:$0xff] %v7270_v10  ;;  %4922 = vtanh.f32 %v7270_v10  ;;  %v9363_v10 = vld [vmem:[#allocation45_spill] sm:$0xff] }
 0x27b   :  { %4924 = vpow2.f32 %v4764_v22 }
 0x27c   :  { %4926 = vtanh.f32 %v1580_v43  ;;  %v9345_v43 = vld [vmem:[#allocation6_spill] sm:$0xff] }
 0x27e   :  { %v4919_v48 = vpop.eup %4918 }
 0x27f   :  { %v1590_v34 = vadd.f32 1.0, %v4919_v48 }
 0x281   :  { %4928 = vrcp.f32 %v1590_v34  ;;  %v4921_v20 = vpop.eup %4920 }
 0x284   :  { %v4923_v44 = vpop.eup %4922 }
 0x285   :  { %v4925_v56 = vpop.eup %4924  ;;  %v3362_v14 = vmul.f32 %v4923_v44, %v4921_v20  ;;  %v9347_v44 = vld [vmem:[#allocation8_spill] sm:$0xff] }
 0x286   :  { %v1591_v9 = vadd.f32 1.0, %v4925_v56  ;;  %v4927_v63 = vpop.eup %4926 }
 0x287   :  { %v3364_v50 = vcombine.high %v3362_v14, %v3362_v14  ;;  %v3371_v49 = vrot.slane %v3362_v14, %v9344_v37  ;;  %v9348_v14 = vld [vmem:[#allocation11_spill] sm:$0xff] }
 0x288   :  { %4930 = vrcp.f32 %v1591_v9 }
 0x289   :  { %v3378_v57 = vrot.slane %v3364_v50, %v9344_v37  ;;  %v3379_v59 = vcombine.high %v3371_v49, %v3371_v49  ;;  %v3387_v38 = vrot.slane %v3371_v49, %v9344_v37 }
 0x28b   :  { %v4929_v61 = vpop.eup %4928  ;;  %v3380_v35 = vcombine.high %v3378_v57, %v3378_v57  ;;  %v3394_v29 = vrot.slane %v3378_v57, %v9344_v37  ;;  %v3401_v53 = vrot.slane %v3379_v59, %v9344_v37  ;;  %v3409_v60 = vcombine.high %v3387_v38, %v3387_v38 }
 0x28c   :  { %v7279_v24 = vrot.slane %v3387_v38, %v9345_v43  ;;  %v7281_v54 = vmul.f32 %v4929_v61, %v4927_v63  ;;  %v9349_v38 = vld [vmem:[#allocation38_spill] sm:$0xff]  ;;  %v9350_v61 = vld [vmem:[#allocation39_spill] sm:$0xff] }
 0x28d   :  { %v3408_v18 = vrot.slane %v3380_v35, %v9344_v37  ;;  %v3410_v5 = vcombine.high %v3394_v29, %v3394_v29  ;;  %v3411_v22 = vcombine.high %v3401_v53, %v3401_v53  ;;  %v7285_v48 = vrot.slane %v3401_v53, %v9345_v43  ;;  %v9361_v37 = vld [vmem:[#allocation14_spill] sm:$0xff] }
 0x28e   :  { %9346 = vst [vmem:[#allocation140_spill] sm:$0xff] %v7281_v54  ;;  %v7288_v34 = vrot.slane %v3409_v60, %v9345_v43  ;;  %v7291_v20 = vrot.slane %v3394_v29, %v9345_v43  ;;  %v3759_v56 = vmul.f32 %v7279_v24, %v9347_v44  ;;  %v3760_v50 = vmul.f32 %v7279_v24, %v9348_v14  ;;  %v9351_v29 = vld [vmem:[#allocation7_spill] sm:$0xff]  ;;  %v9352_v60 = vld [vmem:[#allocation10_spill] sm:$0xff]  ;;  %v9364_v54 = vld [vmem:[#allocation16_spill] sm:$0xff] }
 0x28f   :  { %v3412_v49 = vcombine.high %v3408_v18, %v3408_v18  ;;  %v7298_v9 = vrot.slane %v3411_v22, %v9345_v43  ;;  %v7301_v57 = vrot.slane %v3408_v18, %v9345_v43  ;;  %v7304_v59 = vrot.slane %v3410_v5, %v9345_v43  ;;  %v9354_v18 = vld [vmem:[#allocation40_spill] sm:$0xff]  ;;  %v9358_v14 = vld [vmem:[#allocation42_spill] sm:$0xff]  ;;  %v9359_v44 = vld [vmem:[#allocation43_spill] sm:$0xff] }
 0x290   :  { %v3761_v63 = vmul.f32 %v7279_v24, %v9349_v38  ;;  %v7310_v35 = vmul.f32 %v7279_v24, %v9350_v61  ;;  %v3763_v53 = vmul.f32 %v7285_v48, %v9351_v29  ;;  %v3764_v22 = vmul.f32 %v7285_v48, %v9352_v60  ;;  %v9357_v38 = vld [vmem:[#allocation12_spill] sm:$0xff] }
 0x291   :  { %v7317_v30 = vrot.slane %v3412_v49, %v9345_v43  ;;  %v3765_v5 = vmul.f32 %v7285_v48, %v9354_v18  ;;  %v3766_v7 = vmul.f32 %v7285_v48, %v9355_v15  ;;  %v3767_v55 = vmul.f32 %v7288_v34, %v9356_v45  ;;  %v9360_v49 = vld [vmem:[#allocation15_spill] sm:$0xff] }
 0x292   :  { %v3768_v61 = vmul.f32 %v7288_v34, %v9357_v38  ;;  %v3769_v29 = vmul.f32 %v7288_v34, %v9358_v14  ;;  %v3770_v60 = vmul.f32 %v7288_v34, %v9359_v44  ;;  %v3771_v43 = vmul.f32 %v7298_v9, %v9360_v49  ;;  %v7357_v28 = vpop.eup %4930 }
 0x293   :  { %9353 = vst [vmem:[#allocation139_spill] sm:$0xff] %v7317_v30  ;;  %v3772_v18 = vmul.f32 %v7298_v9, %v9361_v37  ;;  %v3773_v15 = vmul.f32 %v7298_v9, %v9362_v46  ;;  %v3774_v45 = vmul.f32 %v7298_v9, %v9363_v10  ;;  %v3775_v38 = vmul.f32 %v7291_v20, %v9364_v54 }
 0x294   :  { %v3776_v14 = vmul.f32 %v7291_v20, %v9365_v19  ;;  %v3777_v44 = vmul.f32 %v7291_v20, %v9366_v4  ;;  %v3778_v49 = vmul.f32 %v7291_v20, %v9367_v47  ;;  %v3779_v37 = vmul.f32 %v7301_v57, %v9368_v32  ;;  %9373 = vst [vmem:[#allocation135_spill] sm:$0xff] %v7357_v28  ;;  %v9374_v4 = vld [vmem:[#allocation35_spill] sm:$0xff] }
 0x295   :  { %v3780_v46 = vmul.f32 %v7301_v57, %v9369_v2  ;;  %v3781_v10 = vmul.f32 %v7301_v57, %v9370_v36  ;;  %v3782_v54 = vmul.f32 %v7301_v57, %v9371_v39  ;;  %v3783_v19 = vmul.f32 %v7304_v59, %v9372_v42 }
 0x296   :  { %v3784_v47 = vmul.f32 %v7304_v59, %v9374_v4  ;;  %v3785_v32 = vmul.f32 %v7304_v59, %v9375_v23  ;;  %v3786_v2 = vmul.f32 %v7304_v59, %v9376_v8  ;;  %v3787_v36 = vmul.f32 %v7317_v30, %v9377_v0 }
 0x297   :  { %v3788_v39 = vmul.f32 %v7317_v30, %v9378_v33  ;;  %v3789_v42 = vmul.f32 %v7317_v30, %v9379_v6  ;;  %v3790_v28 = vmul.f32 %v7317_v30, %v9380_v26  ;;  %v3791_v4 = vsel %vm936_vm0, %v3759_v56, 0.0 }
 0x298   :  { %v3792_v31 = vsel %vm936_vm0, %v3763_v53, 0.0  ;;  %v3794_v23 = vsel %vm936_vm0, %v3767_v55, 0.0  ;;  %v3796_v8 = vsel %vm936_vm0, %v3771_v43, 0.0  ;;  %v3798_v21 = vsel %vm936_vm0, %v3775_v38, 0.0 }
 0x299   :  { %v3793_v0 = vadd.f32 %v3792_v31, %v3791_v4  ;;  %v3800_v27 = vsel %vm936_vm0, %v3779_v37, 0.0  ;;  %v3802_v33 = vsel %vm936_vm0, %v3783_v19, 0.0  ;;  %v3804_v6 = vsel %vm936_vm0, %v3787_v36, 0.0 }
 0x29a   :  { %v3806_v62 = vsel %vm936_vm0, %v3760_v50, 0.0  ;;  %v3807_v26 = vsel %vm936_vm0, %v3764_v22, 0.0  ;;  %v3809_v56 = vsel %vm936_vm0, %v3768_v61, 0.0  ;;  %v3811_v53 = vsel %vm936_vm0, %v3772_v18, 0.0 }
 0x29b   :  { %v3795_v55 = vadd.f32 %v3794_v23, %v3793_v0  ;;  %v3808_v30 = vadd.f32 %v3807_v26, %v3806_v62  ;;  %v3813_v43 = vsel %vm936_vm0, %v3776_v14, 0.0  ;;  %v3815_v31 = vsel %vm936_vm0, %v3780_v46, 0.0 }
 0x29c   :  { %v3817_v4 = vsel %vm936_vm0, %v3784_v47, 0.0  ;;  %v3819_v19 = vsel %vm936_vm0, %v3788_v39, 0.0  ;;  %v3821_v36 = vsel %vm936_vm0, %v3761_v63, 0.0  ;;  %v3822_v37 = vsel %vm936_vm0, %v3765_v5, 0.0 }
 0x29d   :  { %v3797_v50 = vadd.f32 %v3796_v8, %v3795_v55  ;;  %v3810_v38 = vadd.f32 %v3809_v56, %v3808_v30  ;;  %v3823_v22 = vadd.f32 %v3822_v37, %v3821_v36  ;;  %v3824_v61 = vsel %vm936_vm0, %v3769_v29, 0.0 }
 0x29e   :  { %v3826_v0 = vsel %vm936_vm0, %v3773_v15, 0.0  ;;  %v3828_v62 = vsel %vm936_vm0, %v3777_v44, 0.0  ;;  %v3830_v26 = vsel %vm936_vm0, %v3781_v10, 0.0  ;;  %v3832_v23 = vsel %vm936_vm0, %v3785_v32, 0.0 }
 0x29f   :  { %v3799_v47 = vadd.f32 %v3798_v21, %v3797_v50  ;;  %v3812_v46 = vadd.f32 %v3811_v53, %v3810_v38  ;;  %v3825_v39 = vadd.f32 %v3824_v61, %v3823_v22  ;;  %v3834_v14 = vsel %vm936_vm0, %v3789_v42, 0.0  ;;  %v9381_v22 = vld [vmem:[#allocation23_spill] sm:$0xff] }
 0x2a0   :  { %v3836_v8 = vsel %vm936_vm0, %v7310_v35, 0.0  ;;  %v3837_v30 = vsel %vm936_vm0, %v3766_v7, 0.0  ;;  %v3839_v63 = vsel %vm936_vm0, %v3770_v60, 0.0  ;;  %v3841_v15 = vsel %vm936_vm0, %v3774_v45, 0.0 }
 0x2a1   :  { %v3801_v29 = vadd.f32 %v3800_v27, %v3799_v47  ;;  %v3814_v44 = vadd.f32 %v3813_v43, %v3812_v46  ;;  %v3827_v18 = vadd.f32 %v3826_v0, %v3825_v39  ;;  %v3838_v10 = vadd.f32 %v3837_v30, %v3836_v8  ;;  %v9382_v46 = vld [vmem:[#allocation30_spill] sm:$0xff] }
 0x2a2   :  { %v3843_v32 = vsel %vm936_vm0, %v3778_v49, 0.0  ;;  %v3845_v21 = vsel %vm936_vm0, %v3782_v54, 0.0  ;;  %v3847_v5 = vsel %vm936_vm0, %v3786_v2, 0.0  ;;  %v3849_v42 = vsel %vm936_vm0, %v3790_v28, 0.0 }
 0x2a3   :  { %v3803_v56 = vadd.f32 %v3802_v33, %v3801_v29  ;;  %v3816_v35 = vadd.f32 %v3815_v31, %v3814_v44  ;;  %v3829_v53 = vadd.f32 %v3828_v62, %v3827_v18  ;;  %v3840_v7 = vadd.f32 %v3839_v63, %v3838_v10  ;;  %v9383_v29 = vld [vmem:[#allocation52_spill] sm:$0xff] }
 0x2a4   :  { %v3453_v60 = vmul.f32 %v7279_v24, %v5638_v1  ;;  %v3454_v27 = vmul.f32 %v7279_v24, %v5640_v11  ;;  %v3457_v45 = vmul.f32 %v7285_v48, %v5644_v13  ;;  %v3458_v54 = vmul.f32 %v7285_v48, %v5646_v58 }
 0x2a5   :  { %v3805_v49 = vadd.f32 %v3804_v6, %v3803_v56  ;;  %v3818_v2 = vadd.f32 %v3817_v4, %v3816_v35  ;;  %v3831_v55 = vadd.f32 %v3830_v26, %v3829_v53  ;;  %v3842_v28 = vadd.f32 %v3841_v15, %v3840_v7 }
 0x2a6   :  { %v3485_v33 = vsel %vm936_vm0, %v3453_v60, 0.0  ;;  %v3500_v43 = vsel %vm936_vm0, %v3454_v27, 0.0  ;;  %v3486_v31 = vsel %vm936_vm0, %v3457_v45, 0.0  ;;  %v3501_v36 = vsel %vm936_vm0, %v3458_v54, 0.0  ;;  %v9384_v45 = vld [vmem:[#allocation58_spill] sm:$0xff] }
 0x2a7   :  { %v3820_v37 = vadd.f32 %v3819_v19, %v3818_v2  ;;  %v3833_v50 = vadd.f32 %v3832_v23, %v3831_v55  ;;  %v3844_v38 = vadd.f32 %v3843_v32, %v3842_v28  ;;  %v3851_v61 = vadd.f32 %v3805_v49, %v9381_v22  ;;  %v9386_v22 = vld [vmem:[#allocation97_spill] sm:$0xff] }
 0x2a8   :  { %v3487_v0 = vadd.f32 %v3486_v31, %v3485_v33  ;;  %v3502_v62 = vadd.f32 %v3501_v36, %v3500_v43  ;;  %v3461_v6 = vmul.f32 %v7288_v34, %v5653_v41  ;;  %v3462_v4 = vmul.f32 %v7288_v34, %v5655_v17  ;;  %v9385_v36 = vld [vmem:[#allocation92_spill] sm:$0xff] }
 0x2a9   :  { %v3835_v26 = vadd.f32 %v3834_v14, %v3833_v50  ;;  %v3846_v47 = vadd.f32 %v3845_v21, %v3844_v38  ;;  %v3852_v39 = vadd.f32 %v3820_v37, %v9382_v46  ;;  %v4790_v8 = vmul.f32 -1.442695, %v3851_v61  ;;  %v9387_v61 = vld [vmem:[#allocation139_spill] sm:$0xff] }
 0x2aa   :  { %v3488_v30 = vsel %vm936_vm0, %v3461_v6, 0.0  ;;  %v3503_v19 = vsel %vm936_vm0, %v3462_v4, 0.0  ;;  %v3465_v23 = vmul.f32 %v7298_v9, %v5668_v25  ;;  %v3466_v63 = vmul.f32 %v7298_v9, %v5670_v12 }
 0x2ab   :  { %v3848_v15 = vadd.f32 %v3847_v5, %v3846_v47  ;;  %v3853_v44 = vadd.f32 %v3835_v26, %v9383_v29  ;;  %4932 = vpow2.f32 %v4790_v8  ;;  %v4791_v18 = vmul.f32 -1.442695, %v3852_v39  ;;  %v9389_v47 = vld [vmem:[#allocation18_spill] sm:$0xff]  ;;  %v9390_v39 = vld [vmem:[#allocation101_spill] sm:$0xff] }
 0x2ac   :  { %v3489_v14 = vadd.f32 %v3488_v30, %v3487_v0  ;;  %v3504_v10 = vadd.f32 %v3503_v19, %v3502_v62  ;;  %v3490_v32 = vsel %vm936_vm0, %v3465_v23, 0.0  ;;  %v3505_v21 = vsel %vm936_vm0, %v3466_v63, 0.0  ;;  %v9388_v62 = vld [vmem:[#allocation98_spill] sm:$0xff]  ;;  %v9391_v63 = vld [vmem:[#allocation25_spill] sm:$0xff] }
 0x2ad   :  { %v3850_v56 = vadd.f32 %v3849_v42, %v3848_v15  ;;  %4934 = vpow2.f32 %v4791_v18  ;;  %v4792_v35 = vmul.f32 -1.442695, %v3853_v44  ;;  %v3469_v53 = vmul.f32 %v7291_v20, %v5676_v3 }
 0x2ae   :  { %v3491_v7 = vadd.f32 %v3490_v32, %v3489_v14  ;;  %v3506_v60 = vadd.f32 %v3505_v21, %v3504_v10  ;;  %v3470_v5 = vmul.f32 %v7291_v20, %v5678_v51  ;;  %v3473_v27 = vmul.f32 %v7301_v57, %v5689_v16  ;;  %v9392_v10 = vld [vmem:[#allocation102_spill] sm:$0xff] }
 0x2af   :  { %v3854_v54 = vadd.f32 %v3850_v56, %v9384_v45  ;;  %4936 = vpow2.f32 %v4792_v35  ;;  %v3492_v49 = vsel %vm936_vm0, %v3469_v53, 0.0  ;;  %v3474_v42 = vmul.f32 %v7301_v57, %v5691_v52  ;;  %v9394_v35 = vld [vmem:[#allocation105_spill] sm:$0xff]  ;;  %v9396_v45 = vld [vmem:[#allocation106_spill] sm:$0xff] }
 0x2b0   :  { %v3493_v2 = vadd.f32 %v3492_v49, %v3491_v7  ;;  %v3507_v55 = vsel %vm936_vm0, %v3470_v5, 0.0  ;;  %v3494_v28 = vsel %vm936_vm0, %v3473_v27, 0.0  ;;  %v3477_v33 = vmul.f32 %v7304_v59, %v9019_v40 }
 0x2b1   :  { %4938 = vtanh.f32 %v3854_v54  ;;  %v3508_v43 = vadd.f32 %v3507_v55, %v3506_v60  ;;  %v3509_v31 = vsel %vm936_vm0, %v3474_v42, 0.0  ;;  %v3478_v37 = vmul.f32 %v7304_v59, %v9385_v36 }
 0x2b2   :  { %v3495_v50 = vadd.f32 %v3494_v28, %v3493_v2  ;;  %v3496_v38 = vsel %vm936_vm0, %v3477_v33, 0.0  ;;  %v3481_v0 = vmul.f32 %v9387_v61, %v9386_v22  ;;  %v3482_v6 = vmul.f32 %v9387_v61, %v9388_v62  ;;  %v9397_v28 = vld [vmem:[#allocation111_spill] sm:$0xff] }
 0x2b3   :  { %v3510_v4 = vadd.f32 %v3509_v31, %v3508_v43  ;;  %v3511_v26 = vsel %vm936_vm0, %v3478_v37, 0.0  ;;  %v3455_v46 = vmul.f32 %v7279_v24, %v9389_v47  ;;  %v3456_v8 = vmul.f32 %v7279_v24, %v9390_v39 }
 0x2b4   :  { %v3497_v30 = vadd.f32 %v3496_v38, %v3495_v50  ;;  %v3498_v19 = vsel %vm936_vm0, %v3481_v0, 0.0  ;;  %v3513_v23 = vsel %vm936_vm0, %v3482_v6, 0.0  ;;  %v3459_v15 = vmul.f32 %v7285_v48, %v9391_v63  ;;  %v9398_v38 = vld [vmem:[#allocation112_spill] sm:$0xff]  ;;  %v9399_v0 = vld [vmem:[#allocation115_spill] sm:$0xff] }
 0x2b5   :  { %v4933_v29 = vpop.eup %4932  ;;  %v3512_v44 = vadd.f32 %v3511_v26, %v3510_v4  ;;  %v3515_v18 = vsel %vm936_vm0, %v3455_v46, 0.0  ;;  %v3530_v14 = vsel %vm936_vm0, %v3456_v8, 0.0  ;;  %v3460_v32 = vmul.f32 %v7285_v48, %v9392_v10  ;;  %v9400_v4 = vld [vmem:[#allocation116_spill] sm:$0xff]  ;;  %v9401_v8 = vld [vmem:[#allocation119_spill] sm:$0xff] }
 0x2b6   :  { %v3864_v21 = vadd.f32 1.0, %v4933_v29  ;;  %v7468_v56 = vadd.f32 %v3498_v19, %v3497_v30  ;;  %v3516_v24 = vsel %vm936_vm0, %v3459_v15, 0.0  ;;  %v3463_v53 = vmul.f32 %v7288_v34, %v9394_v35  ;;  %v9402_v15 = vld [vmem:[#allocation120_spill] sm:$0xff] }
 0x2b7   :  { %v4935_v7 = vpop.eup %4934  ;;  %v7473_v60 = vadd.f32 %v3513_v23, %v3512_v44  ;;  %v3517_v5 = vadd.f32 %v3516_v24, %v3515_v18  ;;  %v3531_v27 = vsel %vm936_vm0, %v3460_v32, 0.0  ;;  %v3464_v54 = vmul.f32 %v7288_v34, %v9396_v45  ;;  %v9403_v44 = vld [vmem:[#allocation26_spill] sm:$0xff] }
 0x2b8   :  { %9393 = vst [vmem:[#allocation137_spill] sm:$0xff] %v7468_v56  ;;  %v3865_v49 = vadd.f32 1.0, %v4935_v7  ;;  %4940 = vrcp.f32 %v3864_v21  ;;  %v3532_v48 = vadd.f32 %v3531_v27, %v3530_v14  ;;  %v3518_v2 = vsel %vm936_vm0, %v3463_v53, 0.0  ;;  %v9404_v21 = vld [vmem:[#allocation19_spill] sm:$0xff]  ;;  %v9430_v56 = vld [vmem:[#allocation16_spill] sm:$0xff] }
 0x2b9   :  { %9395 = vst [vmem:[#allocation121_spill] sm:$0xff] %v7473_v60  ;;  %v4937_v42 = vpop.eup %4936  ;;  %v3533_v55 = vsel %vm936_vm0, %v3464_v54, 0.0  ;;  %v3467_v33 = vmul.f32 %v7298_v9, %v9397_v28  ;;  %v3519_v43 = vadd.f32 %v3518_v2, %v3517_v5  ;;  %v3468_v34 = vmul.f32 %v7298_v9, %v9398_v38  ;;  %v9405_v53 = vld [vmem:[#allocation123_spill] sm:$0xff] }
 0x2ba   :  { %4942 = vrcp.f32 %v3865_v49  ;;  %v3534_v31 = vadd.f32 %v3533_v55, %v3532_v48  ;;  %v3471_v6 = vmul.f32 %v7291_v20, %v9399_v0  ;;  %v3472_v26 = vmul.f32 %v7291_v20, %v9400_v4  ;;  %v9406_v54 = vld [vmem:[#allocation127_spill] sm:$0xff]  ;;  %v9408_v55 = vld [vmem:[#allocation124_spill] sm:$0xff]  ;;  %v9441_v4 = vld [vmem:[#allocation65_spill] sm:$0xff] }
 0x2bb   :  { %v4939_v37 = vpop.eup %4938  ;;  %v3520_v50 = vsel %vm936_vm0, %v3467_v33, 0.0  ;;  %v3475_v30 = vmul.f32 %v7301_v57, %v9401_v8  ;;  %v3535_v19 = vsel %vm936_vm0, %v3468_v34, 0.0  ;;  %v3476_v29 = vmul.f32 %v7301_v57, %v9402_v15  ;;  %v9407_v49 = vld [vmem:[#allocation135_spill] sm:$0xff]  ;;  %v9409_v34 = vld [vmem:[#allocation140_spill] sm:$0xff]  ;;  %v9440_v8 = vld [vmem:[#allocation37_spill] sm:$0xff] }
 0x2bc   :  { %v3521_v46 = vadd.f32 %v3520_v50, %v3519_v43  ;;  %v3522_v23 = vsel %vm936_vm0, %v3471_v6, 0.0  ;;  %v3479_v9 = vmul.f32 %v7304_v59, %v9403_v44  ;;  %v3536_v18 = vadd.f32 %v3535_v19, %v3534_v31  ;;  %v9438_v44 = vld [vmem:[#allocation63_spill] sm:$0xff]  ;;  %v9439_v15 = vld [vmem:[#allocation36_spill] sm:$0xff] }
 0x2bd   :  { %v3537_v32 = vsel %vm936_vm0, %v3472_v26, 0.0  ;;  %v3524_v20 = vsel %vm936_vm0, %v3475_v30, 0.0  ;;  %v3480_v24 = vmul.f32 %v7304_v59, %v9404_v21  ;;  %v3483_v7 = vmul.f32 %v9387_v61, %v9405_v53  ;;  %v9436_v53 = vld [vmem:[#allocation34_spill] sm:$0xff]  ;;  %v9437_v21 = vld [vmem:[#allocation35_spill] sm:$0xff] }
 0x2be   :  { %v3523_v14 = vadd.f32 %v3522_v23, %v3521_v46  ;;  %v3538_v5 = vadd.f32 %v3537_v32, %v3536_v18  ;;  %v1600_v57 = vmul.f32 %v9407_v49, %v9406_v54  ;;  %v3539_v48 = vsel %vm936_vm0, %v3476_v29, 0.0  ;;  %v9414_v32 = vld [vmem:[#allocation29_spill] sm:$0xff] }
 0x2bf   :  { %v3526_v2 = vsel %vm936_vm0, %v3479_v9, 0.0  ;;  %v3484_v33 = vmul.f32 %v9387_v61, %v9408_v55  ;;  %v3541_v26 = vsel %vm936_vm0, %v3480_v24, 0.0  ;;  %v3528_v46 = vsel %vm936_vm0, %v3483_v7, 0.0  ;;  %v9412_v9 = vld [vmem:[#allocation126_spill] sm:$0xff]  ;;  %v9416_v54 = vld [vmem:[#allocation9_spill] sm:$0xff] }
 0x2c0   :  { %v3525_v27 = vadd.f32 %v3524_v20, %v3523_v14  ;;  %v3540_v31 = vadd.f32 %v3539_v48, %v3538_v5  ;;  %v7510_v59 = vadd.f32 %v9409_v34, %v1600_v57  ;;  %v3866_v19 = vadd.f32 1.0, %v4937_v42  ;;  %v9435_v55 = vld [vmem:[#allocation61_spill] sm:$0xff] }
 0x2c1   :  { %v3543_v61 = vsel %vm936_vm0, %v3484_v33, 0.0  ;;  %v4765_v20 = vmul.f32 -1.442695, %v9414_v32 }
 0x2c2   :  { %v4941_v43 = vpop.eup %4940  ;;  %v3527_v50 = vadd.f32 %v3526_v2, %v3525_v27  ;;  %9410 = vst [vmem:[#allocation128_spill] sm:$0xff] %v7510_v59  ;;  %v3542_v23 = vadd.f32 %v3541_v26, %v3540_v31  ;;  %4944 = vrcp.f32 %v3866_v19 }
 0x2c3   :  { %v3875_v6 = vmul.f32 %v4941_v43, %v4939_v37 }
 0x2c4   :  { %v4943_v30 = vpop.eup %4942  ;;  %v7514_v29 = vadd.f32 %v3528_v46, %v3527_v50  ;;  %v7518_v14 = vadd.f32 %v3543_v61, %v3542_v23  ;;  %v9418_v61 = vld [vmem:[#allocation8_spill] sm:$0xff] }
 0x2c5   :  { %v3874_v18 = vmul.f32 %v4943_v30, %v9412_v9 }
 0x2c6   :  { %9411 = vst [vmem:[#allocation136_spill] sm:$0xff] %v7514_v29  ;;  %9413 = vst [vmem:[#allocation122_spill] sm:$0xff] %v7518_v14  ;;  %v9427_v14 = vld [vmem:[#allocation15_spill] sm:$0xff]  ;;  %v9428_v29 = vld [vmem:[#allocation14_spill] sm:$0xff] }
 0x2c7   :  { %v7521_v5 = vadd.f32 %v3875_v6, %v3874_v18  ;;  %v9417_v6 = vld [vmem:[#allocation6_spill] sm:$0xff] }
 0x2c9   :  { %9415 = vst [vmem:[#allocation138_spill] sm:$0xff] %v7521_v5  ;;  %4946 = vtanh.f32 %v7521_v5  ;;  %v9434_v5 = vld [vmem:[#allocation33_spill] sm:$0xff] }
 0x2ca   :  { %4948 = vpow2.f32 %v4765_v20 }
 0x2cc   :  { %v4945_v37 = vpop.eup %4944 }
 0x2d3   :  { %v4947_v24 = vpop.eup %4946 }
 0x2d4   :  { %v4949_v42 = vpop.eup %4948  ;;  %v3878_v7 = vmul.f32 %v4947_v24, %v4945_v37 }
 0x2d5   :  { %v1592_v57 = vadd.f32 1.0, %v4949_v42  ;;  %v9419_v42 = vld [vmem:[#allocation11_spill] sm:$0xff] }
 0x2d6   :  { %v3880_v27 = vcombine.high %v3878_v7, %v3878_v7  ;;  %v3887_v49 = vrot.slane %v3878_v7, %v9416_v54 }
 0x2d7   :  { %4950 = vrcp.f32 %v1592_v57 }
 0x2d8   :  { %v3894_v48 = vrot.slane %v3880_v27, %v9416_v54  ;;  %v3895_v2 = vcombine.high %v3887_v49, %v3887_v49  ;;  %v3903_v33 = vrot.slane %v3887_v49, %v9416_v54  ;;  %4952 = vtanh.f32 %v7510_v59  ;;  %v9420_v49 = vld [vmem:[#allocation39_spill] sm:$0xff]  ;;  %v9431_v59 = vld [vmem:[#allocation17_spill] sm:$0xff] }
 0x2da   :  { %v3896_v43 = vcombine.high %v3894_v48, %v3894_v48  ;;  %v3910_v31 = vrot.slane %v3894_v48, %v9416_v54  ;;  %v3917_v50 = vrot.slane %v3895_v2, %v9416_v54  ;;  %v3925_v34 = vcombine.high %v3903_v33, %v3903_v33  ;;  %v9421_v48 = vld [vmem:[#allocation7_spill] sm:$0xff] }
 0x2db   :  { %v7530_v26 = vrot.slane %v3903_v33, %v9417_v6  ;;  %v9422_v33 = vld [vmem:[#allocation10_spill] sm:$0xff] }
 0x2dc   :  { %v3924_v46 = vrot.slane %v3896_v43, %v9416_v54  ;;  %v3926_v30 = vcombine.high %v3910_v31, %v3910_v31  ;;  %v3927_v19 = vcombine.high %v3917_v50, %v3917_v50  ;;  %v7534_v23 = vrot.slane %v3917_v50, %v9417_v6  ;;  %v9423_v50 = vld [vmem:[#allocation41_spill] sm:$0xff]  ;;  %v9433_v54 = vld [vmem:[#allocation32_spill] sm:$0xff] }
 0x2dd   :  { %v7537_v9 = vrot.slane %v3925_v34, %v9417_v6  ;;  %v7540_v18 = vrot.slane %v3910_v31, %v9417_v6  ;;  %v4275_v32 = vmul.f32 %v7530_v26, %v9418_v61  ;;  %v4276_v7 = vmul.f32 %v7530_v26, %v9419_v42  ;;  %v9426_v42 = vld [vmem:[#allocation43_spill] sm:$0xff] }
 0x2de   :  { %v3928_v20 = vcombine.high %v3924_v46, %v3924_v46  ;;  %v7546_v37 = vrot.slane %v3927_v19, %v9417_v6  ;;  %v7549_v24 = vrot.slane %v3924_v46, %v9417_v6  ;;  %v7554_v27 = vrot.slane %v3926_v30, %v9417_v6  ;;  %v9424_v46 = vld [vmem:[#allocation13_spill] sm:$0xff]  ;;  %v9425_v30 = vld [vmem:[#allocation12_spill] sm:$0xff] }
 0x2df   :  { %v4278_v57 = vmul.f32 %v7530_v26, %v9420_v49  ;;  %v4279_v2 = vmul.f32 %v7534_v23, %v9421_v48  ;;  %v4280_v43 = vmul.f32 %v7534_v23, %v9422_v33  ;;  %v4282_v34 = vmul.f32 %v7534_v23, %v9423_v50 }
 0x2e0   :  { %v7563_v31 = vrot.slane %v3928_v20, %v9417_v6  ;;  %v4283_v19 = vmul.f32 %v7537_v9, %v9424_v46  ;;  %v4284_v61 = vmul.f32 %v7537_v9, %v9425_v30  ;;  %v4286_v49 = vmul.f32 %v7537_v9, %v9426_v42  ;;  %v9429_v20 = vld [vmem:[#allocation45_spill] sm:$0xff]  ;;  %v9432_v6 = vld [vmem:[#allocation47_spill] sm:$0xff] }
 0x2e1   :  { %v4287_v48 = vmul.f32 %v7546_v37, %v9427_v14  ;;  %v4288_v33 = vmul.f32 %v7546_v37, %v9428_v29  ;;  %v4290_v60 = vmul.f32 %v7546_v37, %v9429_v20  ;;  %v4291_v50 = vmul.f32 %v7540_v18, %v9430_v56  ;;  %v7603_v0 = vpop.eup %4950 }
 0x2e2   :  { %v4292_v46 = vmul.f32 %v7540_v18, %v9431_v59  ;;  %v4294_v30 = vmul.f32 %v7540_v18, %v9432_v6  ;;  %v4295_v42 = vmul.f32 %v7549_v24, %v9433_v54  ;;  %v4296_v14 = vmul.f32 %v7549_v24, %v9434_v5  ;;  %9442 = vst [vmem:[#allocation133_spill] sm:$0xff] %v7603_v0  ;;  %v7612_v45 = vpop.eup %4952 }
 0x2e3   :  { %v4298_v29 = vmul.f32 %v7549_v24, %v9435_v55  ;;  %v4299_v20 = vmul.f32 %v7554_v27, %v9436_v53  ;;  %v4300_v56 = vmul.f32 %v7554_v27, %v9437_v21  ;;  %v4302_v59 = vmul.f32 %v7554_v27, %v9438_v44  ;;  %9443 = vst [vmem:[#allocation142_spill] sm:$0xff] %v7612_v45 }
 0x2e4   :  { %v4303_v6 = vmul.f32 %v7563_v31, %v9439_v15  ;;  %v4304_v54 = vmul.f32 %v7563_v31, %v9440_v8  ;;  %v4306_v5 = vmul.f32 %v7563_v31, %v9441_v4  ;;  %v4307_v55 = vsel %vm936_vm0, %v4275_v32, 0.0 }
 0x2e5   :  { %v4308_v53 = vsel %vm936_vm0, %v4279_v2, 0.0  ;;  %v4310_v21 = vsel %vm936_vm0, %v4283_v19, 0.0  ;;  %v4312_v38 = vsel %vm936_vm0, %v4287_v48, 0.0  ;;  %v4314_v28 = vsel %vm936_vm0, %v4291_v50, 0.0 }
 0x2e6   :  { %v4309_v44 = vadd.f32 %v4308_v53, %v4307_v55  ;;  %v4316_v15 = vsel %vm936_vm0, %v4295_v42, 0.0  ;;  %v4318_v8 = vsel %vm936_vm0, %v4299_v20, 0.0  ;;  %v4320_v4 = vsel %vm936_vm0, %v4303_v6, 0.0 }
 0x2e7   :  { %v4322_v0 = vsel %vm936_vm0, %v4276_v7, 0.0  ;;  %v4323_v32 = vsel %vm936_vm0, %v4280_v43, 0.0  ;;  %v4325_v2 = vsel %vm936_vm0, %v4284_v61, 0.0  ;;  %v4327_v48 = vsel %vm936_vm0, %v4288_v33, 0.0 }
 0x2e8   :  { %v4311_v19 = vadd.f32 %v4310_v21, %v4309_v44  ;;  %v4324_v35 = vadd.f32 %v4323_v32, %v4322_v0  ;;  %v4329_v50 = vsel %vm936_vm0, %v4292_v46, 0.0  ;;  %v4331_v42 = vsel %vm936_vm0, %v4296_v14, 0.0  ;;  %v9446_v44 = vld [vmem:[#allocation42_spill] sm:$0xff] }
 0x2e9   :  { %v4333_v20 = vsel %vm936_vm0, %v4300_v56, 0.0  ;;  %v4352_v55 = vsel %vm936_vm0, %v4278_v57, 0.0  ;;  %v4353_v6 = vsel %vm936_vm0, %v4282_v34, 0.0  ;;  %v4335_v43 = vsel %vm936_vm0, %v4304_v54, 0.0  ;;  %v9445_v54 = vld [vmem:[#allocation40_spill] sm:$0xff] }
 0x2ea   :  { %v4313_v53 = vadd.f32 %v4312_v38, %v4311_v19  ;;  %v4326_v7 = vadd.f32 %v4325_v2, %v4324_v35  ;;  %v4354_v45 = vadd.f32 %v4353_v6, %v4352_v55  ;;  %v4355_v61 = vsel %vm936_vm0, %v4286_v49, 0.0  ;;  %v9444_v35 = vld [vmem:[#allocation38_spill] sm:$0xff] }
 0x2eb   :  { %v4357_v0 = vsel %vm936_vm0, %v4290_v60, 0.0  ;;  %v4359_v33 = vsel %vm936_vm0, %v4294_v30, 0.0  ;;  %v4361_v46 = vsel %vm936_vm0, %v4298_v29, 0.0  ;;  %v4363_v57 = vsel %vm936_vm0, %v4302_v59, 0.0  ;;  %v9448_v2 = vld [vmem:[#allocation46_spill] sm:$0xff] }
 0x2ec   :  { %v4315_v14 = vadd.f32 %v4314_v28, %v4313_v53  ;;  %v4328_v21 = vadd.f32 %v4327_v48, %v4326_v7  ;;  %v4356_v56 = vadd.f32 %v4355_v61, %v4354_v45  ;;  %v3969_v38 = vmul.f32 %v7530_v26, %v5638_v1  ;;  %v9447_v45 = vld [vmem:[#allocation44_spill] sm:$0xff]  ;;  %v9450_v6 = vld [vmem:[#allocation62_spill] sm:$0xff] }
 0x2ed   :  { %v4277_v34 = vmul.f32 %v7530_v26, %v9444_v35  ;;  %v4281_v49 = vmul.f32 %v7534_v23, %v9445_v54  ;;  %v4285_v60 = vmul.f32 %v7537_v9, %v9446_v44  ;;  %v4365_v28 = vsel %vm936_vm0, %v4306_v5, 0.0  ;;  %v9449_v48 = vld [vmem:[#allocation60_spill] sm:$0xff] }
 0x2ee   :  { %v4317_v30 = vadd.f32 %v4316_v15, %v4315_v14  ;;  %v4330_v32 = vadd.f32 %v4329_v50, %v4328_v21  ;;  %v4358_v29 = vadd.f32 %v4357_v0, %v4356_v56  ;;  %v4289_v59 = vmul.f32 %v7546_v37, %v9447_v45  ;;  %v9451_v50 = vld [vmem:[#allocation64_spill] sm:$0xff] }
 0x2ef   :  { %v4293_v19 = vmul.f32 %v7540_v18, %v9448_v2  ;;  %v4297_v55 = vmul.f32 %v7549_v24, %v9449_v48  ;;  %v4301_v53 = vmul.f32 %v7554_v27, %v9450_v6  ;;  %v4001_v15 = vsel %vm936_vm0, %v3969_v38, 0.0 }
 0x2f0   :  { %v4319_v7 = vadd.f32 %v4318_v8, %v4317_v30  ;;  %v4332_v61 = vadd.f32 %v4331_v42, %v4330_v32  ;;  %v4360_v35 = vadd.f32 %v4359_v33, %v4358_v29  ;;  %v4305_v5 = vmul.f32 %v7563_v31, %v9451_v50  ;;  %v9452_v32 = vld [vmem:[#allocation24_spill] sm:$0xff] }
 0x2f1   :  { %v4337_v0 = vsel %vm936_vm0, %v4277_v34, 0.0  ;;  %v4338_v14 = vsel %vm936_vm0, %v4281_v49, 0.0  ;;  %v4340_v21 = vsel %vm936_vm0, %v4285_v60, 0.0  ;;  %v4342_v2 = vsel %vm936_vm0, %v4289_v59, 0.0  ;;  %v9453_v59 = vld [vmem:[#allocation31_spill] sm:$0xff] }
 0x2f2   :  { %v4321_v56 = vadd.f32 %v4320_v4, %v4319_v7  ;;  %v4334_v54 = vadd.f32 %v4333_v20, %v4332_v61  ;;  %v4362_v44 = vadd.f32 %v4361_v46, %v4360_v35  ;;  %v4339_v45 = vadd.f32 %v4338_v14, %v4337_v0  ;;  %v9454_v7 = vld [vmem:[#allocation59_spill] sm:$0xff] }
 0x2f3   :  { %v4344_v8 = vsel %vm936_vm0, %v4293_v19, 0.0  ;;  %v4346_v42 = vsel %vm936_vm0, %v4297_v55, 0.0  ;;  %v4348_v33 = vsel %vm936_vm0, %v4301_v53, 0.0  ;;  %v3970_v49 = vmul.f32 %v7530_v26, %v5640_v11  ;;  %v9503_v11 = vld [vmem:[#allocation104_spill] sm:$0xff] }
 0x2f4   :  { %v4336_v38 = vadd.f32 %v4335_v43, %v4334_v54  ;;  %v4364_v30 = vadd.f32 %v4363_v57, %v4362_v44  ;;  %v4367_v34 = vadd.f32 %v4321_v56, %v9452_v32  ;;  %v4341_v29 = vadd.f32 %v4340_v21, %v4339_v45 }
 0x2f5   :  { %v3973_v4 = vmul.f32 %v7534_v23, %v5644_v13  ;;  %v3974_v20 = vmul.f32 %v7534_v23, %v5646_v58  ;;  %v3977_v46 = vmul.f32 %v7537_v9, %v5653_v41  ;;  %v4016_v48 = vsel %vm936_vm0, %v3970_v49, 0.0 }
 0x2f6   :  { %v4366_v60 = vadd.f32 %v4365_v28, %v4364_v30  ;;  %v4368_v19 = vadd.f32 %v4336_v38, %v9453_v59  ;;  %v4796_v43 = vmul.f32 -1.442695, %v4367_v34  ;;  %v4343_v57 = vadd.f32 %v4342_v2, %v4341_v29 }
 0x2f7   :  { %v4002_v55 = vsel %vm936_vm0, %v3973_v4, 0.0  ;;  %v4017_v6 = vsel %vm936_vm0, %v3974_v20, 0.0  ;;  %v4004_v53 = vsel %vm936_vm0, %v3977_v46, 0.0  ;;  %v3978_v28 = vmul.f32 %v7537_v9, %v5655_v17 }
 0x2f8   :  { %v4370_v61 = vadd.f32 %v4366_v60, %v9454_v7  ;;  %4954 = vpow2.f32 %v4796_v43  ;;  %v4797_v35 = vmul.f32 -1.442695, %v4368_v19  ;;  %v4345_v50 = vadd.f32 %v4344_v8, %v4343_v57  ;;  %v9455_v43 = vld [vmem:[#allocation53_spill] sm:$0xff] }
 0x2f9   :  { %v4003_v0 = vadd.f32 %v4002_v55, %v4001_v15  ;;  %v4018_v14 = vadd.f32 %v4017_v6, %v4016_v48  ;;  %v3981_v21 = vmul.f32 %v7546_v37, %v5668_v25  ;;  %v3982_v54 = vmul.f32 %v7546_v37, %v5670_v12 }
 0x2fa   :  { %4956 = vpow2.f32 %v4797_v35  ;;  %v4347_v56 = vadd.f32 %v4346_v42, %v4345_v50  ;;  %v3985_v44 = vmul.f32 %v7540_v18, %v5676_v3  ;;  %v4350_v45 = vsel %vm936_vm0, %v4305_v5, 0.0  ;;  %v9498_v3 = vld [vmem:[#allocation100_spill] sm:$0xff] }
 0x2fb   :  { %v4005_v2 = vadd.f32 %v4004_v53, %v4003_v0  ;;  %v4019_v15 = vsel %vm936_vm0, %v3978_v28, 0.0  ;;  %v4006_v8 = vsel %vm936_vm0, %v3981_v21, 0.0  ;;  %v4021_v32 = vsel %vm936_vm0, %v3982_v54, 0.0 }
 0x2fc   :  { %v4349_v38 = vadd.f32 %v4348_v33, %v4347_v56  ;;  %v4020_v30 = vadd.f32 %v4019_v15, %v4018_v14  ;;  %v4008_v34 = vsel %vm936_vm0, %v3985_v44, 0.0  ;;  %v3986_v29 = vmul.f32 %v7540_v18, %v5678_v51  ;;  %v9494_v51 = vld [vmem:[#allocation96_spill] sm:$0xff] }
 0x2fd   :  { %v4007_v42 = vadd.f32 %v4006_v8, %v4005_v2  ;;  %v3989_v49 = vmul.f32 %v7549_v24, %v5689_v16  ;;  %v3990_v5 = vmul.f32 %v7549_v24, %v5691_v52  ;;  %v3993_v33 = vmul.f32 %v7554_v27, %v9019_v40  ;;  %v9490_v52 = vld [vmem:[#allocation87_spill] sm:$0xff] }
 0x2fe   :  { %v4351_v4 = vadd.f32 %v4350_v45, %v4349_v38  ;;  %v4022_v20 = vadd.f32 %v4021_v32, %v4020_v30  ;;  %v3994_v46 = vmul.f32 %v7554_v27, %v9385_v36  ;;  %4958 = vtanh.f32 %v4370_v61  ;;  %v9488_v36 = vld [vmem:[#allocation84_spill] sm:$0xff] }
 0x2ff   :  { %v4009_v60 = vadd.f32 %v4008_v34, %v4007_v42  ;;  %v4023_v59 = vsel %vm936_vm0, %v3986_v29, 0.0  ;;  %v4010_v19 = vsel %vm936_vm0, %v3989_v49, 0.0  ;;  %v4025_v55 = vsel %vm936_vm0, %v3990_v5, 0.0 }
 0x300   :  { %v4369_v57 = vadd.f32 %v4351_v4, %v9455_v43  ;;  %v4024_v48 = vadd.f32 %v4023_v59, %v4022_v20  ;;  %v4012_v6 = vsel %vm936_vm0, %v3993_v33, 0.0  ;;  %v3997_v7 = vmul.f32 %v7563_v31, %v9386_v22  ;;  %v9459_v4 = vld [vmem:[#allocation106_spill] sm:$0xff]  ;;  %v9460_v33 = vld [vmem:[#allocation111_spill] sm:$0xff]  ;;  %v9461_v43 = vld [vmem:[#allocation112_spill] sm:$0xff] }
 0x301   :  { %v4011_v53 = vadd.f32 %v4010_v19, %v4009_v60  ;;  %v3998_v35 = vmul.f32 %v7563_v31, %v9388_v62  ;;  %v3971_v61 = vmul.f32 %v7530_v26, %v9389_v47  ;;  %v4027_v28 = vsel %vm936_vm0, %v3994_v46, 0.0  ;;  %v9486_v62 = vld [vmem:[#allocation113_spill] sm:$0xff] }
 0x302   :  { %v4955_v50 = vpop.eup %4954  ;;  %v4798_v0 = vmul.f32 -1.442695, %v4369_v57  ;;  %v4026_v14 = vadd.f32 %v4025_v55, %v4024_v48  ;;  %v3975_v21 = vmul.f32 %v7534_v23, %v9391_v63  ;;  %v4014_v44 = vsel %vm936_vm0, %v3997_v7, 0.0  ;;  %v9502_v63 = vld [vmem:[#allocation103_spill] sm:$0xff] }
 0x303   :  { %v4380_v56 = vadd.f32 1.0, %v4955_v50  ;;  %v4013_v54 = vadd.f32 %v4012_v6, %v4011_v53  ;;  %v3972_v45 = vmul.f32 %v7530_v26, %v9390_v39  ;;  %v4029_v8 = vsel %vm936_vm0, %v3998_v35, 0.0  ;;  %v9458_v26 = vld [vmem:[#allocation105_spill] sm:$0xff]  ;;  %v9463_v35 = vld [vmem:[#allocation116_spill] sm:$0xff]  ;;  %v9464_v50 = vld [vmem:[#allocation119_spill] sm:$0xff] }
 0x304   :  { %v4957_v2 = vpop.eup %4956  ;;  %4960 = vpow2.f32 %v4798_v0  ;;  %v4028_v15 = vadd.f32 %v4027_v28, %v4026_v14  ;;  %v4031_v38 = vsel %vm936_vm0, %v3971_v61, 0.0  ;;  %v4032_v34 = vsel %vm936_vm0, %v3975_v21, 0.0 }
 0x305   :  { %v4381_v30 = vadd.f32 1.0, %v4957_v2  ;;  %4962 = vrcp.f32 %v4380_v56  ;;  %v7714_v32 = vadd.f32 %v4014_v44, %v4013_v54  ;;  %v4033_v29 = vadd.f32 %v4032_v34, %v4031_v38  ;;  %v9465_v56 = vld [vmem:[#allocation120_spill] sm:$0xff]  ;;  %v9466_v44 = vld [vmem:[#allocation26_spill] sm:$0xff] }
 0x306   :  { %v7717_v42 = vadd.f32 %v4029_v8, %v4028_v15  ;;  %v3976_v49 = vmul.f32 %v7534_v23, %v9392_v10  ;;  %v3979_v5 = vmul.f32 %v7537_v9, %v9458_v26  ;;  %v3980_v20 = vmul.f32 %v7537_v9, %v9459_v4  ;;  %v9462_v9 = vld [vmem:[#allocation115_spill] sm:$0xff]  ;;  %v9467_v8 = vld [vmem:[#allocation133_spill] sm:$0xff]  ;;  %v9468_v38 = vld [vmem:[#allocation142_spill] sm:$0xff] }
 0x307   :  { %9456 = vst [vmem:[#allocation141_spill] sm:$0xff] %v7714_v32  ;;  %4964 = vrcp.f32 %v4381_v30  ;;  %v3983_v46 = vmul.f32 %v7546_v37, %v9460_v33  ;;  %v4046_v60 = vsel %vm936_vm0, %v3972_v45, 0.0  ;;  %v3984_v57 = vmul.f32 %v7546_v37, %v9461_v43  ;;  %v9491_v43 = vld [vmem:[#allocation88_spill] sm:$0xff] }
 0x308   :  { %9457 = vst [vmem:[#allocation23_spill] sm:$0xff] %v7717_v42  ;;  %v4047_v59 = vsel %vm936_vm0, %v3976_v49, 0.0  ;;  %v4034_v19 = vsel %vm936_vm0, %v3979_v5, 0.0  ;;  %v4959_v23 = vpop.eup %4958  ;;  %v4049_v6 = vsel %vm936_vm0, %v3980_v20, 0.0  ;;  %v3987_v7 = vmul.f32 %v7540_v18, %v9462_v9  ;;  %v9469_v49 = vld [vmem:[#allocation19_spill] sm:$0xff]  ;;  %v9511_v42 = vld [vmem:[#allocation54_spill] sm:$0xff] }
 0x309   :  { %v4048_v48 = vadd.f32 %v4047_v59, %v4046_v60  ;;  %v4035_v55 = vadd.f32 %v4034_v19, %v4033_v29  ;;  %v4036_v53 = vsel %vm936_vm0, %v3983_v46, 0.0  ;;  %v3988_v61 = vmul.f32 %v7540_v18, %v9463_v35  ;;  %v9470_v20 = vld [vmem:[#allocation123_spill] sm:$0xff]  ;;  %v9489_v35 = vld [vmem:[#allocation117_spill] sm:$0xff] }
 0x30a   :  { %v3991_v0 = vmul.f32 %v7549_v24, %v9464_v50  ;;  %v4051_v37 = vsel %vm936_vm0, %v3984_v57, 0.0  ;;  %v4038_v21 = vsel %vm936_vm0, %v3987_v7, 0.0  ;;  %v3992_v54 = vmul.f32 %v7549_v24, %v9465_v56  ;;  %v9487_v50 = vld [vmem:[#allocation83_spill] sm:$0xff] }
 0x30b   :  { %v4050_v14 = vadd.f32 %v4049_v6, %v4048_v48  ;;  %v4037_v28 = vadd.f32 %v4036_v53, %v4035_v55  ;;  %v3995_v45 = vmul.f32 %v7554_v27, %v9466_v44  ;;  %v1604_v18 = vmul.f32 %v9468_v38, %v9467_v8  ;;  %v9471_v55 = vld [vmem:[#allocation124_spill] sm:$0xff] }
 0x30c   :  { %v4053_v34 = vsel %vm936_vm0, %v3988_v61, 0.0  ;;  %v4040_v29 = vsel %vm936_vm0, %v3991_v0, 0.0  ;;  %v3996_v5 = vmul.f32 %v7554_v27, %v9469_v49  ;;  %v3999_v46 = vmul.f32 %v7563_v31, %v9470_v20 }
 0x30d   :  { %v4052_v2 = vadd.f32 %v4051_v37, %v4050_v14  ;;  %v4039_v15 = vadd.f32 %v4038_v21, %v4037_v28  ;;  %v4055_v57 = vsel %vm936_vm0, %v3992_v54, 0.0  ;;  %v4042_v48 = vsel %vm936_vm0, %v3995_v45, 0.0  ;;  %v9472_v14 = vld [vmem:[#allocation138_spill] sm:$0xff]  ;;  %v9473_v21 = vld [vmem:[#allocation9_spill] sm:$0xff] }
 0x30e   :  { %v4961_v30 = vpop.eup %4960  ;;  %v4000_v6 = vmul.f32 %v7563_v31, %v9471_v55  ;;  %v4057_v28 = vsel %vm936_vm0, %v3996_v5, 0.0  ;;  %v4044_v37 = vsel %vm936_vm0, %v3999_v46, 0.0  ;;  %v1606_v46 = vcombine.high %v1604_v18, %v1604_v18 }
 0x30f   :  { %v4963_v24 = vpop.eup %4962  ;;  %v4054_v60 = vadd.f32 %v4053_v34, %v4052_v2  ;;  %v4041_v59 = vadd.f32 %v4040_v29, %v4039_v15  ;;  %v4382_v7 = vadd.f32 1.0, %v4961_v30  ;;  %v1613_v2 = vrot.slane %v1604_v18, %v9473_v21  ;;  %v9476_v34 = vld [vmem:[#allocation6_spill] sm:$0xff] }
 0x310   :  { %v4391_v19 = vmul.f32 %v4963_v24, %v4959_v23  ;;  %v4059_v45 = vsel %vm936_vm0, %v4000_v6, 0.0  ;;  %v9479_v6 = vld [vmem:[#allocation76_spill] sm:$0xff]  ;;  %v1620_v18 = vrot.slane %v1606_v46, %v9473_v21  ;;  %v9484_v46 = vld [vmem:[#allocation79_spill] sm:$0xff] }
 0x311   :  { %v4965_v53 = vpop.eup %4964  ;;  %v4056_v61 = vadd.f32 %v4055_v57, %v4054_v60  ;;  %v4043_v0 = vadd.f32 %v4042_v48, %v4041_v59  ;;  %4966 = vrcp.f32 %v4382_v7  ;;  %v1621_v8 = vcombine.high %v1613_v2, %v1613_v2  ;;  %v9478_v57 = vld [vmem:[#allocation75_spill] sm:$0xff] }
 0x312   :  { %v4390_v27 = vmul.f32 %v4965_v53, %v9472_v14  ;;  %v1629_v30 = vrot.slane %v1613_v2, %v9473_v21 }
 0x313   :  { %v4058_v23 = vadd.f32 %v4057_v28, %v4056_v61  ;;  %v7762_v15 = vadd.f32 %v4044_v37, %v4043_v0  ;;  %v1643_v38 = vrot.slane %v1621_v8, %v9473_v21  ;;  %v9480_v0 = vld [vmem:[#allocation72_spill] sm:$0xff]  ;;  %v9482_v37 = vld [vmem:[#allocation109_spill] sm:$0xff]  ;;  %v1636_v8 = vrot.slane %v1620_v18, %v9473_v21 }
 0x314   :  { %v4392_v54 = vadd.f32 %v4391_v19, %v4390_v27  ;;  %v1651_v60 = vcombine.high %v1629_v30, %v1629_v30  ;;  %v7777_v59 = vrot.slane %v1629_v30, %v9476_v34  ;;  %v9481_v27 = vld [vmem:[#allocation73_spill] sm:$0xff]  ;;  %v9483_v30 = vld [vmem:[#allocation107_spill] sm:$0xff] }
 0x315   :  { %9474 = vst [vmem:[#allocation30_spill] sm:$0xff] %v7762_v15  ;;  %v7765_v31 = vadd.f32 %v4059_v45, %v4058_v23  ;;  %v7774_v29 = vrot.slane %v1643_v38, %v9476_v34  ;;  %v1653_v7 = vcombine.high %v1643_v38, %v1643_v38  ;;  %v1622_v45 = vcombine.high %v1620_v18, %v1620_v18  ;;  %v9515_v15 = vld [vmem:[#allocation74_spill] sm:$0xff] }
 0x316   :  { %4968 = vtanh.f32 %v4392_v54  ;;  %4729 = vst.msk [vmem:[%s8559_s11] sm:$0xff] %vm936_vm0, %v4392_v54  ;;  %v1666_v61 = vrot.slane %v1651_v60, %v9476_v34  ;;  %v2001_v14 = vmul.f32 %v7777_v59, %v9480_v0  ;;  %v2002_v28 = vmul.f32 %v7777_v59, %v9481_v27  ;;  %v9485_v60 = vld [vmem:[#allocation80_spill] sm:$0xff] }
 0x317   :  { %9475 = vst [vmem:[#allocation52_spill] sm:$0xff] %v7765_v31  ;;  %v2005_v48 = vmul.f32 %v7774_v29, %v9478_v57  ;;  %v2006_v53 = vmul.f32 %v7774_v29, %v9479_v6  ;;  %v2007_v2 = vmul.f32 %v7774_v29, %v9482_v37  ;;  %v7802_v38 = vrot.slane %v1653_v7, %v9476_v34 }
 0x318   :  { %v2010_v55 = vmul.f32 %v1666_v61, %v9485_v60  ;;  %v2033_v20 = vsel %vm936_vm0, %v2001_v14, 0.0  ;;  %v2048_v49 = vsel %vm936_vm0, %v2002_v28, 0.0  ;;  %v1650_v18 = vrot.slane %v1622_v45, %v9473_v21 }
 0x319   :  { %v2034_v23 = vsel %vm936_vm0, %v2005_v48, 0.0  ;;  %v2049_v54 = vsel %vm936_vm0, %v2006_v53, 0.0  ;;  %v2064_v53 = vsel %vm936_vm0, %v2007_v2, 0.0  ;;  %v1674_v7 = vrot.slane %v1636_v8, %v9476_v34 }
 0x31a   :  { %v2035_v48 = vadd.f32 %v2034_v23, %v2033_v20  ;;  %v2050_v44 = vadd.f32 %v2049_v54, %v2048_v49  ;;  %v2011_v56 = vmul.f32 %v1666_v61, %v9486_v62  ;;  %v2013_v22 = vmul.f32 %v7802_v38, %v9487_v50 }
 0x31b   :  { %v4967_v5 = vpop.eup %4966  ;;  %v2014_v40 = vmul.f32 %v7802_v38, %v9488_v36  ;;  %v2051_v28 = vsel %vm936_vm0, %v2010_v55, 0.0  ;;  %v1652_v54 = vcombine.high %v1636_v8, %v1636_v8  ;;  %v1678_v45 = vrot.slane %v1650_v18, %v9476_v34 }
 0x31c   :  { %v2052_v2 = vadd.f32 %v2051_v28, %v2050_v44  ;;  %v2015_v9 = vmul.f32 %v7802_v38, %v9489_v35  ;;  %v2017_v16 = vmul.f32 %v1674_v7, %v9490_v52  ;;  %v2018_v33 = vmul.f32 %v1674_v7, %v9491_v43 }
 0x31d   :  { %v2038_v4 = vsel %vm936_vm0, %v2013_v22, 0.0  ;;  %v2066_v55 = vsel %vm936_vm0, %v2011_v56, 0.0  ;;  %v1682_v8 = vrot.slane %v1652_v54, %v9476_v34  ;;  %v2022_v12 = vmul.f32 %v1678_v45, %v9494_v51 }
 0x31e   :  { %v2040_v25 = vsel %vm936_vm0, %v2017_v16, 0.0  ;;  %v2055_v22 = vsel %vm936_vm0, %v2018_v33, 0.0 }
 0x31f   :  { %v2026_v47 = vmul.f32 %v1682_v8, %v9498_v3  ;;  %v2057_v33 = vsel %vm936_vm0, %v2022_v12, 0.0 }
 0x320   :  { %v4969_v24 = vpop.eup %4968 }
 0x321   :  { %v7779_v19 = vmul.f32 %v4969_v24, %v4967_v5  ;;  %v2003_v5 = vmul.f32 %v7777_v59, %v9483_v30  ;;  %v2009_v24 = vmul.f32 %v1666_v61, %v9484_v46 }
 0x323   :  { %9477 = vst [vmem:[#allocation58_spill] sm:$0xff] %v7779_v19  ;;  %4726 = vst.msk [vmem:[%s8558_s10] sm:$0xff] %vm936_vm0, %v7779_v19  ;;  %v2036_v14 = vsel %vm936_vm0, %v2009_v24, 0.0  ;;  %v2063_v49 = vsel %vm936_vm0, %v2003_v5, 0.0  ;;  %v2053_v24 = vsel %vm936_vm0, %v2014_v40, 0.0  ;;  %v2068_v40 = vsel %vm936_vm0, %v2015_v9, 0.0 }
 0x324   :  { %v2037_v20 = vadd.f32 %v2036_v14, %v2035_v48  ;;  %v2065_v23 = vadd.f32 %v2064_v53, %v2063_v49  ;;  %v2054_v48 = vadd.f32 %v2053_v24, %v2052_v2  ;;  %v1654_v53 = vcombine.high %v1650_v18, %v1650_v18  ;;  %v9492_v14 = vld [vmem:[#allocation130_spill] sm:$0xff]  ;;  %v9493_v49 = vld [vmem:[#allocation95_spill] sm:$0xff] }
 0x325   :  { %v2019_v28 = vmul.f32 %v1674_v7, %v9492_v14  ;;  %v2021_v26 = vmul.f32 %v1678_v45, %v9493_v49  ;;  %v9495_v18 = vld [vmem:[#allocation110_spill] sm:$0xff]  ;;  %v9497_v24 = vld [vmem:[#allocation99_spill] sm:$0xff] }
 0x326   :  { %v2039_v5 = vadd.f32 %v2038_v4, %v2037_v20  ;;  %v2067_v44 = vadd.f32 %v2066_v55, %v2065_v23  ;;  %v2056_v56 = vadd.f32 %v2055_v22, %v2054_v48  ;;  %v1686_v20 = vrot.slane %v1654_v53, %v9476_v34  ;;  %v9496_v23 = vld [vmem:[#allocation131_spill] sm:$0xff]  ;;  %v9500_v22 = vld [vmem:[#allocation114_spill] sm:$0xff] }
 0x327   :  { %v2008_v2 = vmul.f32 %v7774_v29, %v9495_v18  ;;  %v2023_v54 = vmul.f32 %v1678_v45, %v9496_v23  ;;  %v2025_v55 = vmul.f32 %v1682_v8, %v9497_v24  ;;  %v2042_v16 = vsel %vm936_vm0, %v2021_v26, 0.0 }
 0x328   :  { %v2041_v39 = vadd.f32 %v2040_v25, %v2039_v5  ;;  %v2069_v4 = vadd.f32 %v2068_v40, %v2067_v44  ;;  %v2070_v9 = vsel %vm936_vm0, %v2019_v28, 0.0  ;;  %v9499_v25 = vld [vmem:[#allocation108_spill] sm:$0xff]  ;;  %v2058_v44 = vadd.f32 %v2057_v33, %v2056_v56  ;;  %v9501_v40 = vld [vmem:[#allocation90_spill] sm:$0xff] }
 0x329   :  { %v2004_v5 = vmul.f32 %v7777_v59, %v9499_v25  ;;  %v2012_v29 = vmul.f32 %v1666_v61, %v9500_v22  ;;  %v2027_v10 = vmul.f32 %v1682_v8, %v9501_v40  ;;  %v2029_v17 = vmul.f32 %v1686_v20, %v9502_v63  ;;  %v9504_v61 = vld [vmem:[#allocation134_spill] sm:$0xff] }
 0x32a   :  { %v2043_v48 = vadd.f32 %v2042_v16, %v2041_v39  ;;  %v2071_v53 = vadd.f32 %v2070_v9, %v2069_v4  ;;  %v2079_v41 = vsel %vm936_vm0, %v2008_v2, 0.0  ;;  %v2030_v26 = vmul.f32 %v1686_v20, %v9503_v11  ;;  %v9505_v9 = vld [vmem:[#allocation118_spill] sm:$0xff]  ;;  %v9506_v2 = vld [vmem:[#allocation129_spill] sm:$0xff] }
 0x32b   :  { %v2044_v12 = vsel %vm936_vm0, %v2025_v55, 0.0  ;;  %v2059_v28 = vsel %vm936_vm0, %v2026_v47, 0.0  ;;  %v2072_v1 = vsel %vm936_vm0, %v2023_v54, 0.0  ;;  %v2078_v4 = vsel %vm936_vm0, %v2004_v5, 0.0  ;;  %v9507_v5 = vld [vmem:[#allocation93_spill] sm:$0xff] }
 0x32c   :  { %v2045_v59 = vadd.f32 %v2044_v12, %v2043_v48  ;;  %v2060_v39 = vadd.f32 %v2059_v28, %v2058_v44  ;;  %v2073_v56 = vadd.f32 %v2072_v1, %v2071_v53  ;;  %v2031_v16 = vmul.f32 %v1686_v20, %v9504_v61  ;;  %v9508_v53 = vld [vmem:[#allocation20_spill] sm:$0xff]  ;;  %v9510_v28 = vld [vmem:[#allocation27_spill] sm:$0xff] }
 0x32d   :  { %v2080_v33 = vadd.f32 %v2079_v41, %v2078_v4  ;;  %v2016_v58 = vmul.f32 %v7802_v38, %v9505_v9  ;;  %v2020_v13 = vmul.f32 %v1674_v7, %v9506_v2  ;;  %v2046_v19 = vsel %vm936_vm0, %v2029_v17, 0.0  ;;  %v9509_v41 = vld [vmem:[#allocation94_spill] sm:$0xff]  ;;  %v9512_v17 = vld [vmem:[#allocation49_spill] sm:$0xff] }
 0x32e   :  { %v2061_v55 = vsel %vm936_vm0, %v2030_v26, 0.0  ;;  %v2074_v47 = vsel %vm936_vm0, %v2027_v10, 0.0  ;;  %v2047_v54 = vadd.f32 %v2046_v19, %v2045_v59  ;;  %v2081_v1 = vsel %vm936_vm0, %v2012_v29, 0.0  ;;  %v9513_v26 = vld [vmem:[#allocation125_spill] sm:$0xff] }
 0x32f   :  { %v2062_v48 = vadd.f32 %v2061_v55, %v2060_v39  ;;  %v2075_v44 = vadd.f32 %v2074_v47, %v2073_v56  ;;  %v1997_v12 = vadd.f32 %v9508_v53, %v9507_v5  ;;  %v1998_v4 = vadd.f32 %v9510_v28, %v9509_v41  ;;  %v9514_v59 = vld [vmem:[#allocation89_spill] sm:$0xff] }
 0x330   :  { %v2076_v38 = vsel %vm936_vm0, %v2031_v16, 0.0  ;;  %v2082_v7 = vadd.f32 %v2081_v1, %v2080_v33  ;;  %v1999_v32 = vadd.f32 %v9512_v17, %v9511_v42  ;;  %v2024_v31 = vmul.f32 %v1678_v45, %v9513_v26 }
 0x331   :  { %v2077_v10 = vadd.f32 %v2076_v38, %v2075_v44  ;;  %v2083_v19 = vsel %vm936_vm0, %v2016_v58, 0.0  ;;  %v2028_v39 = vmul.f32 %v1682_v8, %v9514_v59  ;;  %v2085_v56 = vsel %vm936_vm0, %v2020_v13, 0.0  ;;  %v9516_v44 = vld [vmem:[#allocation48_spill] sm:$0xff]  ;;  %v9517_v13 = vld [vmem:[#allocation55_spill] sm:$0xff] }
 0x332   :  { %v2084_v29 = vadd.f32 %v2083_v19, %v2082_v7  ;;  %v2093_v55 = vadd.f32 %v2047_v54, %v1997_v12  ;;  %v2094_v47 = vadd.f32 %v2062_v48, %v1998_v4  ;;  %v2032_v16 = vmul.f32 %v1686_v20, %v9515_v15 }
 0x333   :  { %v2095_v53 = vadd.f32 %v2077_v10, %v1999_v32  ;;  %v2087_v33 = vsel %vm936_vm0, %v2024_v31, 0.0  ;;  %v2089_v45 = vsel %vm936_vm0, %v2028_v39, 0.0  ;;  %v2000_v54 = vadd.f32 %v9517_v13, %v9516_v44 }
 0x334   :  { %v2086_v28 = vadd.f32 %v2085_v56, %v2084_v29  ;;  %v4769_v1 = vmul.f32 -1.442695, %v2093_v55  ;;  %v4770_v17 = vmul.f32 -1.442695, %v2094_v47  ;;  %v2091_v8 = vsel %vm936_vm0, %v2032_v16, 0.0  ;;  %v9518_v56 = vld [vmem:[#allocation128_spill] sm:$0xff] }
 0x335   :  { %v4771_v12 = vmul.f32 -1.442695, %v2095_v53 }
 0x336   :  { %v2088_v42 = vadd.f32 %v2087_v33, %v2086_v28  ;;  %4970 = vpow2.f32 %v4769_v1 }
 0x337   :  { %4972 = vpow2.f32 %v4770_v17 }
 0x338   :  { %v2090_v58 = vadd.f32 %v2089_v45, %v2088_v42  ;;  %4974 = vpow2.f32 %v4771_v12 }
 0x33a   :  { %v2092_v48 = vadd.f32 %v2091_v8, %v2090_v58 }
 0x33c   :  { %v2096_v32 = vadd.f32 %v2092_v48, %v2000_v54 }
 0x33e   :  { %4976 = vtanh.f32 %v2096_v32 }
 0x340   :  { %v4971_v4 = vpop.eup %4970 }
 0x341   :  { %v4973_v20 = vpop.eup %4972  ;;  %v2106_v31 = vadd.f32 1.0, %v4971_v4 }
 0x342   :  { %v2107_v38 = vadd.f32 1.0, %v4973_v20  ;;  %v4975_v7 = vpop.eup %4974 }
 0x343   :  { %4978 = vrcp.f32 %v2106_v31  ;;  %v2108_v39 = vadd.f32 1.0, %v4975_v7  ;;  %v9519_v7 = vld [vmem:[#allocation21_spill] sm:$0xff] }
 0x344   :  { %4980 = vrcp.f32 %v2107_v38 }
 0x345   :  { %4982 = vrcp.f32 %v2108_v39 }
 0x348   :  { %v4977_v10 = vpop.eup %4976 }
 0x34d   :  { %v4979_v42 = vpop.eup %4978 }
 0x34e   :  { %v4981_v19 = vpop.eup %4980  ;;  %v2117_v29 = vmul.f32 %v4979_v42, %v4977_v10  ;;  %v7895_v10 = vadd.f32 %v9519_v7, %v9507_v5  ;;  %v9520_v42 = vld [vmem:[#allocation28_spill] sm:$0xff] }
 0x34f   :  { %v2116_v55 = vmul.f32 %v4981_v19, %v9518_v56  ;;  %v4983_v53 = vpop.eup %4982  ;;  %v7899_v19 = vadd.f32 %v9520_v42, %v9509_v41 }
 0x351   :  { %v7882_v47 = vadd.f32 %v2117_v29, %v2116_v55 }
 0x353   :  { %4984 = vtanh.f32 %v7882_v47 }
 0x35d   :  { %v4985_v28 = vpop.eup %4984 }
 0x35e   :  { %v2120_v16 = vmul.f32 %v4985_v28, %v4983_v53 }
 0x360   :  { %v2122_v33 = vcombine.high %v2120_v16, %v2120_v16  ;;  %v2129_v1 = vrot.slane %v2120_v16, %v9473_v21 }
 0x362   :  { %v2136_v17 = vrot.slane %v2122_v33, %v9473_v21  ;;  %v2137_v45 = vcombine.high %v2129_v1, %v2129_v1  ;;  %v2145_v58 = vrot.slane %v2129_v1, %v9473_v21 }
 0x364   :  { %v2138_v8 = vcombine.high %v2136_v17, %v2136_v17  ;;  %v2152_v13 = vrot.slane %v2136_v17, %v9473_v21  ;;  %v2159_v54 = vrot.slane %v2137_v45, %v9473_v21  ;;  %v2167_v32 = vcombine.high %v2145_v58, %v2145_v58 }
 0x365   :  { %v2174_v4 = vrot.slane %v2145_v58, %v9476_v34 }
 0x366   :  { %v2166_v48 = vrot.slane %v2138_v8, %v9473_v21  ;;  %v2169_v12 = vcombine.high %v2159_v54, %v2159_v54  ;;  %v2168_v20 = vcombine.high %v2152_v13, %v2152_v13  ;;  %v2178_v31 = vrot.slane %v2159_v54, %v9476_v34 }
 0x367   :  { %v2182_v39 = vrot.slane %v2167_v32, %v9476_v34  ;;  %v2190_v29 = vrot.slane %v2152_v13, %v9476_v34  ;;  %v2517_v53 = vmul.f32 %v2174_v4, %v9480_v0  ;;  %v2518_v28 = vmul.f32 %v2174_v4, %v9481_v27 }
 0x368   :  { %v2170_v38 = vcombine.high %v2166_v48, %v2166_v48  ;;  %v2186_v56 = vrot.slane %v2169_v12, %v9476_v34  ;;  %v2194_v55 = vrot.slane %v2166_v48, %v9476_v34  ;;  %v7908_v16 = vrot.slane %v2168_v20, %v9476_v34 }
 0x369   :  { %v2519_v33 = vmul.f32 %v2174_v4, %v9483_v30  ;;  %v2520_v1 = vmul.f32 %v2174_v4, %v9499_v25  ;;  %v2521_v17 = vmul.f32 %v2178_v31, %v9478_v57  ;;  %v2522_v58 = vmul.f32 %v2178_v31, %v9479_v6 }
 0x36a   :  { %v7914_v45 = vrot.slane %v2170_v38, %v9476_v34  ;;  %v2523_v8 = vmul.f32 %v2178_v31, %v9482_v37  ;;  %v2524_v13 = vmul.f32 %v2178_v31, %v9495_v18  ;;  %v2525_v54 = vmul.f32 %v2182_v39, %v9484_v46 }
 0x36b   :  { %v2526_v48 = vmul.f32 %v2182_v39, %v9485_v60  ;;  %v2527_v32 = vmul.f32 %v2182_v39, %v9486_v62  ;;  %v2528_v12 = vmul.f32 %v2182_v39, %v9500_v22  ;;  %v2529_v4 = vmul.f32 %v2186_v56, %v9487_v50 }
 0x36c   :  { %v2530_v20 = vmul.f32 %v2186_v56, %v9488_v36  ;;  %v2531_v38 = vmul.f32 %v2186_v56, %v9489_v35  ;;  %v2532_v7 = vmul.f32 %v2186_v56, %v9505_v9  ;;  %v2533_v42 = vmul.f32 %v2190_v29, %v9490_v52 }
 0x36d   :  { %v2534_v31 = vmul.f32 %v2190_v29, %v9491_v43  ;;  %v2535_v46 = vmul.f32 %v2190_v29, %v9492_v14  ;;  %v2536_v60 = vmul.f32 %v2190_v29, %v9506_v2  ;;  %v2537_v62 = vmul.f32 %v2194_v55, %v9493_v49 }
 0x36e   :  { %v2538_v39 = vmul.f32 %v2194_v55, %v9494_v51  ;;  %v2549_v50 = vsel %vm936_vm0, %v2517_v53, 0.0  ;;  %v2550_v36 = vsel %vm936_vm0, %v2521_v17, 0.0  ;;  %v2539_v35 = vmul.f32 %v2194_v55, %v9496_v23 }
 0x36f   :  { %v2540_v56 = vmul.f32 %v2194_v55, %v9513_v26  ;;  %v2541_v52 = vmul.f32 %v7908_v16, %v9497_v24  ;;  %v2551_v43 = vadd.f32 %v2550_v36, %v2549_v50  ;;  %v2542_v14 = vmul.f32 %v7908_v16, %v9498_v3 }
 0x370   :  { %v2552_v29 = vsel %vm936_vm0, %v2525_v54, 0.0  ;;  %v2564_v49 = vsel %vm936_vm0, %v2518_v28, 0.0  ;;  %v2565_v51 = vsel %vm936_vm0, %v2522_v58, 0.0  ;;  %v2543_v53 = vmul.f32 %v7908_v16, %v9501_v40 }
 0x371   :  { %v2545_v17 = vmul.f32 %v7914_v45, %v9502_v63  ;;  %v2553_v55 = vadd.f32 %v2552_v29, %v2551_v43  ;;  %v2566_v26 = vadd.f32 %v2565_v51, %v2564_v49  ;;  %v2554_v24 = vsel %vm936_vm0, %v2529_v4, 0.0 }
 0x372   :  { %v2567_v36 = vsel %vm936_vm0, %v2526_v48, 0.0  ;;  %v2579_v50 = vsel %vm936_vm0, %v2519_v33, 0.0  ;;  %v2580_v54 = vsel %vm936_vm0, %v2523_v8, 0.0  ;;  %v2546_v28 = vmul.f32 %v7914_v45, %v9503_v11 }
 0x373   :  { %v2555_v58 = vadd.f32 %v2554_v24, %v2553_v55  ;;  %v2568_v3 = vadd.f32 %v2567_v36, %v2566_v26  ;;  %v2581_v23 = vadd.f32 %v2580_v54, %v2579_v50  ;;  %v2547_v40 = vmul.f32 %v7914_v45, %v9504_v61 }
 0x374   :  { %v2556_v43 = vsel %vm936_vm0, %v2533_v42, 0.0  ;;  %v2569_v51 = vsel %vm936_vm0, %v2530_v20, 0.0  ;;  %v2582_v49 = vsel %vm936_vm0, %v2527_v32, 0.0  ;;  %v2558_v33 = vsel %vm936_vm0, %v2537_v62, 0.0 }
 0x375   :  { %v2557_v48 = vadd.f32 %v2556_v43, %v2555_v58  ;;  %v2570_v4 = vadd.f32 %v2569_v51, %v2568_v3  ;;  %v2583_v8 = vadd.f32 %v2582_v49, %v2581_v23  ;;  %v2571_v29 = vsel %vm936_vm0, %v2534_v31, 0.0 }
 0x376   :  { %v2584_v24 = vsel %vm936_vm0, %v2531_v38, 0.0  ;;  %v2594_v26 = vsel %vm936_vm0, %v2520_v1, 0.0  ;;  %v2595_v55 = vsel %vm936_vm0, %v2524_v13, 0.0  ;;  %v2560_v20 = vsel %vm936_vm0, %v2541_v52, 0.0 }
 0x377   :  { %v2559_v36 = vadd.f32 %v2558_v33, %v2557_v48  ;;  %v2572_v50 = vadd.f32 %v2571_v29, %v2570_v4  ;;  %v2585_v42 = vadd.f32 %v2584_v24, %v2583_v8  ;;  %v2596_v54 = vadd.f32 %v2595_v55, %v2594_v26  ;;  %v9521_v29 = vld [vmem:[#allocation54_spill] sm:$0xff] }
 0x378   :  { %v2573_v32 = vsel %vm936_vm0, %v2538_v39, 0.0  ;;  %v2586_v62 = vsel %vm936_vm0, %v2535_v46, 0.0  ;;  %v2597_v3 = vsel %vm936_vm0, %v2528_v12, 0.0  ;;  %v2562_v1 = vsel %vm936_vm0, %v2545_v17, 0.0 }
 0x379   :  { %v2561_v23 = vadd.f32 %v2560_v20, %v2559_v36  ;;  %v2574_v31 = vadd.f32 %v2573_v32, %v2572_v50  ;;  %v2587_v58 = vadd.f32 %v2586_v62, %v2585_v42  ;;  %v2598_v38 = vadd.f32 %v2597_v3, %v2596_v54  ;;  %v9523_v32 = vld [vmem:[#allocation56_spill] sm:$0xff] }
 0x37a   :  { %v2575_v13 = vsel %vm936_vm0, %v2542_v14, 0.0  ;;  %v2588_v43 = vsel %vm936_vm0, %v2539_v35, 0.0  ;;  %v2599_v51 = vsel %vm936_vm0, %v2532_v7, 0.0  ;;  %v2544_v46 = vmul.f32 %v7908_v16, %v9514_v59  ;;  %v9522_v7 = vld [vmem:[#allocation50_spill] sm:$0xff] }
 0x37b   :  { %v2563_v49 = vadd.f32 %v2562_v1, %v2561_v23  ;;  %v2576_v52 = vadd.f32 %v2575_v13, %v2574_v31  ;;  %v2589_v48 = vadd.f32 %v2588_v43, %v2587_v58  ;;  %v2600_v39 = vadd.f32 %v2599_v51, %v2598_v38 }
 0x37c   :  { %v2577_v12 = vsel %vm936_vm0, %v2546_v28, 0.0  ;;  %v2590_v33 = vsel %vm936_vm0, %v2543_v53, 0.0  ;;  %v2601_v4 = vsel %vm936_vm0, %v2536_v60, 0.0  ;;  %v2515_v24 = vadd.f32 %v9522_v7, %v9521_v29 }
 0x37d   :  { %v2578_v17 = vadd.f32 %v2577_v12, %v2576_v52  ;;  %v2591_v8 = vadd.f32 %v2590_v33, %v2589_v48  ;;  %v2602_v14 = vadd.f32 %v2601_v4, %v2600_v39  ;;  %v2609_v35 = vadd.f32 %v2563_v49, %v7895_v10 }
 0x37e   :  { %v2548_v26 = vmul.f32 %v7914_v45, %v9515_v15  ;;  %v2592_v55 = vsel %vm936_vm0, %v2547_v40, 0.0  ;;  %v2603_v16 = vsel %vm936_vm0, %v2540_v56, 0.0  ;;  %v2605_v50 = vsel %vm936_vm0, %v2544_v46, 0.0 }
 0x37f   :  { %v2593_v28 = vadd.f32 %v2592_v55, %v2591_v8  ;;  %v2604_v36 = vadd.f32 %v2603_v16, %v2602_v14  ;;  %v2610_v53 = vadd.f32 %v2578_v17, %v7899_v19  ;;  %v4775_v60 = vmul.f32 -1.442695, %v2609_v35 }
 0x380   :  { %v2607_v20 = vsel %vm936_vm0, %v2548_v26, 0.0  ;;  %v2516_v45 = vadd.f32 %v9523_v32, %v9516_v44 }
 0x381   :  { %v2606_v42 = vadd.f32 %v2605_v50, %v2604_v36  ;;  %v2611_v54 = vadd.f32 %v2593_v28, %v2515_v24  ;;  %4986 = vpow2.f32 %v4775_v60  ;;  %v4776_v10 = vmul.f32 -1.442695, %v2610_v53  ;;  %v9524_v53 = vld [vmem:[#allocation132_spill] sm:$0xff]  ;;  %v9525_v50 = vld [vmem:[#allocation22_spill] sm:$0xff] }
 0x382   :  { %v8003_v60 = vadd.f32 %v9524_v53, %v9507_v5  ;;  %v9536_v53 = vld [vmem:[#allocation96_spill] sm:$0xff] }
 0x383   :  { %v2608_v62 = vadd.f32 %v2607_v20, %v2606_v42  ;;  %4988 = vpow2.f32 %v4776_v10  ;;  %v4777_v56 = vmul.f32 -1.442695, %v2611_v54  ;;  %v8007_v42 = vadd.f32 %v9525_v50, %v9509_v41 }
 0x385   :  { %v2612_v40 = vadd.f32 %v2608_v62, %v2516_v45  ;;  %4990 = vpow2.f32 %v4777_v56 }
 0x387   :  { %4992 = vtanh.f32 %v2612_v40 }
 0x38b   :  { %v4987_v3 = vpop.eup %4986 }
 0x38c   :  { %v2622_v23 = vadd.f32 1.0, %v4987_v3 }
 0x38d   :  { %v4989_v19 = vpop.eup %4988 }
 0x38e   :  { %v2623_v31 = vadd.f32 1.0, %v4989_v19  ;;  %4994 = vrcp.f32 %v2622_v23 }
 0x38f   :  { %v4991_v58 = vpop.eup %4990 }
 0x390   :  { %4996 = vrcp.f32 %v2623_v31  ;;  %v2624_v51 = vadd.f32 1.0, %v4991_v58 }
 0x391   :  { %v4993_v38 = vpop.eup %4992 }
 0x392   :  { %4998 = vrcp.f32 %v2624_v51 }
 0x398   :  { %v4995_v1 = vpop.eup %4994 }
 0x399   :  { %v2633_v13 = vmul.f32 %v4995_v1, %v4993_v38  ;;  %v9526_v1 = vld [vmem:[#allocation79_spill] sm:$0xff] }
 0x39a   :  { %v4997_v43 = vpop.eup %4996 }
 0x39b   :  { %v2632_v49 = vmul.f32 %v4997_v43, %v7882_v47  ;;  %v9527_v43 = vld [vmem:[#allocation80_spill] sm:$0xff] }
 0x39c   :  { %v4999_v48 = vpop.eup %4998 }
 0x39d   :  { %v7990_v52 = vadd.f32 %v2633_v13, %v2632_v49  ;;  %v9528_v49 = vld [vmem:[#allocation113_spill] sm:$0xff] }
 0x39f   :  { %5000 = vtanh.f32 %v7990_v52 }
 0x3a9   :  { %v5001_v39 = vpop.eup %5000 }
 0x3aa   :  { %v2636_v46 = vmul.f32 %v5001_v39, %v4999_v48 }
 0x3ac   :  { %v2638_v12 = vcombine.high %v2636_v46, %v2636_v46  ;;  %v2645_v33 = vrot.slane %v2636_v46, %v9473_v21  ;;  %v9529_v46 = vld [vmem:[#allocation83_spill] sm:$0xff] }
 0x3ae   :  { %v2652_v4 = vrot.slane %v2638_v12, %v9473_v21  ;;  %v2653_v17 = vcombine.high %v2645_v33, %v2645_v33  ;;  %v2661_v8 = vrot.slane %v2645_v33, %v9473_v21  ;;  %v9530_v33 = vld [vmem:[#allocation84_spill] sm:$0xff] }
 0x3b0   :  { %v2654_v14 = vcombine.high %v2652_v4, %v2652_v4  ;;  %v2668_v35 = vrot.slane %v2652_v4, %v9473_v21  ;;  %v2675_v47 = vrot.slane %v2653_v17, %v9473_v21  ;;  %v2683_v24 = vcombine.high %v2661_v8, %v2661_v8  ;;  %v9531_v17 = vld [vmem:[#allocation117_spill] sm:$0xff] }
 0x3b1   :  { %v2690_v55 = vrot.slane %v2661_v8, %v9476_v34 }
 0x3b2   :  { %v2682_v7 = vrot.slane %v2654_v14, %v9473_v21  ;;  %v2685_v26 = vcombine.high %v2675_v47, %v2675_v47  ;;  %v2684_v16 = vcombine.high %v2668_v35, %v2668_v35  ;;  %v2694_v28 = vrot.slane %v2675_v47, %v9476_v34 }
 0x3b3   :  { %v2698_v54 = vrot.slane %v2683_v24, %v9476_v34  ;;  %v2706_v10 = vrot.slane %v2668_v35, %v9476_v34  ;;  %v3033_v45 = vmul.f32 %v2690_v55, %v9480_v0  ;;  %v3034_v62 = vmul.f32 %v2690_v55, %v9481_v27  ;;  %v9532_v35 = vld [vmem:[#allocation87_spill] sm:$0xff] }
 0x3b4   :  { %v2686_v36 = vcombine.high %v2682_v7, %v2682_v7  ;;  %v2702_v20 = vrot.slane %v2685_v26, %v9476_v34  ;;  %v2710_v32 = vrot.slane %v2682_v7, %v9476_v34  ;;  %v8016_v40 = vrot.slane %v2684_v16, %v9476_v34  ;;  %v9533_v7 = vld [vmem:[#allocation88_spill] sm:$0xff]  ;;  %v9534_v26 = vld [vmem:[#allocation130_spill] sm:$0xff] }
 0x3b5   :  { %v3035_v56 = vmul.f32 %v2690_v55, %v9483_v30  ;;  %v3036_v3 = vmul.f32 %v2690_v55, %v9499_v25  ;;  %v3037_v23 = vmul.f32 %v2694_v28, %v9478_v57  ;;  %v3038_v31 = vmul.f32 %v2694_v28, %v9479_v6 }
 0x3b6   :  { %v8022_v19 = vrot.slane %v2686_v36, %v9476_v34  ;;  %v3039_v58 = vmul.f32 %v2694_v28, %v9482_v37  ;;  %v3040_v38 = vmul.f32 %v2694_v28, %v9495_v18  ;;  %v3041_v13 = vmul.f32 %v2698_v54, %v9526_v1  ;;  %v9535_v28 = vld [vmem:[#allocation95_spill] sm:$0xff] }
 0x3b7   :  { %v3042_v51 = vmul.f32 %v2698_v54, %v9527_v43  ;;  %v3043_v48 = vmul.f32 %v2698_v54, %v9528_v49  ;;  %v3044_v39 = vmul.f32 %v2698_v54, %v9500_v22  ;;  %v3045_v12 = vmul.f32 %v2702_v20, %v9529_v46  ;;  %v9537_v46 = vld [vmem:[#allocation131_spill] sm:$0xff]  ;;  %v9538_v22 = vld [vmem:[#allocation125_spill] sm:$0xff]  ;;  %v9540_v49 = vld [vmem:[#allocation100_spill] sm:$0xff] }
 0x3b8   :  { %v3046_v4 = vmul.f32 %v2702_v20, %v9530_v33  ;;  %v3047_v8 = vmul.f32 %v2702_v20, %v9531_v17  ;;  %v3048_v14 = vmul.f32 %v2702_v20, %v9505_v9  ;;  %v3049_v47 = vmul.f32 %v2706_v10, %v9532_v35  ;;  %v9539_v9 = vld [vmem:[#allocation99_spill] sm:$0xff] }
 0x3b9   :  { %v3050_v24 = vmul.f32 %v2706_v10, %v9533_v7  ;;  %v3051_v55 = vmul.f32 %v2706_v10, %v9534_v26  ;;  %v3052_v16 = vmul.f32 %v2706_v10, %v9506_v2  ;;  %v3053_v36 = vmul.f32 %v2710_v32, %v9535_v28 }
 0x3ba   :  { %v3054_v50 = vmul.f32 %v2710_v32, %v9536_v53  ;;  %v3065_v54 = vsel %vm936_vm0, %v3033_v45, 0.0  ;;  %v3066_v33 = vsel %vm936_vm0, %v3037_v23, 0.0  ;;  %v3055_v17 = vmul.f32 %v2710_v32, %v9537_v46  ;;  %v9541_v45 = vld [vmem:[#allocation90_spill] sm:$0xff] }
 0x3bb   :  { %v3056_v20 = vmul.f32 %v2710_v32, %v9538_v22  ;;  %v3057_v35 = vmul.f32 %v8016_v40, %v9539_v9  ;;  %v3067_v7 = vadd.f32 %v3066_v33, %v3065_v54  ;;  %v3058_v26 = vmul.f32 %v8016_v40, %v9540_v49 }
 0x3bc   :  { %v3068_v10 = vsel %vm936_vm0, %v3041_v13, 0.0  ;;  %v3080_v28 = vsel %vm936_vm0, %v3034_v62, 0.0  ;;  %v3081_v53 = vsel %vm936_vm0, %v3038_v31, 0.0  ;;  %v3059_v23 = vmul.f32 %v8016_v40, %v9541_v45 }
 0x3bd   :  { %v3061_v46 = vmul.f32 %v8022_v19, %v9502_v63  ;;  %v3069_v32 = vadd.f32 %v3068_v10, %v3067_v7  ;;  %v3082_v22 = vadd.f32 %v3081_v53, %v3080_v28  ;;  %v3070_v9 = vsel %vm936_vm0, %v3045_v12, 0.0 }
 0x3be   :  { %v3083_v33 = vsel %vm936_vm0, %v3042_v51, 0.0  ;;  %v3095_v54 = vsel %vm936_vm0, %v3035_v56, 0.0  ;;  %v3096_v13 = vsel %vm936_vm0, %v3039_v58, 0.0  ;;  %v3062_v62 = vmul.f32 %v8022_v19, %v9503_v11 }
 0x3bf   :  { %v3071_v31 = vadd.f32 %v3070_v9, %v3069_v32  ;;  %v3084_v49 = vadd.f32 %v3083_v33, %v3082_v22  ;;  %v3097_v2 = vadd.f32 %v3096_v13, %v3095_v54  ;;  %v3063_v45 = vmul.f32 %v8022_v19, %v9504_v61 }
 0x3c0   :  { %v3072_v7 = vsel %vm936_vm0, %v3049_v47, 0.0  ;;  %v3085_v28 = vsel %vm936_vm0, %v3046_v4, 0.0  ;;  %v3098_v12 = vsel %vm936_vm0, %v3043_v48, 0.0  ;;  %v3074_v56 = vsel %vm936_vm0, %v3053_v36, 0.0 }
 0x3c1   :  { %v3073_v51 = vadd.f32 %v3072_v7, %v3071_v31  ;;  %v3086_v53 = vadd.f32 %v3085_v28, %v3084_v49  ;;  %v3099_v58 = vadd.f32 %v3098_v12, %v3097_v2  ;;  %v3087_v10 = vsel %vm936_vm0, %v3050_v24, 0.0 }
 0x3c2   :  { %v3100_v9 = vsel %vm936_vm0, %v3047_v8, 0.0  ;;  %v3110_v22 = vsel %vm936_vm0, %v3036_v3, 0.0  ;;  %v3111_v32 = vsel %vm936_vm0, %v3040_v38, 0.0  ;;  %v3076_v4 = vsel %vm936_vm0, %v3057_v35, 0.0 }
 0x3c3   :  { %v3075_v33 = vadd.f32 %v3074_v56, %v3073_v51  ;;  %v3088_v54 = vadd.f32 %v3087_v10, %v3086_v53  ;;  %v3101_v47 = vadd.f32 %v3100_v9, %v3099_v58  ;;  %v3112_v13 = vadd.f32 %v3111_v32, %v3110_v22 }
 0x3c4   :  { %v3089_v48 = vsel %vm936_vm0, %v3054_v50, 0.0  ;;  %v3102_v36 = vsel %vm936_vm0, %v3051_v55, 0.0  ;;  %v3113_v2 = vsel %vm936_vm0, %v3044_v39, 0.0  ;;  %v3078_v3 = vsel %vm936_vm0, %v3061_v46, 0.0 }
 0x3c5   :  { %v3077_v49 = vadd.f32 %v3076_v4, %v3075_v33  ;;  %v3090_v24 = vadd.f32 %v3089_v48, %v3088_v54  ;;  %v3103_v31 = vadd.f32 %v3102_v36, %v3101_v47  ;;  %v3114_v8 = vadd.f32 %v3113_v2, %v3112_v13  ;;  %v9543_v4 = vld [vmem:[#allocation57_spill] sm:$0xff] }
 0x3c6   :  { %v3091_v38 = vsel %vm936_vm0, %v3058_v26, 0.0  ;;  %v3104_v7 = vsel %vm936_vm0, %v3055_v17, 0.0  ;;  %v3115_v28 = vsel %vm936_vm0, %v3048_v14, 0.0  ;;  %v3060_v55 = vmul.f32 %v8016_v40, %v9514_v59  ;;  %v9542_v14 = vld [vmem:[#allocation51_spill] sm:$0xff] }
 0x3c7   :  { %v3079_v12 = vadd.f32 %v3078_v3, %v3077_v49  ;;  %v3092_v35 = vadd.f32 %v3091_v38, %v3090_v24  ;;  %v3105_v51 = vadd.f32 %v3104_v7, %v3103_v31  ;;  %v3116_v50 = vadd.f32 %v3115_v28, %v3114_v8 }
 0x3c8   :  { %v3093_v39 = vsel %vm936_vm0, %v3062_v62, 0.0  ;;  %v3106_v56 = vsel %vm936_vm0, %v3059_v23, 0.0  ;;  %v3117_v53 = vsel %vm936_vm0, %v3052_v16, 0.0  ;;  %v3031_v10 = vadd.f32 %v9542_v14, %v9521_v29 }
 0x3c9   :  { %v3094_v46 = vadd.f32 %v3093_v39, %v3092_v35  ;;  %v3107_v58 = vadd.f32 %v3106_v56, %v3105_v51  ;;  %v3118_v26 = vadd.f32 %v3117_v53, %v3116_v50  ;;  %v3125_v17 = vadd.f32 %v3079_v12, %v8003_v60 }
 0x3ca   :  { %v3064_v9 = vmul.f32 %v8022_v19, %v9515_v15  ;;  %v3108_v22 = vsel %vm936_vm0, %v3063_v45, 0.0  ;;  %v3119_v40 = vsel %vm936_vm0, %v3056_v20, 0.0  ;;  %v3121_v33 = vsel %vm936_vm0, %v3060_v55, 0.0 }
 0x3cb   :  { %v3109_v62 = vadd.f32 %v3108_v22, %v3107_v58  ;;  %v3120_v32 = vadd.f32 %v3119_v40, %v3118_v26  ;;  %v3126_v23 = vadd.f32 %v3094_v46, %v8007_v42  ;;  %v4781_v16 = vmul.f32 -1.442695, %v3125_v17 }
 0x3cc   :  { %v3123_v13 = vsel %vm936_vm0, %v3064_v9, 0.0  ;;  %v3032_v19 = vadd.f32 %v9543_v4, %v9516_v44 }
 0x3cd   :  { %v3122_v54 = vadd.f32 %v3121_v33, %v3120_v32  ;;  %v3127_v47 = vadd.f32 %v3109_v62, %v3031_v10  ;;  %5002 = vpow2.f32 %v4781_v16  ;;  %v4782_v60 = vmul.f32 -1.442695, %v3126_v23  ;;  %v9544_v32 = vld [vmem:[#allocation137_spill] sm:$0xff] }
 0x3ce   :  { %v8111_v23 = vadd.f32 %v9544_v32, %v9507_v5  ;;  %v9545_v16 = vld [vmem:[#allocation121_spill] sm:$0xff]  ;;  %v9557_v32 = vld [vmem:[#allocation96_spill] sm:$0xff]  ;;  %v9558_v5 = vld [vmem:[#allocation131_spill] sm:$0xff] }
 0x3cf   :  { %v3124_v48 = vadd.f32 %v3123_v13, %v3122_v54  ;;  %5004 = vpow2.f32 %v4782_v60  ;;  %v4783_v20 = vmul.f32 -1.442695, %v3127_v47  ;;  %v8115_v33 = vadd.f32 %v9545_v16, %v9509_v41 }
 0x3d1   :  { %v3128_v45 = vadd.f32 %v3124_v48, %v3032_v19  ;;  %5006 = vpow2.f32 %v4783_v20 }
 0x3d3   :  { %5008 = vtanh.f32 %v3128_v45 }
 0x3d7   :  { %v5003_v36 = vpop.eup %5002 }
 0x3d8   :  { %v3138_v2 = vadd.f32 1.0, %v5003_v36 }
 0x3d9   :  { %v5005_v42 = vpop.eup %5004 }
 0x3da   :  { %v3139_v49 = vadd.f32 1.0, %v5005_v42  ;;  %5010 = vrcp.f32 %v3138_v2 }
 0x3db   :  { %v5007_v24 = vpop.eup %5006 }
 0x3dc   :  { %5012 = vrcp.f32 %v3139_v49  ;;  %v3140_v7 = vadd.f32 1.0, %v5007_v24 }
 0x3dd   :  { %v5009_v31 = vpop.eup %5008 }
 0x3de   :  { %5014 = vrcp.f32 %v3140_v7  ;;  %v9547_v7 = vld [vmem:[#allocation114_spill] sm:$0xff] }
 0x3e4   :  { %v5011_v8 = vpop.eup %5010 }
 0x3e5   :  { %v3149_v3 = vmul.f32 %v5011_v8, %v5009_v31 }
 0x3e6   :  { %v5013_v38 = vpop.eup %5012 }
 0x3e7   :  { %v3148_v28 = vmul.f32 %v5013_v38, %v7990_v52 }
 0x3e8   :  { %v5015_v35 = vpop.eup %5014 }
 0x3e9   :  { %v8098_v12 = vadd.f32 %v3149_v3, %v3148_v28  ;;  %v9546_v3 = vld [vmem:[#allocation113_spill] sm:$0xff] }
 0x3eb   :  { %5016 = vtanh.f32 %v8098_v12 }
 0x3f5   :  { %v5017_v51 = vpop.eup %5016 }
 0x3f6   :  { %v3152_v50 = vmul.f32 %v5017_v51, %v5015_v35  ;;  %v9548_v35 = vld [vmem:[#allocation83_spill] sm:$0xff] }
 0x3f8   :  { %v3154_v55 = vcombine.high %v3152_v50, %v3152_v50  ;;  %v3161_v39 = vrot.slane %v3152_v50, %v9473_v21  ;;  %v9549_v50 = vld [vmem:[#allocation84_spill] sm:$0xff] }
 0x3fa   :  { %v3168_v56 = vrot.slane %v3154_v55, %v9473_v21  ;;  %v3169_v53 = vcombine.high %v3161_v39, %v3161_v39  ;;  %v3177_v46 = vrot.slane %v3161_v39, %v9473_v21  ;;  %v9550_v39 = vld [vmem:[#allocation117_spill] sm:$0xff] }
 0x3fc   :  { %v3170_v58 = vcombine.high %v3168_v56, %v3168_v56  ;;  %v3184_v26 = vrot.slane %v3168_v56, %v9473_v21  ;;  %v3191_v52 = vrot.slane %v3169_v53, %v9473_v21  ;;  %v3199_v14 = vcombine.high %v3177_v46, %v3177_v46  ;;  %v9551_v53 = vld [vmem:[#allocation118_spill] sm:$0xff] }
 0x3fd   :  { %v3206_v9 = vrot.slane %v3177_v46, %v9476_v34 }
 0x3fe   :  { %v3198_v17 = vrot.slane %v3170_v58, %v9473_v21  ;;  %v3201_v10 = vcombine.high %v3191_v52, %v3191_v52  ;;  %v3200_v22 = vcombine.high %v3184_v26, %v3184_v26  ;;  %v3210_v40 = vrot.slane %v3191_v52, %v9476_v34  ;;  %v9552_v58 = vld [vmem:[#allocation87_spill] sm:$0xff]  ;;  %v9553_v52 = vld [vmem:[#allocation88_spill] sm:$0xff] }
 0x3ff   :  { %v3214_v54 = vrot.slane %v3199_v14, %v9476_v34  ;;  %v3222_v47 = vrot.slane %v3184_v26, %v9476_v34  ;;  %v3549_v4 = vmul.f32 %v3206_v9, %v9480_v0  ;;  %v3550_v19 = vmul.f32 %v3206_v9, %v9481_v27  ;;  %v9554_v14 = vld [vmem:[#allocation130_spill] sm:$0xff] }
 0x400   :  { %v3202_v62 = vcombine.high %v3198_v17, %v3198_v17  ;;  %v3218_v60 = vrot.slane %v3201_v10, %v9476_v34  ;;  %v3226_v13 = vrot.slane %v3198_v17, %v9476_v34  ;;  %v8124_v48 = vrot.slane %v3200_v22, %v9476_v34 }
 0x401   :  { %v3551_v45 = vmul.f32 %v3206_v9, %v9483_v30  ;;  %v3552_v20 = vmul.f32 %v3206_v9, %v9499_v25  ;;  %v3553_v36 = vmul.f32 %v3210_v40, %v9478_v57  ;;  %v3554_v42 = vmul.f32 %v3210_v40, %v9479_v6  ;;  %v9555_v9 = vld [vmem:[#allocation129_spill] sm:$0xff]  ;;  %v9561_v6 = vld [vmem:[#allocation100_spill] sm:$0xff] }
 0x402   :  { %v8130_v2 = vrot.slane %v3202_v62, %v9476_v34  ;;  %v3555_v49 = vmul.f32 %v3210_v40, %v9482_v37  ;;  %v3556_v24 = vmul.f32 %v3210_v40, %v9495_v18  ;;  %v3557_v31 = vmul.f32 %v3214_v54, %v9526_v1  ;;  %v9556_v40 = vld [vmem:[#allocation95_spill] sm:$0xff] }
 0x403   :  { %v3558_v8 = vmul.f32 %v3214_v54, %v9527_v43  ;;  %v3559_v38 = vmul.f32 %v3214_v54, %v9546_v3  ;;  %v3560_v28 = vmul.f32 %v3214_v54, %v9547_v7  ;;  %v3561_v51 = vmul.f32 %v3218_v60, %v9548_v35  ;;  %v9559_v43 = vld [vmem:[#allocation125_spill] sm:$0xff]  ;;  %v9560_v35 = vld [vmem:[#allocation99_spill] sm:$0xff] }
 0x404   :  { %v3562_v55 = vmul.f32 %v3218_v60, %v9549_v50  ;;  %v3563_v56 = vmul.f32 %v3218_v60, %v9550_v39  ;;  %v3564_v46 = vmul.f32 %v3218_v60, %v9551_v53  ;;  %v3565_v26 = vmul.f32 %v3222_v47, %v9552_v58 }
 0x405   :  { %v3566_v17 = vmul.f32 %v3222_v47, %v9553_v52  ;;  %v3567_v10 = vmul.f32 %v3222_v47, %v9554_v14  ;;  %v3568_v22 = vmul.f32 %v3222_v47, %v9555_v9  ;;  %v3569_v62 = vmul.f32 %v3226_v13, %v9556_v40 }
 0x406   :  { %v3570_v16 = vmul.f32 %v3226_v13, %v9557_v32  ;;  %v3581_v54 = vsel %vm936_vm0, %v3549_v4, 0.0  ;;  %v3582_v41 = vsel %vm936_vm0, %v3553_v36, 0.0  ;;  %v3571_v50 = vmul.f32 %v3226_v13, %v9558_v5  ;;  %v9562_v4 = vld [vmem:[#allocation90_spill] sm:$0xff] }
 0x407   :  { %v3572_v60 = vmul.f32 %v3226_v13, %v9559_v43  ;;  %v3573_v58 = vmul.f32 %v8124_v48, %v9560_v35  ;;  %v3583_v52 = vadd.f32 %v3582_v41, %v3581_v54  ;;  %v3574_v27 = vmul.f32 %v8124_v48, %v9561_v6 }
 0x408   :  { %v3584_v47 = vsel %vm936_vm0, %v3557_v31, 0.0  ;;  %v3596_v1 = vsel %vm936_vm0, %v3550_v19, 0.0  ;;  %v3597_v32 = vsel %vm936_vm0, %v3554_v42, 0.0  ;;  %v3575_v36 = vmul.f32 %v8124_v48, %v9562_v4 }
 0x409   :  { %v3577_v57 = vmul.f32 %v8130_v2, %v9502_v63  ;;  %v3585_v13 = vadd.f32 %v3584_v47, %v3583_v52  ;;  %v3598_v0 = vadd.f32 %v3597_v32, %v3596_v1  ;;  %v3586_v35 = vsel %vm936_vm0, %v3561_v51, 0.0 }
 0x40a   :  { %v3599_v41 = vsel %vm936_vm0, %v3558_v8, 0.0  ;;  %v3611_v54 = vsel %vm936_vm0, %v3551_v45, 0.0  ;;  %v3612_v31 = vsel %vm936_vm0, %v3555_v49, 0.0  ;;  %v3578_v19 = vmul.f32 %v8130_v2, %v9503_v11 }
 0x40b   :  { %v3587_v42 = vadd.f32 %v3586_v35, %v3585_v13  ;;  %v3600_v6 = vadd.f32 %v3599_v41, %v3598_v0  ;;  %v3613_v43 = vadd.f32 %v3612_v31, %v3611_v54  ;;  %v3579_v4 = vmul.f32 %v8130_v2, %v9504_v61 }
 0x40c   :  { %v3588_v52 = vsel %vm936_vm0, %v3565_v26, 0.0  ;;  %v3601_v1 = vsel %vm936_vm0, %v3562_v55, 0.0  ;;  %v3614_v51 = vsel %vm936_vm0, %v3559_v38, 0.0  ;;  %v3590_v45 = vsel %vm936_vm0, %v3569_v62, 0.0 }
 0x40d   :  { %v3589_v8 = vadd.f32 %v3588_v52, %v3587_v42  ;;  %v3602_v32 = vadd.f32 %v3601_v1, %v3600_v6  ;;  %v3615_v49 = vadd.f32 %v3614_v51, %v3613_v43  ;;  %v3603_v47 = vsel %vm936_vm0, %v3566_v17, 0.0 }
 0x40e   :  { %v3616_v35 = vsel %vm936_vm0, %v3563_v56, 0.0  ;;  %v3626_v0 = vsel %vm936_vm0, %v3552_v20, 0.0  ;;  %v3627_v13 = vsel %vm936_vm0, %v3556_v24, 0.0  ;;  %v3592_v55 = vsel %vm936_vm0, %v3573_v58, 0.0 }
 0x40f   :  { %v3591_v41 = vadd.f32 %v3590_v45, %v3589_v8  ;;  %v3604_v54 = vadd.f32 %v3603_v47, %v3602_v32  ;;  %v3617_v26 = vadd.f32 %v3616_v35, %v3615_v49  ;;  %v3628_v31 = vadd.f32 %v3627_v13, %v3626_v0 }
 0x410   :  { %v3605_v38 = vsel %vm936_vm0, %v3570_v16, 0.0  ;;  %v3618_v62 = vsel %vm936_vm0, %v3567_v10, 0.0  ;;  %v3629_v6 = vsel %vm936_vm0, %v3560_v28, 0.0  ;;  %v3594_v20 = vsel %vm936_vm0, %v3577_v57, 0.0 }
 0x411   :  { %v3593_v43 = vadd.f32 %v3592_v55, %v3591_v41  ;;  %v3606_v17 = vadd.f32 %v3605_v38, %v3604_v54  ;;  %v3619_v42 = vadd.f32 %v3618_v62, %v3617_v26  ;;  %v3630_v56 = vadd.f32 %v3629_v6, %v3628_v31  ;;  %v9564_v55 = vld [vmem:[#allocation122_spill] sm:$0xff] }
 0x412   :  { %v3607_v24 = vsel %vm936_vm0, %v3574_v27, 0.0  ;;  %v3620_v52 = vsel %vm936_vm0, %v3571_v50, 0.0  ;;  %v3631_v1 = vsel %vm936_vm0, %v3564_v46, 0.0  ;;  %v3576_v10 = vmul.f32 %v8124_v48, %v9514_v59  ;;  %v9563_v46 = vld [vmem:[#allocation136_spill] sm:$0xff] }
 0x413   :  { %v3595_v51 = vadd.f32 %v3594_v20, %v3593_v43  ;;  %v3608_v58 = vadd.f32 %v3607_v24, %v3606_v17  ;;  %v3621_v8 = vadd.f32 %v3620_v52, %v3619_v42  ;;  %v3632_v16 = vadd.f32 %v3631_v1, %v3630_v56 }
 0x414   :  { %v3609_v28 = vsel %vm936_vm0, %v3578_v19, 0.0  ;;  %v3622_v45 = vsel %vm936_vm0, %v3575_v36, 0.0  ;;  %v3633_v32 = vsel %vm936_vm0, %v3568_v22, 0.0  ;;  %v3547_v47 = vadd.f32 %v9563_v46, %v9521_v29 }
 0x415   :  { %v3610_v57 = vadd.f32 %v3609_v28, %v3608_v58  ;;  %v3623_v49 = vadd.f32 %v3622_v45, %v3621_v8  ;;  %v3634_v27 = vadd.f32 %v3633_v32, %v3632_v16  ;;  %v3641_v50 = vadd.f32 %v3595_v51, %v8111_v23 }
 0x416   :  { %v3580_v35 = vmul.f32 %v8130_v2, %v9515_v15  ;;  %v3624_v0 = vsel %vm936_vm0, %v3579_v4, 0.0  ;;  %v3635_v48 = vsel %vm936_vm0, %v3572_v60, 0.0  ;;  %v3637_v41 = vsel %vm936_vm0, %v3576_v10, 0.0 }
 0x417   :  { %v3625_v19 = vadd.f32 %v3624_v0, %v3623_v49  ;;  %v3636_v13 = vadd.f32 %v3635_v48, %v3634_v27  ;;  %v3642_v36 = vadd.f32 %v3610_v57, %v8115_v33  ;;  %v4787_v22 = vmul.f32 -1.442695, %v3641_v50 }
 0x418   :  { %v3639_v31 = vsel %vm936_vm0, %v3580_v35, 0.0  ;;  %v3548_v2 = vadd.f32 %v9564_v55, %v9516_v44 }
 0x419   :  { %v3638_v54 = vadd.f32 %v3637_v41, %v3636_v13  ;;  %v3643_v26 = vadd.f32 %v3625_v19, %v3547_v47  ;;  %5018 = vpow2.f32 %v4787_v22  ;;  %v4788_v23 = vmul.f32 -1.442695, %v3642_v36 }
 0x41b   :  { %v3640_v38 = vadd.f32 %v3639_v31, %v3638_v54  ;;  %5020 = vpow2.f32 %v4788_v23  ;;  %v4789_v60 = vmul.f32 -1.442695, %v3643_v26  ;;  %v9565_v26 = vld [vmem:[#allocation30_spill] sm:$0xff] }
 0x41c   :  { %v8228_v23 = vadd.f32 %v9565_v26, %v9521_v29  ;;  %v9576_v29 = vld [vmem:[#allocation87_spill] sm:$0xff] }
 0x41d   :  { %v3644_v4 = vadd.f32 %v3640_v38, %v3548_v2  ;;  %5022 = vpow2.f32 %v4789_v60 }
 0x41f   :  { %5024 = vtanh.f32 %v3644_v4 }
 0x423   :  { %v5019_v62 = vpop.eup %5018 }
 0x424   :  { %v3654_v6 = vadd.f32 1.0, %v5019_v62  ;;  %v9566_v62 = vld [vmem:[#allocation52_spill] sm:$0xff] }
 0x425   :  { %v5021_v33 = vpop.eup %5020 }
 0x426   :  { %v3655_v43 = vadd.f32 1.0, %v5021_v33  ;;  %5026 = vrcp.f32 %v3654_v6  ;;  %v8244_v6 = vadd.f32 %v9566_v62, %v9516_v44 }
 0x427   :  { %v5023_v17 = vpop.eup %5022 }
 0x428   :  { %5028 = vrcp.f32 %v3655_v43  ;;  %v3656_v52 = vadd.f32 1.0, %v5023_v17 }
 0x429   :  { %v5025_v42 = vpop.eup %5024 }
 0x42a   :  { %5030 = vrcp.f32 %v3656_v52 }
 0x430   :  { %v5027_v56 = vpop.eup %5026 }
 0x431   :  { %v3665_v20 = vmul.f32 %v5027_v56, %v5025_v42 }
 0x432   :  { %v5029_v24 = vpop.eup %5028 }
 0x433   :  { %v3664_v1 = vmul.f32 %v5029_v24, %v8098_v12 }
 0x434   :  { %v5031_v58 = vpop.eup %5030 }
 0x435   :  { %v8206_v51 = vadd.f32 %v3665_v20, %v3664_v1 }
 0x437   :  { %5032 = vtanh.f32 %v8206_v51 }
 0x441   :  { %v5033_v8 = vpop.eup %5032 }
 0x442   :  { %v3668_v16 = vmul.f32 %v5033_v8, %v5031_v58  ;;  %v9567_v58 = vld [vmem:[#allocation90_spill] sm:$0xff] }
 0x444   :  { %v3670_v10 = vcombine.high %v3668_v16, %v3668_v16  ;;  %v3677_v28 = vrot.slane %v3668_v16, %v9473_v21 }
 0x446   :  { %v3684_v45 = vrot.slane %v3670_v10, %v9473_v21  ;;  %v3685_v32 = vcombine.high %v3677_v28, %v3677_v28  ;;  %v3693_v57 = vrot.slane %v3677_v28, %v9473_v21 }
 0x448   :  { %v3686_v49 = vcombine.high %v3684_v45, %v3684_v45  ;;  %v3700_v27 = vrot.slane %v3684_v45, %v9473_v21  ;;  %v3707_v12 = vrot.slane %v3685_v32, %v9473_v21  ;;  %v3715_v50 = vcombine.high %v3693_v57, %v3693_v57 }
 0x449   :  { %v3722_v35 = vrot.slane %v3693_v57, %v9476_v34  ;;  %v9568_v57 = vld [vmem:[#allocation125_spill] sm:$0xff] }
 0x44a   :  { %v3714_v46 = vrot.slane %v3686_v49, %v9473_v21  ;;  %v3717_v47 = vcombine.high %v3707_v12, %v3707_v12  ;;  %v3726_v0 = vrot.slane %v3707_v12, %v9476_v34  ;;  %v3716_v48 = vcombine.high %v3700_v27, %v3700_v27 }
 0x44b   :  { %v3730_v13 = vrot.slane %v3715_v50, %v9476_v34  ;;  %v8222_v22 = vrot.slane %v3700_v27, %v9476_v34  ;;  %v4067_v41 = vmul.f32 %v3722_v35, %v9483_v30  ;;  %v4068_v38 = vmul.f32 %v3722_v35, %v9499_v25 }
 0x44c   :  { %v3718_v19 = vcombine.high %v3714_v46, %v3714_v46  ;;  %v8219_v36 = vrot.slane %v3717_v47, %v9476_v34  ;;  %v4071_v54 = vmul.f32 %v3726_v0, %v9482_v37  ;;  %v8231_v31 = vrot.slane %v3714_v46, %v9476_v34 }
 0x44d   :  { %v8234_v55 = vrot.slane %v3716_v48, %v9476_v34  ;;  %v4072_v4 = vmul.f32 %v3726_v0, %v9495_v18  ;;  %v4075_v60 = vmul.f32 %v3730_v13, %v9546_v3  ;;  %v4076_v33 = vmul.f32 %v3730_v13, %v9547_v7 }
 0x44e   :  { %v8237_v2 = vrot.slane %v3718_v19, %v9476_v34  ;;  %v4079_v43 = vmul.f32 %v8219_v36, %v9550_v39  ;;  %v4080_v17 = vmul.f32 %v8219_v36, %v9551_v53  ;;  %v4083_v42 = vmul.f32 %v8222_v22, %v9554_v14 }
 0x44f   :  { %v4084_v56 = vmul.f32 %v8222_v22, %v9555_v9  ;;  %v4127_v20 = vsel %vm936_vm0, %v4067_v41, 0.0  ;;  %v4128_v24 = vsel %vm936_vm0, %v4071_v54, 0.0  ;;  %v8259_v52 = vmul.f32 %v8231_v31, %v9556_v40 }
 0x450   :  { %v4087_v1 = vmul.f32 %v8231_v31, %v9558_v5  ;;  %v4091_v8 = vmul.f32 %v8234_v55, %v9567_v58  ;;  %v4129_v16 = vadd.f32 %v4128_v24, %v4127_v20  ;;  %v4095_v10 = vmul.f32 %v8237_v2, %v9504_v61  ;;  %v9570_v24 = vld [vmem:[#allocation75_spill] sm:$0xff] }
 0x451   :  { %v4130_v28 = vsel %vm936_vm0, %v4075_v60, 0.0  ;;  %v4142_v45 = vsel %vm936_vm0, %v4068_v38, 0.0  ;;  %v4143_v32 = vsel %vm936_vm0, %v4072_v4, 0.0  ;;  %v4088_v49 = vmul.f32 %v8231_v31, %v9568_v57  ;;  %v9569_v38 = vld [vmem:[#allocation72_spill] sm:$0xff] }
 0x452   :  { %v4092_v27 = vmul.f32 %v8234_v55, %v9514_v59  ;;  %v4131_v12 = vadd.f32 %v4130_v28, %v4129_v16  ;;  %v4144_v50 = vadd.f32 %v4143_v32, %v4142_v45  ;;  %v4096_v46 = vmul.f32 %v8237_v2, %v9515_v15  ;;  %v9571_v45 = vld [vmem:[#allocation79_spill] sm:$0xff] }
 0x453   :  { %v4132_v47 = vsel %vm936_vm0, %v4079_v43, 0.0  ;;  %v4134_v48 = vsel %vm936_vm0, %v4083_v42, 0.0  ;;  %v4145_v19 = vsel %vm936_vm0, %v4076_v33, 0.0  ;;  %v4136_v54 = vsel %vm936_vm0, %v4087_v1, 0.0  ;;  %v9572_v1 = vld [vmem:[#allocation73_spill] sm:$0xff] }
 0x454   :  { %v4133_v41 = vadd.f32 %v4132_v47, %v4131_v12  ;;  %v4146_v26 = vadd.f32 %v4145_v19, %v4144_v50  ;;  %v4065_v4 = vmul.f32 %v3722_v35, %v9569_v38  ;;  %v4138_v60 = vsel %vm936_vm0, %v4091_v8, 0.0  ;;  %v9573_v50 = vld [vmem:[#allocation76_spill] sm:$0xff]  ;;  %v9574_v19 = vld [vmem:[#allocation83_spill] sm:$0xff] }
 0x455   :  { %v4140_v62 = vsel %vm936_vm0, %v4095_v10, 0.0  ;;  %v4147_v20 = vsel %vm936_vm0, %v4080_v17, 0.0  ;;  %v4069_v16 = vmul.f32 %v3726_v0, %v9570_v24  ;;  %v4149_v42 = vsel %vm936_vm0, %v4084_v56, 0.0 }
 0x456   :  { %v4135_v28 = vadd.f32 %v4134_v48, %v4133_v41  ;;  %v4148_v43 = vadd.f32 %v4147_v20, %v4146_v26  ;;  %v4073_v33 = vmul.f32 %v3730_v13, %v9571_v45  ;;  %v4151_v32 = vsel %vm936_vm0, %v4088_v49, 0.0  ;;  %v9575_v26 = vld [vmem:[#allocation80_spill] sm:$0xff] }
 0x457   :  { %v4066_v12 = vmul.f32 %v3722_v35, %v9572_v1  ;;  %v4070_v47 = vmul.f32 %v3726_v0, %v9573_v50  ;;  %v4077_v8 = vmul.f32 %v8219_v36, %v9574_v19  ;;  %v4097_v17 = vsel %vm936_vm0, %v4065_v4, 0.0 }
 0x458   :  { %v4137_v10 = vadd.f32 %v4136_v54, %v4135_v28  ;;  %v4150_v44 = vadd.f32 %v4149_v42, %v4148_v43  ;;  %v4098_v48 = vsel %vm936_vm0, %v4069_v16, 0.0  ;;  %v4153_v41 = vsel %vm936_vm0, %v4092_v27, 0.0  ;;  %v9577_v54 = vld [vmem:[#allocation84_spill] sm:$0xff] }
 0x459   :  { %v4155_v56 = vsel %vm936_vm0, %v4096_v46, 0.0  ;;  %v4074_v20 = vmul.f32 %v3730_v13, %v9575_v26  ;;  %v4099_v49 = vadd.f32 %v4098_v48, %v4097_v17  ;;  %v4081_v0 = vmul.f32 %v8222_v22, %v9576_v29 }
 0x45a   :  { %v4139_v15 = vadd.f32 %v4138_v60, %v4137_v10  ;;  %v4152_v35 = vadd.f32 %v4151_v32, %v4150_v44  ;;  %v4100_v59 = vsel %vm936_vm0, %v4073_v33, 0.0  ;;  %v4078_v28 = vmul.f32 %v8219_v36, %v9577_v54  ;;  %v9578_v60 = vld [vmem:[#allocation88_spill] sm:$0xff]  ;;  %v9579_v32 = vld [vmem:[#allocation99_spill] sm:$0xff] }
 0x45b   :  { %v4101_v4 = vadd.f32 %v4100_v59, %v4099_v49  ;;  %v4112_v16 = vsel %vm936_vm0, %v4066_v12, 0.0  ;;  %v4113_v27 = vsel %vm936_vm0, %v4070_v47, 0.0  ;;  %v4102_v13 = vsel %vm936_vm0, %v4077_v8, 0.0  ;;  %v9581_v49 = vld [vmem:[#allocation100_spill] sm:$0xff] }
 0x45c   :  { %v4141_v43 = vadd.f32 %v4140_v62, %v4139_v15  ;;  %v4154_v46 = vadd.f32 %v4153_v41, %v4152_v35  ;;  %v4114_v42 = vadd.f32 %v4113_v27, %v4112_v16  ;;  %v4082_v44 = vmul.f32 %v8222_v22, %v9578_v60  ;;  %v9580_v15 = vld [vmem:[#allocation96_spill] sm:$0xff] }
 0x45d   :  { %v4089_v10 = vmul.f32 %v8234_v55, %v9579_v32  ;;  %v4103_v33 = vadd.f32 %v4102_v13, %v4101_v4  ;;  %v4115_v17 = vsel %vm936_vm0, %v4074_v20, 0.0  ;;  %v4104_v12 = vsel %vm936_vm0, %v4081_v0, 0.0 }
 0x45e   :  { %v4156_v36 = vadd.f32 %v4155_v56, %v4154_v46  ;;  %v4159_v59 = vadd.f32 %v4141_v43, %v8228_v23  ;;  %v4116_v47 = vadd.f32 %v4115_v17, %v4114_v42  ;;  %v4086_v62 = vmul.f32 %v8231_v31, %v9580_v15  ;;  %v9583_v46 = vld [vmem:[#allocation141_spill] sm:$0xff]  ;;  %v9584_v17 = vld [vmem:[#allocation94_spill] sm:$0xff] }
 0x45f   :  { %v4105_v8 = vadd.f32 %v4104_v12, %v4103_v33  ;;  %v4117_v48 = vsel %vm936_vm0, %v4078_v28, 0.0  ;;  %v4093_v22 = vmul.f32 %v8237_v2, %v9502_v63  ;;  %v4106_v20 = vsel %vm936_vm0, %v8259_v52, 0.0  ;;  %v9582_v52 = vld [vmem:[#allocation93_spill] sm:$0xff] }
 0x460   :  { %v4160_v41 = vadd.f32 %v4156_v36, %v8244_v6  ;;  %v4118_v56 = vadd.f32 %v4117_v48, %v4116_v47  ;;  %v4090_v23 = vmul.f32 %v8234_v55, %v9581_v49  ;;  %v4119_v0 = vsel %vm936_vm0, %v4082_v44, 0.0  ;;  %v9585_v36 = vld [vmem:[#allocation23_spill] sm:$0xff] }
 0x461   :  { %v4107_v35 = vadd.f32 %v4106_v20, %v4105_v8  ;;  %v4108_v31 = vsel %vm936_vm0, %v4089_v10, 0.0  ;;  %v4094_v28 = vmul.f32 %v8237_v2, %v9503_v11  ;;  %v4121_v27 = vsel %vm936_vm0, %v4086_v62, 0.0  ;;  %v9586_v62 = vld [vmem:[#allocation58_spill] sm:$0xff]  ;;  %v9596_v11 = vld [vmem:[#allocation81_spill] sm:$0xff] }
 0x462   :  { %v4120_v4 = vadd.f32 %v4119_v0, %v4118_v56  ;;  %v4110_v6 = vsel %vm936_vm0, %v4093_v22, 0.0  ;;  %v4061_v13 = vadd.f32 %v9583_v46, %v9582_v52  ;;  %v4123_v55 = vsel %vm936_vm0, %v4090_v23, 0.0  ;;  %v9587_v46 = vld [vmem:[#allocation68_spill] sm:$0xff] }
 0x463   :  { %v4109_v16 = vadd.f32 %v4108_v31, %v4107_v35  ;;  %v4125_v44 = vsel %vm936_vm0, %v4094_v28, 0.0  ;;  %v4062_v12 = vadd.f32 %v9585_v36, %v9584_v17  ;;  %v4403_v48 = vrot.slane %v9586_v62, %v9473_v21 }
 0x464   :  { %v4122_v43 = vadd.f32 %v4121_v27, %v4120_v4  ;;  %v4795_v56 = vmul.f32 -1.442695, %v4159_v59  ;;  %v4396_v0 = vcombine.high %v9586_v62, %v9586_v62 }
 0x465   :  { %v4111_v42 = vadd.f32 %v4110_v6, %v4109_v16  ;;  %v4411_v20 = vcombine.high %v4403_v48, %v4403_v48  ;;  %v4419_v35 = vrot.slane %v4403_v48, %v9473_v21 }
 0x466   :  { %v4124_v33 = vadd.f32 %v4123_v55, %v4122_v43  ;;  %v4410_v6 = vrot.slane %v4396_v0, %v9473_v21 }
 0x467   :  { %v4157_v10 = vadd.f32 %v4111_v42, %v4061_v13  ;;  %v4433_v23 = vrot.slane %v4411_v20, %v9473_v21  ;;  %v4441_v27 = vcombine.high %v4419_v35, %v4419_v35  ;;  %v4448_v59 = vrot.slane %v4419_v35, %v9476_v34  ;;  %v9588_v42 = vld [vmem:[#allocation69_spill] sm:$0xff] }
 0x468   :  { %v4126_v2 = vadd.f32 %v4125_v44, %v4124_v33  ;;  %v4426_v44 = vrot.slane %v4410_v6, %v9473_v21 }
 0x469   :  { %v4793_v47 = vmul.f32 -1.442695, %v4157_v10  ;;  %v4452_v28 = vrot.slane %v4433_v23, %v9476_v34  ;;  %v4456_v33 = vrot.slane %v4441_v27, %v9476_v34  ;;  %v9589_v10 = vld [vmem:[#allocation66_spill] sm:$0xff] }
 0x46a   :  { %v4158_v8 = vadd.f32 %v4126_v2, %v4062_v12  ;;  %v4485_v36 = vmul.f32 %v4448_v59, %v9589_v10  ;;  %v9590_v12 = vld [vmem:[#allocation67_spill] sm:$0xff]  ;;  %v4442_v63 = vcombine.high %v4426_v44, %v4426_v44 }
 0x46b   :  { %5034 = vpow2.f32 %v4793_v47  ;;  %v4489_v13 = vmul.f32 %v4452_v28, %v9587_v46  ;;  %v4490_v55 = vmul.f32 %v4452_v28, %v9588_v42  ;;  %v4486_v2 = vmul.f32 %v4448_v59, %v9590_v12  ;;  %v9595_v12 = vld [vmem:[#allocation18_spill] sm:$0xff] }
 0x46c   :  { %v4794_v22 = vmul.f32 -1.442695, %v4158_v8  ;;  %v4412_v8 = vcombine.high %v4410_v6, %v4410_v6  ;;  %v4517_v0 = vsel %vm936_vm0, %v4485_v36, 0.0 }
 0x46d   :  { %v4518_v47 = vsel %vm936_vm0, %v4489_v13, 0.0  ;;  %v4533_v48 = vsel %vm936_vm0, %v4490_v55, 0.0  ;;  %v4532_v46 = vsel %vm936_vm0, %v4486_v2, 0.0  ;;  %v9594_v13 = vld [vmem:[#allocation102_spill] sm:$0xff]  ;;  %v9598_v2 = vld [vmem:[#allocation77_spill] sm:$0xff] }
 0x46e   :  { %5036 = vpow2.f32 %v4794_v22  ;;  %v9591_v22 = vld [vmem:[#allocation70_spill] sm:$0xff]  ;;  %v4519_v6 = vadd.f32 %v4518_v47, %v4517_v0  ;;  %v4492_v42 = vmul.f32 %v4452_v28, %v9594_v13  ;;  %v4534_v55 = vadd.f32 %v4533_v48, %v4532_v46  ;;  %v9601_v13 = vld [vmem:[#allocation105_spill] sm:$0xff] }
 0x46f   :  { %5038 = vpow2.f32 %v4795_v56  ;;  %v4493_v20 = vmul.f32 %v4456_v33, %v9591_v22  ;;  %v4464_v56 = vrot.slane %v4426_v44, %v9476_v34  ;;  %v4440_v10 = vrot.slane %v4412_v8, %v9473_v21  ;;  %v9599_v8 = vld [vmem:[#allocation78_spill] sm:$0xff] }
 0x470   :  { %5040 = vtanh.f32 %v4160_v41  ;;  %v4443_v41 = vcombine.high %v4433_v23, %v4433_v23  ;;  %v9593_v23 = vld [vmem:[#allocation25_spill] sm:$0xff]  ;;  %v4487_v22 = vmul.f32 %v4448_v59, %v9595_v12  ;;  %v4495_v12 = vmul.f32 %v4456_v33, %v9601_v13 }
 0x471   :  { %v4491_v27 = vmul.f32 %v4452_v28, %v9593_v23  ;;  %v4520_v36 = vsel %vm936_vm0, %v4493_v20, 0.0 }
 0x472   :  { %v4521_v0 = vadd.f32 %v4520_v36, %v4519_v6 }
 0x473   :  { %v4548_v28 = vsel %vm936_vm0, %v4491_v27, 0.0 }
 0x475   :  { %v5035_v31 = vpop.eup %5034 }
 0x476   :  { %v4170_v4 = vadd.f32 1.0, %v5035_v31  ;;  %v9592_v31 = vld [vmem:[#allocation71_spill] sm:$0xff] }
 0x478   :  { %v5037_v16 = vpop.eup %5036  ;;  %5042 = vrcp.f32 %v4170_v4  ;;  %v4494_v4 = vmul.f32 %v4456_v33, %v9592_v31  ;;  %v4501_v31 = vmul.f32 %v4464_v56, %v9596_v11  ;;  %v9600_v11 = vld [vmem:[#allocation82_spill] sm:$0xff] }
 0x479   :  { %v4171_v43 = vadd.f32 1.0, %v5037_v16  ;;  %v5039_v62 = vpop.eup %5038  ;;  %v4460_v16 = vrot.slane %v4443_v41, %v9476_v34  ;;  %v9597_v41 = vld [vmem:[#allocation101_spill] sm:$0xff]  ;;  %v4502_v44 = vmul.f32 %v4464_v56, %v9600_v11 }
 0x47a   :  { %v5041_v35 = vpop.eup %5040  ;;  %v4488_v58 = vmul.f32 %v4448_v59, %v9597_v41  ;;  %v4535_v49 = vsel %vm936_vm0, %v4494_v4, 0.0  ;;  %v4172_v48 = vadd.f32 1.0, %v5039_v62  ;;  %v4547_v59 = vsel %vm936_vm0, %v4487_v22, 0.0 }
 0x47b   :  { %5044 = vrcp.f32 %v4171_v43  ;;  %v4497_v47 = vmul.f32 %v4460_v16, %v9598_v2  ;;  %v4498_v46 = vmul.f32 %v4460_v16, %v9599_v8  ;;  %v4549_v41 = vadd.f32 %v4548_v28, %v4547_v59  ;;  %v9602_v2 = vld [vmem:[#allocation106_spill] sm:$0xff]  ;;  %v9604_v8 = vld [vmem:[#allocation112_spill] sm:$0xff] }
 0x47c   :  { %v4562_v4 = vsel %vm936_vm0, %v4488_v58, 0.0  ;;  %v4496_v27 = vmul.f32 %v4456_v33, %v9602_v2  ;;  %5046 = vrcp.f32 %v4172_v48  ;;  %v4550_v58 = vsel %vm936_vm0, %v4495_v12, 0.0 }
 0x47d   :  { %v4522_v6 = vsel %vm936_vm0, %v4497_v47, 0.0  ;;  %v4551_v33 = vadd.f32 %v4550_v58, %v4549_v41  ;;  %v4500_v47 = vmul.f32 %v4460_v16, %v9604_v8  ;;  %v4539_v11 = vsel %vm936_vm0, %v4502_v44, 0.0  ;;  %v9607_v41 = vld [vmem:[#allocation115_spill] sm:$0xff] }
 0x47e   :  { %v4503_v2 = vmul.f32 %v4464_v56, %v9607_v41 }
 0x482   :  { %v5043_v43 = vpop.eup %5042 }
 0x483   :  { %v4181_v61 = vmul.f32 %v5043_v43, %v5041_v35  ;;  %v4563_v35 = vsel %vm936_vm0, %v4492_v42, 0.0  ;;  %v4536_v43 = vadd.f32 %v4535_v49, %v4534_v55  ;;  %v4468_v42 = vrot.slane %v4440_v10, %v9476_v34 }
 0x484   :  { %v4564_v36 = vadd.f32 %v4563_v35, %v4562_v4  ;;  %v4537_v49 = vsel %vm936_vm0, %v4498_v46, 0.0  ;;  %v4444_v55 = vcombine.high %v4440_v10, %v4440_v10  ;;  %v9605_v35 = vld [vmem:[#allocation85_spill] sm:$0xff] }
 0x485   :  { %v5045_v23 = vpop.eup %5044  ;;  %v4538_v22 = vadd.f32 %v4537_v49, %v4536_v43  ;;  %v4505_v48 = vmul.f32 %v4468_v42, %v9605_v35  ;;  %v9606_v43 = vld [vmem:[#allocation86_spill] sm:$0xff] }
 0x486   :  { %v4180_v20 = vmul.f32 %v5045_v23, %v8206_v51  ;;  %v4523_v51 = vadd.f32 %v4522_v6, %v4521_v0  ;;  %v9603_v23 = vld [vmem:[#allocation111_spill] sm:$0xff]  ;;  %v4472_v0 = vrot.slane %v4442_v63, %v9476_v34  ;;  %v4506_v59 = vmul.f32 %v4468_v42, %v9606_v43 }
 0x487   :  { %v4499_v28 = vmul.f32 %v4460_v16, %v9603_v23  ;;  %v4476_v13 = vrot.slane %v4444_v55, %v9476_v34  ;;  %v4540_v12 = vadd.f32 %v4539_v11, %v4538_v22  ;;  %v4526_v63 = vsel %vm936_vm0, %v4505_v48, 0.0  ;;  %v9610_v23 = vld [vmem:[#allocation92_spill] sm:$0xff]  ;;  %v9611_v22 = vld [vmem:[#allocation97_spill] sm:$0xff] }
 0x488   :  { %v8375_v62 = vadd.f32 %v4181_v61, %v4180_v20  ;;  %v4565_v61 = vsel %vm936_vm0, %v4496_v27, 0.0  ;;  %v4524_v20 = vsel %vm936_vm0, %v4501_v31, 0.0  ;;  %v4567_v31 = vsel %vm936_vm0, %v4500_v47, 0.0  ;;  %v9608_v27 = vld [vmem:[#allocation116_spill] sm:$0xff] }
 0x489   :  { %v4566_v46 = vadd.f32 %v4565_v61, %v4564_v36  ;;  %v4525_v10 = vadd.f32 %v4524_v20, %v4523_v51  ;;  %v4552_v4 = vsel %vm936_vm0, %v4499_v28, 0.0  ;;  %v4504_v6 = vmul.f32 %v4464_v56, %v9608_v27  ;;  %v9609_v36 = vld [vmem:[#allocation91_spill] sm:$0xff]  ;;  %v5047_v28 = vpop.eup %5046  ;;  %v9613_v11 = vld [vmem:[#allocation120_spill] sm:$0xff] }
 0x48a   :  { %5048 = vtanh.f32 %v8375_v62  ;;  %v4553_v16 = vadd.f32 %v4552_v4, %v4551_v33  ;;  %v4509_v51 = vmul.f32 %v4472_v0, %v9609_v36  ;;  %v4541_v58 = vsel %vm936_vm0, %v4506_v59, 0.0  ;;  %v9612_v20 = vld [vmem:[#allocation119_spill] sm:$0xff] }
 0x48b   :  { %v4568_v49 = vadd.f32 %v4567_v31, %v4566_v46  ;;  %v4527_v44 = vadd.f32 %v4526_v63, %v4525_v10  ;;  %v4510_v55 = vmul.f32 %v4472_v0, %v9610_v23  ;;  %v4513_v61 = vmul.f32 %v4476_v13, %v9611_v22 }
 0x48c   :  { %v4542_v8 = vadd.f32 %v4541_v58, %v4540_v12  ;;  %v4554_v33 = vsel %vm936_vm0, %v4503_v2, 0.0  ;;  %v4507_v47 = vmul.f32 %v4468_v42, %v9612_v20  ;;  %v4569_v48 = vsel %vm936_vm0, %v4504_v6, 0.0  ;;  %v9614_v12 = vld [vmem:[#allocation98_spill] sm:$0xff] }
 0x48d   :  { %v4555_v56 = vadd.f32 %v4554_v33, %v4553_v16  ;;  %v4508_v43 = vmul.f32 %v4468_v42, %v9613_v11  ;;  %v4528_v46 = vsel %vm936_vm0, %v4509_v51, 0.0  ;;  %v4570_v10 = vadd.f32 %v4569_v48, %v4568_v49  ;;  %v9615_v58 = vld [vmem:[#allocation26_spill] sm:$0xff]  ;;  %v9616_v49 = vld [vmem:[#allocation19_spill] sm:$0xff] }
 0x48e   :  { %v4529_v4 = vadd.f32 %v4528_v46, %v4527_v44  ;;  %v4543_v41 = vsel %vm936_vm0, %v4510_v55, 0.0  ;;  %v4530_v31 = vsel %vm936_vm0, %v4513_v61, 0.0  ;;  %v4514_v27 = vmul.f32 %v4476_v13, %v9614_v12 }
 0x48f   :  { %v4544_v2 = vadd.f32 %v4543_v41, %v4542_v8  ;;  %v4556_v63 = vsel %vm936_vm0, %v4507_v47, 0.0  ;;  %v4571_v42 = vsel %vm936_vm0, %v4508_v43, 0.0  ;;  %v4511_v51 = vmul.f32 %v4472_v0, %v9615_v58  ;;  %v9618_v43 = vld [vmem:[#allocation124_spill] sm:$0xff] }
 0x490   :  { %v4557_v6 = vadd.f32 %v4556_v63, %v4555_v56  ;;  %v4512_v23 = vmul.f32 %v4472_v0, %v9616_v49  ;;  %v4572_v44 = vadd.f32 %v4571_v42, %v4570_v10  ;;  %v4545_v8 = vsel %vm936_vm0, %v4514_v27, 0.0  ;;  %v9617_v0 = vld [vmem:[#allocation123_spill] sm:$0xff] }
 0x491   :  { %v4546_v33 = vadd.f32 %v4545_v8, %v4544_v2  ;;  %v4558_v56 = vsel %vm936_vm0, %v4511_v51, 0.0  ;;  %v4515_v11 = vmul.f32 %v4476_v13, %v9617_v0  ;;  %v4516_v46 = vmul.f32 %v4476_v13, %v9618_v43 }
 0x492   :  { %v4573_v48 = vsel %vm936_vm0, %v4512_v23, 0.0  ;;  %v4559_v10 = vadd.f32 %v4558_v56, %v4557_v6  ;;  %v9619_v56 = vld [vmem:[#allocation100_spill] sm:$0xff] }
 0x493   :  { %v4575_v13 = vsel %vm936_vm0, %v4516_v46, 0.0 }
 0x494   :  { %v5049_v35 = vpop.eup %5048 }
 0x495   :  { %v4184_v59 = vmul.f32 %v5049_v35, %v5047_v28  ;;  %v4531_v28 = vadd.f32 %v4530_v31, %v4529_v4 }
 0x497   :  { %v4186_v36 = vcombine.high %v4184_v59, %v4184_v59  ;;  %v4193_v16 = vrot.slane %v4184_v59, %v9473_v21  ;;  %v4574_v59 = vadd.f32 %v4573_v48, %v4572_v44  ;;  %v8425_v27 = vadd.f32 %v4531_v28, %v9582_v52  ;;  %v9620_v48 = vld [vmem:[#allocation90_spill] sm:$0xff] }
 0x499   :  { %v4200_v55 = vrot.slane %v4186_v36, %v9473_v21  ;;  %v4201_v22 = vcombine.high %v4193_v16, %v4193_v16  ;;  %v4209_v61 = vrot.slane %v4193_v16, %v9473_v21  ;;  %v8429_v36 = vadd.f32 %v4546_v33, %v9584_v17 }
 0x49a   :  { %v4560_v16 = vsel %vm936_vm0, %v4515_v11, 0.0  ;;  %v8433_v42 = vadd.f32 %v4575_v13, %v4574_v59  ;;  %v9621_v11 = vld [vmem:[#allocation103_spill] sm:$0xff] }
 0x49b   :  { %v4202_v20 = vcombine.high %v4200_v55, %v4200_v55  ;;  %v4216_v47 = vrot.slane %v4200_v55, %v9473_v21  ;;  %v4223_v35 = vrot.slane %v4201_v22, %v9473_v21  ;;  %v4231_v41 = vcombine.high %v4209_v61, %v4209_v61 }
 0x49c   :  { %v4238_v12 = vrot.slane %v4209_v61, %v9476_v34  ;;  %v8437_v51 = vadd.f32 %v4560_v16, %v4559_v10 }
 0x49d   :  { %v4230_v4 = vrot.slane %v4202_v20, %v9473_v21  ;;  %v4233_v31 = vcombine.high %v4223_v35, %v4223_v35  ;;  %v4232_v2 = vcombine.high %v4216_v47, %v4216_v47  ;;  %v4242_v63 = vrot.slane %v4223_v35, %v9476_v34 }
 0x49e   :  { %v4246_v21 = vrot.slane %v4231_v41, %v9476_v34  ;;  %v4254_v58 = vrot.slane %v4216_v47, %v9476_v34  ;;  %v4581_v17 = vmul.f32 %v4238_v12, %v9569_v38  ;;  %v4582_v23 = vmul.f32 %v4238_v12, %v9572_v1 }
 0x49f   :  { %v4234_v6 = vcombine.high %v4230_v4, %v4230_v4  ;;  %v4250_v52 = vrot.slane %v4233_v31, %v9476_v34  ;;  %v4258_v49 = vrot.slane %v4230_v4, %v9476_v34  ;;  %v8444_v44 = vrot.slane %v4232_v2, %v9476_v34  ;;  %v9622_v4 = vld [vmem:[#allocation104_spill] sm:$0xff] }
 0x4a0   :  { %v4583_v55 = vmul.f32 %v4238_v12, %v9483_v30  ;;  %v4584_v22 = vmul.f32 %v4238_v12, %v9499_v25  ;;  %v4585_v61 = vmul.f32 %v4242_v63, %v9570_v24  ;;  %v4586_v8 = vmul.f32 %v4242_v63, %v9573_v50 }
 0x4a1   :  { %v8450_v28 = vrot.slane %v4234_v6, %v9476_v34  ;;  %v4587_v33 = vmul.f32 %v4242_v63, %v9482_v37  ;;  %v4588_v38 = vmul.f32 %v4242_v63, %v9495_v18  ;;  %v4589_v1 = vmul.f32 %v4246_v21, %v9571_v45  ;;  %v9623_v63 = vld [vmem:[#allocation134_spill] sm:$0xff] }
 0x4a2   :  { %v4590_v20 = vmul.f32 %v4246_v21, %v9575_v26  ;;  %v4591_v47 = vmul.f32 %v4246_v21, %v9546_v3  ;;  %v4592_v30 = vmul.f32 %v4246_v21, %v9547_v7  ;;  %v4593_v25 = vmul.f32 %v4250_v52, %v9574_v19 }
 0x4a3   :  { %v4594_v24 = vmul.f32 %v4250_v52, %v9577_v54  ;;  %v4595_v35 = vmul.f32 %v4250_v52, %v9550_v39  ;;  %v4596_v50 = vmul.f32 %v4250_v52, %v9551_v53  ;;  %v4597_v37 = vmul.f32 %v4254_v58, %v9576_v29 }
 0x4a4   :  { %v4598_v18 = vmul.f32 %v4254_v58, %v9578_v60  ;;  %v4599_v45 = vmul.f32 %v4254_v58, %v9554_v14  ;;  %v4600_v26 = vmul.f32 %v4254_v58, %v9555_v9  ;;  %v4601_v3 = vmul.f32 %v4258_v49, %v9556_v40 }
 0x4a5   :  { %v4602_v7 = vmul.f32 %v4258_v49, %v9580_v15  ;;  %v4613_v19 = vsel %vm936_vm0, %v4581_v17, 0.0  ;;  %v4614_v54 = vsel %vm936_vm0, %v4585_v61, 0.0  ;;  %v4603_v39 = vmul.f32 %v4258_v49, %v9558_v5 }
 0x4a6   :  { %v4604_v53 = vmul.f32 %v4258_v49, %v9568_v57  ;;  %v4605_v29 = vmul.f32 %v8444_v44, %v9579_v32  ;;  %v4615_v60 = vadd.f32 %v4614_v54, %v4613_v19  ;;  %v4606_v14 = vmul.f32 %v8444_v44, %v9619_v56 }
 0x4a7   :  { %v4616_v9 = vsel %vm936_vm0, %v4589_v1, 0.0  ;;  %v4628_v40 = vsel %vm936_vm0, %v4582_v23, 0.0  ;;  %v4629_v15 = vsel %vm936_vm0, %v4586_v8, 0.0  ;;  %v4607_v0 = vmul.f32 %v8444_v44, %v9620_v48 }
 0x4a8   :  { %v4609_v5 = vmul.f32 %v8450_v28, %v9621_v11  ;;  %v4617_v57 = vadd.f32 %v4616_v9, %v4615_v60  ;;  %v4630_v43 = vadd.f32 %v4629_v15, %v4628_v40  ;;  %v4618_v32 = vsel %vm936_vm0, %v4593_v25, 0.0  ;;  %v9624_v15 = vld [vmem:[#allocation89_spill] sm:$0xff] }
 0x4a9   :  { %v4631_v46 = vsel %vm936_vm0, %v4590_v20, 0.0  ;;  %v4643_v10 = vsel %vm936_vm0, %v4583_v55, 0.0  ;;  %v4644_v59 = vsel %vm936_vm0, %v4587_v33, 0.0  ;;  %v4610_v41 = vmul.f32 %v8450_v28, %v9622_v4 }
 0x4aa   :  { %v4619_v31 = vadd.f32 %v4618_v32, %v4617_v57  ;;  %v4632_v12 = vadd.f32 %v4631_v46, %v4630_v43  ;;  %v4645_v2 = vadd.f32 %v4644_v59, %v4643_v10  ;;  %v4611_v16 = vmul.f32 %v8450_v28, %v9623_v63  ;;  %v9625_v43 = vld [vmem:[#allocation54_spill] sm:$0xff] }
 0x4ab   :  { %v4620_v13 = vsel %vm936_vm0, %v4597_v37, 0.0  ;;  %v4633_v6 = vsel %vm936_vm0, %v4594_v24, 0.0  ;;  %v4646_v21 = vsel %vm936_vm0, %v4591_v47, 0.0  ;;  %v4622_v52 = vsel %vm936_vm0, %v4601_v3, 0.0  ;;  %v9626_v32 = vld [vmem:[#allocation74_spill] sm:$0xff] }
 0x4ac   :  { %v4621_v58 = vadd.f32 %v4620_v13, %v4619_v31  ;;  %v4634_v49 = vadd.f32 %v4633_v6, %v4632_v12  ;;  %v4647_v17 = vadd.f32 %v4646_v21, %v4645_v2  ;;  %v4635_v23 = vsel %vm936_vm0, %v4598_v18, 0.0  ;;  %v9627_v2 = vld [vmem:[#allocation48_spill] sm:$0xff] }
 0x4ad   :  { %v4648_v55 = vsel %vm936_vm0, %v4595_v35, 0.0  ;;  %v4658_v61 = vsel %vm936_vm0, %v4584_v22, 0.0  ;;  %v4659_v8 = vsel %vm936_vm0, %v4588_v38, 0.0  ;;  %v4624_v24 = vsel %vm936_vm0, %v4605_v29, 0.0 }
 0x4ae   :  { %v4623_v33 = vadd.f32 %v4622_v52, %v4621_v58  ;;  %v4636_v1 = vadd.f32 %v4635_v23, %v4634_v49  ;;  %v4649_v20 = vadd.f32 %v4648_v55, %v4647_v17  ;;  %v4660_v25 = vadd.f32 %v4659_v8, %v4658_v61 }
 0x4af   :  { %v4637_v47 = vsel %vm936_vm0, %v4602_v7, 0.0  ;;  %v4650_v37 = vsel %vm936_vm0, %v4599_v45, 0.0  ;;  %v4661_v3 = vsel %vm936_vm0, %v4592_v30, 0.0  ;;  %v4626_v22 = vsel %vm936_vm0, %v4609_v5, 0.0 }
 0x4b0   :  { %v4625_v19 = vadd.f32 %v4624_v24, %v4623_v33  ;;  %v4638_v18 = vadd.f32 %v4637_v47, %v4636_v1  ;;  %v4651_v54 = vadd.f32 %v4650_v37, %v4649_v20  ;;  %v4662_v35 = vadd.f32 %v4661_v3, %v4660_v25  ;;  %v4704_v20 = vpop.permute.xlu1 %4703 }
 0x4b1   :  { %v4639_v38 = vsel %vm936_vm0, %v4606_v14, 0.0  ;;  %v4652_v60 = vsel %vm936_vm0, %v4603_v39, 0.0  ;;  %v4663_v56 = vsel %vm936_vm0, %v4596_v50, 0.0  ;;  %v4608_v45 = vmul.f32 %v8444_v44, %v9624_v15 }
 0x4b2   :  { %v4627_v9 = vadd.f32 %v4626_v22, %v4625_v19  ;;  %v4640_v29 = vadd.f32 %v4639_v38, %v4638_v18  ;;  %v4653_v40 = vadd.f32 %v4652_v60, %v4651_v54  ;;  %v4664_v7 = vadd.f32 %v4663_v56, %v4662_v35  ;;  %v4717_v19 = vpop.permute.xlu0 %4716 }
 0x4b3   :  { %v4641_v30 = vsel %vm936_vm0, %v4610_v41, 0.0  ;;  %v4654_v48 = vsel %vm936_vm0, %v4607_v0, 0.0  ;;  %v4665_v11 = vsel %vm936_vm0, %v4600_v26, 0.0  ;;  %v4579_v50 = vadd.f32 %v8437_v51, %v9625_v43 }
 0x4b4   :  { %v4642_v5 = vadd.f32 %v4641_v30, %v4640_v29  ;;  %v4655_v57 = vadd.f32 %v4654_v48, %v4653_v40  ;;  %v4666_v14 = vadd.f32 %v4665_v11, %v4664_v7  ;;  %v4673_v39 = vadd.f32 %v4627_v9, %v8425_v27 }
 0x4b5   :  { %v4612_v46 = vmul.f32 %v8450_v28, %v9626_v32  ;;  %v4656_v10 = vsel %vm936_vm0, %v4611_v16, 0.0  ;;  %v4667_v44 = vsel %vm936_vm0, %v4604_v53, 0.0  ;;  %v4669_v41 = vsel %vm936_vm0, %v4608_v45, 0.0 }
 0x4b6   :  { %v4657_v59 = vadd.f32 %v4656_v10, %v4655_v57  ;;  %v4668_v4 = vadd.f32 %v4667_v44, %v4666_v14  ;;  %v4674_v0 = vadd.f32 %v4642_v5, %v8429_v36  ;;  %v4799_v26 = vmul.f32 -1.442695, %v4673_v39 }
 0x4b7   :  { %v4671_v51 = vsel %vm936_vm0, %v4612_v46, 0.0  ;;  %v4580_v28 = vadd.f32 %v8433_v42, %v9627_v2  ;;  %v4722_v35 = vrot.slane %v4717_v19, %v9476_v34 }
 0x4b8   :  { %v4670_v31 = vadd.f32 %v4669_v41, %v4668_v4  ;;  %v4675_v12 = vadd.f32 %v4657_v59, %v4579_v50  ;;  %5050 = vpow2.f32 %v4799_v26  ;;  %v4800_v27 = vmul.f32 -1.442695, %v4674_v0 }
 0x4ba   :  { %v4672_v63 = vadd.f32 %v4671_v51, %v4670_v31  ;;  %5052 = vpow2.f32 %v4800_v27  ;;  %v4801_v53 = vmul.f32 -1.442695, %v4675_v12 }
 0x4bc   :  { %v4676_v16 = vadd.f32 %v4672_v63, %v4580_v28  ;;  %5054 = vpow2.f32 %v4801_v53 }
 0x4be   :  { %5056 = vtanh.f32 %v4676_v16 }
 0x4c2   :  { %v5051_v13 = vpop.eup %5050 }
 0x4c3   :  { %v4686_v6 = vadd.f32 1.0, %v5051_v13 }
 0x4c4   :  { %v5053_v36 = vpop.eup %5052 }
 0x4c5   :  { %v4687_v21 = vadd.f32 1.0, %v5053_v36  ;;  %5058 = vrcp.f32 %v4686_v6 }
 0x4c6   :  { %v5055_v58 = vpop.eup %5054 }
 0x4c7   :  { %5060 = vrcp.f32 %v4687_v21  ;;  %v4688_v55 = vadd.f32 1.0, %v5055_v58 }
 0x4c8   :  { %v5057_v52 = vpop.eup %5056 }
 0x4c9   :  { %5062 = vrcp.f32 %v4688_v55 }
 0x4cf   :  { %v5059_v49 = vpop.eup %5058 }
 0x4d0   :  { %v4697_v17 = vmul.f32 %v5059_v49, %v5057_v52 }
 0x4d1   :  { %v5061_v23 = vpop.eup %5060 }
 0x4d2   :  { %v4696_v42 = vmul.f32 %v5061_v23, %v8375_v62 }
 0x4d3   :  { %v5063_v8 = vpop.eup %5062 }
 0x4d4   :  { %v4698_v61 = vadd.f32 %v4697_v17, %v4696_v42 }
 0x4d6   :  { %5064 = vtanh.f32 %v4698_v61  ;;  %4803 = vst.msk [vmem:[%s8559_s11 + $0x8] sm:$0xff] %vm936_vm0, %v4698_v61  ;;  %s4738_s11 = sshll.u32 %s5092_s12, 4  ;;  %s4739_s11 = int_to_ptr.vmem [resolvable:$true] %s4738_s11 }
 0x4d7   :  { %s5066_s13 = scalar_lea.vmem %s4739_s11, 16  ;;  %p5071_p1 = scmp.lt.s32.totalorder %s4739_s11, %s4739_s11 }
 0x4d8   :  { %p5067_p0 = scmp.ne.s32.totalorder %s4739_s11, %s5066_s13 }
 0x4e0   :  { %v5065_v33 = vpop.eup %5064 }
 0x4e1   :  { %v4700_v1 = vmul.f32 %v5065_v33, %v5063_v8 }
 0x4e3   :  { %v4706_v25 = vmul.f32 %v4704_v20, %v4700_v1  ;;  %4802 = vst.msk [vmem:[%s8558_s10 + $0x8] sm:$0xff] %vm936_vm0, %v4700_v1  ;;  %s5070_s10 = scalar_lea.vmem %s4739_s11, 32 }
 0x4e4   :  { %p5072_p2 = scmp.lt.s32.totalorder %s5070_s10, %s5066_s13 }
 0x4e5   :  { %v4707_v62 = vsel %vm936_vm0, %v4706_v25, 0.0 }
 0x4e6   :  { %v4708_v24 = vrot.slane %v4707_v62, 4  ;;  %p5073_p3 = por %p5072_p2, %p5071_p1 }
 0x4e8   :  { %v4709_v47 = vadd.f32 %v4708_v24, %v4707_v62  ;;  %p5074_p4 = pnand %p5073_p3, %p5067_p0 }
 0x4ea   :  { %v4710_v37 = vrot.slane %v4709_v47, 2 }
 0x4ec   :  { %v4711_v3 = vadd.f32 %v4710_v37, %v4709_v47 }
 0x4ee   :  { %v4712_v18 = vrot.slane %v4711_v3, 1 }
 0x4f0   :  { %v4713_v54 = vadd.f32 %v4712_v18, %v4711_v3 }
 0x4f2   :  { %v4723_v22 = vadd.f32 %v4722_v35, %v4713_v54 }
 0x4f4   :  { %4725 = vst.msk [vmem:[#allocation3] sm:$0x1] %vm4724_vm1, %v4723_v22 }
 0x4f5   :  { %5077 = shalt.err (!%p5074_p4)
}
 0x4f6   :  { %s5078_s16 = scalar_lea.hbm %s8557_s9, 16 }
 0x4f7   :  { %p5079_p5 = scmp.ne.s32.totalorder %s8557_s9, %s5078_s16  ;;  %p5082_p6 = scmp.lt.u32.totalorder %s5078_s16, %s8557_s9 }
 0x4f9   :  { %p5084_p7 = pnand %p5082_p6, %p5079_p5 }
 0x4fb   :  { %5087 = shalt.err (!%p5084_p7)
}
 0x4fc   :  { %4741 = dma.vmem_to_hbm [thread:$0]  %s4739_s11, 16, %s8557_s9, [#allocation4]  }
 0x4fd   :  { %5088 = dma.done.wait [#allocation4], 16  }
 0x4fe   :  { %5089 = vsyncadd [#allocation4], 4294967280 }
 0x4ff   :  { %4753 = vsyncpa [#allocation4], 1 }

</bundles_post_ra>
